<compile_context>
chip_gen: v7x
topology: tpu7x:2x2x1
jax: 0.10.0
libtpu: 0.0.40
codegen_flags: <defaults>
</compile_context>

<pallas_src>
from functools import partial

import numpy as np
import jax
import jax.numpy as jnp
from jax import lax
from jax.experimental import pallas as pl
from jax.experimental.pallas import tpu as pltpu

P = 128          # pitch_range (required by the hard-coded 144 = 128 + 16 channels)
H_IN = 16        # prev_x height
Z_DIM = 100
NEG_INF = -1e30


def _bit_reversal_perm(n):
    bits = n.bit_length() - 1
    return np.array([int(format(i, f"0{bits}b")[::-1], 2) for i in range(n)],
                    dtype=np.int32)


# ----------------------------------------------------------------------------------
# Kernel
# ----------------------------------------------------------------------------------
def make_kernel(tb: int, use_attention: bool):
    f32 = jnp.float32
    bf16 = jnp.bfloat16

    def dotf(a, b):
        return jnp.dot(a, b, preferred_element_type=f32)

    def lrelu(x):            # leaky_relu(x, 0.2)
        return jnp.maximum(x, 0.2 * x)

    def relu(x):
        return jnp.maximum(x, 0.0)

    def same_batch_mask(m):
        # rows i, j belong to the same batch element iff i % tb == j % tb;
        # tb is a power of two so the mod is a bitwise AND (cheap VPU iota work,
        # replaces the HBM-fed f32 (M, M) mask inputs of rev 2).
        ri = lax.broadcasted_iota(jnp.int32, (m, m), 0)
        ci = lax.broadcasted_iota(jnp.int32, (m, m), 1)
        return (ri & (tb - 1)) == (ci & (tb - 1))

    def kernel(h1img_ref, prev_ref, cond_ref, w_dec_m_ref, w_dec_c_ref,
               w_d4_m_ref, w_d4_c_ref, w_attn_ref, bias_ref, out_ref):

        # ---- unpack the consolidated bias array (one bias per row) ----
        def brow(i, width):
            return bias_ref[i:i + 1, 0:width]                  # (1, width) f32

        b_d1 = brow(0, P); b_d2 = brow(1, P); b_d3 = brow(2, P)
        gamma = brow(3, 1)
        b_q = brow(4, 128); b_k = brow(5, 128); b_v = brow(6, 144)
        b_h0p = brow(7, 16); b_h1p = brow(8, 16)
        b_h2p = brow(9, 16); b_h3p = brow(10, 16)

        def pair_conv(x, r0, b):
            # Conv2d(16->16, k=(2,1), stride=(2,2)) in the bit-reversed row layout:
            # natural rows (2j, 2j+1) sit at the same index of the top / bottom halves.
            m = x.shape[0] // 2
            xb = x.astype(bf16)
            return (dotf(xb[:m, :], cond_ref[r0:r0 + 16, :])
                    + dotf(xb[m:, :], cond_ref[r0 + 16:r0 + 32, :]) + b)

        def deconv(h, p, idx, b):
            # ConvTranspose2d(144->128, k=(2,1), stride=(2,2)); the 144 input channels
            # are carried as the (h: 128ch, p: 16ch) pair so no concat is materialized.
            # Output stays in the bit-reversed row layout "[kh=0 rows ; kh=1 rows]".
            w_m = w_dec_m_ref[idx * 128:(idx + 1) * 128, :]     # (128, 256) bf16
            w_c = w_dec_c_ref[idx * 16:(idx + 1) * 16, :]       # (16, 256) bf16
            y = dotf(h.astype(bf16), w_m) + dotf(p.astype(bf16), w_c)   # (M, 256) f32
            return jnp.concatenate([y[:, 0:P], y[:, P:2 * P]], axis=0) + b

        def self_attn(h, p):
            # SAGAN Self_Attn over the spatial rows of each batch element.  Batch
            # elements are kept apart with an in-kernel iota mask on the score matrix.
            # Q/K/V come from ONE fused dot; the q/k column blocks are zero-padded to
            # 128 lanes (zero weights + zero bias), so contracting over the full 128
            # lanes is exact and no misaligned slice is needed.
            hb = h.astype(bf16)
            pb = p.astype(bf16)
            qkv = dotf(hb, w_attn_ref[0:128, :]) + dotf(pb, w_attn_ref[128:144, :])
            q = (qkv[:, 0:128] + b_q).astype(bf16)              # lanes >= 18 are 0
            k = (qkv[:, 128:256] + b_k).astype(bf16)            # lanes >= 18 are 0
            v = qkv[:, 256:400] + b_v                           # (M, 144) f32
            s = lax.dot_general(q, k, (((1,), (1,)), ((), ())),
                                preferred_element_type=f32)     # (M, M)
            s = jnp.where(same_batch_mask(h.shape[0]), s, NEG_INF)
            s = s - jnp.max(s, axis=-1, keepdims=True)
            e = jnp.exp(s)
            inv = pl.reciprocal(jnp.sum(e, axis=-1, keepdims=True), approx=True)
            a = (e * inv).astype(bf16)
            av = dotf(a, v.astype(bf16))                        # (M, 144) f32
            return gamma * av[:, 0:P] + h, gamma * av[:, P:144] + p

        # -------- conditioning ("prev") tower; rows arrive in bit-reversed order --------
        xp = prev_ref[0]                                        # (16*tb, 128) bf16
        h0p = lrelu(dotf(xp, cond_ref[0:128, :]) + b_h0p)       # (16*tb, 16) f32
        h1p = lrelu(pair_conv(h0p, 128, b_h1p))                 # (8*tb, 16)
        h2p = lrelu(pair_conv(h1p, 160, b_h2p))                 # (4*tb, 16)
        h3p = lrelu(pair_conv(h2p, 192, b_h3p))                 # (2*tb, 16)

        # -------- generator stack; the z-tower image h1_img was hoisted to the host --------
        h1_img = h1img_ref[0]                                   # (2*tb, 128) bf16
        h2 = relu(deconv(h1_img, h3p, 0, b_d1))                 # (4*tb, 128)
        h2m, h2c = self_attn(h2, h2p) if use_attention else (h2, h2p)
        h3 = relu(deconv(h2m, h2c, 1, b_d2))                    # (8*tb, 128)
        h4 = relu(deconv(h3, h1p, 2, b_d3))                     # (16*tb, 128)
        # torch forward calls self.attn1 for this site as well (attn2 unused)
        h4m, h4c = self_attn(h4, h0p) if use_attention else (h4, h0p)

        # final ConvTranspose2d(144->1, k=(1,P), stride=(1,2)).  The sigmoid and the
        # scalar bias are dropped: the only consumer is the argmax-based one_hot().
        logits = (dotf(h4m.astype(bf16), w_d4_m_ref[...])
                  + dotf(h4c.astype(bf16), w_d4_c_ref[...]))    # (16*tb, 128) f32

        # one_hot(): 1.0 at the first argmax along the pitch axis
        col = lax.broadcasted_iota(jnp.int32, logits.shape, 1)
        mx = jnp.max(logits, axis=-1, keepdims=True)
        idx = jnp.min(jnp.where(logits == mx, col, logits.shape[-1]),
                      axis=-1, keepdims=True)
        out_ref[0] = (col == idx).astype(out_ref.dtype)

    return kernel


# ----------------------------------------------------------------------------------
# Parameters: torch-layout synthetic params + host-side repack for the kernel
# ----------------------------------------------------------------------------------
def init_torch_params(key, pitch_range=P):
    """Deterministic synthetic parameters with the exact torch shapes of sampling()."""
    keys = iter(jax.random.split(key, 64))

    def nrm(shape, scale=0.08):
        return (scale * jax.random.normal(next(keys), shape)).astype(jnp.float32)

    t = {}
    t["h0_prev.w"] = nrm((16, 1, 1, pitch_range)); t["h0_prev.b"] = nrm((16,))
    for n in ("h1_prev", "h2_prev", "h3_prev"):
        t[f"{n}.w"] = nrm((16, 16, 2, 1)); t[f"{n}.b"] = nrm((16,))
    t["linear1.w"] = nrm((1024, 100)); t["linear1.b"] = nrm((1024,))
    t["linear2.w"] = nrm((256, 1024)); t["linear2.b"] = nrm((256,))
    for n in ("h1", "h2", "h3"):
        t[f"{n}.w"] = nrm((144, pitch_range, 2, 1)); t[f"{n}.b"] = nrm((pitch_range,))
    t["h4.w"] = nrm((144, 1, 1, pitch_range)); t["h4.b"] = nrm((1,))
    t["attn1.q.w"] = nrm((18, 144, 1, 1)); t["attn1.q.b"] = nrm((18,))
    t["attn1.k.w"] = nrm((18, 144, 1, 1)); t["attn1.k.b"] = nrm((18,))
    t["attn1.v.w"] = nrm((144, 144, 1, 1)); t["attn1.v.b"] = nrm((144,))
    # torch initializes gamma to 0 (attention would be a no-op); use nonzero here.
    t["attn1.gamma"] = jnp.float32(0.5)
    return t


def pack_params(t):
    """Host-side repack: (in,out) transposes, layout permutations folded in, tiny tensors
    packed into a few contiguous arrays, all MXU weights cast to bf16."""
    f32, bf16 = jnp.float32, jnp.bfloat16

    # conditioning-tower weight pack: (224, 16) bf16
    rows = [jnp.transpose(t["h0_prev.w"][:, 0, 0, :])]               # rows   0:128
    for n in ("h1_prev", "h2_prev", "h3_prev"):                      # rows 128:224
        rows.append(jnp.transpose(t[f"{n}.w"][:, :, 0, 0]))          #   kh=0 (16,16)
        rows.append(jnp.transpose(t[f"{n}.w"][:, :, 1, 0]))          #   kh=1 (16,16)
    cond = jnp.concatenate(rows, axis=0).astype(bf16)

    # z tower (runs on the host as two full-batch XLA dots), bf16 weights / f32 biases
    w_l1 = jnp.transpose(t["linear1.w"]).astype(bf16)                # (100, 1024)
    # permute linear2 columns so the output is already the (H=2, C=128) image of
    # .view(B, 128, 2, 1): cols [0:128] -> image row h=0, cols [128:256] -> h=1.
    perm2 = jnp.concatenate([jnp.arange(0, 256, 2), jnp.arange(1, 256, 2)])
    w_l2 = jnp.transpose(t["linear2.w"])[:, perm2].astype(bf16)      # (1024, 256)
    b_l2 = t["linear2.b"][perm2].astype(f32)

    # deconv stack split at K = 128 (main) / 16 (cond-concat) input channels:
    #   main (3*128, 256), cond (3*16, 256); columns = [kh=0 | kh=1] output blocks.
    dec_m, dec_c = [], []
    for n in ("h1", "h2", "h3"):
        w = t[f"{n}.w"]                                              # (144, 128, 2, 1)
        blk = jnp.concatenate([w[:, :, 0, 0], w[:, :, 1, 0]], axis=1)
        dec_m.append(blk[0:128, :])
        dec_c.append(blk[128:144, :])
    w_dec_main = jnp.concatenate(dec_m, axis=0).astype(bf16)         # (384, 256)
    w_dec_cond = jnp.concatenate(dec_c, axis=0).astype(bf16)         # (48, 256)

    # final 144->128 dense, split the same way, bf16
    w_d4 = t["h4.w"][:, 0, 0, :]                                     # (144, 128)
    w_d4_main = w_d4[0:128, :].astype(bf16)
    w_d4_cond = w_d4[128:144, :].astype(bf16)

    # attention (attn1 used at BOTH sites): fused (144, 400) pack, q at 0:18,
    # k at 128:146, v at 256:400.  Columns 18:128 and 146:256 are exact zeros so the
    # kernel can contract over whole 128-lane q/k blocks without misaligned slicing.
    wq = jnp.transpose(t["attn1.q.w"][:, :, 0, 0])                   # (144, 18)
    wk = jnp.transpose(t["attn1.k.w"][:, :, 0, 0])                   # (144, 18)
    wv = jnp.transpose(t["attn1.v.w"][:, :, 0, 0])                   # (144, 144)
    w_attn = jnp.zeros((144, 400), f32)
    w_attn = w_attn.at[:, 0:18].set(wq).at[:, 128:146].set(wk).at[:, 256:400].set(wv)
    w_attn = w_attn.astype(bf16)

    # bias pack: one (zero-padded) bias per row, (11, 256) f32
    def row(v):
        v = jnp.asarray(v, f32).reshape(-1)
        return jnp.pad(v, (0, 256 - v.shape[0]))[None, :]

    bias_pack = jnp.concatenate([
        row(t["h1.b"]), row(t["h2.b"]), row(t["h3.b"]),
        row(t["attn1.gamma"]),
        row(t["attn1.q.b"]), row(t["attn1.k.b"]), row(t["attn1.v.b"]),
        row(t["h0_prev.b"]), row(t["h1_prev.b"]),
        row(t["h2_prev.b"]), row(t["h3_prev.b"]),
    ], axis=0)

    return {"cond": cond,
            "w_l1": w_l1, "b_l1": t["linear1.b"].astype(f32),
            "w_l2": w_l2, "b_l2": b_l2,
            "w_dec_main": w_dec_main, "w_dec_cond": w_dec_cond,
            "w_d4_main": w_d4_main, "w_d4_cond": w_d4_cond,
            "w_attn": w_attn, "bias": bias_pack}


# ----------------------------------------------------------------------------------
# Wrapper
# ----------------------------------------------------------------------------------
def _pick_tile(batch, max_tile, min_grid):
    """Largest power-of-two tile <= max_tile dividing `batch`, honouring min_grid steps."""
    tb = 1
    while tb * 2 <= max_tile and batch % (tb * 2) == 0:
        tb *= 2
    while tb > 1 and batch // tb < min_grid:
        tb //= 2
    return tb


@partial(jax.jit, static_argnames=("attention", "max_tile_batch", "min_grid"))
def run_sampling(z, prev_x, packed, *, attention=True, max_tile_batch=16, min_grid=1):
    """z: (B, 100); prev_x: (B, 1, 16, 128) NCHW. Returns one-hot (B, 1, 16, 128) f32.

    max_tile_batch=16 gives M = 16*tb = 256 rows per step (fills the v6e/v7x 256x256
    MXU); pass 8 on v5e (128x128 MXU).  v7x callers should pass min_grid=2 (and use
    B >= 2*tb) so both TensorCores receive steps of the "parallel" grid axis.
    """
    B = z.shape[0]
    tb = _pick_tile(B, max_tile_batch, min_grid)
    G = B // tb
    M16 = 16 * tb
    bf16, f32 = jnp.bfloat16, jnp.float32

    perm = jnp.asarray(_bit_reversal_perm(16))
    inv_perm = jnp.argsort(perm)

    # ---- hoisted z-tower: two full-batch (M = B) dots instead of M = tb per step ----
    h0 = jnp.maximum(jnp.dot(z.astype(bf16), packed["w_l1"],
                             preferred_element_type=f32) + packed["b_l1"], 0.0)
    h1 = jnp.maximum(jnp.dot(h0.astype(bf16), packed["w_l2"],
                             preferred_element_type=f32) + packed["b_l2"], 0.0)
    # cols [0:128] -> image row h=0, [128:256] -> h=1; fold batch: row = h*tb + b
    h1_img = h1.reshape(G, tb, 2, P).transpose(0, 2, 1, 3).reshape(G, 2 * tb, P)
    h1_img = h1_img.astype(bf16)

    # prev rows -> bit-reversed order, batch folded along sublanes: row = h*tb + b
    prev = prev_x.reshape(B, 16, P).astype(f32)[:, perm, :]
    prev = prev.reshape(G, tb, 16, P).transpose(0, 2, 1, 3).reshape(G, M16, P)
    prev = prev.astype(bf16)

    const_params = [packed["cond"], packed["w_dec_main"], packed["w_dec_cond"],
                    packed["w_d4_main"], packed["w_d4_cond"], packed["w_attn"],
                    packed["bias"]]

    in_specs = [
        pl.BlockSpec((1, 2 * tb, P), lambda g: (g, 0, 0)),
        pl.BlockSpec((1, M16, P), lambda g: (g, 0, 0)),
    ] + [pl.BlockSpec(a.shape, lambda g: (0, 0)) for a in const_params]

    out = pl.pallas_call(
        make_kernel(tb, attention),
        out_shape=jax.ShapeDtypeStruct((G, M16, P), jnp.bfloat16),
        grid_spec=pltpu.PrefetchScalarGridSpec(
            num_scalar_prefetch=0,
            grid=(G,),
            in_specs=in_specs,
            out_specs=pl.BlockSpec((1, M16, P), lambda g: (g, 0, 0)),
        ),
        compiler_params=pltpu.CompilerParams(
            dimension_semantics=("parallel",),
            vmem_limit_bytes=16 * 1024 * 1024,
        ),
    )(h1_img, prev, *const_params)

    # back to natural row order / NCHW, one-hot cast up to f32 on the host
    out = out.reshape(G, 16, tb, P).transpose(0, 2, 1, 3).reshape(B, 16, P)
    out = out[:, inv_perm, :].astype(f32)
    return out.reshape(B, 1, 16, P)


# ----------------------------------------------------------------------------------
# Pure-JAX f32 reference of the torch forward (natural layouts) for validation
# ----------------------------------------------------------------------------------
@partial(jax.jit, static_argnames=("attention",))
def reference_logits(z, prev_x, t, attention=True):
    """Returns the pre-sigmoid logits of self.h4 (sigmoid / scalar bias are
    argmax-equivalent, so comparing argmax against these validates the one-hot)."""
    f32 = jnp.float32
    B = z.shape[0]
    lrelu = lambda v: jnp.where(v >= 0, v, 0.2 * v)
    relu = lambda v: jnp.maximum(v, 0.0)

    xp = prev_x.reshape(B, H_IN, P).astype(f32)
    h0p = lrelu(jnp.einsum("bhw,ow->bho", xp, t["h0_prev.w"][:, 0, 0, :])
                + t["h0_prev.b"])                                     # (B,16,16)

    def prev_conv(h, w, b):
        return lrelu(jnp.einsum("bhc,oc->bho", h[:, 0::2, :], w[:, :, 0, 0])
                     + jnp.einsum("bhc,oc->bho", h[:, 1::2, :], w[:, :, 1, 0]) + b)

    h1p = prev_conv(h0p, t["h1_prev.w"], t["h1_prev.b"])              # (B,8,16)
    h2p = prev_conv(h1p, t["h2_prev.w"], t["h2_prev.b"])              # (B,4,16)
    h3p = prev_conv(h2p, t["h3_prev.w"], t["h3_prev.b"])              # (B,2,16)

    h0 = relu(z.astype(f32) @ t["linear1.w"].T + t["linear1.b"])      # (B,1024)
    h1 = relu(h0 @ t["linear2.w"].T + t["linear2.b"])                 # (B,256)
    h1_img = h1.reshape(B, P, 2).transpose(0, 2, 1)                   # (B,2,128)

    def deconv(xc, w, b):
        y0 = jnp.einsum("bhc,co->bho", xc, w[:, :, 0, 0])
        y1 = jnp.einsum("bhc,co->bho", xc, w[:, :, 1, 0])
        y = jnp.stack([y0, y1], axis=2).reshape(B, 2 * xc.shape[1], w.shape[1])
        return relu(y + b)

    def attn(xc):
        q = jnp.einsum("bnc,oc->bno", xc, t["attn1.q.w"][:, :, 0, 0]) + t["attn1.q.b"]
        k = jnp.einsum("bnc,oc->bno", xc, t["attn1.k.w"][:, :, 0, 0]) + t["attn1.k.b"]
        v = jnp.einsum("bnc,oc->bno", xc, t["attn1.v.w"][:, :, 0, 0]) + t["attn1.v.b"]
        a = jax.nn.softmax(jnp.einsum("bno,bmo->bnm", q, k), axis=-1)
        return t["attn1.gamma"] * jnp.einsum("bnm,bmv->bnv", a, v) + xc

    c1 = jnp.concatenate([h1_img, h3p], axis=-1)                      # (B,2,144)
    h2 = deconv(c1, t["h1.w"], t["h1.b"])                             # (B,4,128)
    c2 = jnp.concatenate([h2, h2p], axis=-1)
    if attention:
        c2 = attn(c2)
    h3 = deconv(c2, t["h2.w"], t["h2.b"])                             # (B,8,128)
    c3 = jnp.concatenate([h3, h1p], axis=-1)
    h4 = deconv(c3, t["h3.w"], t["h3.b"])                             # (B,16,128)
    c4 = jnp.concatenate([h4, h0p], axis=-1)
    if attention:
        c4 = attn(c4)
    return jnp.einsum("bhc,cw->bhw", c4, t["h4.w"][:, 0, 0, :]) + t["h4.b"][0]


if __name__ == "__main__":
    key = jax.random.PRNGKey(0)
    kz, kp, kw = jax.random.split(key, 3)

    B = 16
    z = jax.random.normal(kz, (B, Z_DIM), jnp.float32)
    prev_x = jax.random.normal(kp, (B, 1, H_IN, P), jnp.float32)
    torch_params = init_torch_params(kw)
    packed = pack_params(torch_params)

    # default: tb=16 -> M=256 rows per step (v6e/v7x MXU-sized), grid=(1,)
    g_x = jax.block_until_ready(run_sampling(z, prev_x, packed, attention=True))
    assert g_x.shape == (B, 1, H_IN, P), g_x.shape
    assert g_x.dtype == jnp.float32
    assert bool(jnp.all(jnp.sum(g_x, axis=-1) == 1.0)), "output is not one-hot"

    # attention=False path with tb=8 -> grid=(2,) exercises the pipelined grid (v5e tiling)
    g_x2 = jax.block_until_ready(
        run_sampling(z, prev_x, packed, attention=False, max_tile_batch=8))
    assert bool(jnp.all(jnp.sum(g_x2, axis=-1) == 1.0)), "output is not one-hot"

    # Numerical check vs the pure-JAX f32 reference.  bf16 / approx-reciprocal can flip
    # genuinely near-tied argmaxes, so only rows with a clear top-1 margin must match.
    def check(onehot, logits_ref):
        ref_idx = jnp.argmax(logits_ref, axis=-1)                     # (B, 16)
        got_idx = jnp.argmax(onehot[:, 0], axis=-1)
        top2 = jnp.sort(logits_ref, axis=-1)[..., -2:]
        margin = top2[..., 1] - top2[..., 0]
        clear = margin > 0.25 * (jnp.std(logits_ref, axis=-1) + 1e-6)
        assert float(jnp.mean(clear.astype(jnp.float32))) > 0.25, "reference check vacuous"
        assert bool(jnp.all(jnp.where(clear, ref_idx == got_idx, True))), \
            "kernel argmax disagrees with the f32 reference on clear-margin rows"

    check(g_x, reference_logits(z, prev_x, torch_params, attention=True))
    check(g_x2, reference_logits(z, prev_x, torch_params, attention=False))

    print("KERNEL_OK")
</pallas_src>

<mosaic_0001>
module attributes {stable_mosaic.version = 11 : i64} {
  func.func @kernel(%arg0: i32, %arg1: memref<1x32x128xbf16, #tpu.memory_space<vmem>>, %arg2: memref<1x256x128xbf16, #tpu.memory_space<vmem>>, %arg3: memref<224x16xbf16, #tpu.memory_space<vmem>>, %arg4: memref<384x256xbf16, #tpu.memory_space<vmem>>, %arg5: memref<48x256xbf16, #tpu.memory_space<vmem>>, %arg6: memref<128x128xbf16, #tpu.memory_space<vmem>>, %arg7: memref<16x128xbf16, #tpu.memory_space<vmem>>, %arg8: memref<144x400xbf16, #tpu.memory_space<vmem>>, %arg9: memref<11x256xf32, #tpu.memory_space<vmem>>, %arg10: memref<1x256x128xbf16, #tpu.memory_space<vmem>>) attributes {dimension_semantics = [#tpu.dimension_semantics<parallel>], iteration_bounds = array<i64: 1>, scalar_prefetch = 0 : i64, scratch_operands = 0 : i64, tpu.core_type = #tpu.core_type<tc>, window_params = [{transform_indices = @transform_0, window_bounds = array<i64: 1, 32, 128>}, {transform_indices = @transform_1, window_bounds = array<i64: 1, 256, 128>}, {pipeline_mode = #tpu.pipeline_mode<synchronous>, transform_indices = @transform_2, window_bounds = array<i64: 224, 16>}, {pipeline_mode = #tpu.pipeline_mode<synchronous>, transform_indices = @transform_3, window_bounds = array<i64: 384, 256>}, {pipeline_mode = #tpu.pipeline_mode<synchronous>, transform_indices = @transform_4, window_bounds = array<i64: 48, 256>}, {pipeline_mode = #tpu.pipeline_mode<synchronous>, transform_indices = @transform_5, window_bounds = array<i64: 128, 128>}, {pipeline_mode = #tpu.pipeline_mode<synchronous>, transform_indices = @transform_6, window_bounds = array<i64: 16, 128>}, {pipeline_mode = #tpu.pipeline_mode<synchronous>, transform_indices = @transform_7, window_bounds = array<i64: 144, 400>}, {pipeline_mode = #tpu.pipeline_mode<synchronous>, transform_indices = @transform_8, window_bounds = array<i64: 11, 256>}, {transform_indices = @transform_9, window_bounds = array<i64: 1, 256, 128>}]} {
    %c0 = arith.constant 0 : index
    %c0_0 = arith.constant 0 : index
    %0 = vector.load %arg9[%c0, %c0_0] : memref<11x256xf32, #tpu.memory_space<vmem>>, vector<1x128xf32>
    %c1 = arith.constant 1 : index
    %c0_1 = arith.constant 0 : index
    %1 = vector.load %arg9[%c1, %c0_1] : memref<11x256xf32, #tpu.memory_space<vmem>>, vector<1x128xf32>
    %c2 = arith.constant 2 : index
    %c0_2 = arith.constant 0 : index
    %2 = vector.load %arg9[%c2, %c0_2] : memref<11x256xf32, #tpu.memory_space<vmem>>, vector<1x128xf32>
    %c3 = arith.constant 3 : index
    %c0_3 = arith.constant 0 : index
    %3 = vector.load %arg9[%c3, %c0_3] : memref<11x256xf32, #tpu.memory_space<vmem>>, vector<1x1xf32>
    %c4 = arith.constant 4 : index
    %c0_4 = arith.constant 0 : index
    %4 = vector.load %arg9[%c4, %c0_4] : memref<11x256xf32, #tpu.memory_space<vmem>>, vector<1x128xf32>
    %c5 = arith.constant 5 : index
    %c0_5 = arith.constant 0 : index
    %5 = vector.load %arg9[%c5, %c0_5] : memref<11x256xf32, #tpu.memory_space<vmem>>, vector<1x128xf32>
    %c6 = arith.constant 6 : index
    %c0_6 = arith.constant 0 : index
    %6 = vector.load %arg9[%c6, %c0_6] : memref<11x256xf32, #tpu.memory_space<vmem>>, vector<1x144xf32>
    %c7 = arith.constant 7 : index
    %c0_7 = arith.constant 0 : index
    %7 = vector.load %arg9[%c7, %c0_7] : memref<11x256xf32, #tpu.memory_space<vmem>>, vector<1x16xf32>
    %c8 = arith.constant 8 : index
    %c0_8 = arith.constant 0 : index
    %8 = vector.load %arg9[%c8, %c0_8] : memref<11x256xf32, #tpu.memory_space<vmem>>, vector<1x16xf32>
    %c9 = arith.constant 9 : index
    %c0_9 = arith.constant 0 : index
    %9 = vector.load %arg9[%c9, %c0_9] : memref<11x256xf32, #tpu.memory_space<vmem>>, vector<1x16xf32>
    %c10 = arith.constant 10 : index
    %c0_10 = arith.constant 0 : index
    %10 = vector.load %arg9[%c10, %c0_10] : memref<11x256xf32, #tpu.memory_space<vmem>>, vector<1x16xf32>
    %c0_11 = arith.constant 0 : index
    %c0_12 = arith.constant 0 : index
    %c0_13 = arith.constant 0 : index
    %11 = vector.load %arg2[%c0_11, %c0_12, %c0_13] : memref<1x256x128xbf16, #tpu.memory_space<vmem>>, vector<1x256x128xbf16>
    %12 = vector.shape_cast %11 : vector<1x256x128xbf16> to vector<256x128xbf16>
    %c0_14 = arith.constant 0 : index
    %c0_15 = arith.constant 0 : index
    %13 = vector.load %arg3[%c0_14, %c0_15] : memref<224x16xbf16, #tpu.memory_space<vmem>>, vector<128x16xbf16>
    %cst = arith.constant dense<0.000000e+00> : vector<256x16xf32>
    %14 = tpu.matmul %12, %13, %cst {dimension_numbers = #tpu.dot_dimension_numbers<[1], [0], [0], [1], [0, 0, 1, 1], [], []>} : vector<256x128xbf16>, vector<128x16xbf16>, vector<256x16xf32> -> vector<256x16xf32>
    %15 = vector.broadcast %7 : vector<1x16xf32> to vector<256x16xf32>
    %16 = arith.addf %14, %15 : vector<256x16xf32>
    %cst_16 = arith.constant 2.000000e-01 : f32
    %17 = vector.broadcast %cst_16 : f32 to vector<256x16xf32>
    %18 = arith.mulf %17, %16 : vector<256x16xf32>
    %19 = arith.maximumf %16, %18 : vector<256x16xf32>
    %20 = arith.truncf %19 : vector<256x16xf32> to vector<256x16xbf16>
    %21 = vector.extract_strided_slice %20 {offsets = [0, 0], sizes = [128, 16], strides = [1, 1]} : vector<256x16xbf16> to vector<128x16xbf16>
    %c128 = arith.constant 128 : index
    %c0_17 = arith.constant 0 : index
    %22 = vector.load %arg3[%c128, %c0_17] : memref<224x16xbf16, #tpu.memory_space<vmem>>, vector<16x16xbf16>
    %cst_18 = arith.constant dense<0.000000e+00> : vector<128x16xf32>
    %23 = tpu.matmul %21, %22, %cst_18 {dimension_numbers = #tpu.dot_dimension_numbers<[1], [0], [0], [1], [0, 0, 1, 1], [], []>} : vector<128x16xbf16>, vector<16x16xbf16>, vector<128x16xf32> -> vector<128x16xf32>
    %24 = vector.extract_strided_slice %20 {offsets = [128, 0], sizes = [128, 16], strides = [1, 1]} : vector<256x16xbf16> to vector<128x16xbf16>
    %c144 = arith.constant 144 : index
    %c0_19 = arith.constant 0 : index
    %25 = vector.load %arg3[%c144, %c0_19] : memref<224x16xbf16, #tpu.memory_space<vmem>>, vector<16x16xbf16>
    %cst_20 = arith.constant dense<0.000000e+00> : vector<128x16xf32>
    %26 = tpu.matmul %24, %25, %cst_20 {dimension_numbers = #tpu.dot_dimension_numbers<[1], [0], [0], [1], [0, 0, 1, 1], [], []>} : vector<128x16xbf16>, vector<16x16xbf16>, vector<128x16xf32> -> vector<128x16xf32>
    %27 = arith.addf %23, %26 : vector<128x16xf32>
    %28 = vector.broadcast %8 : vector<1x16xf32> to vector<128x16xf32>
    %29 = arith.addf %27, %28 : vector<128x16xf32>
    %cst_21 = arith.constant 2.000000e-01 : f32
    %30 = vector.broadcast %cst_21 : f32 to vector<128x16xf32>
    %31 = arith.mulf %30, %29 : vector<128x16xf32>
    %32 = arith.maximumf %29, %31 : vector<128x16xf32>
    %33 = arith.truncf %32 : vector<128x16xf32> to vector<128x16xbf16>
    %34 = vector.extract_strided_slice %33 {offsets = [0, 0], sizes = [64, 16], strides = [1, 1]} : vector<128x16xbf16> to vector<64x16xbf16>
    %c160 = arith.constant 160 : index
    %c0_22 = arith.constant 0 : index
    %35 = vector.load %arg3[%c160, %c0_22] : memref<224x16xbf16, #tpu.memory_space<vmem>>, vector<16x16xbf16>
    %cst_23 = arith.constant dense<0.000000e+00> : vector<64x16xf32>
    %36 = tpu.matmul %34, %35, %cst_23 {dimension_numbers = #tpu.dot_dimension_numbers<[1], [0], [0], [1], [0, 0, 1, 1], [], []>} : vector<64x16xbf16>, vector<16x16xbf16>, vector<64x16xf32> -> vector<64x16xf32>
    %37 = vector.extract_strided_slice %33 {offsets = [64, 0], sizes = [64, 16], strides = [1, 1]} : vector<128x16xbf16> to vector<64x16xbf16>
    %c176 = arith.constant 176 : index
    %c0_24 = arith.constant 0 : index
    %38 = vector.load %arg3[%c176, %c0_24] : memref<224x16xbf16, #tpu.memory_space<vmem>>, vector<16x16xbf16>
    %cst_25 = arith.constant dense<0.000000e+00> : vector<64x16xf32>
    %39 = tpu.matmul %37, %38, %cst_25 {dimension_numbers = #tpu.dot_dimension_numbers<[1], [0], [0], [1], [0, 0, 1, 1], [], []>} : vector<64x16xbf16>, vector<16x16xbf16>, vector<64x16xf32> -> vector<64x16xf32>
    %40 = arith.addf %36, %39 : vector<64x16xf32>
    %41 = vector.broadcast %9 : vector<1x16xf32> to vector<64x16xf32>
    %42 = arith.addf %40, %41 : vector<64x16xf32>
    %cst_26 = arith.constant 2.000000e-01 : f32
    %43 = vector.broadcast %cst_26 : f32 to vector<64x16xf32>
    %44 = arith.mulf %43, %42 : vector<64x16xf32>
    %45 = arith.maximumf %42, %44 : vector<64x16xf32>
    %46 = arith.truncf %45 : vector<64x16xf32> to vector<64x16xbf16>
    %47 = vector.extract_strided_slice %46 {offsets = [0, 0], sizes = [32, 16], strides = [1, 1]} : vector<64x16xbf16> to vector<32x16xbf16>
    %c192 = arith.constant 192 : index
    %c0_27 = arith.constant 0 : index
    %48 = vector.load %arg3[%c192, %c0_27] : memref<224x16xbf16, #tpu.memory_space<vmem>>, vector<16x16xbf16>
    %cst_28 = arith.constant dense<0.000000e+00> : vector<32x16xf32>
    %49 = tpu.matmul %47, %48, %cst_28 {dimension_numbers = #tpu.dot_dimension_numbers<[1], [0], [0], [1], [0, 0, 1, 1], [], []>} : vector<32x16xbf16>, vector<16x16xbf16>, vector<32x16xf32> -> vector<32x16xf32>
    %50 = vector.extract_strided_slice %46 {offsets = [32, 0], sizes = [32, 16], strides = [1, 1]} : vector<64x16xbf16> to vector<32x16xbf16>
    %c208 = arith.constant 208 : index
    %c0_29 = arith.constant 0 : index
    %51 = vector.load %arg3[%c208, %c0_29] : memref<224x16xbf16, #tpu.memory_space<vmem>>, vector<16x16xbf16>
    %cst_30 = arith.constant dense<0.000000e+00> : vector<32x16xf32>
    %52 = tpu.matmul %50, %51, %cst_30 {dimension_numbers = #tpu.dot_dimension_numbers<[1], [0], [0], [1], [0, 0, 1, 1], [], []>} : vector<32x16xbf16>, vector<16x16xbf16>, vector<32x16xf32> -> vector<32x16xf32>
    %53 = arith.addf %49, %52 : vector<32x16xf32>
    %54 = vector.broadcast %10 : vector<1x16xf32> to vector<32x16xf32>
    %55 = arith.addf %53, %54 : vector<32x16xf32>
    %cst_31 = arith.constant 2.000000e-01 : f32
    %56 = vector.broadcast %cst_31 : f32 to vector<32x16xf32>
    %57 = arith.mulf %56, %55 : vector<32x16xf32>
    %58 = arith.maximumf %55, %57 : vector<32x16xf32>
    %c0_32 = arith.constant 0 : index
    %c0_33 = arith.constant 0 : index
    %c0_34 = arith.constant 0 : index
    %59 = vector.load %arg1[%c0_32, %c0_33, %c0_34] : memref<1x32x128xbf16, #tpu.memory_space<vmem>>, vector<1x32x128xbf16>
    %60 = vector.shape_cast %59 : vector<1x32x128xbf16> to vector<32x128xbf16>
    %c0_35 = arith.constant 0 : index
    %c0_36 = arith.constant 0 : index
    %61 = vector.load %arg4[%c0_35, %c0_36] : memref<384x256xbf16, #tpu.memory_space<vmem>>, vector<128x256xbf16>
    %c0_37 = arith.constant 0 : index
    %c0_38 = arith.constant 0 : index
    %62 = vector.load %arg5[%c0_37, %c0_38] : memref<48x256xbf16, #tpu.memory_space<vmem>>, vector<16x256xbf16>
    %cst_39 = arith.constant dense<0.000000e+00> : vector<32x256xf32>
    %63 = tpu.matmul %60, %61, %cst_39 {dimension_numbers = #tpu.dot_dimension_numbers<[1], [0], [0], [1], [0, 0, 1, 1], [], []>} : vector<32x128xbf16>, vector<128x256xbf16>, vector<32x256xf32> -> vector<32x256xf32>
    %64 = arith.truncf %58 : vector<32x16xf32> to vector<32x16xbf16>
    %cst_40 = arith.constant dense<0.000000e+00> : vector<32x256xf32>
    %65 = tpu.matmul %64, %62, %cst_40 {dimension_numbers = #tpu.dot_dimension_numbers<[1], [0], [0], [1], [0, 0, 1, 1], [], []>} : vector<32x16xbf16>, vector<16x256xbf16>, vector<32x256xf32> -> vector<32x256xf32>
    %66 = arith.addf %63, %65 : vector<32x256xf32>
    %67 = vector.extract_strided_slice %66 {offsets = [0, 0], sizes = [32, 128], strides = [1, 1]} : vector<32x256xf32> to vector<32x128xf32>
    %68 = vector.extract_strided_slice %66 {offsets = [0, 128], sizes = [32, 128], strides = [1, 1]} : vector<32x256xf32> to vector<32x128xf32>
    %69 = tpu.concatenate %67, %68 in 0 : vector<32x128xf32>, vector<32x128xf32> -> vector<64x128xf32>
    %70 = vector.broadcast %0 : vector<1x128xf32> to vector<64x128xf32>
    %71 = arith.addf %69, %70 : vector<64x128xf32>
    %cst_41 = arith.constant 0.000000e+00 : f32
    %72 = vector.broadcast %cst_41 : f32 to vector<64x128xf32>
    %73 = arith.maximumf %71, %72 : vector<64x128xf32>
    %74 = arith.truncf %73 : vector<64x128xf32> to vector<64x128xbf16>
    %75 = arith.truncf %45 : vector<64x16xf32> to vector<64x16xbf16>
    %c0_42 = arith.constant 0 : index
    %c0_43 = arith.constant 0 : index
    %76 = vector.load %arg8[%c0_42, %c0_43] : memref<144x400xbf16, #tpu.memory_space<vmem>>, vector<128x400xbf16>
    %cst_44 = arith.constant dense<0.000000e+00> : vector<64x400xf32>
    %77 = tpu.matmul %74, %76, %cst_44 {dimension_numbers = #tpu.dot_dimension_numbers<[1], [0], [0], [1], [0, 0, 1, 1], [], []>} : vector<64x128xbf16>, vector<128x400xbf16>, vector<64x400xf32> -> vector<64x400xf32>
    %c128_45 = arith.constant 128 : index
    %c0_46 = arith.constant 0 : index
    %78 = vector.load %arg8[%c128_45, %c0_46] : memref<144x400xbf16, #tpu.memory_space<vmem>>, vector<16x400xbf16>
    %cst_47 = arith.constant dense<0.000000e+00> : vector<64x400xf32>
    %79 = tpu.matmul %75, %78, %cst_47 {dimension_numbers = #tpu.dot_dimension_numbers<[1], [0], [0], [1], [0, 0, 1, 1], [], []>} : vector<64x16xbf16>, vector<16x400xbf16>, vector<64x400xf32> -> vector<64x400xf32>
    %80 = arith.addf %77, %79 : vector<64x400xf32>
    %81 = vector.extract_strided_slice %80 {offsets = [0, 0], sizes = [64, 128], strides = [1, 1]} : vector<64x400xf32> to vector<64x128xf32>
    %82 = vector.broadcast %4 : vector<1x128xf32> to vector<64x128xf32>
    %83 = arith.addf %81, %82 : vector<64x128xf32>
    %84 = arith.truncf %83 : vector<64x128xf32> to vector<64x128xbf16>
    %85 = vector.extract_strided_slice %80 {offsets = [0, 128], sizes = [64, 128], strides = [1, 1]} : vector<64x400xf32> to vector<64x128xf32>
    %86 = vector.broadcast %5 : vector<1x128xf32> to vector<64x128xf32>
    %87 = arith.addf %85, %86 : vector<64x128xf32>
    %88 = arith.truncf %87 : vector<64x128xf32> to vector<64x128xbf16>
    %89 = vector.extract_strided_slice %80 {offsets = [0, 256], sizes = [64, 144], strides = [1, 1]} : vector<64x400xf32> to vector<64x144xf32>
    %90 = vector.broadcast %6 : vector<1x144xf32> to vector<64x144xf32>
    %91 = arith.addf %89, %90 : vector<64x144xf32>
    %cst_48 = arith.constant dense<0.000000e+00> : vector<64x64xf32>
    %92 = tpu.matmul %84, %88, %cst_48 {dimension_numbers = #tpu.dot_dimension_numbers<[1], [1], [0], [0], [0, 0, 1, 0], [], []>} : vector<64x128xbf16>, vector<64x128xbf16>, vector<64x64xf32> -> vector<64x64xf32>
    %93 = tpu.iota {dimensions = array<i32: 0>} : vector<64x64xi32>
    %94 = tpu.iota {dimensions = array<i32: 1>} : vector<64x64xi32>
    %c15_i32 = arith.constant 15 : i32
    %95 = vector.broadcast %c15_i32 : i32 to vector<64x64xi32>
    %96 = arith.andi %93, %95 : vector<64x64xi32>
    %c15_i32_49 = arith.constant 15 : i32
    %97 = vector.broadcast %c15_i32_49 : i32 to vector<64x64xi32>
    %98 = arith.andi %94, %97 : vector<64x64xi32>
    %99 = arith.cmpi eq, %96, %98 : vector<64x64xi32>
    %cst_50 = arith.constant -1.000000e+30 : f32
    %100 = vector.broadcast %cst_50 : f32 to vector<64x64xf32>
    %101 = arith.select %99, %92, %100 : vector<64x64xi1>, vector<64x64xf32>
    %cst_51 = arith.constant dense<0xFF800000> : vector<64xf32>
    %102 = vector.multi_reduction <maximumf>, %101, %cst_51 [1] : vector<64x64xf32> to vector<64xf32>
    %103 = vector.shape_cast %102 : vector<64xf32> to vector<64x1xf32>
    %104 = vector.broadcast %103 : vector<64x1xf32> to vector<64x64xf32>
    %105 = arith.subf %101, %104 : vector<64x64xf32>
    %106 = math.exp %105 : vector<64x64xf32>
    %cst_52 = arith.constant dense<0.000000e+00> : vector<64xf32>
    %107 = vector.multi_reduction <add>, %106, %cst_52 [1] : vector<64x64xf32> to vector<64xf32>
    %108 = vector.shape_cast %107 : vector<64xf32> to vector<64x1xf32>
    %109 = tpu.reciprocal %108 {approx = true} : vector<64x1xf32> -> vector<64x1xf32>
    %110 = vector.broadcast %109 : vector<64x1xf32> to vector<64x64xf32>
    %111 = arith.mulf %106, %110 : vector<64x64xf32>
    %112 = arith.truncf %111 : vector<64x64xf32> to vector<64x64xbf16>
    %113 = arith.truncf %91 : vector<64x144xf32> to vector<64x144xbf16>
    %cst_53 = arith.constant dense<0.000000e+00> : vector<64x144xf32>
    %114 = tpu.matmul %112, %113, %cst_53 {dimension_numbers = #tpu.dot_dimension_numbers<[1], [0], [0], [1], [0, 0, 1, 1], [], []>} : vector<64x64xbf16>, vector<64x144xbf16>, vector<64x144xf32> -> vector<64x144xf32>
    %115 = vector.extract_strided_slice %114 {offsets = [0, 0], sizes = [64, 128], strides = [1, 1]} : vector<64x144xf32> to vector<64x128xf32>
    %116 = vector.broadcast %3 : vector<1x1xf32> to vector<64x128xf32>
    %117 = arith.mulf %116, %115 : vector<64x128xf32>
    %118 = arith.addf %117, %73 : vector<64x128xf32>
    %119 = vector.extract_strided_slice %114 {offsets = [0, 128], sizes = [64, 16], strides = [1, 1]} : vector<64x144xf32> to vector<64x16xf32>
    %120 = vector.broadcast %3 : vector<1x1xf32> to vector<64x16xf32>
    %121 = arith.mulf %120, %119 : vector<64x16xf32>
    %122 = arith.addf %121, %45 : vector<64x16xf32>
    %c128_54 = arith.constant 128 : index
    %c0_55 = arith.constant 0 : index
    %123 = vector.load %arg4[%c128_54, %c0_55] : memref<384x256xbf16, #tpu.memory_space<vmem>>, vector<128x256xbf16>
    %c16 = arith.constant 16 : index
    %c0_56 = arith.constant 0 : index
    %124 = vector.load %arg5[%c16, %c0_56] : memref<48x256xbf16, #tpu.memory_space<vmem>>, vector<16x256xbf16>
    %125 = arith.truncf %118 : vector<64x128xf32> to vector<64x128xbf16>
    %cst_57 = arith.constant dense<0.000000e+00> : vector<64x256xf32>
    %126 = tpu.matmul %125, %123, %cst_57 {dimension_numbers = #tpu.dot_dimension_numbers<[1], [0], [0], [1], [0, 0, 1, 1], [], []>} : vector<64x128xbf16>, vector<128x256xbf16>, vector<64x256xf32> -> vector<64x256xf32>
    %127 = arith.truncf %122 : vector<64x16xf32> to vector<64x16xbf16>
    %cst_58 = arith.constant dense<0.000000e+00> : vector<64x256xf32>
    %128 = tpu.matmul %127, %124, %cst_58 {dimension_numbers = #tpu.dot_dimension_numbers<[1], [0], [0], [1], [0, 0, 1, 1], [], []>} : vector<64x16xbf16>, vector<16x256xbf16>, vector<64x256xf32> -> vector<64x256xf32>
    %129 = arith.addf %126, %128 : vector<64x256xf32>
    %130 = vector.extract_strided_slice %129 {offsets = [0, 0], sizes = [64, 128], strides = [1, 1]} : vector<64x256xf32> to vector<64x128xf32>
    %131 = vector.extract_strided_slice %129 {offsets = [0, 128], sizes = [64, 128], strides = [1, 1]} : vector<64x256xf32> to vector<64x128xf32>
    %132 = tpu.concatenate %130, %131 in 0 : vector<64x128xf32>, vector<64x128xf32> -> vector<128x128xf32>
    %133 = vector.broadcast %1 : vector<1x128xf32> to vector<128x128xf32>
    %134 = arith.addf %132, %133 : vector<128x128xf32>
    %cst_59 = arith.constant 0.000000e+00 : f32
    %135 = vector.broadcast %cst_59 : f32 to vector<128x128xf32>
    %136 = arith.maximumf %134, %135 : vector<128x128xf32>
    %c256 = arith.constant 256 : index
    %c0_60 = arith.constant 0 : index
    %137 = vector.load %arg4[%c256, %c0_60] : memref<384x256xbf16, #tpu.memory_space<vmem>>, vector<128x256xbf16>
    %c32 = arith.constant 32 : index
    %c0_61 = arith.constant 0 : index
    %138 = vector.load %arg5[%c32, %c0_61] : memref<48x256xbf16, #tpu.memory_space<vmem>>, vector<16x256xbf16>
    %139 = arith.truncf %136 : vector<128x128xf32> to vector<128x128xbf16>
    %cst_62 = arith.constant dense<0.000000e+00> : vector<128x256xf32>
    %140 = tpu.matmul %139, %137, %cst_62 {dimension_numbers = #tpu.dot_dimension_numbers<[1], [0], [0], [1], [0, 0, 1, 1], [], []>} : vector<128x128xbf16>, vector<128x256xbf16>, vector<128x256xf32> -> vector<128x256xf32>
    %141 = arith.truncf %32 : vector<128x16xf32> to vector<128x16xbf16>
    %cst_63 = arith.constant dense<0.000000e+00> : vector<128x256xf32>
    %142 = tpu.matmul %141, %138, %cst_63 {dimension_numbers = #tpu.dot_dimension_numbers<[1], [0], [0], [1], [0, 0, 1, 1], [], []>} : vector<128x16xbf16>, vector<16x256xbf16>, vector<128x256xf32> -> vector<128x256xf32>
    %143 = arith.addf %140, %142 : vector<128x256xf32>
    %144 = vector.extract_strided_slice %143 {offsets = [0, 0], sizes = [128, 128], strides = [1, 1]} : vector<128x256xf32> to vector<128x128xf32>
    %145 = vector.extract_strided_slice %143 {offsets = [0, 128], sizes = [128, 128], strides = [1, 1]} : vector<128x256xf32> to vector<128x128xf32>
    %146 = tpu.concatenate %144, %145 in 0 : vector<128x128xf32>, vector<128x128xf32> -> vector<256x128xf32>
    %147 = vector.broadcast %2 : vector<1x128xf32> to vector<256x128xf32>
    %148 = arith.addf %146, %147 : vector<256x128xf32>
    %cst_64 = arith.constant 0.000000e+00 : f32
    %149 = vector.broadcast %cst_64 : f32 to vector<256x128xf32>
    %150 = arith.maximumf %148, %149 : vector<256x128xf32>
    %151 = arith.truncf %150 : vector<256x128xf32> to vector<256x128xbf16>
    %152 = arith.truncf %19 : vector<256x16xf32> to vector<256x16xbf16>
    %c0_65 = arith.constant 0 : index
    %c0_66 = arith.constant 0 : index
    %153 = vector.load %arg8[%c0_65, %c0_66] : memref<144x400xbf16, #tpu.memory_space<vmem>>, vector<128x400xbf16>
    %cst_67 = arith.constant dense<0.000000e+00> : vector<256x400xf32>
    %154 = tpu.matmul %151, %153, %cst_67 {dimension_numbers = #tpu.dot_dimension_numbers<[1], [0], [0], [1], [0, 0, 1, 1], [], []>} : vector<256x128xbf16>, vector<128x400xbf16>, vector<256x400xf32> -> vector<256x400xf32>
    %c128_68 = arith.constant 128 : index
    %c0_69 = arith.constant 0 : index
    %155 = vector.load %arg8[%c128_68, %c0_69] : memref<144x400xbf16, #tpu.memory_space<vmem>>, vector<16x400xbf16>
    %cst_70 = arith.constant dense<0.000000e+00> : vector<256x400xf32>
    %156 = tpu.matmul %152, %155, %cst_70 {dimension_numbers = #tpu.dot_dimension_numbers<[1], [0], [0], [1], [0, 0, 1, 1], [], []>} : vector<256x16xbf16>, vector<16x400xbf16>, vector<256x400xf32> -> vector<256x400xf32>
    %157 = arith.addf %154, %156 : vector<256x400xf32>
    %158 = vector.extract_strided_slice %157 {offsets = [0, 0], sizes = [256, 128], strides = [1, 1]} : vector<256x400xf32> to vector<256x128xf32>
    %159 = vector.broadcast %4 : vector<1x128xf32> to vector<256x128xf32>
    %160 = arith.addf %158, %159 : vector<256x128xf32>
    %161 = arith.truncf %160 : vector<256x128xf32> to vector<256x128xbf16>
    %162 = vector.extract_strided_slice %157 {offsets = [0, 128], sizes = [256, 128], strides = [1, 1]} : vector<256x400xf32> to vector<256x128xf32>
    %163 = vector.broadcast %5 : vector<1x128xf32> to vector<256x128xf32>
    %164 = arith.addf %162, %163 : vector<256x128xf32>
    %165 = arith.truncf %164 : vector<256x128xf32> to vector<256x128xbf16>
    %166 = vector.extract_strided_slice %157 {offsets = [0, 256], sizes = [256, 144], strides = [1, 1]} : vector<256x400xf32> to vector<256x144xf32>
    %167 = vector.broadcast %6 : vector<1x144xf32> to vector<256x144xf32>
    %168 = arith.addf %166, %167 : vector<256x144xf32>
    %cst_71 = arith.constant dense<0.000000e+00> : vector<256x256xf32>
    %169 = tpu.matmul %161, %165, %cst_71 {dimension_numbers = #tpu.dot_dimension_numbers<[1], [1], [0], [0], [0, 0, 1, 0], [], []>} : vector<256x128xbf16>, vector<256x128xbf16>, vector<256x256xf32> -> vector<256x256xf32>
    %170 = tpu.iota {dimensions = array<i32: 0>} : vector<256x256xi32>
    %171 = tpu.iota {dimensions = array<i32: 1>} : vector<256x256xi32>
    %c15_i32_72 = arith.constant 15 : i32
    %172 = vector.broadcast %c15_i32_72 : i32 to vector<256x256xi32>
    %173 = arith.andi %170, %172 : vector<256x256xi32>
    %c15_i32_73 = arith.constant 15 : i32
    %174 = vector.broadcast %c15_i32_73 : i32 to vector<256x256xi32>
    %175 = arith.andi %171, %174 : vector<256x256xi32>
    %176 = arith.cmpi eq, %173, %175 : vector<256x256xi32>
    %cst_74 = arith.constant -1.000000e+30 : f32
    %177 = vector.broadcast %cst_74 : f32 to vector<256x256xf32>
    %178 = arith.select %176, %169, %177 : vector<256x256xi1>, vector<256x256xf32>
    %cst_75 = arith.constant dense<0xFF800000> : vector<256xf32>
    %179 = vector.multi_reduction <maximumf>, %178, %cst_75 [1] : vector<256x256xf32> to vector<256xf32>
    %180 = vector.shape_cast %179 : vector<256xf32> to vector<256x1xf32>
    %181 = vector.broadcast %180 : vector<256x1xf32> to vector<256x256xf32>
    %182 = arith.subf %178, %181 : vector<256x256xf32>
    %183 = math.exp %182 : vector<256x256xf32>
    %cst_76 = arith.constant dense<0.000000e+00> : vector<256xf32>
    %184 = vector.multi_reduction <add>, %183, %cst_76 [1] : vector<256x256xf32> to vector<256xf32>
    %185 = vector.shape_cast %184 : vector<256xf32> to vector<256x1xf32>
    %186 = tpu.reciprocal %185 {approx = true} : vector<256x1xf32> -> vector<256x1xf32>
    %187 = vector.broadcast %186 : vector<256x1xf32> to vector<256x256xf32>
    %188 = arith.mulf %183, %187 : vector<256x256xf32>
    %189 = arith.truncf %188 : vector<256x256xf32> to vector<256x256xbf16>
    %190 = arith.truncf %168 : vector<256x144xf32> to vector<256x144xbf16>
    %cst_77 = arith.constant dense<0.000000e+00> : vector<256x144xf32>
    %191 = tpu.matmul %189, %190, %cst_77 {dimension_numbers = #tpu.dot_dimension_numbers<[1], [0], [0], [1], [0, 0, 1, 1], [], []>} : vector<256x256xbf16>, vector<256x144xbf16>, vector<256x144xf32> -> vector<256x144xf32>
    %192 = vector.extract_strided_slice %191 {offsets = [0, 0], sizes = [256, 128], strides = [1, 1]} : vector<256x144xf32> to vector<256x128xf32>
    %193 = vector.broadcast %3 : vector<1x1xf32> to vector<256x128xf32>
    %194 = arith.mulf %193, %192 : vector<256x128xf32>
    %195 = arith.addf %194, %150 : vector<256x128xf32>
    %196 = vector.extract_strided_slice %191 {offsets = [0, 128], sizes = [256, 16], strides = [1, 1]} : vector<256x144xf32> to vector<256x16xf32>
    %197 = vector.broadcast %3 : vector<1x1xf32> to vector<256x16xf32>
    %198 = arith.mulf %197, %196 : vector<256x16xf32>
    %199 = arith.addf %198, %19 : vector<256x16xf32>
    %200 = arith.truncf %195 : vector<256x128xf32> to vector<256x128xbf16>
    %c0_78 = arith.constant 0 : index
    %c0_79 = arith.constant 0 : index
    %201 = vector.load %arg6[%c0_78, %c0_79] : memref<128x128xbf16, #tpu.memory_space<vmem>>, vector<128x128xbf16>
    %cst_80 = arith.constant dense<0.000000e+00> : vector<256x128xf32>
    %202 = tpu.matmul %200, %201, %cst_80 {dimension_numbers = #tpu.dot_dimension_numbers<[1], [0], [0], [1], [0, 0, 1, 1], [], []>} : vector<256x128xbf16>, vector<128x128xbf16>, vector<256x128xf32> -> vector<256x128xf32>
    %203 = arith.truncf %199 : vector<256x16xf32> to vector<256x16xbf16>
    %c0_81 = arith.constant 0 : index
    %c0_82 = arith.constant 0 : index
    %204 = vector.load %arg7[%c0_81, %c0_82] : memref<16x128xbf16, #tpu.memory_space<vmem>>, vector<16x128xbf16>
    %cst_83 = arith.constant dense<0.000000e+00> : vector<256x128xf32>
    %205 = tpu.matmul %203, %204, %cst_83 {dimension_numbers = #tpu.dot_dimension_numbers<[1], [0], [0], [1], [0, 0, 1, 1], [], []>} : vector<256x16xbf16>, vector<16x128xbf16>, vector<256x128xf32> -> vector<256x128xf32>
    %206 = arith.addf %202, %205 : vector<256x128xf32>
    %207 = tpu.iota {dimensions = array<i32: 1>} : vector<256x128xi32>
    %cst_84 = arith.constant dense<0xFF800000> : vector<256xf32>
    %208 = vector.multi_reduction <maximumf>, %206, %cst_84 [1] : vector<256x128xf32> to vector<256xf32>
    %209 = vector.shape_cast %208 : vector<256xf32> to vector<256x1xf32>
    %210 = vector.broadcast %209 : vector<256x1xf32> to vector<256x128xf32>
    %211 = arith.cmpf oeq, %206, %210 : vector<256x128xf32>
    %c128_i32 = arith.constant 128 : i32
    %212 = vector.broadcast %c128_i32 : i32 to vector<256x128xi32>
    %213 = arith.select %211, %207, %212 : vector<256x128xi1>, vector<256x128xi32>
    %cst_85 = arith.constant dense<2147483647> : vector<256xi32>
    %214 = vector.multi_reduction <minsi>, %213, %cst_85 [1] : vector<256x128xi32> to vector<256xi32>
    %215 = vector.shape_cast %214 : vector<256xi32> to vector<256x1xi32>
    %216 = vector.broadcast %215 : vector<256x1xi32> to vector<256x128xi32>
    %217 = arith.cmpi eq, %207, %216 : vector<256x128xi32>
    %218 = arith.extui %217 : vector<256x128xi1> to vector<256x128xi32>
    %219 = arith.sitofp %218 : vector<256x128xi32> to vector<256x128xf32>
    %220 = arith.truncf %219 : vector<256x128xf32> to vector<256x128xbf16>
    %c0_86 = arith.constant 0 : index
    %c0_87 = arith.constant 0 : index
    %c0_88 = arith.constant 0 : index
    %221 = vector.load %arg10[%c0_86, %c0_87, %c0_88] : memref<1x256x128xbf16, #tpu.memory_space<vmem>>, vector<1x256x128xbf16>
    %222 = vector.shape_cast %221 : vector<1x256x128xbf16> to vector<256x128xbf16>
    %223 = vector.shape_cast %220 : vector<256x128xbf16> to vector<1x256x128xbf16>
    tpu.vector_store %arg10[%c0_86, %c0_87, %c0_88], %223 {strides = array<i32>} : memref<1x256x128xbf16, #tpu.memory_space<vmem>>, vector<1x256x128xbf16>,
    return
  }
  func.func @transform_0(%arg0: i32) -> (i32, i32, i32) {
    %c0_i32 = arith.constant 0 : i32
    %c0_i32_0 = arith.constant 0 : i32
    %c0_i32_1 = arith.constant 0 : i32
    return %arg0, %c0_i32, %c0_i32_0 : i32, i32, i32
  }
  func.func @transform_1(%arg0: i32) -> (i32, i32, i32) {
    %c0_i32 = arith.constant 0 : i32
    %c0_i32_0 = arith.constant 0 : i32
    %c0_i32_1 = arith.constant 0 : i32
    return %arg0, %c0_i32, %c0_i32_0 : i32, i32, i32
  }
  func.func @transform_2(%arg0: i32) -> (i32, i32) {
    %c0_i32 = arith.constant 0 : i32
    %c0_i32_0 = arith.constant 0 : i32
    %c0_i32_1 = arith.constant 0 : i32
    return %c0_i32, %c0_i32_0 : i32, i32
  }
  func.func @transform_3(%arg0: i32) -> (i32, i32) {
    %c0_i32 = arith.constant 0 : i32
    %c0_i32_0 = arith.constant 0 : i32
    %c0_i32_1 = arith.constant 0 : i32
    return %c0_i32, %c0_i32_0 : i32, i32
  }
  func.func @transform_4(%arg0: i32) -> (i32, i32) {
    %c0_i32 = arith.constant 0 : i32
    %c0_i32_0 = arith.constant 0 : i32
    %c0_i32_1 = arith.constant 0 : i32
    return %c0_i32, %c0_i32_0 : i32, i32
  }
  func.func @transform_5(%arg0: i32) -> (i32, i32) {
    %c0_i32 = arith.constant 0 : i32
    %c0_i32_0 = arith.constant 0 : i32
    %c0_i32_1 = arith.constant 0 : i32
    return %c0_i32, %c0_i32_0 : i32, i32
  }
  func.func @transform_6(%arg0: i32) -> (i32, i32) {
    %c0_i32 = arith.constant 0 : i32
    %c0_i32_0 = arith.constant 0 : i32
    %c0_i32_1 = arith.constant 0 : i32
    return %c0_i32, %c0_i32_0 : i32, i32
  }
  func.func @transform_7(%arg0: i32) -> (i32, i32) {
    %c0_i32 = arith.constant 0 : i32
    %c0_i32_0 = arith.constant 0 : i32
    %c0_i32_1 = arith.constant 0 : i32
    return %c0_i32, %c0_i32_0 : i32, i32
  }
  func.func @transform_8(%arg0: i32) -> (i32, i32) {
    %c0_i32 = arith.constant 0 : i32
    %c0_i32_0 = arith.constant 0 : i32
    %c0_i32_1 = arith.constant 0 : i32
    return %c0_i32, %c0_i32_0 : i32, i32
  }
  func.func @transform_9(%arg0: i32) -> (i32, i32, i32) {
    %c0_i32 = arith.constant 0 : i32
    %c0_i32_0 = arith.constant 0 : i32
    %c0_i32_1 = arith.constant 0 : i32
    return %arg0, %c0_i32, %c0_i32_0 : i32, i32, i32
  }
}

</mosaic_0001>

<bundles_post_ra>
// kernel: run_sampling.1
= control target key start
LH: loop header
LB: loop body
LE: loop exit
PB: predicated region body
PF: predicated region fallthrough
CT: control target
= control target key end

     0   :  { %vm488_vm0 = vcmask 130048   ;;  %vm2047_vm3 = vcmask 523264   ;;  %s11475_s2 = inlined_call_operand.vmem [shape: bf16[224,16], index: 2, kind: input, shape index: {}]   ;;  %s11476_s1 = inlined_call_operand.vmem [shape: bf16[1,256,128], index: 1, kind: input, shape index: {}]   ;;  %s11477_s8 = inlined_call_operand.vmem [shape: f32[11,256], index: 8, kind: input, shape index: {}]   ;;  %s11478_s7 = inlined_call_operand.vmem [shape: bf16[144,400], index: 7, kind: input, shape index: {}]   ;;  %s11479_s4 = inlined_call_operand.vmem [shape: bf16[48,256], index: 4, kind: input, shape index: {}]   ;;  %s11480_s3 = inlined_call_operand.vmem [shape: bf16[384,256], index: 3, kind: input, shape index: {}]   ;;  %s11481_s0 = inlined_call_operand.vmem [shape: bf16[1,32,128], index: 0, kind: input, shape index: {}]   ;;  %s11482_s6 = inlined_call_operand.vmem [shape: bf16[16,128], index: 6, kind: input, shape index: {}]   ;;  %s11483_s5 = inlined_call_operand.vmem [shape: bf16[128,128], index: 5, kind: input, shape index: {}]   ;;  %s11484_s9 = inlined_call_operand.vmem [shape: bf16[1,256,128], index: 9, kind: output, shape index: {}]  }
   0x1   :  { %v7509_v0 = vld [vmem:[%s11475_s2] sm:$0xff]   ;;  %v7510_v1 = vld [vmem:[%s11475_s2 + $0x8] sm:$0xff]   ;;  %v7511_v2 = vld [vmem:[%s11475_s2 + $0x10] sm:$0xff]  }
   0x2   :  { %7016 = vmatprep.subr.bf16.mxu0 %v7509_v0  ;;  %v7512_v3 = vld [vmem:[%s11475_s2 + $0x18] sm:$0xff]   ;;  %v7517_v4 = vld [vmem:[%s11476_s1] sm:$0xff]   ;;  %v7514_v6 = vld [vmem:[%s11475_s2 + $0x28] sm:$0xff]  }
   0x3   :  { %7017 = vmatpush3.bf16.msra.mxu0 %v7509_v0  ;;  %7032 = vmatprep.mubr.bf16.mxu0 %v7517_v4  ;;  %v7513_v5 = vld [vmem:[%s11475_s2 + $0x20] sm:$0xff]   ;;  %v7515_v7 = vld [vmem:[%s11475_s2 + $0x30] sm:$0xff]   ;;  %v7516_v8 = vld [vmem:[%s11475_s2 + $0x38] sm:$0xff]  }
   0x4   :  { %7018 = vmatprep.subr.bf16.mxu0 %v7510_v1  ;;  %v7518_v9 = vld [vmem:[%s11476_s1 + $0x8] sm:$0xff]   ;;  %v7519_v10 = vld [vmem:[%s11476_s1 + $0x10] sm:$0xff]   ;;  %v7520_v11 = vld [vmem:[%s11476_s1 + $0x18] sm:$0xff]  }
   0x5   :  { %v7521_v12 = vld [vmem:[%s11476_s1 + $0x20] sm:$0xff]   ;;  %v7522_v13 = vld [vmem:[%s11476_s1 + $0x28] sm:$0xff]   ;;  %v7523_v14 = vld [vmem:[%s11476_s1 + $0x30] sm:$0xff]  }
   0x6   :  { %v7524_v15 = vld [vmem:[%s11476_s1 + $0x38] sm:$0xff]   ;;  %v7525_v16 = vld [vmem:[%s11476_s1 + $0x40] sm:$0xff]   ;;  %v7526_v17 = vld [vmem:[%s11476_s1 + $0x48] sm:$0xff]  }
   0x7   :  { %7019 = vmatpush3.bf16.msra.mxu0 %v7510_v1  ;;  %v7527_v18 = vld [vmem:[%s11476_s1 + $0x50] sm:$0xff]   ;;  %v7528_v19 = vld [vmem:[%s11476_s1 + $0x58] sm:$0xff]   ;;  %v7529_v20 = vld [vmem:[%s11476_s1 + $0x60] sm:$0xff]  }
   0x8   :  { %7020 = vmatprep.subr.bf16.mxu0 %v7511_v2  ;;  %v7530_v21 = vld [vmem:[%s11476_s1 + $0x68] sm:$0xff]   ;;  %v7531_v22 = vld [vmem:[%s11476_s1 + $0x70] sm:$0xff]   ;;  %v7532_v23 = vld [vmem:[%s11476_s1 + $0x78] sm:$0xff]  }
   0x9   :  { %v7533_v24 = vld [vmem:[%s11475_s2 + $0x48] sm:$0xff]   ;;  %v7534_v25 = vld [vmem:[%s11475_s2 + $0x40] sm:$0xff]  }
   0xa   :  { %7064 = vmatprep.subr.bf16.mxu1 %v7533_v24  ;;  %v8112_v42 = vld [vmem:[%s11477_s8 + $0x7] ss:$0 sm:$0xff] }
   0xb   :  { %7021 = vmatpush3.bf16.msra.mxu0 %v7511_v2  ;;  %7065 = vmatpush3.bf16.msra.mxu1 %v7533_v24 }
   0xc   :  { %7022 = vmatprep.subr.bf16.mxu0 %v7512_v3  ;;  %7082 = vmatprep.subr.bf16.mxu1 %v7534_v25 }
   0xf   :  { %7023 = vmatpush3.bf16.msra.mxu0 %v7512_v3 }
  0x10   :  { %7024 = vmatprep.subr.bf16.mxu0 %v7513_v5 }
  0x13   :  { %7025 = vmatpush3.bf16.msra.mxu0 %v7513_v5 }
  0x14   :  { %7026 = vmatprep.subr.bf16.mxu0 %v7514_v6 }
  0x17   :  { %7027 = vmatpush3.bf16.msra.mxu0 %v7514_v6 }
  0x18   :  { %7028 = vmatprep.subr.bf16.mxu0 %v7515_v7 }
  0x1b   :  { %7029 = vmatpush3.bf16.msra.mxu0 %v7515_v7 }
  0x1c   :  { %7030 = vmatprep.subr.bf16.mxu0 %v7516_v8 }
  0x1f   :  { %7031 = vmatpush3.bf16.msra.mxu0 %v7516_v8 }
  0x22   :  { %7033 = vmatmul.mubr.bf16.vlgmr.msra.gmra.mrb[0].mxu0 %v7518_v9 }
  0x23   :  { %7036 = vmatprep.mubr.bf16.mxu0 %v7519_v10 }
  0x2a   :  { %7037 = vmatmul.mubr.bf16.gmra.mrb[4].mxu0 %v7520_v11 }
  0x2b   :  { %7040 = vmatprep.mubr.bf16.mxu0 %v7521_v12 }
  0x32   :  { %7041 = vmatmul.mubr.bf16.gmra.mrb[8].mxu0 %v7522_v13 }
  0x33   :  { %7044 = vmatprep.mubr.bf16.mxu0 %v7523_v14 }
  0x3a   :  { %7045 = vmatmul.mubr.bf16.gmra.mrb[12].mxu0 %v7524_v15 }
  0x3b   :  { %7048 = vmatprep.mubr.bf16.mxu0 %v7525_v16 }
  0x42   :  { %7049 = vmatmul.mubr.bf16.gmra.mrb[16].mxu0 %v7526_v17 }
  0x43   :  { %7052 = vmatprep.mubr.bf16.mxu0 %v7527_v18 }
  0x4a   :  { %7053 = vmatmul.mubr.bf16.gmra.mrb[20].mxu0 %v7528_v19 }
  0x4b   :  { %7056 = vmatprep.mubr.bf16.mxu0 %v7529_v20 }
  0x52   :  { %7057 = vmatmul.mubr.bf16.gmra.mrb[24].mxu0 %v7530_v21 }
  0x53   :  { %7060 = vmatprep.mubr.bf16.mxu0 %v7531_v22 }
  0x5a   :  { %7061 = vmatmul.mubr.bf16.gmra.mrb[28].mxu0 %v7532_v23 }
  0xf5   :  { %v8077_v26 = vpop.f32.mrb[0].mxu0 }
  0xf6   :  { %v8079_v27 = vpop.f32.mrb[1].mxu0 }
  0xf7   :  { %v8081_v28 = vpop.f32.mrb[2].mxu0 }
  0xf8   :  { %v8083_v29 = vpop.f32.mrb[3].mxu0 }
  0xfd   :  { %v8085_v30 = vpop.f32.mrb[4].mxu0 }
  0xfe   :  { %v8087_v31 = vpop.f32.mrb[5].mxu0 }
  0xff   :  { %v8089_v32 = vpop.f32.mrb[6].mxu0 }
 0x100   :  { %v8091_v33 = vpop.f32.mrb[7].mxu0 }
 0x105   :  { %v8093_v34 = vpop.f32.mrb[8].mxu0 }
 0x106   :  { %v8095_v35 = vpop.f32.mrb[9].mxu0 }
 0x107   :  { %v8097_v36 = vpop.f32.mrb[10].mxu0 }
 0x108   :  { %v8099_v37 = vpop.f32.mrb[11].mxu0 }
 0x10d   :  { %v8101_v38 = vpop.f32.mrb[12].mxu0 }
 0x10e   :  { %v8103_v39 = vpop.f32.mrb[13].mxu0 }
 0x10f   :  { %v8105_v40 = vpop.f32.mrb[14].mxu0 }
 0x110   :  { %v8107_v41 = vpop.f32.mrb[15].mxu0 }
 0x115   :  { %v7050_v43 = vpop.f32.mrb[16].mxu0 }
 0x116   :  { %v344_v44 = vadd.f32 %v7050_v43, %v8112_v42  ;;  %v335_v45 = vpop.f32.mrb[17].mxu0 }
 0x117   :  { %v336_v46 = vadd.f32 %v335_v45, %v8112_v42  ;;  %v7051_v47 = vpop.f32.mrb[18].mxu0  ;;  %v275_v45 = vadd.f32 %v8083_v29, %v8112_v42 }
 0x118   :  { %v347_v48 = vadd.f32 %v7051_v47, %v8112_v42  ;;  %v338_v49 = vpop.f32.mrb[19].mxu0  ;;  %v416_v52 = vmul.f32 0.2, %v344_v44 }
 0x119   :  { %v414_v50 = vmul.f32 0.2, %v336_v46  ;;  %v339_v51 = vadd.f32 %v338_v49, %v8112_v42 }
 0x11a   :  { %v417_v53 = vmul.f32 0.2, %v347_v48  ;;  %v8124_v59 = vmax.f32 %v344_v44, %v416_v52  ;;  %v272_v52 = vadd.f32 %v8079_v27, %v8112_v42 }
 0x11b   :  { %v415_v54 = vmul.f32 0.2, %v339_v51  ;;  %v8120_v56 = vmax.f32 %v336_v46, %v414_v50 }
 0x11c   :  { %v8118_v55 = vmax.f32 %v347_v48, %v417_v53  ;;  %11663 = vst [vmem:[#allocation5_spill] sm:$0xff] %v8124_v59 }
 0x11d   :  { %11661 = vst [vmem:[#allocation3_spill] sm:$0xff] %v8120_v56  ;;  %v8122_v57 = vmax.f32 %v339_v51, %v415_v54  ;;  %v7054_v58 = vpop.f32.mrb[20].mxu0 }
 0x11e   :  { %11660 = vst [vmem:[#allocation2_spill] sm:$0xff] %v8118_v55  ;;  %v360_v60 = vadd.f32 %v7054_v58, %v8112_v42  ;;  %v351_v61 = vpop.f32.mrb[21].mxu0  ;;  %v8134_v1 = vpack.c.bf16 %v8118_v55, %v8124_v59 }
 0x11f   :  { %11662 = vst [vmem:[#allocation4_spill] sm:$0xff] %v8122_v57  ;;  %v352_v62 = vadd.f32 %v351_v61, %v8112_v42  ;;  %v7055_v63 = vpop.f32.mrb[22].mxu0  ;;  %v8130_v0 = vpack.c.bf16 %v8122_v57, %v8120_v56 }
 0x120   :  { %v363_v2 = vadd.f32 %v7055_v63, %v8112_v42  ;;  %v354_v3 = vpop.f32.mrb[23].mxu0  ;;  %v420_v6 = vmul.f32 0.2, %v360_v60 }
 0x121   :  { %v418_v4 = vmul.f32 0.2, %v352_v62  ;;  %v355_v5 = vadd.f32 %v354_v3, %v8112_v42  ;;  %7066 = vmatprep.mubr.msk.bf16.mxu1 %vm488_vm0, %v8130_v0 }
 0x122   :  { %v421_v7 = vmul.f32 0.2, %v363_v2  ;;  %7067 = vmatmul.mubr.msk.bf16.vlgmr.msra.gmra.mrb[0].mxu1 %vm488_vm0, %v8134_v1  ;;  %v8148_v13 = vmax.f32 %v360_v60, %v420_v6  ;;  %v283_v6 = vadd.f32 %v8081_v28, %v8112_v42  ;;  %v288_v28 = vadd.f32 %v8087_v31, %v8112_v42 }
 0x123   :  { %v419_v8 = vmul.f32 0.2, %v355_v5  ;;  %7083 = vmatpush3.bf16.msra.mxu1 %v7534_v25  ;;  %v8144_v10 = vmax.f32 %v352_v62, %v418_v4  ;;  %v399_v62 = vmul.f32 0.2, %v275_v45  ;;  %v398_v4 = vmul.f32 0.2, %v272_v52 }
 0x124   :  { %v8142_v9 = vmax.f32 %v363_v2, %v421_v7  ;;  %11667 = vst [vmem:[#allocation9_spill] sm:$0xff] %v8148_v13  ;;  %v402_v31 = vmul.f32 0.2, %v288_v28 }
 0x125   :  { %11665 = vst [vmem:[#allocation7_spill] sm:$0xff] %v8144_v10  ;;  %v8146_v11 = vmax.f32 %v355_v5, %v419_v8  ;;  %v7058_v12 = vpop.f32.mrb[24].mxu0  ;;  %v8198_v8 = vmax.f32 %v275_v45, %v399_v62 }
 0x126   :  { %11664 = vst [vmem:[#allocation6_spill] sm:$0xff] %v8142_v9  ;;  %v376_v14 = vadd.f32 %v7058_v12, %v8112_v42  ;;  %v367_v15 = vpop.f32.mrb[25].mxu0  ;;  %v8158_v19 = vpack.c.bf16 %v8142_v9, %v8148_v13  ;;  %v291_v12 = vadd.f32 %v8091_v33, %v8112_v42 }
 0x127   :  { %11666 = vst [vmem:[#allocation8_spill] sm:$0xff] %v8146_v11  ;;  %v8153_v16 = vpack.c.bf16 %v8146_v11, %v8144_v10  ;;  %v368_v17 = vadd.f32 %v367_v15, %v8112_v42  ;;  %v7059_v18 = vpop.f32.mrb[26].mxu0  ;;  %11673 = vst [vmem:[#allocation15_spill] sm:$0xff] %v8198_v8 }
 0x128   :  { %v379_v20 = vadd.f32 %v7059_v18, %v8112_v42  ;;  %v370_v21 = vpop.f32.mrb[27].mxu0  ;;  %v424_v24 = vmul.f32 0.2, %v376_v14 }
 0x129   :  { %v422_v22 = vmul.f32 0.2, %v368_v17  ;;  %v371_v23 = vadd.f32 %v370_v21, %v8112_v42  ;;  %7070 = vmatprep.mubr.msk.bf16.mxu1 %vm488_vm0, %v8153_v16 }
 0x12a   :  { %v425_v25 = vmul.f32 0.2, %v379_v20  ;;  %7071 = vmatmul.mubr.msk.bf16.gmra.mrb[4].mxu1 %vm488_vm0, %v8158_v19  ;;  %v8174_v49 = vmax.f32 %v376_v14, %v424_v24 }
 0x12b   :  { %v423_v43 = vmul.f32 0.2, %v371_v23  ;;  %v8170_v46 = vmax.f32 %v368_v17, %v422_v22  ;;  %v280_v17 = vadd.f32 %v8077_v26, %v8112_v42  ;;  %v401_v22 = vmul.f32 0.2, %v283_v6 }
 0x12c   :  { %v8166_v44 = vmax.f32 %v379_v20, %v425_v25  ;;  %11671 = vst [vmem:[#allocation13_spill] sm:$0xff] %v8174_v49  ;;  %v8210_v20 = vmax.f32 %v272_v52, %v398_v4  ;;  %v403_v26 = vmul.f32 0.2, %v291_v12  ;;  %v8244_v52 = vmax.f32 %v288_v28, %v402_v31 }
 0x12d   :  { %11669 = vst [vmem:[#allocation11_spill] sm:$0xff] %v8170_v46  ;;  %v8172_v47 = vmax.f32 %v371_v23, %v423_v43  ;;  %v7062_v48 = vpop.f32.mrb[28].mxu0  ;;  %v400_v24 = vmul.f32 0.2, %v280_v17  ;;  %v8232_v25 = vmax.f32 %v283_v6, %v401_v22  ;;  %v299_v43 = vadd.f32 %v8089_v32, %v8112_v42 }
 0x12e   :  { %11668 = vst [vmem:[#allocation10_spill] sm:$0xff] %v8166_v44  ;;  %v392_v50 = vadd.f32 %v7062_v48, %v8112_v42  ;;  %v383_v51 = vpop.f32.mrb[29].mxu0  ;;  %v8186_v58 = vpack.c.bf16 %v8166_v44, %v8174_v49  ;;  %11677 = vst [vmem:[#allocation19_spill] sm:$0xff] %v8210_v20  ;;  %v8224_v23 = vpack.c.bf16 %v8198_v8, %v8210_v20 }
 0x12f   :  { %11670 = vst [vmem:[#allocation12_spill] sm:$0xff] %v8172_v47  ;;  %v8181_v53 = vpack.c.bf16 %v8172_v47, %v8170_v46  ;;  %v384_v54 = vadd.f32 %v383_v51, %v8112_v42  ;;  %v7063_v29 = vpop.f32.mrb[30].mxu0  ;;  %11678 = vst [vmem:[#allocation20_spill] sm:$0xff] %v8232_v25  ;;  %v8236_v45 = vmax.f32 %v291_v12, %v403_v26  ;;  %v405_v32 = vmul.f32 0.2, %v299_v43 }
 0x130   :  { %v395_v60 = vadd.f32 %v7063_v29, %v8112_v42  ;;  %v386_v61 = vpop.f32.mrb[31].mxu0  ;;  %v428_v27 = vmul.f32 0.2, %v392_v50  ;;  %v307_v48 = vadd.f32 %v8099_v37, %v8112_v42  ;;  %v296_v51 = vadd.f32 %v8085_v30, %v8112_v42  ;;  %11681 = vst [vmem:[#allocation23_spill] sm:$0xff] %v8244_v52 }
 0x131   :  { %v426_v63 = vmul.f32 0.2, %v384_v54  ;;  %v387_v2 = vadd.f32 %v386_v61, %v8112_v42  ;;  %7074 = vmatprep.mubr.msk.bf16.mxu1 %vm488_vm0, %v8181_v53  ;;  %11679 = vst [vmem:[#allocation21_spill] sm:$0xff] %v8236_v45  ;;  %v8260_v62 = vmax.f32 %v299_v43, %v405_v32  ;;  %v7535_v32 = vld [vmem:[%s11475_s2 + $0x58] sm:$0xff]  }
 0x132   :  { %v429_v3 = vmul.f32 0.2, %v395_v60  ;;  %7075 = vmatmul.mubr.msk.bf16.gmra.mrb[8].mxu1 %vm488_vm0, %v8186_v58  ;;  %v8208_v18 = vmax.f32 %v392_v50, %v428_v27  ;;  %v8240_v50 = vmax.f32 %v280_v17, %v400_v24  ;;  %v407_v37 = vmul.f32 0.2, %v307_v48  ;;  %7100 = vmatprep.subr.bf16.mxu1 %v7535_v32 }
 0x133   :  { %v427_v5 = vmul.f32 0.2, %v387_v2  ;;  %v8202_v14 = vmax.f32 %v384_v54, %v426_v63  ;;  %v304_v54 = vadd.f32 %v8095_v35, %v8112_v42  ;;  %v404_v61 = vmul.f32 0.2, %v296_v51  ;;  %11682 = vst [vmem:[#allocation24_spill] sm:$0xff] %v8260_v62 }
 0x134   :  { %v8196_v7 = vmax.f32 %v395_v60, %v429_v3  ;;  %11676 = vst [vmem:[#allocation18_spill] sm:$0xff] %v8208_v18  ;;  %11680 = vst [vmem:[#allocation22_spill] sm:$0xff] %v8240_v50  ;;  %v8250_v29 = vpack.c.bf16 %v8232_v25, %v8240_v50  ;;  %v8254_v60 = vpack.c.bf16 %v8236_v45, %v8244_v52 }
 0x135   :  { %11674 = vst [vmem:[#allocation16_spill] sm:$0xff] %v8202_v14  ;;  %v8204_v15 = vmax.f32 %v387_v2, %v427_v5  ;;  %v406_v30 = vmul.f32 0.2, %v304_v54  ;;  %v315_v35 = vadd.f32 %v8097_v36, %v8112_v42  ;;  %v8264_v63 = vmax.f32 %v307_v48, %v407_v37  ;;  %v8328_v37 = vld [vmem:[%s11475_s2 + $0x50] sm:$0xff]  }
 0x136   :  { %11672 = vst [vmem:[#allocation14_spill] sm:$0xff] %v8196_v7  ;;  %v8220_v33 = vpack.c.bf16 %v8196_v7, %v8208_v18  ;;  %v323_v2 = vadd.f32 %v8107_v41, %v8112_v42  ;;  %v8268_v27 = vmax.f32 %v296_v51, %v404_v61  ;;  %v312_v3 = vadd.f32 %v8093_v34, %v8112_v42  ;;  %v8334_v61 = vld [vmem:[%s11477_s8 + $0x10] ss:$0 sm:$0xff] }
 0x137   :  { %11675 = vst [vmem:[#allocation17_spill] sm:$0xff] %v8204_v15  ;;  %v8216_v21 = vpack.c.bf16 %v8204_v15, %v8202_v14  ;;  %11683 = vst [vmem:[#allocation25_spill] sm:$0xff] %v8264_v63  ;;  %v8272_v4 = vmax.f32 %v304_v54, %v406_v30  ;;  %v320_v5 = vadd.f32 %v8103_v39, %v8112_v42  ;;  %v409_v36 = vmul.f32 0.2, %v315_v35 }
 0x138   :  { %11684 = vst [vmem:[#allocation26_spill] sm:$0xff] %v8268_v27  ;;  %v8278_v6 = vpack.c.bf16 %v8260_v62, %v8268_v27  ;;  %v411_v41 = vmul.f32 0.2, %v323_v2  ;;  %v408_v17 = vmul.f32 0.2, %v312_v3  ;;  %v331_v39 = vadd.f32 %v8105_v40, %v8112_v42 }
 0x139   :  { %7078 = vmatprep.mubr.msk.bf16.mxu1 %vm488_vm0, %v8216_v21  ;;  %11685 = vst [vmem:[#allocation27_spill] sm:$0xff] %v8272_v4  ;;  %v8282_v12 = vpack.c.bf16 %v8264_v63, %v8272_v4  ;;  %v410_v34 = vmul.f32 0.2, %v320_v5  ;;  %v8288_v28 = vmax.f32 %v315_v35, %v409_v36  ;;  %v328_v24 = vadd.f32 %v8101_v38, %v8112_v42 }
 0x13a   :  { %7079 = vmatmul.mubr.msk.bf16.gmra.mrb[12].mxu1 %vm488_vm0, %v8220_v33  ;;  %v8292_v22 = vmax.f32 %v323_v2, %v411_v41  ;;  %v8294_v26 = vmax.f32 %v312_v3, %v408_v17  ;;  %v413_v48 = vmul.f32 0.2, %v331_v39 }
 0x13b   :  { %7084 = vmatprep.mubr.msk.bf16.mxu1 %vm488_vm0, %v8224_v23  ;;  %11686 = vst [vmem:[#allocation28_spill] sm:$0xff] %v8288_v28  ;;  %v8298_v31 = vmax.f32 %v320_v5, %v410_v34  ;;  %v412_v54 = vmul.f32 0.2, %v328_v24 }
 0x13c   :  { %11687 = vst [vmem:[#allocation29_spill] sm:$0xff] %v8292_v22  ;;  %11688 = vst [vmem:[#allocation30_spill] sm:$0xff] %v8294_v26  ;;  %v8302_v43 = vpack.c.bf16 %v8288_v28, %v8294_v26  ;;  %v8312_v40 = vmax.f32 %v331_v39, %v413_v48 }
 0x13d   :  { %11689 = vst [vmem:[#allocation31_spill] sm:$0xff] %v8298_v31  ;;  %v8306_v51 = vpack.c.bf16 %v8292_v22, %v8298_v31  ;;  %v8314_v38 = vmax.f32 %v328_v24, %v412_v54 }
 0x13e   :  { %11690 = vst [vmem:[#allocation32_spill] sm:$0xff] %v8312_v40 }
 0x13f   :  { %11691 = vst [vmem:[#allocation33_spill] sm:$0xff] %v8314_v38  ;;  %v8318_v42 = vpack.c.bf16 %v8312_v40, %v8314_v38 }
 0x142   :  { %7085 = vmatmul.mubr.msk.bf16.vlgmr.msra.gmra.mrb[0].mxu1 %vm488_vm0, %v8250_v29 }
 0x143   :  { %7088 = vmatprep.mubr.msk.bf16.mxu1 %vm488_vm0, %v8254_v60  ;;  %7101 = vmatpush3.bf16.msra.mxu1 %v7535_v32 }
 0x144   :  { %7110 = vmatprep.subr.bf16.mxu1 %v8328_v37 }
 0x14a   :  { %7089 = vmatmul.mubr.msk.bf16.gmra.mrb[4].mxu1 %vm488_vm0, %v8278_v6 }
 0x14b   :  { %7092 = vmatprep.mubr.msk.bf16.mxu1 %vm488_vm0, %v8282_v12 }
 0x152   :  { %7093 = vmatmul.mubr.msk.bf16.gmra.mrb[8].mxu1 %vm488_vm0, %v8302_v43 }
 0x153   :  { %7096 = vmatprep.mubr.msk.bf16.mxu1 %vm488_vm0, %v8306_v51 }
 0x15a   :  { %7097 = vmatmul.mubr.msk.bf16.gmra.mrb[12].mxu1 %vm488_vm0, %v8318_v42 }
 0x215   :  { %v7086_v30 = vpop.f32.mrb[0].mxu1 }
 0x216   :  { %v739_v35 = vadd.f32 %v7086_v30, %v8334_v61  ;;  %v674_v2 = vpop.f32.mrb[1].mxu1 }
 0x217   :  { %v737_v3 = vadd.f32 %v674_v2, %v8334_v61  ;;  %v7087_v5 = vpop.f32.mrb[2].mxu1 }
 0x218   :  { %v755_v36 = vmul.f32 0.2, %v739_v35  ;;  %v740_v41 = vadd.f32 %v7087_v5, %v8334_v61  ;;  %v677_v17 = vpop.f32.mrb[3].mxu1 }
 0x219   :  { %v753_v34 = vmul.f32 0.2, %v737_v3  ;;  %v738_v39 = vadd.f32 %v677_v17, %v8334_v61 }
 0x21a   :  { %v756_v24 = vmul.f32 0.2, %v740_v41  ;;  %v771_v54 = vmax.f32 %v739_v35, %v755_v36 }
 0x21b   :  { %v754_v48 = vmul.f32 0.2, %v738_v39  ;;  %v769_v7 = vmax.f32 %v737_v3, %v753_v34 }
 0x21c   :  { %v772_v32 = vmax.f32 %v740_v41, %v756_v24 }
 0x21d   :  { %v770_v18 = vmax.f32 %v738_v39, %v754_v48  ;;  %v7090_v15 = vpop.f32.mrb[4].mxu1 }
 0x21e   :  { %v8340_v14 = vpack.c.bf16 %v772_v32, %v771_v54  ;;  %v743_v30 = vadd.f32 %v7090_v15, %v8334_v61  ;;  %v690_v2 = vpop.f32.mrb[5].mxu1 }
 0x21f   :  { %v8343_v44 = vpack.c.bf16 %v770_v18, %v769_v7  ;;  %v741_v5 = vadd.f32 %v690_v2, %v8334_v61  ;;  %v7091_v49 = vpop.f32.mrb[6].mxu1 }
 0x220   :  { %v759_v47 = vmul.f32 0.2, %v743_v30  ;;  %v744_v17 = vadd.f32 %v7091_v49, %v8334_v61  ;;  %v693_v46 = vpop.f32.mrb[7].mxu1 }
 0x221   :  { %v757_v9 = vmul.f32 0.2, %v741_v5  ;;  %v742_v35 = vadd.f32 %v693_v46, %v8334_v61 }
 0x222   :  { %v760_v3 = vmul.f32 0.2, %v744_v17  ;;  %v775_v41 = vmax.f32 %v743_v30, %v759_v47 }
 0x223   :  { %v758_v36 = vmul.f32 0.2, %v742_v35  ;;  %v773_v39 = vmax.f32 %v741_v5, %v757_v9 }
 0x224   :  { %v776_v34 = vmax.f32 %v744_v17, %v760_v3 }
 0x225   :  { %v774_v24 = vmax.f32 %v742_v35, %v758_v36  ;;  %v7094_v15 = vpop.f32.mrb[8].mxu1 }
 0x226   :  { %v8348_v48 = vpack.c.bf16 %v776_v34, %v775_v41  ;;  %v747_v7 = vadd.f32 %v7094_v15, %v8334_v61  ;;  %v706_v18 = vpop.f32.mrb[9].mxu1 }
 0x227   :  { %v8351_v54 = vpack.c.bf16 %v774_v24, %v773_v39  ;;  %v745_v49 = vadd.f32 %v706_v18, %v8334_v61  ;;  %v7095_v32 = vpop.f32.mrb[10].mxu1 }
 0x228   :  { %v763_v2 = vmul.f32 0.2, %v747_v7  ;;  %v748_v46 = vadd.f32 %v7095_v32, %v8334_v61  ;;  %v709_v13 = vpop.f32.mrb[11].mxu1 }
 0x229   :  { %v761_v11 = vmul.f32 0.2, %v745_v49  ;;  %v746_v47 = vadd.f32 %v709_v13, %v8334_v61 }
 0x22a   :  { %v764_v9 = vmul.f32 0.2, %v748_v46  ;;  %v779_v5 = vmax.f32 %v747_v7, %v763_v2 }
 0x22b   :  { %v762_v30 = vmul.f32 0.2, %v746_v47  ;;  %v777_v35 = vmax.f32 %v745_v49, %v761_v11 }
 0x22c   :  { %v780_v17 = vmax.f32 %v748_v46, %v764_v9 }
 0x22d   :  { %v778_v3 = vmax.f32 %v746_v47, %v762_v30  ;;  %v7098_v36 = vpop.f32.mrb[12].mxu1 }
 0x22e   :  { %v8356_v41 = vpack.c.bf16 %v780_v17, %v779_v5  ;;  %v751_v34 = vadd.f32 %v7098_v36, %v8334_v61  ;;  %v722_v39 = vpop.f32.mrb[13].mxu1  ;;  %v43_v17 = vld [vmem:[%s11477_s8 + $0x11] ss:$0 sm:$0xff] }
 0x22f   :  { %v8359_v24 = vpack.c.bf16 %v778_v3, %v777_v35  ;;  %v749_v15 = vadd.f32 %v722_v39, %v8334_v61  ;;  %v7099_v18 = vpop.f32.mrb[14].mxu1 }
 0x230   :  { %v767_v32 = vmul.f32 0.2, %v751_v34  ;;  %v752_v13 = vadd.f32 %v7099_v18, %v8334_v61  ;;  %v725_v10 = vpop.f32.mrb[15].mxu1 }
 0x231   :  { %v765_v55 = vmul.f32 0.2, %v749_v15  ;;  %v750_v7 = vadd.f32 %v725_v10, %v8334_v61  ;;  %7102 = vmatprep.mubr.msk.bf16.mxu1 %vm488_vm0, %v8359_v24  ;;  %v7538_v10 = vld [vmem:[%s11475_s2 + $0x68] sm:$0xff]   ;;  %v11500_v61 = vmov 0  }
 0x232   :  { %v768_v11 = vmul.f32 0.2, %v752_v13  ;;  %7103 = vmatmul.mubr.msk.bf16.vlgmr.msra.gmra.mrb[16].mxu1 %vm488_vm0, %v8356_v41  ;;  %v783_v2 = vmax.f32 %v751_v34, %v767_v32  ;;  %7508 = vset.pattern.permute.xlu0 %v11500_v61 }
 0x233   :  { %v766_v49 = vmul.f32 0.2, %v750_v7  ;;  %7111 = vmatpush3.bf16.msra.mxu1 %v8328_v37  ;;  %v781_v47 = vmax.f32 %v749_v15, %v765_v55  ;;  %v7537_v55 = vld [vmem:[%s11475_s2 + $0x60] sm:$0xff]  }
 0x234   :  { %v784_v46 = vmax.f32 %v752_v13, %v768_v11  ;;  %7126 = vmatprep.subr.bf16.mxu0 %v7537_v55  ;;  %v7541_v37 = vld [vmem:[%s11478_s7 + $0x104] ss:$16 sps:$4 sm:$0xff]   ;;  %7120 = vmatprep.subr.bf16.mxu1 %v7538_v10 }
 0x235   :  { %v782_v9 = vmax.f32 %v750_v7, %v766_v49  ;;  %7127 = vmatpush3.bf16.msra.mxu0 %v7537_v55 }
 0x236   :  { %v8369_v30 = vpack.c.bf16 %v784_v46, %v783_v2  ;;  %1443 = vmatprep.subr.bf16.mxu0 %v7541_v37 }
 0x237   :  { %v8371_v5 = vpack.c.bf16 %v782_v9, %v781_v47 }
 0x239   :  { %7106 = vmatprep.mubr.msk.bf16.mxu1 %vm488_vm0, %v8371_v5 }
 0x23a   :  { %7107 = vmatmul.mubr.msk.bf16.gmra.mrb[20].mxu1 %vm488_vm0, %v8369_v30 }
 0x23b   :  { %7112 = vmatprep.mubr.msk.bf16.mxu1 %vm488_vm0, %v8343_v44 }
 0x242   :  { %7113 = vmatmul.mubr.msk.bf16.vlgmr.msra.gmra.mrb[16].mxu1 %vm488_vm0, %v8340_v14 }
 0x243   :  { %7116 = vmatprep.mubr.msk.bf16.mxu1 %vm488_vm0, %v8351_v54  ;;  %7121 = vmatpush3.bf16.msra.mxu1 %v7538_v10 }
 0x24a   :  { %7117 = vmatmul.mubr.msk.bf16.gmra.mrb[20].mxu1 %vm488_vm0, %v8348_v48 }
 0x315   :  { %v7114_v35 = vpop.f32.mrb[16].mxu1 }
 0x316   :  { %v965_v3 = vadd.f32 %v7114_v35, %v43_v17  ;;  %v932_v36 = vpop.f32.mrb[17].mxu1 }
 0x317   :  { %v963_v34 = vadd.f32 %v932_v36, %v43_v17  ;;  %v7115_v39 = vpop.f32.mrb[18].mxu1 }
 0x318   :  { %v966_v15 = vadd.f32 %v7115_v39, %v43_v17  ;;  %v935_v18 = vpop.f32.mrb[19].mxu1  ;;  %v973_v7 = vmul.f32 0.2, %v965_v3 }
 0x319   :  { %v971_v32 = vmul.f32 0.2, %v963_v34  ;;  %v964_v13 = vadd.f32 %v935_v18, %v43_v17  ;;  %v7539_v18 = vld [vmem:[%s11478_s7 + $0x100] ss:$16 sps:$4 sm:$0xff]  }
 0x31a   :  { %v974_v11 = vmul.f32 0.2, %v966_v15  ;;  %v8404_v55 = vmax.f32 %v965_v3, %v973_v7  ;;  %v7544_v3 = vld [vmem:[%s11478_s7 + $0x10c] ss:$16 sps:$4 sm:$0xff]  }
 0x31b   :  { %v972_v49 = vmul.f32 0.2, %v964_v13  ;;  %v8400_v46 = vmax.f32 %v963_v34, %v971_v32 }
 0x31c   :  { %v8398_v2 = vmax.f32 %v966_v15, %v974_v11 }
 0x31d   :  { %v8402_v47 = vmax.f32 %v964_v13, %v972_v49  ;;  %v7118_v9 = vpop.f32.mrb[20].mxu1 }
 0x31e   :  { %v969_v10 = vadd.f32 %v7118_v9, %v43_v17  ;;  %v948_v37 = vpop.f32.mrb[21].mxu1  ;;  %v988_v34 = vpack.c.bf16 %v8398_v2, %v8404_v55 }
 0x31f   :  { %v987_v35 = vpack.c.bf16 %v8402_v47, %v8400_v46  ;;  %v967_v36 = vadd.f32 %v948_v37, %v43_v17  ;;  %v7119_v39 = vpop.f32.mrb[22].mxu1 }
 0x320   :  { %v970_v15 = vadd.f32 %v7119_v39, %v43_v17  ;;  %v951_v32 = vpop.f32.mrb[23].mxu1  ;;  %v977_v11 = vmul.f32 0.2, %v969_v10 }
 0x321   :  { %v975_v13 = vmul.f32 0.2, %v967_v36  ;;  %v968_v7 = vadd.f32 %v951_v32, %v43_v17  ;;  %7128 = vmatprep.mubr.msk.bf16.mxu0 %vm488_vm0, %v987_v35  ;;  %v7542_v32 = vld [vmem:[%s11478_s7 + $0x108] ss:$16 sps:$4 sm:$0xff]  }
 0x322   :  { %v978_v49 = vmul.f32 0.2, %v970_v15  ;;  %7129 = vmatmul.mubr.msk.bf16.vlgmr.msra.gmra.mrb[32].mxu0 %vm488_vm0, %v988_v34  ;;  %v8425_v57 = vmax.f32 %v969_v10, %v977_v11  ;;  %v7547_v10 = vld [vmem:[%s11479_s4 + $0x4] ss:$8 sps:$4 sm:$0xff]   ;;  %v7580_v11 = vld [vmem:[%s11478_s7 + $0x40] ss:$16 sps:$4 sm:$0xff]  }
 0x323   :  { %v976_v9 = vmul.f32 0.2, %v968_v7  ;;  %1444 = vmatpush1.bf16.msra.mxu0 %v7539_v18  ;;  %1475 = vmatprep.mubr.bf16.mxu0 %v11500_v61  ;;  %v8421_v39 = vmax.f32 %v967_v36, %v975_v13  ;;  %v7550_v36 = vld [vmem:[%s11480_s3 + $0x4] ss:$8 sps:$4 sm:$0xff]   ;;  %v7577_v13 = vld [vmem:[%s11478_s7 + $0x20] ss:$16 sps:$4 sm:$0xff]  }
 0x324   :  { %v8419_v37 = vmax.f32 %v970_v15, %v978_v49  ;;  %1516 = vmatprep.subr.bf16.mxu0 %v7544_v3  ;;  %1169 = vmatprep.subr.bf16.mxu1 %v7547_v10  ;;  %v7576_v15 = vld [vmem:[%s11478_s7 + $0x4] ss:$16 sps:$4 sm:$0xff]   ;;  %v7589_v10 = vld [vmem:[%s11478_s7 + $0xa0] ss:$16 sps:$4 sm:$0xff]  }
 0x325   :  { %v8423_v59 = vmax.f32 %v968_v7, %v976_v9  ;;  %v7579_v3 = vld [vmem:[%s11478_s7 + $0x24] ss:$16 sps:$4 sm:$0xff]   ;;  %v7583_v9 = vld [vmem:[%s11478_s7 + $0x60] ss:$16 sps:$4 sm:$0xff]  }
 0x326   :  { %v990_v18 = vpack.c.bf16 %v8419_v37, %v8425_v57  ;;  %v7582_v7 = vld [vmem:[%s11478_s7 + $0x44] ss:$16 sps:$4 sm:$0xff]  }
 0x327   :  { %v989_v17 = vpack.c.bf16 %v8423_v59, %v8421_v39  ;;  %v7585_v49 = vld [vmem:[%s11478_s7 + $0x64] ss:$16 sps:$4 sm:$0xff]  }
 0x329   :  { %7122 = vmatprep.mubr.msk.bf16.mxu1 %vm488_vm0, %v989_v17 }
 0x32a   :  { %7123 = vmatmul.mubr.msk.bf16.vlgmr.msra.gmra.mrb[24].mxu1 %vm488_vm0, %v990_v18  ;;  %6553 = vmatmul.mubr.msk.bf16.vlgmr.msra.gmra.mrb[36].mxu0 %vm488_vm0, %v987_v35 }
 0x32b   :  { %1485 = vmatprep.mubr.bf16.mxu0 %v11500_v61  ;;  %1517 = vmatpush1.bf16.msra.mxu0 %v7542_v32  ;;  %v7586_v32 = vld [vmem:[%s11478_s7 + $0x80] ss:$16 sps:$4 sm:$0xff]  }
 0x32c   :  { %1201 = vmatprep.mubr.bf16.mxu1 %v11500_v61  ;;  %1749 = vmatprep.subr.bf16.mxu0 %v7576_v15 }
 0x332   :  { %6554 = vmatmul.mubr.msk.bf16.gmra.mrb[40].mxu0 %vm488_vm0, %v988_v34 }
 0x333   :  { %1495 = vmatprep.mubr.bf16.mxu0 %v11500_v61 }
 0x33a   :  { %6555 = vmatmul.mubr.msk.bf16.gmra.mrb[44].mxu0 %vm488_vm0, %v989_v17 }
 0x33b   :  { %1505 = vmatprep.mubr.bf16.mxu0 %v11500_v61 }
 0x342   :  { %6556 = vmatmul.mubr.msk.bf16.gmra.mrb[48].mxu0 %vm488_vm0, %v990_v18 }
 0x343   :  { %1548 = vmatprep.mubr.bf16.mxu0 %v11500_v61 }
 0x34a   :  { %6557 = vmatmul.mubr.msk.bf16.vlgmr.msra.gmra.mrb[52].mxu0 %vm488_vm0, %v987_v35  ;;  %v7545_v35 = vld [vmem:[%s11479_s4] ss:$8 sps:$4 sm:$0xff]  }
 0x34b   :  { %1558 = vmatprep.mubr.bf16.mxu0 %v11500_v61  ;;  %1170 = vmatpush1.bf16.msra.mxu1 %v7545_v35 }
 0x34c   :  { %1314 = vmatprep.subr.bf16.mxu1 %v7550_v36 }
 0x352   :  { %6558 = vmatmul.mubr.msk.bf16.gmra.mrb[56].mxu0 %vm488_vm0, %v988_v34  ;;  %v7574_v34 = vld [vmem:[%s11478_s7] ss:$16 sps:$4 sm:$0xff]  }
 0x353   :  { %1568 = vmatprep.mubr.bf16.mxu0 %v11500_v61  ;;  %1750 = vmatpush1.bf16.msra.mxu0 %v7574_v34 }
 0x354   :  { %1751 = vmatprep.subr.bf16.mxu0 %v7579_v3  ;;  %v44_v3 = vld [vmem:[%s11477_s8 + $0x12] ss:$0 sm:$0xff] }
 0x357   :  { %1752 = vmatpush1.bf16.msra.mxu0 %v7577_v13 }
 0x358   :  { %1753 = vmatprep.subr.bf16.mxu0 %v7582_v7 }
 0x35a   :  { %6559 = vmatmul.mubr.msk.bf16.gmra.mrb[60].mxu0 %vm488_vm0, %v989_v17  ;;  %v7588_v17 = vld [vmem:[%s11478_s7 + $0x84] ss:$16 sps:$4 sm:$0xff]  }
 0x35b   :  { %1578 = vmatprep.mubr.bf16.mxu0 %v11500_v61  ;;  %1754 = vmatpush1.bf16.msra.mxu0 %v7580_v11 }
 0x35c   :  { %1755 = vmatprep.subr.bf16.mxu0 %v7585_v49 }
 0x35f   :  { %1756 = vmatpush1.bf16.msra.mxu0 %v7583_v9 }
 0x360   :  { %1757 = vmatprep.subr.bf16.mxu0 %v7588_v17 }
 0x362   :  { %6560 = vmatmul.mubr.msk.bf16.gmra.mrb[64].mxu0 %vm488_vm0, %v990_v18  ;;  %v7591_v18 = vld [vmem:[%s11478_s7 + $0xa4] ss:$16 sps:$4 sm:$0xff]  }
 0x363   :  { %1781 = vmatprep.mubr.bf16.mxu0 %v11500_v61  ;;  %1758 = vmatpush1.bf16.msra.mxu0 %v7586_v32 }
 0x364   :  { %1759 = vmatprep.subr.bf16.mxu0 %v7591_v18 }
 0x367   :  { %1760 = vmatpush1.bf16.msra.mxu0 %v7589_v10 }
 0x3f5   :  { %v7130_v35 = vpop.f32.mrb[32].mxu0 }
 0x3f6   :  { %v1102_v36 = vpop.f32.mrb[33].mxu0 }
 0x3f7   :  { %v7131_v34 = vpop.f32.mrb[34].mxu0 }
 0x3f8   :  { %v1105_v15 = vpop.f32.mrb[35].mxu0 }
 0x3fd   :  { %v7124_v13 = vpop.f32.mrb[24].mxu1 }
 0x3fe   :  { %v1111_v7 = vadd.f32 %v7130_v35, %v7124_v13  ;;  %v1041_v11 = vpop.f32.mrb[25].mxu1  ;;  %v7548_v35 = vld [vmem:[%s11480_s3] ss:$8 sps:$4 sm:$0xff]  }
 0x3ff   :  { %v1103_v49 = vadd.f32 %v1102_v36, %v1041_v11  ;;  %v7125_v9 = vpop.f32.mrb[26].mxu1  ;;  %v7572_v13 = vld [vmem:[%s11481_s0] sm:$0xff]  }
 0x400   :  { %v1119_v17 = vadd.f32 %v1111_v7, %v44_v3  ;;  %v1114_v32 = vadd.f32 %v7131_v34, %v7125_v9  ;;  %v1044_v61 = vpop.f32.mrb[27].mxu1  ;;  %v7566_v34 = vld [vmem:[%s11480_s3 + $0x60] ss:$8 sps:$4 sm:$0xff]   ;;  %v7594_v11 = vld [vmem:[%s11478_s7 + $0xc4] ss:$16 sps:$4 sm:$0xff]  }
 0x401   :  { %v1117_v56 = vadd.f32 %v1103_v49, %v44_v3  ;;  %v1106_v40 = vadd.f32 %v1105_v15, %v1044_v61  ;;  %v7553_v61 = vld [vmem:[%s11480_s3 + $0x14] ss:$8 sps:$4 sm:$0xff]   ;;  %v7573_v7 = vld [vmem:[%s11481_s0 + $0x8] sm:$0xff]   ;;  %v7592_v49 = vld [vmem:[%s11478_s7 + $0xc0] ss:$16 sps:$4 sm:$0xff]   ;;  %1761 = vmatprep.subr.bf16.mxu0 %v7594_v11 }
 0x402   :  { %v1123_v18 = vmul.f32 0.2, %v1119_v17  ;;  %v1120_v10 = vadd.f32 %v1114_v32, %v44_v3  ;;  %v7571_v15 = vld [vmem:[%s11480_s3 + $0x74] ss:$8 sps:$4 sm:$0xff]   ;;  %1762 = vmatpush1.bf16.msra.mxu0 %v7592_v49 }
 0x403   :  { %v1121_v38 = vmul.f32 0.2, %v1117_v56  ;;  %v1118_v22 = vadd.f32 %v1106_v40, %v44_v3  ;;  %v7551_v40 = vld [vmem:[%s11480_s3 + $0x10] ss:$8 sps:$4 sm:$0xff]   ;;  %v7597_v9 = vld [vmem:[%s11478_s7 + $0xe4] ss:$16 sps:$4 sm:$0xff]  }
 0x404   :  { %v1124_v31 = vmul.f32 0.2, %v1120_v10  ;;  %v1127_v26 = vmax.f32 %v1119_v17, %v1123_v18  ;;  %v7569_v3 = vld [vmem:[%s11480_s3 + $0x70] ss:$8 sps:$4 sm:$0xff]   ;;  %1763 = vmatprep.subr.bf16.mxu0 %v7597_v9  ;;  %v7600_v32 = vld [vmem:[%s11478_s7 + $0xc] ss:$16 sps:$4 sm:$0xff]  }
 0x405   :  { %v1122_v28 = vmul.f32 0.2, %v1118_v22  ;;  %v1125_v4 = vmax.f32 %v1117_v56, %v1121_v38  ;;  %v7556_v56 = vld [vmem:[%s11480_s3 + $0x24] ss:$8 sps:$4 sm:$0xff]   ;;  %v7595_v17 = vld [vmem:[%s11478_s7 + $0xe0] ss:$16 sps:$4 sm:$0xff]  }
 0x406   :  { %v1128_v63 = vmax.f32 %v1120_v10, %v1124_v31  ;;  %v11692_v31 = vmov 0   ;;  %v7568_v38 = vld [vmem:[%s11480_s3 + $0x64] ss:$8 sps:$4 sm:$0xff]   ;;  %1764 = vmatpush1.bf16.msra.mxu0 %v7595_v17  ;;  %v33_v18 = vld [vmem:[%s11477_s8] ss:$0 sm:$0xff] }
 0x407   :  { %v1126_v62 = vmax.f32 %v1118_v22, %v1122_v28  ;;  %v7562_v28 = vld [vmem:[%s11480_s3 + $0x44] ss:$8 sps:$4 sm:$0xff]   ;;  %v7560_v22 = vld [vmem:[%s11480_s3 + $0x40] ss:$8 sps:$4 sm:$0xff]   ;;  %1822 = vmatprep.subr.bf16.mxu0 %v7600_v32 }
 0x408   :  { %v1152_v27 = vpack.c.bf16 %v1128_v63, %v1127_v26  ;;  %v7559_v63 = vld [vmem:[%s11480_s3 + $0x34] ss:$8 sps:$4 sm:$0xff]   ;;  %v7563_v26 = vld [vmem:[%s11480_s3 + $0x50] ss:$8 sps:$4 sm:$0xff]  }
 0x409   :  { %v1151_v36 = vpack.c.bf16 %v1126_v62, %v1125_v4  ;;  %v7554_v62 = vld [vmem:[%s11480_s3 + $0x20] ss:$8 sps:$4 sm:$0xff]   ;;  %v7557_v4 = vld [vmem:[%s11480_s3 + $0x30] ss:$8 sps:$4 sm:$0xff]  }
 0x40a   :  { %v7604_v9 = vld [vmem:[%s11478_s7 + $0x48] ss:$16 sps:$4 sm:$0xff]  }
 0x40b   :  { %6529 = vmatmul.mubr.msk.bf16.vlgmr.msra.gmra.mrb[28].mxu1 %vm488_vm0, %v1151_v36 }
 0x40c   :  { %1315 = vmatpush1.bf16.msra.mxu1 %v7548_v35  ;;  %1211 = vmatprep.mubr.bf16.mxu1 %v11692_v31 }
 0x40d   :  { %1316 = vmatprep.subr.bf16.mxu1 %v7553_v61 }
 0x410   :  { %1317 = vmatpush1.bf16.msra.mxu1 %v7551_v40 }
 0x411   :  { %1318 = vmatprep.subr.bf16.mxu1 %v7556_v56 }
 0x413   :  { %6530 = vmatmul.mubr.msk.bf16.gmra.mrb[32].mxu1 %vm488_vm0, %v1152_v27  ;;  %v7565_v27 = vld [vmem:[%s11480_s3 + $0x54] ss:$8 sps:$4 sm:$0xff]  }
 0x414   :  { %1319 = vmatpush1.bf16.msra.mxu1 %v7554_v62  ;;  %1346 = vmatprep.mubr.bf16.mxu1 %v11692_v31 }
 0x415   :  { %1320 = vmatprep.subr.bf16.mxu1 %v7559_v63 }
 0x418   :  { %1321 = vmatpush1.bf16.msra.mxu1 %v7557_v4  ;;  %v7598_v4 = vld [vmem:[%s11478_s7 + $0x8] ss:$16 sps:$4 sm:$0xff]  }
 0x419   :  { %1322 = vmatprep.subr.bf16.mxu1 %v7562_v28 }
 0x41c   :  { %1323 = vmatpush1.bf16.msra.mxu1 %v7560_v22  ;;  %v7603_v22 = vld [vmem:[%s11478_s7 + $0x2c] ss:$16 sps:$4 sm:$0xff]  }
 0x41d   :  { %1324 = vmatprep.subr.bf16.mxu1 %v7565_v27 }
 0x420   :  { %1325 = vmatpush1.bf16.msra.mxu1 %v7563_v26 }
 0x421   :  { %1326 = vmatprep.subr.bf16.mxu1 %v7568_v38 }
 0x424   :  { %1327 = vmatpush1.bf16.msra.mxu1 %v7566_v34 }
 0x425   :  { %1328 = vmatprep.subr.bf16.mxu1 %v7571_v15  ;;  %v7601_v15 = vld [vmem:[%s11478_s7 + $0x28] ss:$16 sps:$4 sm:$0xff]  }
 0x428   :  { %1329 = vmatpush1.bf16.msra.mxu1 %v7569_v3 }
 0x42b   :  { %1347 = vmatmul.mubr.bf16.vlgmr.msra.gmra.mrb[28].mxu1 %v7572_v13 }
 0x42c   :  { %1356 = vmatprep.mubr.bf16.mxu1 %v11692_v31 }
 0x433   :  { %1357 = vmatmul.mubr.bf16.gmra.mrb[32].mxu1 %v7573_v7  ;;  %v7606_v7 = vld [vmem:[%s11478_s7 + $0x4c] ss:$16 sps:$4 sm:$0xff]  }
 0x434   :  { %2192 = vmatprep.mubr.bf16.mxu1 %v11692_v31 }
 0x4fe   :  { %v1348_v10 = vpop.f32.mrb[28].mxu1 }
 0x4ff   :  { %v8576_v35 = vadd.f32 %v1348_v10, %v33_v18  ;;  %v1350_v36 = vpop.f32.mrb[29].mxu1  ;;  %v7609_v10 = vld [vmem:[%s11478_s7 + $0x6c] ss:$16 sps:$4 sm:$0xff]  }
 0x500   :  { %v1352_v61 = vpop.f32.mrb[30].mxu1 }
 0x501   :  { %v8578_v40 = vadd.f32 %v1352_v61, %v33_v18  ;;  %v1354_v56 = vpop.f32.mrb[31].mxu1  ;;  %v11520_v62 = vmax.f32 %v8576_v35, 0.0  ;;  %v8617_v61 = vadd.f32 %v1350_v36, %v33_v18  ;;  %v7610_v36 = vld [vmem:[%s11478_s7 + $0x88] ss:$16 sps:$4 sm:$0xff]  }
 0x502   :  { %v8608_v17 = vadd.f32 %v1354_v56, %v33_v18 }
 0x503   :  { %v11519_v63 = vmax.f32 %v8578_v40, 0.0 }
 0x504   :  { %v11515_v56 = vmax.f32 %v8608_v17, 0.0 }
 0x505   :  { %v1383_v28 = vpack.c.bf16 %v11519_v63, %v11520_v62 }
 0x506   :  { %v1358_v27 = vpop.f32.mrb[32].mxu1 }
 0x507   :  { %v8592_v26 = vadd.f32 %v1358_v27, %v33_v18  ;;  %v1360_v38 = vpop.f32.mrb[33].mxu1  ;;  %1782 = vmatmul.mubr.bf16.vlgmr.msra.gmra.mrb[36].mxu0 %v1383_v28  ;;  %v11516_v27 = vmax.f32 %v8617_v61, 0.0 }
 0x508   :  { %v1362_v34 = vpop.f32.mrb[34].mxu1  ;;  %1823 = vmatpush1.bf16.msra.mxu0 %v7598_v4  ;;  %1791 = vmatprep.mubr.bf16.mxu0 %v11692_v31  ;;  %v7607_v4 = vld [vmem:[%s11478_s7 + $0x68] ss:$16 sps:$4 sm:$0xff]  }
 0x509   :  { %v8598_v3 = vadd.f32 %v1362_v34, %v33_v18  ;;  %v1364_v13 = vpop.f32.mrb[35].mxu1  ;;  %1824 = vmatprep.subr.bf16.mxu0 %v7603_v22  ;;  %v11518_v11 = vmax.f32 %v8592_v26, 0.0  ;;  %v7612_v22 = vld [vmem:[%s11478_s7 + $0x8c] ss:$16 sps:$4 sm:$0xff]   ;;  %v1385_v34 = vpack.c.bf16 %v11515_v56, %v11516_v27 }
 0x50b   :  { %v11517_v49 = vmax.f32 %v8598_v3, 0.0 }
 0x50c   :  { %1825 = vmatpush1.bf16.msra.mxu0 %v7601_v15  ;;  %v8635_v15 = vadd.f32 %v1364_v13, %v33_v18  ;;  %v7618_v13 = vld [vmem:[%s11478_s7 + $0xcc] ss:$16 sps:$4 sm:$0xff]  }
 0x50d   :  { %v1384_v32 = vpack.c.bf16 %v11517_v49, %v11518_v11  ;;  %1826 = vmatprep.subr.bf16.mxu0 %v7606_v7  ;;  %v7615_v7 = vld [vmem:[%s11478_s7 + $0xac] ss:$16 sps:$4 sm:$0xff]  }
 0x50f   :  { %1792 = vmatmul.mubr.bf16.gmra.mrb[40].mxu0 %v1384_v32 }
 0x510   :  { %1827 = vmatpush1.bf16.msra.mxu0 %v7604_v9  ;;  %1801 = vmatprep.mubr.bf16.mxu0 %v11692_v31  ;;  %v8640_v9 = vadd.f32 %v1360_v38, %v33_v18  ;;  %v7616_v18 = vld [vmem:[%s11478_s7 + $0xc8] ss:$16 sps:$4 sm:$0xff]  }
 0x511   :  { %1828 = vmatprep.subr.bf16.mxu0 %v7609_v10  ;;  %v7613_v10 = vld [vmem:[%s11478_s7 + $0xa8] ss:$16 sps:$4 sm:$0xff]  }
 0x514   :  { %1829 = vmatpush1.bf16.msra.mxu0 %v7607_v4  ;;  %v11513_v4 = vmax.f32 %v8635_v15, 0.0 }
 0x515   :  { %1830 = vmatprep.subr.bf16.mxu0 %v7612_v22  ;;  %v11514_v22 = vmax.f32 %v8640_v9, 0.0 }
 0x517   :  { %1802 = vmatmul.mubr.bf16.gmra.mrb[44].mxu0 %v1385_v34  ;;  %v1386_v38 = vpack.c.bf16 %v11513_v4, %v11514_v22 }
 0x518   :  { %1831 = vmatpush1.bf16.msra.mxu0 %v7610_v36  ;;  %1811 = vmatprep.mubr.bf16.mxu0 %v11692_v31  ;;  %v7621_v36 = vld [vmem:[%s11478_s7 + $0xec] ss:$16 sps:$4 sm:$0xff]  }
 0x519   :  { %1832 = vmatprep.subr.bf16.mxu0 %v7615_v7  ;;  %v7619_v7 = vld [vmem:[%s11478_s7 + $0xe8] ss:$16 sps:$4 sm:$0xff]  }
 0x51c   :  { %1833 = vmatpush1.bf16.msra.mxu0 %v7613_v10  ;;  %v37_v10 = vld [vmem:[%s11477_s8 + $0x4] ss:$0 sm:$0xff] }
 0x51d   :  { %1834 = vmatprep.subr.bf16.mxu0 %v7618_v13 }
 0x51f   :  { %1812 = vmatmul.mubr.bf16.gmra.mrb[48].mxu0 %v1386_v38 }
 0x520   :  { %1835 = vmatpush1.bf16.msra.mxu0 %v7616_v18  ;;  %1854 = vmatprep.mubr.bf16.mxu0 %v11692_v31  ;;  %v38_v18 = vld [vmem:[%s11477_s8 + $0x5] ss:$0 sm:$0xff] }
 0x521   :  { %1836 = vmatprep.subr.bf16.mxu0 %v7621_v36 }
 0x524   :  { %1837 = vmatpush1.bf16.msra.mxu0 %v7619_v7 }
 0x527   :  { %1855 = vmatmul.mubr.bf16.vlgmr.msra.gmra.mrb[52].mxu0 %v1383_v28 }
 0x528   :  { %1864 = vmatprep.mubr.bf16.mxu0 %v11692_v31 }
 0x52f   :  { %1865 = vmatmul.mubr.bf16.gmra.mrb[56].mxu0 %v1384_v32 }
 0x530   :  { %1874 = vmatprep.mubr.bf16.mxu0 %v11692_v31 }
 0x537   :  { %1875 = vmatmul.mubr.bf16.gmra.mrb[60].mxu0 %v1385_v34 }
 0x538   :  { %1884 = vmatprep.mubr.bf16.mxu0 %v11692_v31 }
 0x53f   :  { %1885 = vmatmul.mubr.bf16.gmra.mrb[64].mxu0 %v1386_v38 }
 0x5da   :  { %v1783_v13 = vpop.f32.mrb[36].mxu0 }
 0x5db   :  { %v1785_v36 = vpop.f32.mrb[37].mxu0  ;;  %v1895_v7 = vadd.f32 %v1783_v13, %v37_v10 }
 0x5dc   :  { %v1787_v28 = vpop.f32.mrb[38].mxu0  ;;  %v1907_v22 = vadd.f32 %v1785_v36, %v38_v18 }
 0x5dd   :  { %v1896_v4 = vadd.f32 %v1787_v28, %v37_v10  ;;  %v1789_v32 = vpop.f32.mrb[39].mxu0 }
 0x5de   :  { %v1908_v56 = vadd.f32 %v1789_v32, %v38_v18 }
 0x5df   :  { %v1903_v34 = vpack.c.bf16 %v1896_v4, %v1895_v7  ;;  %v1920_v7 = vlaneseq }
 0x5e0   :  { %v1915_v27 = vpack.c.bf16 %v1908_v56, %v1907_v22 }
 0x5e1   :  { %7140 = vmatprep.mubr.bf16.mxu0 %v1903_v34 }
 0x5e2   :  { %v1793_v38 = vpop.f32.mrb[40].mxu0  ;;  %7132 = vmatprep.subr.bf16.mxu0 %v1915_v27 }
 0x5e3   :  { %v1795_v49 = vpop.f32.mrb[41].mxu0  ;;  %7133 = vmatpush3.bf16.xpose.msra.mxu0 %v1915_v27  ;;  %v1897_v63 = vadd.f32 %v1793_v38, %v37_v10 }
 0x5e4   :  { %v1797_v11 = vpop.f32.mrb[42].mxu0  ;;  %v1909_v52 = vadd.f32 %v1795_v49, %v38_v18 }
 0x5e5   :  { %v1898_v62 = vadd.f32 %v1797_v11, %v37_v10  ;;  %v1799_v45 = vpop.f32.mrb[43].mxu0  ;;  %v8675_v11 = vshrl.u32 %v1920_v7, 7 }
 0x5e6   :  { %v1910_v25 = vadd.f32 %v1799_v45, %v38_v18 }
 0x5e7   :  { %v1904_v50 = vpack.c.bf16 %v1898_v62, %v1897_v63  ;;  %v1922_v63 = vsub.s32 0, %v8675_v11 }
 0x5e8   :  { %v1916_v8 = vpack.c.bf16 %v1910_v25, %v1909_v52 }
 0x5ea   :  { %v1803_v13 = vpop.f32.mrb[44].mxu0  ;;  %7134 = vmatprep.subr.bf16.mxu0 %v1916_v8 }
 0x5eb   :  { %v1805_v28 = vpop.f32.mrb[45].mxu0  ;;  %7135 = vmatpush3.bf16.xpose.msra.mxu0 %v1916_v8  ;;  %v1899_v4 = vadd.f32 %v1803_v13, %v37_v10 }
 0x5ec   :  { %v1807_v36 = vpop.f32.mrb[46].mxu0  ;;  %v1911_v32 = vadd.f32 %v1805_v28, %v38_v18  ;;  %v6468_v28 = vld [vmem:[%s11477_s8 + $0x6] ss:$8 sm:$0x3] }
 0x5ed   :  { %v1900_v56 = vadd.f32 %v1807_v36, %v37_v10  ;;  %v1809_v22 = vpop.f32.mrb[47].mxu0  ;;  %v1926_v36 = vsub.s32 1, %v8675_v11 }
 0x5ee   :  { %v1912_v34 = vadd.f32 %v1809_v22, %v38_v18  ;;  %v8685_v22 = vrot.slane %v6468_v28, %v1922_v63 }
 0x5ef   :  { %v1905_v27 = vpack.c.bf16 %v1900_v56, %v1899_v4 }
 0x5f0   :  { %v1917_v20 = vpack.c.bf16 %v1912_v34, %v1911_v32  ;;  %v8687_v32 = vrot.slane %v6468_v28, %v1926_v36 }
 0x5f2   :  { %v1813_v49 = vpop.f32.mrb[48].mxu0  ;;  %7136 = vmatprep.subr.bf16.mxu0 %v1917_v20 }
 0x5f3   :  { %v1815_v45 = vpop.f32.mrb[49].mxu0  ;;  %7137 = vmatpush3.bf16.xpose.msra.mxu0 %v1917_v20  ;;  %v1901_v52 = vadd.f32 %v1813_v49, %v37_v10  ;;  %v7624_v20 = vld [vmem:[%s11479_s4 + $0x24] ss:$8 sps:$4 sm:$0xff]  }
 0x5f4   :  { %v1817_v25 = vpop.f32.mrb[50].mxu0  ;;  %v1913_v38 = vadd.f32 %v1815_v45, %v38_v18 }
 0x5f5   :  { %v1902_v62 = vadd.f32 %v1817_v25, %v37_v10  ;;  %v1819_v8 = vpop.f32.mrb[51].mxu0 }
 0x5f6   :  { %v1914_v13 = vadd.f32 %v1819_v8, %v38_v18 }
 0x5f7   :  { %v1906_v4 = vpack.c.bf16 %v1902_v62, %v1901_v52 }
 0x5f8   :  { %v1918_v56 = vpack.c.bf16 %v1914_v13, %v1913_v38  ;;  %v7622_v38 = vld [vmem:[%s11479_s4 + $0x20] ss:$8 sps:$4 sm:$0xff]  }
 0x5fa   :  { %v1856_v10 = vpop.f32.mrb[52].mxu0  ;;  %7138 = vmatprep.subr.bf16.mxu0 %v1918_v56 }
 0x5fb   :  { %v1858_v34 = vpop.f32.mrb[53].mxu0  ;;  %7139 = vmatpush3.bf16.xpose.msra.mxu0 %v1918_v56  ;;  %v1930_v49 = vadd.f32 %v8685_v22, %v1856_v10 }
 0x5fc   :  { %v1860_v18 = vpop.f32.mrb[54].mxu0  ;;  %2612 = vmatprep.subr.bf16.mxu0 %v7624_v20  ;;  %v1931_v52 = vadd.f32 %v8687_v32, %v1858_v34 }
 0x5fd   :  { %v1932_v45 = vadd.f32 %v8685_v22, %v1860_v18  ;;  %v1862_v25 = vpop.f32.mrb[55].mxu0 }
 0x5fe   :  { %v1933_v62 = vadd.f32 %v8687_v32, %v1862_v25 }
 0x5ff   :  { %v2140_v8 = vpack.c.bf16 %v1932_v45, %v1930_v49 }
 0x600   :  { %v2141_v63 = vpack.c.bf16 %v1933_v62, %v1931_v52 }
 0x602   :  { %v1866_v13 = vpop.f32.mrb[56].mxu0  ;;  %7141 = vmatmul.mubr.bf16.vlgmr.msra.gmra.mrb[68].mxu0 %v1904_v50  ;;  %2160 = vmatprep.subr.bf16.mxu1 %v2141_v63 }
 0x603   :  { %v1868_v28 = vpop.f32.mrb[57].mxu0  ;;  %7144 = vmatprep.mubr.bf16.mxu0 %v1905_v27  ;;  %2161 = vmatpush1.bf16.msra.mxu1 %v2140_v8  ;;  %v1934_v56 = vadd.f32 %v8685_v22, %v1866_v13 }
 0x604   :  { %v1870_v36 = vpop.f32.mrb[58].mxu0  ;;  %2613 = vmatpush1.bf16.msra.mxu0 %v7622_v38  ;;  %v1935_v34 = vadd.f32 %v8687_v32, %v1868_v28 }
 0x605   :  { %v1936_v20 = vadd.f32 %v8685_v22, %v1870_v36  ;;  %v1872_v10 = vpop.f32.mrb[59].mxu0 }
 0x606   :  { %v1937_v18 = vadd.f32 %v8687_v32, %v1872_v10 }
 0x607   :  { %v2142_v49 = vpack.c.bf16 %v1936_v20, %v1934_v56 }
 0x608   :  { %v2143_v45 = vpack.c.bf16 %v1937_v18, %v1935_v34 }
 0x60a   :  { %v1876_v25 = vpop.f32.mrb[60].mxu0  ;;  %7145 = vmatmul.mubr.bf16.gmra.mrb[72].mxu0 %v1906_v4  ;;  %2162 = vmatprep.subr.bf16.mxu1 %v2143_v45 }
 0x60b   :  { %v1878_v50 = vpop.f32.mrb[61].mxu0  ;;  %2163 = vmatpush1.bf16.msra.mxu1 %v2142_v49  ;;  %2644 = vmatprep.mubr.bf16.mxu0 %v11692_v31  ;;  %v1938_v52 = vadd.f32 %v8685_v22, %v1876_v25 }
 0x60c   :  { %v1880_v27 = vpop.f32.mrb[62].mxu0  ;;  %v1939_v63 = vadd.f32 %v8687_v32, %v1878_v50  ;;  %v11697_v50 = vmov 0 }
 0x60d   :  { %v1940_v62 = vadd.f32 %v8685_v22, %v1880_v27  ;;  %v1882_v8 = vpop.f32.mrb[63].mxu0 }
 0x60e   :  { %v1941_v38 = vadd.f32 %v8687_v32, %v1882_v8  ;;  %v11703_v8 = vmov 0 }
 0x60f   :  { %v2144_v13 = vpack.c.bf16 %v1940_v62, %v1938_v52  ;;  %v8767_v52 = vadd.s32 32, %v8675_v11 }
 0x610   :  { %v2145_v28 = vpack.c.bf16 %v1941_v38, %v1939_v63 }
 0x611   :  { %11702 = vst [vmem:[#allocation39_spill] sm:$0xff] %v8767_v52 }
 0x612   :  { %v1886_v36 = vpop.f32.mrb[64].mxu0  ;;  %2164 = vmatprep.subr.bf16.mxu1 %v2145_v28  ;;  %6621 = vmatmul.mubr.msk.bf16.vlgmr.msra.gmra.mrb[76].mxu0 %vm488_vm0, %v8343_v44  ;;  %v8734_v44 = vand.u32 127, %v1920_v7  ;;  %v8786_v28 = vadd.s32 48, %v8675_v11 }
 0x613   :  { %v1888_v4 = vpop.f32.mrb[65].mxu0  ;;  %2165 = vmatpush1.bf16.msra.mxu1 %v2144_v13  ;;  %2654 = vmatprep.mubr.bf16.mxu0 %v11692_v31  ;;  %v1942_v20 = vadd.f32 %v8685_v22, %v1886_v36  ;;  %v11706_v13 = vmov 0  ;;  %v8789_v36 = vadd.s32 40, %v8675_v11 }
 0x614   :  { %v1890_v56 = vpop.f32.mrb[66].mxu0  ;;  %v1943_v18 = vadd.f32 %v8687_v32, %v1888_v4  ;;  %11693 = vst [vmem:[#allocation34_spill] sm:$0xff] %v8734_v44  ;;  %11709 = vst [vmem:[#allocation42_spill] sm:$0xff] %v8786_v28 }
 0x615   :  { %v1944_v10 = vadd.f32 %v8685_v22, %v1890_v56  ;;  %v1892_v34 = vpop.f32.mrb[67].mxu0  ;;  %11710 = vst [vmem:[#allocation43_spill] sm:$0xff] %v8789_v36 }
 0x616   :  { %v1945_v49 = vadd.f32 %v8687_v32, %v1892_v34 }
 0x617   :  { %v2146_v45 = vpack.c.bf16 %v1944_v10, %v1942_v20 }
 0x618   :  { %v2147_v25 = vpack.c.bf16 %v1945_v49, %v1943_v18  ;;  %v11529_v49 = vand.u32 15, %v8767_v52 }
 0x61a   :  { %2166 = vmatprep.subr.bf16.mxu1 %v2147_v25  ;;  %6622 = vmatmul.mubr.msk.bf16.gmra.mrb[80].mxu0 %vm488_vm0, %v8340_v14  ;;  %v8737_v14 = vadd.s32 16, %v8675_v11 }
 0x61b   :  { %2167 = vmatpush1.bf16.msra.mxu1 %v2146_v45  ;;  %2664 = vmatprep.mubr.bf16.mxu0 %v11692_v31  ;;  %v8799_v45 = vadd.s32 56, %v8675_v11 }
 0x61c   :  { %11694 = vst [vmem:[#allocation35_spill] sm:$0xff] %v8737_v14 }
 0x61d   :  { %11711 = vst [vmem:[#allocation44_spill] sm:$0xff] %v8799_v45 }
 0x622   :  { %6623 = vmatmul.mubr.msk.bf16.gmra.mrb[84].mxu0 %vm488_vm0, %v8351_v54  ;;  %v8743_v54 = vadd.s32 8, %v8675_v11 }
 0x623   :  { %2674 = vmatprep.mubr.bf16.mxu0 %v11692_v31 }
 0x624   :  { %v11530_v7 = vand.u32 15, %v8743_v54 }
 0x62a   :  { %6624 = vmatmul.mubr.msk.bf16.gmra.mrb[88].mxu0 %vm488_vm0, %v8348_v48  ;;  %v8740_v48 = vadd.s32 24, %v8675_v11 }
 0x62b   :  { %2684 = vmatprep.mubr.bf16.mxu0 %v11692_v31 }
 0x62c   :  { %11695 = vst [vmem:[#allocation36_spill] sm:$0xff] %v8740_v48 }
 0x632   :  { %6625 = vmatmul.mubr.msk.bf16.gmra.mrb[92].mxu0 %vm488_vm0, %v8359_v24  ;;  %v8747_v24 = vand.u32 15, %v8734_v44 }
 0x633   :  { %2694 = vmatprep.mubr.bf16.mxu0 %v11692_v31 }
 0x634   :  { %11696 = vst [vmem:[#allocation37_spill] sm:$0xff] %v8747_v24  ;;  %vm8781_vm5 = vcmp.eq.s32.totalorder %v11530_v7, %v8747_v24  ;;  %vm8810_vm6 = vcmp.eq.s32.totalorder %v11529_v49, %v8747_v24  ;;  %v11718_v49 = vmov 0 }
 0x635   :  { %v11707_v13 = vsel %vm8781_vm5, 4294967295, %v11706_v13 }
 0x636   :  { %11708 = vst [vmem:[#allocation41_spill] sm:$0xff] %v11707_v13 }
 0x63a   :  { %6626 = vmatmul.mubr.msk.bf16.gmra.mrb[96].mxu0 %vm488_vm0, %v8356_v41  ;;  %v11528_v41 = vand.u32 15, %v8737_v14 }
 0x63b   :  { %2704 = vmatprep.mubr.bf16.mxu0 %v11692_v31 }
 0x63c   :  { %vm8755_vm1 = vcmp.eq.s32.totalorder %v11528_v41, %v8747_v24  ;;  %v11537_v41 = vand.u32 15, %v8799_v45 }
 0x63d   :  { %v11698_v50 = vsel %vm8755_vm1, 4294967295, %v11697_v50 }
 0x63e   :  { %11699 = vst [vmem:[#allocation38_spill] sm:$0xff] %v11698_v50  ;;  %vm8834_vm9 = vcmp.eq.s32.totalorder %v11537_v41, %v8747_v24 }
 0x642   :  { %6627 = vmatmul.mubr.msk.bf16.gmra.mrb[100].mxu0 %vm488_vm0, %v8371_v5  ;;  %v11527_v5 = vand.u32 15, %v8740_v48 }
 0x643   :  { %2714 = vmatprep.mubr.bf16.mxu0 %v11692_v31 }
 0x644   :  { %vm8772_vm4 = vcmp.eq.s32.totalorder %v11527_v5, %v8747_v24 }
 0x645   :  { %v11704_v8 = vsel %vm8772_vm4, 4294967295, %v11703_v8 }
 0x646   :  { %11705 = vst [vmem:[#allocation40_spill] sm:$0xff] %v11704_v8 }
 0x64a   :  { %6628 = vmatmul.mubr.msk.bf16.gmra.mrb[104].mxu0 %vm488_vm0, %v8369_v30  ;;  %v11532_v30 = vand.u32 15, %v8675_v11 }
 0x64b   :  { %2837 = vmatprep.mubr.bf16.mxu0 %v11692_v31 }
 0x64c   :  { %vm8762_vm2 = vcmp.eq.s32.totalorder %v11532_v30, %v8747_v24 }
 0x6d5   :  { %v7142_v62 = vpop.f32.mrb[68].mxu0 }
 0x6d6   :  { %v2041_v63 = vsel %vm8755_vm1, %v7142_v62, -1e+30  ;;  %v1980_v38 = vpop.f32.mrb[69].mxu0  ;;  %v11531_v62 = vand.u32 15, %v8786_v28 }
 0x6d7   :  { %v2039_v4 = vsel %vm8762_vm2, %v1980_v38, -1e+30  ;;  %v7143_v56 = vpop.f32.mrb[70].mxu0  ;;  %v2054_v20 = vsel %vm2047_vm3, %v2041_v63, -inf  ;;  %v11534_v38 = vand.u32 15, %v8789_v36 }
 0x6d8   :  { %v2042_v10 = vsel %vm8772_vm4, %v7143_v56, -1e+30  ;;  %2055 = vmax.xlane.f32.xlu1 %v2054_v20  ;;  %v1983_v34 = vpop.f32.mrb[71].mxu0  ;;  %v2048_v18 = vsel %vm2047_vm3, %v2039_v4, -inf  ;;  %v11712_v20 = vmov 0  ;;  %vm8818_vm7 = vcmp.eq.s32.totalorder %v11531_v62, %v8747_v24 }
 0x6d9   :  { %v2040_v25 = vsel %vm8781_vm5, %v1983_v34, -1e+30  ;;  %2049 = vmax.xlane.f32.xlu0 %v2048_v18  ;;  %v2057_v5 = vsel %vm2047_vm3, %v2042_v10, -inf  ;;  %v11713_v20 = vsel %vm8810_vm6, 4294967295, %v11712_v20  ;;  %v11715_v18 = vmov 0 }
 0x6da   :  { %v2051_v56 = vsel %vm2047_vm3, %v2040_v25, -inf  ;;  %11714 = vst [vmem:[#allocation45_spill] sm:$0xff] %v11713_v20  ;;  %v11716_v18 = vsel %vm8818_vm7, 4294967295, %v11715_v18  ;;  %vm8825_vm8 = vcmp.eq.s32.totalorder %v11534_v38, %v8747_v24  ;;  %v11721_v62 = vmov 0 }
 0x6db   :  { %11717 = vst [vmem:[#allocation46_spill] sm:$0xff] %v11716_v18  ;;  %v11719_v49 = vsel %vm8825_vm8, 4294967295, %v11718_v49  ;;  %v11722_v62 = vsel %vm8834_vm9, 4294967295, %v11721_v62 }
 0x6dc   :  { %2058 = vmax.xlane.f32.xlu1 %v2057_v5  ;;  %11720 = vst [vmem:[#allocation47_spill] sm:$0xff] %v11719_v49  ;;  %11723 = vst [vmem:[#allocation48_spill] sm:$0xff] %v11722_v62 }
 0x6dd   :  { %2052 = vmax.xlane.f32.xlu0 %v2051_v56  ;;  %v7146_v34 = vpop.f32.mrb[72].mxu0 }
 0x6de   :  { %v1996_v5 = vpop.f32.mrb[73].mxu0  ;;  %v2045_v38 = vsel %vm8818_vm7, %v7146_v34, -1e+30 }
 0x6df   :  { %v2043_v7 = vsel %vm8810_vm6, %v1996_v5, -1e+30  ;;  %v7147_v56 = vpop.f32.mrb[74].mxu0  ;;  %v2066_v41 = vsel %vm2047_vm3, %v2045_v38, -inf }
 0x6e0   :  { %v1999_v30 = vpop.f32.mrb[75].mxu0  ;;  %v2060_v28 = vsel %vm2047_vm3, %v2043_v7, -inf  ;;  %v2046_v20 = vsel %vm8834_vm9, %v7147_v56, -1e+30 }
 0x6e1   :  { %v2044_v36 = vsel %vm8825_vm8, %v1999_v30, -1e+30  ;;  %2061 = vmax.xlane.f32.xlu0 %v2060_v28  ;;  %v2069_v24 = vsel %vm2047_vm3, %v2046_v20, -inf }
 0x6e2   :  { %v2063_v5 = vsel %vm2047_vm3, %v2044_v36, -inf }
 0x6e3   :  { %2064 = vmax.xlane.f32.xlu1 %v2063_v5 }
 0x6e5   :  { %2067 = vmax.xlane.f32.xlu0 %v2066_v41 }
 0x6e7   :  { %2070 = vmax.xlane.f32.xlu1 %v2069_v24 }
 0x765   :  { %v2056_v45 = vpop.xlane.xlu1 %2055 }
 0x766   :  { %v2074_v52 = vsub.f32 %v2041_v63, %v2056_v45  ;;  %v2050_v18 = vpop.xlane.xlu0 %2049 }
 0x767   :  { %v2072_v34 = vsub.f32 %v2039_v4, %v2050_v18 }
 0x768   :  { %v2084_v8 = vmul.f32 1.442695, %v2074_v52 }
 0x769   :  { %v2080_v49 = vmul.f32 1.442695, %v2072_v34  ;;  %v2059_v30 = vpop.xlane.xlu1 %2058 }
 0x76a   :  { %v2075_v28 = vsub.f32 %v2042_v10, %v2059_v30  ;;  %v2053_v48 = vpop.xlane.xlu0 %2052 }
 0x76b   :  { %7685 = vpow2.f32 %v2080_v49  ;;  %v2073_v50 = vsub.f32 %v2040_v25, %v2053_v48 }
 0x76c   :  { %7687 = vpow2.f32 %v2084_v8  ;;  %v2086_v56 = vmul.f32 1.442695, %v2075_v28 }
 0x76d   :  { %v2082_v5 = vmul.f32 1.442695, %v2073_v50 }
 0x76e   :  { %v2062_v62 = vpop.xlane.xlu0 %2061 }
 0x76f   :  { %7689 = vpow2.f32 %v2082_v5  ;;  %v2076_v41 = vsub.f32 %v2043_v7, %v2062_v62 }
 0x770   :  { %v2065_v14 = vpop.xlane.xlu1 %2064  ;;  %7691 = vpow2.f32 %v2086_v56 }
 0x771   :  { %v2088_v24 = vmul.f32 1.442695, %v2076_v41  ;;  %v2077_v13 = vsub.f32 %v2044_v36, %v2065_v14  ;;  %v36_v41 = vld [vmem:[%s11477_s8 + $0x3] ss:$0 sm:$0xff] }
 0x772   :  { %v2068_v63 = vpop.xlane.xlu0 %2067 }
 0x773   :  { %7693 = vpow2.f32 %v2088_v24  ;;  %v2090_v4 = vmul.f32 1.442695, %v2077_v13  ;;  %v2078_v52 = vsub.f32 %v2045_v38, %v2068_v63 }
 0x774   :  { %v2071_v45 = vpop.xlane.xlu1 %2070 }
 0x775   :  { %v7686_v18 = vpop.eup %7685  ;;  %7695 = vpow2.f32 %v2090_v4  ;;  %v2092_v10 = vmul.f32 1.442695, %v2078_v52  ;;  %v2079_v49 = vsub.f32 %v2046_v20, %v2071_v45 }
 0x776   :  { %v2096_v48 = vsel %vm2047_vm3, %v7686_v18, 0.0  ;;  %v7688_v8 = vpop.eup %7687 }
 0x777   :  { %7697 = vpow2.f32 %v2092_v10  ;;  %v2094_v50 = vmul.f32 1.442695, %v2079_v49  ;;  %2097 = vadd.xlane.f32.xlu0 %v2096_v48  ;;  %v2102_v25 = vsel %vm2047_vm3, %v7688_v8, 0.0 }
 0x779   :  { %v7690_v7 = vpop.eup %7689  ;;  %7699 = vpow2.f32 %v2094_v50 }
 0x77a   :  { %v2099_v14 = vsel %vm2047_vm3, %v7690_v7, 0.0  ;;  %v7692_v36 = vpop.eup %7691 }
 0x77b   :  { %2103 = vadd.xlane.f32.xlu0 %v2102_v25  ;;  %2100 = vadd.xlane.f32.xlu1 %v2099_v14  ;;  %v2105_v38 = vsel %vm2047_vm3, %v7692_v36, 0.0 }
 0x77d   :  { %v7694_v13 = vpop.eup %7693 }
 0x77e   :  { %v2108_v62 = vsel %vm2047_vm3, %v7694_v13, 0.0 }
 0x77f   :  { %v7696_v20 = vpop.eup %7695  ;;  %2109 = vadd.xlane.f32.xlu0 %v2108_v62  ;;  %2106 = vadd.xlane.f32.xlu1 %v2105_v38 }
 0x780   :  { %v2111_v28 = vsel %vm2047_vm3, %v7696_v20, 0.0 }
 0x781   :  { %v7698_v34 = vpop.eup %7697 }
 0x782   :  { %v2114_v30 = vsel %vm2047_vm3, %v7698_v34, 0.0 }
 0x783   :  { %v7700_v56 = vpop.eup %7699  ;;  %2115 = vadd.xlane.f32.xlu0 %v2114_v30  ;;  %2112 = vadd.xlane.f32.xlu1 %v2111_v28 }
 0x784   :  { %v2117_v5 = vsel %vm2047_vm3, %v7700_v56, 0.0 }
 0x787   :  { %2118 = vadd.xlane.f32.xlu1 %v2117_v5 }
 0x799   :  { %2235 = vperm.xlu0 %7508, %v36_v41  }
 0x804   :  { %v2098_v24 = vpop.xlane.xlu0 %2097 }
 0x805   :  { %7701 = vrcp.f32 %v2098_v24 }
 0x808   :  { %v2101_v63 = vpop.xlane.xlu1 %2100  ;;  %v2104_v52 = vpop.xlane.xlu0 %2103 }
 0x809   :  { %7703 = vrcp.f32 %v2101_v63 }
 0x80c   :  { %v2107_v4 = vpop.xlane.xlu1 %2106  ;;  %v2110_v25 = vpop.xlane.xlu0 %2109 }
 0x80d   :  { %7705 = vrcp.f32 %v2107_v4 }
 0x80e   :  { %7707 = vrcp.f32 %v2104_v52 }
 0x80f   :  { %v7702_v45 = vpop.eup %7701 }
 0x810   :  { %v2113_v10 = vpop.xlane.xlu1 %2112  ;;  %v2128_v48 = vmul.f32 %v7702_v45, %v7686_v18  ;;  %v2116_v5 = vpop.xlane.xlu0 %2115 }
 0x811   :  { %7709 = vrcp.f32 %v2113_v10 }
 0x812   :  { %7711 = vrcp.f32 %v2110_v25 }
 0x813   :  { %v7704_v49 = vpop.eup %7703 }
 0x814   :  { %v2129_v50 = vmul.f32 %v7704_v49, %v7690_v7  ;;  %v2119_v30 = vpop.xlane.xlu1 %2118 }
 0x815   :  { %7713 = vrcp.f32 %v2119_v30 }
 0x816   :  { %v2136_v14 = vpack.c.bf16 %v2129_v50, %v2128_v48  ;;  %7715 = vrcp.f32 %v2116_v5  ;;  %v7627_v48 = vld [vmem:[%s11479_s4 + $0x14] ss:$8 sps:$4 sm:$0xff]   ;;  %v11725_v5 = vmax.f32 %v8576_v35, 0.0 }
 0x817   :  { %v7706_v62 = vpop.eup %7705  ;;  %2318 = vmatprep.subr.bf16.mxu1 %v7627_v48  ;;  %v7633_v35 = vld [vmem:[%s11480_s3 + $0x94] ss:$8 sps:$4 sm:$0xff]   ;;  %v7631_v48 = vld [vmem:[%s11480_s3 + $0x90] ss:$8 sps:$4 sm:$0xff]  }
 0x818   :  { %6593 = vmatmul.mubr.msk.bf16.vlgmr.msra.gmra.mrb[36].mxu1 %vm2047_vm3, %v2136_v14  ;;  %v7708_v38 = vpop.eup %7707  ;;  %v2131_v28 = vmul.f32 %v7706_v62, %v7692_v36 }
 0x819   :  { %2202 = vmatprep.mubr.bf16.mxu1 %v11692_v31  ;;  %v2130_v41 = vmul.f32 %v7708_v38, %v7688_v8 }
 0x81b   :  { %v2137_v24 = vpack.c.bf16 %v2131_v28, %v2130_v41  ;;  %v7710_v63 = vpop.eup %7709 }
 0x81c   :  { %v7712_v18 = vpop.eup %7711  ;;  %v2133_v7 = vmul.f32 %v7710_v63, %v7696_v20  ;;  %v7630_v20 = vld [vmem:[%s11480_s3 + $0x84] ss:$8 sps:$4 sm:$0xff]  }
 0x81d   :  { %v2132_v4 = vmul.f32 %v7712_v18, %v7694_v13  ;;  %v7625_v13 = vld [vmem:[%s11479_s4 + $0x10] ss:$8 sps:$4 sm:$0xff]  }
 0x81e   :  { %2319 = vmatpush1.bf16.msra.mxu1 %v7625_v13 }
 0x81f   :  { %v2138_v52 = vpack.c.bf16 %v2133_v7, %v2132_v4  ;;  %v7714_v45 = vpop.eup %7713  ;;  %2471 = vmatprep.subr.bf16.mxu1 %v7630_v20  ;;  %v7636_v20 = vld [vmem:[%s11480_s3 + $0xa4] ss:$8 sps:$4 sm:$0xff]  }
 0x820   :  { %6594 = vmatmul.mubr.msk.bf16.gmra.mrb[40].mxu1 %vm2047_vm3, %v2137_v24  ;;  %v7716_v10 = vpop.eup %7715  ;;  %v2135_v36 = vmul.f32 %v7714_v45, %v7700_v56  ;;  %v11726_v24 = vmax.f32 %v8578_v40, 0.0 }
 0x821   :  { %2212 = vmatprep.mubr.bf16.mxu1 %v11692_v31  ;;  %v2134_v8 = vmul.f32 %v7716_v10, %v7698_v34  ;;  %v8876_v34 = vpop.permute.xlu0 %2235 }
 0x822   :  { %11724 = vst [vmem:[#allocation49_spill] sm:$0xff] %v8876_v34 }
 0x823   :  { %v2139_v49 = vpack.c.bf16 %v2135_v36, %v2134_v8 }
 0x828   :  { %6595 = vmatmul.mubr.msk.bf16.gmra.mrb[44].mxu1 %vm2047_vm3, %v2138_v52  ;;  %v7628_v52 = vld [vmem:[%s11480_s3 + $0x80] ss:$8 sps:$4 sm:$0xff]  }
 0x829   :  { %2222 = vmatprep.mubr.bf16.mxu1 %v11692_v31 }
 0x830   :  { %6596 = vmatmul.mubr.msk.bf16.gmra.mrb[48].mxu1 %vm2047_vm3, %v2139_v49 }
 0x831   :  { %2350 = vmatprep.mubr.bf16.mxu1 %v11692_v31 }
 0x8eb   :  { %v2194_v56 = vpop.f32.mrb[36].mxu1 }
 0x8ec   :  { %v2238_v50 = vmul.f32 %v8876_v34, %v2194_v56  ;;  %v2196_v25 = vpop.f32.mrb[37].mxu1  ;;  %v11727_v56 = vmax.f32 %v8592_v26, 0.0 }
 0x8ed   :  { %v2254_v14 = vmul.f32 %v8876_v34, %v2196_v25  ;;  %v2198_v62 = vpop.f32.mrb[38].mxu1  ;;  %v11728_v25 = vmax.f32 %v8598_v3, 0.0  ;;  %v7639_v3 = vld [vmem:[%s11480_s3 + $0xb4] ss:$8 sps:$4 sm:$0xff]  }
 0x8ee   :  { %v2239_v38 = vmul.f32 %v8876_v34, %v2198_v62  ;;  %v2200_v30 = vpop.f32.mrb[39].mxu1  ;;  %v8884_v41 = vadd.f32 %v2238_v50, %v11725_v5 }
 0x8ef   :  { %v2255_v28 = vmul.f32 %v8876_v34, %v2200_v30  ;;  %v2262_v18 = vadd.f32 %v2254_v14, %v8400_v46  ;;  %v7634_v30 = vld [vmem:[%s11480_s3 + $0xa0] ss:$8 sps:$4 sm:$0xff]  }
 0x8f0   :  { %v8888_v63 = vadd.f32 %v2239_v38, %v11726_v24 }
 0x8f1   :  { %v2263_v7 = vadd.f32 %v2255_v28, %v8402_v47 }
 0x8f2   :  { %v2288_v4 = vpack.c.bf16 %v8888_v63, %v8884_v41  ;;  %v7652_v41 = vld [vmem:[%s11480_s3 + $0x100] ss:$8 sps:$4 sm:$0xff]   ;;  %v7654_v63 = vld [vmem:[%s11480_s3 + $0x104] ss:$8 sps:$4 sm:$0xff]  }
 0x8f3   :  { %v2292_v45 = vpack.c.bf16 %v2263_v7, %v2262_v18  ;;  %v2204_v10 = vpop.f32.mrb[40].mxu1  ;;  %2805 = vmatprep.subr.bf16.mxu0 %v7654_v63 }
 0x8f4   :  { %v2240_v40 = vmul.f32 %v8876_v34, %v2204_v10  ;;  %v2206_v36 = vpop.f32.mrb[41].mxu1  ;;  %2806 = vmatpush1.bf16.msra.mxu0 %v7652_v41 }
 0x8f5   :  { %v2256_v46 = vmul.f32 %v8876_v34, %v2206_v36  ;;  %v2208_v8 = vpop.f32.mrb[42].mxu1  ;;  %6599 = vmatmul.mubr.msk.bf16.vlgmr.msra.gmra.mrb[52].mxu1 %vm488_vm0, %v2292_v45  ;;  %v7637_v45 = vld [vmem:[%s11480_s3 + $0xb0] ss:$8 sps:$4 sm:$0xff]  }
 0x8f6   :  { %v2241_v47 = vmul.f32 %v8876_v34, %v2208_v8  ;;  %v2210_v49 = vpop.f32.mrb[43].mxu1  ;;  %2472 = vmatpush1.bf16.msra.mxu1 %v7628_v52  ;;  %2360 = vmatprep.mubr.bf16.mxu1 %v11692_v31  ;;  %v8914_v50 = vadd.f32 %v2240_v40, %v11727_v56  ;;  %v11729_v40 = vmax.f32 %v8617_v61, 0.0  ;;  %v7645_v61 = vld [vmem:[%s11480_s3 + $0xd4] ss:$8 sps:$4 sm:$0xff]  }
 0x8f7   :  { %v2257_v13 = vmul.f32 %v8876_v34, %v2210_v49  ;;  %2473 = vmatprep.subr.bf16.mxu1 %v7633_v35  ;;  %v2264_v62 = vadd.f32 %v2256_v46, %v8404_v55  ;;  %v7642_v35 = vld [vmem:[%s11480_s3 + $0xc4] ss:$8 sps:$4 sm:$0xff]   ;;  %v11730_v46 = vmax.f32 %v8608_v17, 0.0 }
 0x8f8   :  { %v8918_v14 = vadd.f32 %v2241_v47, %v11728_v25 }
 0x8f9   :  { %v2265_v38 = vadd.f32 %v2257_v13, %v8398_v2 }
 0x8fa   :  { %2474 = vmatpush1.bf16.msra.mxu1 %v7631_v48  ;;  %v2289_v28 = vpack.c.bf16 %v8918_v14, %v8914_v50  ;;  %v7640_v48 = vld [vmem:[%s11480_s3 + $0xc0] ss:$8 sps:$4 sm:$0xff]   ;;  %v7655_v50 = vld [vmem:[%s11480_s3 + $0x110] ss:$8 sps:$4 sm:$0xff]   ;;  %v7660_v14 = vld [vmem:[%s11480_s3 + $0x124] ss:$8 sps:$4 sm:$0xff]  }
 0x8fb   :  { %v2293_v5 = vpack.c.bf16 %v2265_v38, %v2264_v62  ;;  %v2214_v26 = vpop.f32.mrb[44].mxu1  ;;  %2475 = vmatprep.subr.bf16.mxu1 %v7636_v20 }
 0x8fc   :  { %v2242_v24 = vmul.f32 %v8876_v34, %v2214_v26  ;;  %v2216_v55 = vpop.f32.mrb[45].mxu1  ;;  %v7648_v26 = vld [vmem:[%s11480_s3 + $0xe4] ss:$8 sps:$4 sm:$0xff]  }
 0x8fd   :  { %v2258_v2 = vmul.f32 %v8876_v34, %v2216_v55  ;;  %v2218_v18 = vpop.f32.mrb[46].mxu1  ;;  %6600 = vmatmul.mubr.msk.bf16.gmra.mrb[56].mxu1 %vm488_vm0, %v2293_v5  ;;  %v11732_v55 = vmax.f32 %v8635_v15, 0.0  ;;  %v7910_v15 = vld [vmem:[%s11478_s7 + $0x100] ss:$16 sps:$4 sm:$0xff]  }
 0x8fe   :  { %v2243_v7 = vmul.f32 %v8876_v34, %v2218_v18  ;;  %v2220_v52 = vpop.f32.mrb[47].mxu1  ;;  %2476 = vmatpush1.bf16.msra.mxu1 %v7634_v30  ;;  %2370 = vmatprep.mubr.bf16.mxu1 %v11692_v31  ;;  %v2250_v36 = vadd.f32 %v2242_v24, %v11729_v40  ;;  %v7643_v30 = vld [vmem:[%s11480_s3 + $0xd0] ss:$8 sps:$4 sm:$0xff]   ;;  %v7663_v40 = vld [vmem:[%s11480_s3 + $0x134] ss:$8 sps:$4 sm:$0xff]  }
 0x8ff   :  { %v2259_v10 = vmul.f32 %v8876_v34, %v2220_v52  ;;  %2477 = vmatprep.subr.bf16.mxu1 %v7639_v3  ;;  %v2266_v47 = vadd.f32 %v2258_v2, %v8421_v39  ;;  %v11731_v3 = vmax.f32 %v8640_v9, 0.0  ;;  %v7646_v52 = vld [vmem:[%s11480_s3 + $0xe0] ss:$8 sps:$4 sm:$0xff]   ;;  %v7651_v9 = vld [vmem:[%s11480_s3 + $0xf4] ss:$8 sps:$4 sm:$0xff]  }
 0x900   :  { %v2251_v8 = vadd.f32 %v2243_v7, %v11730_v46  ;;  %v7913_v46 = vld [vmem:[%s11478_s7 + $0x24] ss:$16 sps:$4 sm:$0xff]  }
 0x901   :  { %v2267_v49 = vadd.f32 %v2259_v10, %v8423_v59 }
 0x902   :  { %2478 = vmatpush1.bf16.msra.mxu1 %v7637_v45  ;;  %v2290_v13 = vpack.c.bf16 %v2251_v8, %v2250_v36  ;;  %v7912_v36 = vld [vmem:[%s11478_s7] ss:$16 sps:$4 sm:$0xff]  }
 0x903   :  { %v2294_v20 = vpack.c.bf16 %v2267_v49, %v2266_v47  ;;  %v2224_v56 = vpop.f32.mrb[48].mxu1  ;;  %2479 = vmatprep.subr.bf16.mxu1 %v7642_v35  ;;  %v7911_v35 = vld [vmem:[%s11478_s7 + $0x4] ss:$16 sps:$4 sm:$0xff]   ;;  %v7661_v8 = vld [vmem:[%s11480_s3 + $0x130] ss:$8 sps:$4 sm:$0xff]  }
 0x904   :  { %v2244_v17 = vmul.f32 %v8876_v34, %v2224_v56  ;;  %v2226_v25 = vpop.f32.mrb[49].mxu1  ;;  %v7666_v47 = vld [vmem:[%s11480_s3 + $0x144] ss:$8 sps:$4 sm:$0xff]   ;;  %v7914_v49 = vld [vmem:[%s11478_s7 + $0x20] ss:$16 sps:$4 sm:$0xff]  }
 0x905   :  { %v2260_v39 = vmul.f32 %v8876_v34, %v2226_v25  ;;  %v2228_v62 = vpop.f32.mrb[50].mxu1  ;;  %6601 = vmatmul.mubr.msk.bf16.gmra.mrb[60].mxu1 %vm488_vm0, %v2294_v20  ;;  %v7669_v20 = vld [vmem:[%s11480_s3 + $0x154] ss:$8 sps:$4 sm:$0xff]   ;;  %v7916_v56 = vld [vmem:[%s11478_s7 + $0x40] ss:$16 sps:$4 sm:$0xff]  }
 0x906   :  { %v2245_v59 = vmul.f32 %v8876_v34, %v2228_v62  ;;  %v2230_v38 = vpop.f32.mrb[51].mxu1  ;;  %2480 = vmatpush1.bf16.msra.mxu1 %v7640_v48  ;;  %2380 = vmatprep.mubr.bf16.mxu1 %v11692_v31  ;;  %v2252_v24 = vadd.f32 %v2244_v17, %v11731_v3  ;;  %v7915_v48 = vld [vmem:[%s11478_s7 + $0x44] ss:$16 sps:$4 sm:$0xff]   ;;  %v7667_v17 = vld [vmem:[%s11480_s3 + $0x150] ss:$8 sps:$4 sm:$0xff]  }
 0x907   :  { %v2261_v5 = vmul.f32 %v8876_v34, %v2230_v38  ;;  %2481 = vmatprep.subr.bf16.mxu1 %v7645_v61  ;;  %v2268_v18 = vadd.f32 %v2260_v39, %v8425_v57  ;;  %v7649_v57 = vld [vmem:[%s11480_s3 + $0xf0] ss:$8 sps:$4 sm:$0xff]   ;;  %v7917_v61 = vld [vmem:[%s11478_s7 + $0x64] ss:$16 sps:$4 sm:$0xff]  }
 0x908   :  { %v2253_v2 = vadd.f32 %v2245_v59, %v11732_v55  ;;  %v7918_v25 = vld [vmem:[%s11478_s7 + $0x60] ss:$16 sps:$4 sm:$0xff]   ;;  %v7919_v39 = vld [vmem:[%s11478_s7 + $0x84] ss:$16 sps:$4 sm:$0xff]  }
 0x909   :  { %v2269_v7 = vadd.f32 %v2261_v5, %v8419_v37  ;;  %v7909_v37 = vld [vmem:[%s11478_s7 + $0x104] ss:$16 sps:$4 sm:$0xff]   ;;  %v7920_v62 = vld [vmem:[%s11478_s7 + $0x80] ss:$16 sps:$4 sm:$0xff]  }
 0x90a   :  { %2482 = vmatpush1.bf16.msra.mxu1 %v7643_v30  ;;  %v2291_v45 = vpack.c.bf16 %v2253_v2, %v2252_v24  ;;  %v7921_v59 = vld [vmem:[%s11478_s7 + $0xa4] ss:$16 sps:$4 sm:$0xff]   ;;  %v7922_v38 = vld [vmem:[%s11478_s7 + $0xa0] ss:$16 sps:$4 sm:$0xff]  }
 0x90b   :  { %v2295_v10 = vpack.c.bf16 %v2269_v7, %v2268_v18  ;;  %2483 = vmatprep.subr.bf16.mxu1 %v7648_v26  ;;  %v7923_v30 = vld [vmem:[%s11478_s7 + $0xc4] ss:$16 sps:$4 sm:$0xff]   ;;  %v7924_v5 = vld [vmem:[%s11478_s7 + $0xc0] ss:$16 sps:$4 sm:$0xff]   ;;  %v7927_v7 = vld [vmem:[%s11478_s7 + $0x10c] ss:$16 sps:$4 sm:$0xff]  }
 0x90c   :  { %v7925_v26 = vld [vmem:[%s11478_s7 + $0xe4] ss:$16 sps:$4 sm:$0xff]   ;;  %v7926_v3 = vld [vmem:[%s11478_s7 + $0xe0] ss:$16 sps:$4 sm:$0xff]  }
 0x90d   :  { %6602 = vmatmul.mubr.msk.bf16.gmra.mrb[64].mxu1 %vm488_vm0, %v2295_v10  ;;  %v7672_v24 = vld [vmem:[%s11480_s3 + $0x164] ss:$8 sps:$4 sm:$0xff]   ;;  %v7670_v55 = vld [vmem:[%s11480_s3 + $0x160] ss:$8 sps:$4 sm:$0xff]   ;;  %v7675_v2 = vld [vmem:[%s11480_s3 + $0x174] ss:$8 sps:$4 sm:$0xff]  }
 0x90e   :  { %2484 = vmatpush1.bf16.msra.mxu1 %v7646_v52  ;;  %2503 = vmatprep.mubr.bf16.mxu1 %v11692_v31  ;;  %v7673_v18 = vld [vmem:[%s11480_s3 + $0x170] ss:$8 sps:$4 sm:$0xff]   ;;  %v34_v52 = vld [vmem:[%s11477_s8 + $0x1] ss:$0 sm:$0xff] }
 0x90f   :  { %2485 = vmatprep.subr.bf16.mxu1 %v7651_v9 }
 0x912   :  { %2486 = vmatpush1.bf16.msra.mxu1 %v7649_v57 }
 0x913   :  { %2998 = vmatprep.subr.bf16.mxu1 %v7909_v37 }
 0x915   :  { %2504 = vmatmul.mubr.bf16.vlgmr.msra.gmra.mrb[52].mxu1 %v2288_v4  ;;  %v7657_v4 = vld [vmem:[%s11480_s3 + $0x114] ss:$8 sps:$4 sm:$0xff]  }
 0x916   :  { %2513 = vmatprep.mubr.bf16.mxu1 %v11692_v31  ;;  %2999 = vmatpush1.bf16.msra.mxu1 %v7910_v15 }
 0x917   :  { %3384 = vmatprep.subr.bf16.mxu1 %v7911_v35  ;;  %2807 = vmatprep.subr.bf16.mxu0 %v7657_v4 }
 0x918   :  { %2808 = vmatpush1.bf16.msra.mxu0 %v7655_v50 }
 0x919   :  { %2809 = vmatprep.subr.bf16.mxu0 %v7660_v14 }
 0x91d   :  { %2514 = vmatmul.mubr.bf16.gmra.mrb[56].mxu1 %v2289_v28  ;;  %v7658_v28 = vld [vmem:[%s11480_s3 + $0x120] ss:$8 sps:$4 sm:$0xff]  }
 0x91e   :  { %2523 = vmatprep.mubr.bf16.mxu1 %v11692_v31  ;;  %2810 = vmatpush1.bf16.msra.mxu0 %v7658_v28 }
 0x91f   :  { %2811 = vmatprep.subr.bf16.mxu0 %v7663_v40 }
 0x922   :  { %2812 = vmatpush1.bf16.msra.mxu0 %v7661_v8 }
 0x923   :  { %2813 = vmatprep.subr.bf16.mxu0 %v7666_v47 }
 0x925   :  { %2524 = vmatmul.mubr.bf16.gmra.mrb[60].mxu1 %v2290_v13  ;;  %v7664_v13 = vld [vmem:[%s11480_s3 + $0x140] ss:$8 sps:$4 sm:$0xff]  }
 0x926   :  { %2533 = vmatprep.mubr.bf16.mxu1 %v11692_v31  ;;  %2814 = vmatpush1.bf16.msra.mxu0 %v7664_v13 }
 0x927   :  { %2815 = vmatprep.subr.bf16.mxu0 %v7669_v20 }
 0x92a   :  { %2816 = vmatpush1.bf16.msra.mxu0 %v7667_v17 }
 0x92b   :  { %2817 = vmatprep.subr.bf16.mxu0 %v7672_v24 }
 0x92d   :  { %2534 = vmatmul.mubr.bf16.gmra.mrb[64].mxu1 %v2291_v45 }
 0x92e   :  { %3030 = vmatprep.mubr.bf16.mxu1 %v11692_v31  ;;  %2818 = vmatpush1.bf16.msra.mxu0 %v7670_v55 }
 0x92f   :  { %2819 = vmatprep.subr.bf16.mxu0 %v7675_v2 }
 0x932   :  { %2820 = vmatpush1.bf16.msra.mxu0 %v7673_v18 }
 0x933   :  { %3191 = vmatprep.subr.bf16.mxu0 %v7927_v7 }
 0x935   :  { %6645 = vmatmul.mubr.msk.bf16.vlgmr.msra.gmra.mrb[68].mxu1 %vm488_vm0, %v8224_v23 }
 0x936   :  { %3040 = vmatprep.mubr.bf16.mxu1 %v11692_v31  ;;  %3385 = vmatpush1.bf16.msra.mxu1 %v7912_v36 }
 0x937   :  { %3386 = vmatprep.subr.bf16.mxu1 %v7913_v46 }
 0x93a   :  { %3387 = vmatpush1.bf16.msra.mxu1 %v7914_v49 }
 0x93b   :  { %3388 = vmatprep.subr.bf16.mxu1 %v7915_v48  ;;  %v7928_v48 = vld [vmem:[%s11478_s7 + $0x108] ss:$16 sps:$4 sm:$0xff]  }
 0x93d   :  { %6646 = vmatmul.mubr.msk.bf16.gmra.mrb[72].mxu1 %vm488_vm0, %v8250_v29 }
 0x93e   :  { %3050 = vmatprep.mubr.bf16.mxu1 %v11692_v31  ;;  %3389 = vmatpush1.bf16.msra.mxu1 %v7916_v56  ;;  %v7929_v56 = vld [vmem:[%s11478_s7 + $0xc] ss:$16 sps:$4 sm:$0xff]  }
 0x93f   :  { %3390 = vmatprep.subr.bf16.mxu1 %v7917_v61 }
 0x942   :  { %3391 = vmatpush1.bf16.msra.mxu1 %v7918_v25 }
 0x943   :  { %3392 = vmatprep.subr.bf16.mxu1 %v7919_v39 }
 0x945   :  { %6647 = vmatmul.mubr.msk.bf16.gmra.mrb[76].mxu1 %vm488_vm0, %v8254_v60 }
 0x946   :  { %3060 = vmatprep.mubr.bf16.mxu1 %v11692_v31  ;;  %3393 = vmatpush1.bf16.msra.mxu1 %v7920_v62 }
 0x947   :  { %3394 = vmatprep.subr.bf16.mxu1 %v7921_v59 }
 0x94a   :  { %3395 = vmatpush1.bf16.msra.mxu1 %v7922_v38 }
 0x94b   :  { %3396 = vmatprep.subr.bf16.mxu1 %v7923_v30 }
 0x94d   :  { %6648 = vmatmul.mubr.msk.bf16.gmra.mrb[80].mxu1 %vm488_vm0, %v8278_v6 }
 0x94e   :  { %3070 = vmatprep.mubr.bf16.mxu1 %v11692_v31  ;;  %3397 = vmatpush1.bf16.msra.mxu1 %v7924_v5 }
 0x94f   :  { %3398 = vmatprep.subr.bf16.mxu1 %v7925_v26 }
 0x952   :  { %3399 = vmatpush1.bf16.msra.mxu1 %v7926_v3 }
 0x955   :  { %6649 = vmatmul.mubr.msk.bf16.gmra.mrb[84].mxu1 %vm488_vm0, %v8282_v12 }
 0x956   :  { %3080 = vmatprep.mubr.bf16.mxu1 %v11692_v31 }
 0x95d   :  { %6650 = vmatmul.mubr.msk.bf16.gmra.mrb[88].mxu1 %vm488_vm0, %v8302_v43 }
 0x95e   :  { %3090 = vmatprep.mubr.bf16.mxu1 %v11692_v31 }
 0x965   :  { %6651 = vmatmul.mubr.msk.bf16.gmra.mrb[92].mxu1 %vm488_vm0, %v8306_v51 }
 0x966   :  { %3100 = vmatprep.mubr.bf16.mxu1 %v11692_v31 }
 0x96d   :  { %6652 = vmatmul.mubr.msk.bf16.gmra.mrb[96].mxu1 %vm488_vm0, %v8318_v42 }
 0x96e   :  { %3110 = vmatprep.mubr.bf16.mxu1 %v11692_v31 }
 0x975   :  { %6653 = vmatmul.mubr.msk.bf16.gmra.mrb[100].mxu1 %vm488_vm0, %v8130_v0 }
 0x976   :  { %3120 = vmatprep.mubr.bf16.mxu1 %v11692_v31 }
 0x97d   :  { %6654 = vmatmul.mubr.msk.bf16.gmra.mrb[104].mxu1 %vm488_vm0, %v8134_v1 }
 0x97e   :  { %3130 = vmatprep.mubr.bf16.mxu1 %v11692_v31 }
 0x985   :  { %6655 = vmatmul.mubr.msk.bf16.gmra.mrb[108].mxu1 %vm488_vm0, %v8153_v16 }
 0x986   :  { %3140 = vmatprep.mubr.bf16.mxu1 %v11692_v31 }
 0x98d   :  { %6656 = vmatmul.mubr.msk.bf16.gmra.mrb[112].mxu1 %vm488_vm0, %v8158_v19 }
 0x98e   :  { %3150 = vmatprep.mubr.bf16.mxu1 %v11692_v31 }
 0x995   :  { %6657 = vmatmul.mubr.msk.bf16.gmra.mrb[116].mxu1 %vm488_vm0, %v8181_v53 }
 0x996   :  { %3160 = vmatprep.mubr.bf16.mxu1 %v11692_v31 }
 0x99d   :  { %6658 = vmatmul.mubr.msk.bf16.gmra.mrb[120].mxu1 %vm488_vm0, %v8186_v58 }
 0x99e   :  { %3170 = vmatprep.mubr.bf16.mxu1 %v11692_v31 }
 0x9a5   :  { %6659 = vmatmul.mubr.msk.bf16.gmra.mrb[124].mxu1 %vm488_vm0, %v8216_v21 }
 0x9a6   :  { %3180 = vmatprep.mubr.bf16.mxu1 %v11692_v31 }
 0x9ad   :  { %6660 = vmatmul.mubr.msk.bf16.gmra.mrb[128].mxu1 %vm488_vm0, %v8220_v33 }
 0x9ae   :  { %3416 = vmatprep.mubr.bf16.mxu1 %v11692_v31 }
 0x9e8   :  { %v2505_v45 = vpop.f32.mrb[52].mxu1 }
 0x9e9   :  { %v2544_v10 = vadd.f32 %v2505_v45, %v34_v52  ;;  %v2507_v9 = vpop.f32.mrb[53].mxu1 }
 0x9ea   :  { %v2552_v57 = vadd.f32 %v2507_v9, %v34_v52  ;;  %v2509_v37 = vpop.f32.mrb[54].mxu1 }
 0x9eb   :  { %v2545_v15 = vadd.f32 %v2509_v37, %v34_v52  ;;  %v2511_v35 = vpop.f32.mrb[55].mxu1  ;;  %v2560_v63 = vmax.f32 %v2544_v10, 0.0 }
 0x9ec   :  { %v2553_v41 = vadd.f32 %v2511_v35, %v34_v52  ;;  %v2568_v50 = vmax.f32 %v2552_v57, 0.0 }
 0x9ed   :  { %v2561_v4 = vmax.f32 %v2545_v15, 0.0 }
 0x9ee   :  { %v2569_v14 = vmax.f32 %v2553_v41, 0.0 }
 0x9ef   :  { %v2594_v28 = vpack.c.bf16 %v2561_v4, %v2560_v63 }
 0x9f0   :  { %v2598_v40 = vpack.c.bf16 %v2569_v14, %v2568_v50  ;;  %v2515_v36 = vpop.f32.mrb[56].mxu1 }
 0x9f1   :  { %v2546_v46 = vadd.f32 %v2515_v36, %v34_v52  ;;  %v2517_v8 = vpop.f32.mrb[57].mxu1  ;;  %2838 = vmatmul.mubr.bf16.vlgmr.msra.gmra.mrb[76].mxu0 %v2594_v28 }
 0x9f2   :  { %v2554_v47 = vadd.f32 %v2517_v8, %v34_v52  ;;  %v2519_v49 = vpop.f32.mrb[58].mxu1  ;;  %2847 = vmatprep.mubr.bf16.mxu0 %v11692_v31  ;;  %3192 = vmatpush1.bf16.msra.mxu0 %v7928_v48 }
 0x9f3   :  { %v2547_v13 = vadd.f32 %v2519_v49, %v34_v52  ;;  %v2521_v20 = vpop.f32.mrb[59].mxu1  ;;  %3577 = vmatprep.subr.bf16.mxu0 %v7929_v56  ;;  %v2562_v17 = vmax.f32 %v2546_v46, 0.0  ;;  %v7935_v56 = vld [vmem:[%s11478_s7 + $0x6c] ss:$16 sps:$4 sm:$0xff]  }
 0x9f4   :  { %v2555_v61 = vadd.f32 %v2521_v20, %v34_v52  ;;  %v2570_v39 = vmax.f32 %v2554_v47, 0.0  ;;  %v7934_v20 = vld [vmem:[%s11478_s7 + $0x48] ss:$16 sps:$4 sm:$0xff]  }
 0x9f5   :  { %v2563_v25 = vmax.f32 %v2547_v13, 0.0  ;;  %v7932_v13 = vld [vmem:[%s11478_s7 + $0x28] ss:$16 sps:$4 sm:$0xff]  }
 0x9f6   :  { %v2571_v62 = vmax.f32 %v2555_v61, 0.0  ;;  %v7936_v61 = vld [vmem:[%s11478_s7 + $0x68] ss:$16 sps:$4 sm:$0xff]  }
 0x9f7   :  { %v2595_v59 = vpack.c.bf16 %v2563_v25, %v2562_v17  ;;  %v7938_v17 = vld [vmem:[%s11478_s7 + $0x88] ss:$16 sps:$4 sm:$0xff]   ;;  %v7939_v25 = vld [vmem:[%s11478_s7 + $0xac] ss:$16 sps:$4 sm:$0xff]  }
 0x9f8   :  { %v2599_v38 = vpack.c.bf16 %v2571_v62, %v2570_v39  ;;  %v2525_v30 = vpop.f32.mrb[60].mxu1  ;;  %v7940_v39 = vld [vmem:[%s11478_s7 + $0xa8] ss:$16 sps:$4 sm:$0xff]  }
 0x9f9   :  { %v2548_v5 = vadd.f32 %v2525_v30, %v34_v52  ;;  %v2527_v26 = vpop.f32.mrb[61].mxu1  ;;  %2848 = vmatmul.mubr.bf16.gmra.mrb[80].mxu0 %v2595_v59  ;;  %v7942_v62 = vld [vmem:[%s11478_s7 + $0xc8] ss:$16 sps:$4 sm:$0xff]   ;;  %v7943_v59 = vld [vmem:[%s11478_s7 + $0xec] ss:$16 sps:$4 sm:$0xff]  }
 0x9fa   :  { %v2556_v3 = vadd.f32 %v2527_v26, %v34_v52  ;;  %v2529_v24 = vpop.f32.mrb[62].mxu1  ;;  %2857 = vmatprep.mubr.bf16.mxu0 %v11692_v31 }
 0x9fb   :  { %v2549_v55 = vadd.f32 %v2529_v24, %v34_v52  ;;  %v2531_v2 = vpop.f32.mrb[63].mxu1  ;;  %v2564_v7 = vmax.f32 %v2548_v5, 0.0 }
 0x9fc   :  { %v2557_v18 = vadd.f32 %v2531_v2, %v34_v52  ;;  %v2572_v10 = vmax.f32 %v2556_v3, 0.0 }
 0x9fd   :  { %v2565_v45 = vmax.f32 %v2549_v55, 0.0 }
 0x9fe   :  { %v2573_v9 = vmax.f32 %v2557_v18, 0.0 }
 0x9ff   :  { %v2596_v57 = vpack.c.bf16 %v2565_v45, %v2564_v7 }
 0xa00   :  { %v2600_v37 = vpack.c.bf16 %v2573_v9, %v2572_v10  ;;  %v2535_v15 = vpop.f32.mrb[64].mxu1 }
 0xa01   :  { %v2550_v35 = vadd.f32 %v2535_v15, %v34_v52  ;;  %v2537_v41 = vpop.f32.mrb[65].mxu1  ;;  %2858 = vmatmul.mubr.bf16.gmra.mrb[84].mxu0 %v2596_v57 }
 0xa02   :  { %v2558_v63 = vadd.f32 %v2537_v41, %v34_v52  ;;  %v2539_v4 = vpop.f32.mrb[66].mxu1  ;;  %2867 = vmatprep.mubr.bf16.mxu0 %v11692_v31 }
 0xa03   :  { %v2551_v50 = vadd.f32 %v2539_v4, %v34_v52  ;;  %v2541_v14 = vpop.f32.mrb[67].mxu1  ;;  %v2566_v36 = vmax.f32 %v2550_v35, 0.0 }
 0xa04   :  { %v2559_v28 = vadd.f32 %v2541_v14, %v34_v52  ;;  %v2574_v8 = vmax.f32 %v2558_v63, 0.0  ;;  %v7930_v52 = vld [vmem:[%s11478_s7 + $0x8] ss:$16 sps:$4 sm:$0xff]  }
 0xa05   :  { %v2567_v46 = vmax.f32 %v2551_v50, 0.0 }
 0xa06   :  { %v2575_v47 = vmax.f32 %v2559_v28, 0.0 }
 0xa07   :  { %v2597_v49 = vpack.c.bf16 %v2567_v46, %v2566_v36 }
 0xa08   :  { %v2601_v48 = vpack.c.bf16 %v2575_v47, %v2574_v8 }
 0xa09   :  { %2868 = vmatmul.mubr.bf16.gmra.mrb[88].mxu0 %v2597_v49 }
 0xa0a   :  { %2877 = vmatprep.mubr.bf16.mxu0 %v11692_v31 }
 0xa11   :  { %2878 = vmatmul.mubr.bf16.gmra.mrb[92].mxu0 %v2598_v40  ;;  %v7931_v40 = vld [vmem:[%s11478_s7 + $0x2c] ss:$16 sps:$4 sm:$0xff]  }
 0xa12   :  { %2887 = vmatprep.mubr.bf16.mxu0 %v11692_v31 }
 0xa19   :  { %2888 = vmatmul.mubr.bf16.gmra.mrb[96].mxu0 %v2599_v38  ;;  %v7944_v38 = vld [vmem:[%s11478_s7 + $0xe8] ss:$16 sps:$4 sm:$0xff]  }
 0xa1a   :  { %2897 = vmatprep.mubr.bf16.mxu0 %v11692_v31 }
 0xa21   :  { %2898 = vmatmul.mubr.bf16.gmra.mrb[100].mxu0 %v2600_v37 }
 0xa22   :  { %2907 = vmatprep.mubr.bf16.mxu0 %v11692_v31 }
 0xa29   :  { %2908 = vmatmul.mubr.bf16.gmra.mrb[104].mxu0 %v2601_v48 }
 0xa2a   :  { %3223 = vmatprep.mubr.bf16.mxu0 %v11692_v31 }
 0xa31   :  { %6661 = vmatmul.mubr.msk.bf16.vlgmr.msra.gmra.mrb[108].mxu0 %vm488_vm0, %v8224_v23  ;;  %v7933_v23 = vld [vmem:[%s11478_s7 + $0x4c] ss:$16 sps:$4 sm:$0xff]  }
 0xa32   :  { %3233 = vmatprep.mubr.bf16.mxu0 %v11692_v31  ;;  %3578 = vmatpush1.bf16.msra.mxu0 %v7930_v52 }
 0xa33   :  { %3579 = vmatprep.subr.bf16.mxu0 %v7931_v40 }
 0xa36   :  { %3580 = vmatpush1.bf16.msra.mxu0 %v7932_v13 }
 0xa37   :  { %3581 = vmatprep.subr.bf16.mxu0 %v7933_v23 }
 0xa39   :  { %6662 = vmatmul.mubr.msk.bf16.gmra.mrb[112].mxu0 %vm488_vm0, %v8250_v29  ;;  %v7937_v29 = vld [vmem:[%s11478_s7 + $0x8c] ss:$16 sps:$4 sm:$0xff]  }
 0xa3a   :  { %3243 = vmatprep.mubr.bf16.mxu0 %v11692_v31  ;;  %3582 = vmatpush1.bf16.msra.mxu0 %v7934_v20 }
 0xa3b   :  { %3583 = vmatprep.subr.bf16.mxu0 %v7935_v56 }
 0xa3e   :  { %3584 = vmatpush1.bf16.msra.mxu0 %v7936_v61 }
 0xa3f   :  { %3585 = vmatprep.subr.bf16.mxu0 %v7937_v29 }
 0xa41   :  { %6663 = vmatmul.mubr.msk.bf16.gmra.mrb[116].mxu0 %vm488_vm0, %v8254_v60  ;;  %v7941_v60 = vld [vmem:[%s11478_s7 + $0xcc] ss:$16 sps:$4 sm:$0xff]  }
 0xa42   :  { %3253 = vmatprep.mubr.bf16.mxu0 %v11692_v31  ;;  %3586 = vmatpush1.bf16.msra.mxu0 %v7938_v17 }
 0xa43   :  { %3587 = vmatprep.subr.bf16.mxu0 %v7939_v25 }
 0xa46   :  { %3588 = vmatpush1.bf16.msra.mxu0 %v7940_v39 }
 0xa47   :  { %3589 = vmatprep.subr.bf16.mxu0 %v7941_v60 }
 0xa49   :  { %6664 = vmatmul.mubr.msk.bf16.gmra.mrb[120].mxu0 %vm488_vm0, %v8278_v6 }
 0xa4a   :  { %3263 = vmatprep.mubr.bf16.mxu0 %v11692_v31  ;;  %3590 = vmatpush1.bf16.msra.mxu0 %v7942_v62 }
 0xa4b   :  { %3591 = vmatprep.subr.bf16.mxu0 %v7943_v59 }
 0xa4e   :  { %3592 = vmatpush1.bf16.msra.mxu0 %v7944_v38 }
 0xa51   :  { %6665 = vmatmul.mubr.msk.bf16.gmra.mrb[124].mxu0 %vm488_vm0, %v8282_v12 }
 0xa52   :  { %3273 = vmatprep.mubr.bf16.mxu0 %v11692_v31 }
 0xa59   :  { %6666 = vmatmul.mubr.msk.bf16.gmra.mrb[128].mxu0 %vm488_vm0, %v8302_v43 }
 0xa5a   :  { %3283 = vmatprep.mubr.bf16.mxu0 %v11692_v31 }
 0xa61   :  { %6667 = vmatmul.mubr.msk.bf16.gmra.mrb[132].mxu0 %vm488_vm0, %v8306_v51 }
 0xa62   :  { %3293 = vmatprep.mubr.bf16.mxu0 %v11692_v31 }
 0xa69   :  { %6668 = vmatmul.mubr.msk.bf16.gmra.mrb[136].mxu0 %vm488_vm0, %v8318_v42 }
 0xa6a   :  { %3303 = vmatprep.mubr.bf16.mxu0 %v11692_v31 }
 0xa71   :  { %6669 = vmatmul.mubr.msk.bf16.gmra.mrb[140].mxu0 %vm488_vm0, %v8130_v0  ;;  %v9259_v0 = vld [vmem:[%s11477_s8 + $0x2] ss:$0 sm:$0xff] }
 0xa72   :  { %3313 = vmatprep.mubr.bf16.mxu0 %v11692_v31 }
 0xa79   :  { %6670 = vmatmul.mubr.msk.bf16.gmra.mrb[144].mxu0 %vm488_vm0, %v8134_v1 }
 0xa7a   :  { %3323 = vmatprep.mubr.bf16.mxu0 %v11692_v31 }
 0xa81   :  { %6671 = vmatmul.mubr.msk.bf16.gmra.mrb[148].mxu0 %vm488_vm0, %v8153_v16 }
 0xa82   :  { %3333 = vmatprep.mubr.bf16.mxu0 %v11692_v31 }
 0xa89   :  { %6672 = vmatmul.mubr.msk.bf16.gmra.mrb[152].mxu0 %vm488_vm0, %v8158_v19 }
 0xa8a   :  { %3343 = vmatprep.mubr.bf16.mxu0 %v11692_v31 }
 0xa91   :  { %6673 = vmatmul.mubr.msk.bf16.gmra.mrb[156].mxu0 %vm488_vm0, %v8181_v53 }
 0xa92   :  { %3353 = vmatprep.mubr.bf16.mxu0 %v11692_v31 }
 0xa99   :  { %6674 = vmatmul.mubr.msk.bf16.gmra.mrb[160].mxu0 %vm488_vm0, %v8186_v58 }
 0xa9a   :  { %3363 = vmatprep.mubr.bf16.mxu0 %v11692_v31 }
 0xaa1   :  { %6675 = vmatmul.mubr.msk.bf16.gmra.mrb[164].mxu0 %vm488_vm0, %v8216_v21 }
 0xaa2   :  { %3373 = vmatprep.mubr.bf16.mxu0 %v11692_v31 }
 0xaa9   :  { %6676 = vmatmul.mubr.msk.bf16.gmra.mrb[168].mxu0 %vm488_vm0, %v8220_v33 }
 0xaaa   :  { %3609 = vmatprep.mubr.bf16.mxu0 %v11692_v31 }
 0xac4   :  { %v2839_v1 = vpop.f32.mrb[76].mxu0 }
 0xac5   :  { %v9262_v16 = vadd.f32 %v2839_v1, %v9259_v0  ;;  %v2841_v19 = vpop.f32.mrb[77].mxu0 }
 0xac6   :  { %v9265_v53 = vadd.f32 %v2841_v19, %v9259_v0  ;;  %v2843_v58 = vpop.f32.mrb[78].mxu0 }
 0xac7   :  { %11733 = vst [vmem:[#allocation50_spill] sm:$0xff] %v9262_v16  ;;  %v9268_v21 = vadd.f32 %v2843_v58, %v9259_v0  ;;  %v2845_v33 = vpop.f32.mrb[79].mxu0  ;;  %v11581_v12 = vmax.f32 %v9262_v16, 0.0 }
 0xac8   :  { %11734 = vst [vmem:[#allocation51_spill] sm:$0xff] %v9265_v53  ;;  %v9271_v6 = vadd.f32 %v2845_v33, %v9259_v0 }
 0xac9   :  { %11735 = vst [vmem:[#allocation52_spill] sm:$0xff] %v9268_v21  ;;  %v11580_v43 = vmax.f32 %v9268_v21, 0.0 }
 0xaca   :  { %11736 = vst [vmem:[#allocation53_spill] sm:$0xff] %v9271_v6 }
 0xacb   :  { %v2982_v51 = vpack.c.bf16 %v11580_v43, %v11581_v12 }
 0xacc   :  { %v2849_v42 = vpop.f32.mrb[80].mxu0 }
 0xacd   :  { %v9280_v30 = vadd.f32 %v2849_v42, %v9259_v0  ;;  %v2851_v5 = vpop.f32.mrb[81].mxu0  ;;  %3417 = vmatmul.mubr.bf16.vlgmr.msra.gmra.mrb[68].mxu1 %v2982_v51  ;;  %3610 = vmatmul.mubr.bf16.vlgmr.msra.gmra.mrb[108].mxu0 %v2982_v51 }
 0xace   :  { %v9283_v26 = vadd.f32 %v2851_v5, %v9259_v0  ;;  %v2853_v3 = vpop.f32.mrb[82].mxu0  ;;  %3426 = vmatprep.mubr.bf16.mxu1 %v11692_v31  ;;  %3619 = vmatprep.mubr.bf16.mxu0 %v11692_v31 }
 0xacf   :  { %11737 = vst [vmem:[#allocation54_spill] sm:$0xff] %v9280_v30  ;;  %v9288_v24 = vadd.f32 %v2853_v3, %v9259_v0  ;;  %v2855_v55 = vpop.f32.mrb[83].mxu0  ;;  %v11579_v18 = vmax.f32 %v9280_v30, 0.0 }
 0xad0   :  { %11738 = vst [vmem:[#allocation55_spill] sm:$0xff] %v9283_v26  ;;  %v9291_v2 = vadd.f32 %v2855_v55, %v9259_v0 }
 0xad1   :  { %11739 = vst [vmem:[#allocation56_spill] sm:$0xff] %v9288_v24  ;;  %v11578_v7 = vmax.f32 %v9288_v24, 0.0 }
 0xad2   :  { %11740 = vst [vmem:[#allocation57_spill] sm:$0xff] %v9291_v2 }
 0xad3   :  { %v2983_v45 = vpack.c.bf16 %v11578_v7, %v11579_v18 }
 0xad4   :  { %v2859_v10 = vpop.f32.mrb[84].mxu0 }
 0xad5   :  { %v9300_v9 = vadd.f32 %v2859_v10, %v9259_v0  ;;  %v2861_v57 = vpop.f32.mrb[85].mxu0  ;;  %3427 = vmatmul.mubr.bf16.gmra.mrb[72].mxu1 %v2983_v45  ;;  %3620 = vmatmul.mubr.bf16.gmra.mrb[112].mxu0 %v2983_v45 }
 0xad6   :  { %v9303_v37 = vadd.f32 %v2861_v57, %v9259_v0  ;;  %v2863_v15 = vpop.f32.mrb[86].mxu0  ;;  %3436 = vmatprep.mubr.bf16.mxu1 %v11692_v31  ;;  %3629 = vmatprep.mubr.bf16.mxu0 %v11692_v31 }
 0xad7   :  { %11741 = vst [vmem:[#allocation58_spill] sm:$0xff] %v9300_v9  ;;  %v9308_v35 = vadd.f32 %v2863_v15, %v9259_v0  ;;  %v2865_v41 = vpop.f32.mrb[87].mxu0  ;;  %v11577_v4 = vmax.f32 %v9300_v9, 0.0 }
 0xad8   :  { %11742 = vst [vmem:[#allocation59_spill] sm:$0xff] %v9303_v37  ;;  %v9311_v63 = vadd.f32 %v2865_v41, %v9259_v0 }
 0xad9   :  { %11743 = vst [vmem:[#allocation60_spill] sm:$0xff] %v9308_v35  ;;  %v11576_v50 = vmax.f32 %v9308_v35, 0.0 }
 0xada   :  { %11744 = vst [vmem:[#allocation61_spill] sm:$0xff] %v9311_v63 }
 0xadb   :  { %v2984_v14 = vpack.c.bf16 %v11576_v50, %v11577_v4 }
 0xadc   :  { %v2869_v28 = vpop.f32.mrb[88].mxu0 }
 0xadd   :  { %v9320_v36 = vadd.f32 %v2869_v28, %v9259_v0  ;;  %v2871_v46 = vpop.f32.mrb[89].mxu0  ;;  %3437 = vmatmul.mubr.bf16.gmra.mrb[76].mxu1 %v2984_v14  ;;  %3630 = vmatmul.mubr.bf16.gmra.mrb[116].mxu0 %v2984_v14 }
 0xade   :  { %v9323_v8 = vadd.f32 %v2871_v46, %v9259_v0  ;;  %v2873_v47 = vpop.f32.mrb[90].mxu0  ;;  %3446 = vmatprep.mubr.bf16.mxu1 %v11692_v31  ;;  %3639 = vmatprep.mubr.bf16.mxu0 %v11692_v31 }
 0xadf   :  { %11745 = vst [vmem:[#allocation62_spill] sm:$0xff] %v9320_v36  ;;  %v9328_v49 = vadd.f32 %v2873_v47, %v9259_v0  ;;  %v2875_v48 = vpop.f32.mrb[91].mxu0  ;;  %v11575_v40 = vmax.f32 %v9320_v36, 0.0 }
 0xae0   :  { %11746 = vst [vmem:[#allocation63_spill] sm:$0xff] %v9323_v8  ;;  %v9331_v52 = vadd.f32 %v2875_v48, %v9259_v0 }
 0xae1   :  { %11747 = vst [vmem:[#allocation64_spill] sm:$0xff] %v9328_v49  ;;  %v11574_v13 = vmax.f32 %v9328_v49, 0.0 }
 0xae2   :  { %11748 = vst [vmem:[#allocation65_spill] sm:$0xff] %v9331_v52 }
 0xae3   :  { %v2985_v23 = vpack.c.bf16 %v11574_v13, %v11575_v40 }
 0xae4   :  { %v2879_v20 = vpop.f32.mrb[92].mxu0 }
 0xae5   :  { %v9340_v56 = vadd.f32 %v2879_v20, %v9259_v0  ;;  %v2881_v61 = vpop.f32.mrb[93].mxu0  ;;  %3447 = vmatmul.mubr.bf16.gmra.mrb[80].mxu1 %v2985_v23  ;;  %3640 = vmatmul.mubr.bf16.gmra.mrb[120].mxu0 %v2985_v23 }
 0xae6   :  { %v9343_v29 = vadd.f32 %v2881_v61, %v9259_v0  ;;  %v2883_v17 = vpop.f32.mrb[94].mxu0  ;;  %3456 = vmatprep.mubr.bf16.mxu1 %v11692_v31  ;;  %3649 = vmatprep.mubr.bf16.mxu0 %v11692_v31 }
 0xae7   :  { %11749 = vst [vmem:[#allocation66_spill] sm:$0xff] %v9340_v56  ;;  %v9348_v25 = vadd.f32 %v2883_v17, %v9259_v0  ;;  %v2885_v39 = vpop.f32.mrb[95].mxu0  ;;  %v11573_v62 = vmax.f32 %v9340_v56, 0.0 }
 0xae8   :  { %11750 = vst [vmem:[#allocation67_spill] sm:$0xff] %v9343_v29  ;;  %v9351_v60 = vadd.f32 %v2885_v39, %v9259_v0 }
 0xae9   :  { %11751 = vst [vmem:[#allocation68_spill] sm:$0xff] %v9348_v25  ;;  %v11572_v59 = vmax.f32 %v9348_v25, 0.0 }
 0xaea   :  { %11752 = vst [vmem:[#allocation69_spill] sm:$0xff] %v9351_v60 }
 0xaeb   :  { %v2986_v38 = vpack.c.bf16 %v11572_v59, %v11573_v62 }
 0xaec   :  { %v2889_v1 = vpop.f32.mrb[96].mxu0 }
 0xaed   :  { %v9360_v19 = vadd.f32 %v2889_v1, %v9259_v0  ;;  %v2891_v58 = vpop.f32.mrb[97].mxu0  ;;  %3457 = vmatmul.mubr.bf16.gmra.mrb[84].mxu1 %v2986_v38  ;;  %3650 = vmatmul.mubr.bf16.gmra.mrb[124].mxu0 %v2986_v38 }
 0xaee   :  { %v9363_v33 = vadd.f32 %v2891_v58, %v9259_v0  ;;  %v2893_v51 = vpop.f32.mrb[98].mxu0  ;;  %3466 = vmatprep.mubr.bf16.mxu1 %v11692_v31  ;;  %3659 = vmatprep.mubr.bf16.mxu0 %v11692_v31 }
 0xaef   :  { %11753 = vst [vmem:[#allocation70_spill] sm:$0xff] %v9360_v19  ;;  %v9368_v42 = vadd.f32 %v2893_v51, %v9259_v0  ;;  %v2895_v5 = vpop.f32.mrb[99].mxu0  ;;  %v11571_v55 = vmax.f32 %v9360_v19, 0.0 }
 0xaf0   :  { %11754 = vst [vmem:[#allocation71_spill] sm:$0xff] %v9363_v33  ;;  %v9371_v3 = vadd.f32 %v2895_v5, %v9259_v0 }
 0xaf1   :  { %11755 = vst [vmem:[#allocation72_spill] sm:$0xff] %v9368_v42  ;;  %v11570_v45 = vmax.f32 %v9368_v42, 0.0 }
 0xaf2   :  { %11756 = vst [vmem:[#allocation73_spill] sm:$0xff] %v9371_v3 }
 0xaf3   :  { %v2987_v10 = vpack.c.bf16 %v11570_v45, %v11571_v55  ;;  %v9495_v45 = vld [vmem:[%s11477_s8 + $0x5] ss:$0 sm:$0xff] }
 0xaf4   :  { %v2899_v57 = vpop.f32.mrb[100].mxu0 }
 0xaf5   :  { %v9380_v15 = vadd.f32 %v2899_v57, %v9259_v0  ;;  %v2901_v41 = vpop.f32.mrb[101].mxu0  ;;  %3467 = vmatmul.mubr.bf16.gmra.mrb[88].mxu1 %v2987_v10  ;;  %3660 = vmatmul.mubr.bf16.gmra.mrb[128].mxu0 %v2987_v10 }
 0xaf6   :  { %v9383_v14 = vadd.f32 %v2901_v41, %v9259_v0  ;;  %v2903_v28 = vpop.f32.mrb[102].mxu0  ;;  %3476 = vmatprep.mubr.bf16.mxu1 %v11692_v31  ;;  %3669 = vmatprep.mubr.bf16.mxu0 %v11692_v31 }
 0xaf7   :  { %11757 = vst [vmem:[#allocation74_spill] sm:$0xff] %v9380_v15  ;;  %v9388_v46 = vadd.f32 %v2903_v28, %v9259_v0  ;;  %v2905_v47 = vpop.f32.mrb[103].mxu0  ;;  %v11567_v23 = vmax.f32 %v9380_v15, 0.0 }
 0xaf8   :  { %11758 = vst [vmem:[#allocation75_spill] sm:$0xff] %v9383_v14  ;;  %v9391_v48 = vadd.f32 %v2905_v47, %v9259_v0  ;;  %v11560_v47 = vmax.f32 %v9271_v6, 0.0 }
 0xaf9   :  { %11759 = vst [vmem:[#allocation76_spill] sm:$0xff] %v9388_v46  ;;  %v11566_v20 = vmax.f32 %v9388_v46, 0.0 }
 0xafa   :  { %11760 = vst [vmem:[#allocation77_spill] sm:$0xff] %v9391_v48 }
 0xafb   :  { %v2988_v61 = vpack.c.bf16 %v11566_v20, %v11567_v23 }
 0xafc   :  { %v2909_v17 = vpop.f32.mrb[104].mxu0 }
 0xafd   :  { %v9400_v39 = vadd.f32 %v2909_v17, %v9259_v0  ;;  %v2911_v38 = vpop.f32.mrb[105].mxu0  ;;  %3477 = vmatmul.mubr.bf16.gmra.mrb[92].mxu1 %v2988_v61  ;;  %3670 = vmatmul.mubr.bf16.gmra.mrb[132].mxu0 %v2988_v61  ;;  %v11550_v17 = vmax.f32 %v9291_v2, 0.0 }
 0xafe   :  { %v9403_v1 = vadd.f32 %v2911_v38, %v9259_v0  ;;  %v2913_v58 = vpop.f32.mrb[106].mxu0  ;;  %3486 = vmatprep.mubr.bf16.mxu1 %v11692_v31  ;;  %3679 = vmatprep.mubr.bf16.mxu0 %v11692_v31  ;;  %v11551_v38 = vmax.f32 %v9283_v26, 0.0 }
 0xaff   :  { %11761 = vst [vmem:[#allocation78_spill] sm:$0xff] %v9400_v39  ;;  %v9408_v51 = vadd.f32 %v2913_v58, %v9259_v0  ;;  %v2915_v5 = vpop.f32.mrb[107].mxu0  ;;  %v11565_v57 = vmax.f32 %v9400_v39, 0.0 }
 0xb00   :  { %11762 = vst [vmem:[#allocation79_spill] sm:$0xff] %v9403_v1  ;;  %v9411_v10 = vadd.f32 %v2915_v5, %v9259_v0  ;;  %v11561_v0 = vmax.f32 %v9265_v53, 0.0  ;;  %v2991_v58 = vpack.c.bf16 %v11550_v17, %v11551_v38  ;;  %v11552_v5 = vmax.f32 %v9311_v63, 0.0 }
 0xb01   :  { %11763 = vst [vmem:[#allocation80_spill] sm:$0xff] %v9408_v51  ;;  %v11564_v41 = vmax.f32 %v9408_v51, 0.0  ;;  %v11555_v17 = vmax.f32 %v9323_v8, 0.0 }
 0xb02   :  { %11764 = vst [vmem:[#allocation81_spill] sm:$0xff] %v9411_v10  ;;  %v2990_v61 = vpack.c.bf16 %v11560_v47, %v11561_v0 }
 0xb03   :  { %v2989_v28 = vpack.c.bf16 %v11564_v41, %v11565_v57 }
 0xb05   :  { %3487 = vmatmul.mubr.bf16.gmra.mrb[96].mxu1 %v2989_v28  ;;  %3680 = vmatmul.mubr.bf16.gmra.mrb[136].mxu0 %v2989_v28  ;;  %v11553_v28 = vmax.f32 %v9303_v37, 0.0 }
 0xb06   :  { %3496 = vmatprep.mubr.bf16.mxu1 %v11692_v31  ;;  %3689 = vmatprep.mubr.bf16.mxu0 %v11692_v31 }
 0xb0d   :  { %3497 = vmatmul.mubr.bf16.gmra.mrb[100].mxu1 %v2990_v61  ;;  %3690 = vmatmul.mubr.bf16.gmra.mrb[140].mxu0 %v2990_v61  ;;  %v2992_v61 = vpack.c.bf16 %v11552_v5, %v11553_v28  ;;  %v11557_v5 = vmax.f32 %v9343_v29, 0.0 }
 0xb0e   :  { %3506 = vmatprep.mubr.bf16.mxu1 %v11692_v31  ;;  %3699 = vmatprep.mubr.bf16.mxu0 %v11692_v31 }
 0xb15   :  { %3507 = vmatmul.mubr.bf16.gmra.mrb[104].mxu1 %v2991_v58  ;;  %3700 = vmatmul.mubr.bf16.gmra.mrb[144].mxu0 %v2991_v58  ;;  %v11554_v58 = vmax.f32 %v9331_v52, 0.0 }
 0xb16   :  { %3516 = vmatprep.mubr.bf16.mxu1 %v11692_v31  ;;  %3709 = vmatprep.mubr.bf16.mxu0 %v11692_v31 }
 0xb17   :  { %v2993_v38 = vpack.c.bf16 %v11554_v58, %v11555_v17  ;;  %v11559_v58 = vmax.f32 %v9363_v33, 0.0 }
 0xb1d   :  { %3517 = vmatmul.mubr.bf16.gmra.mrb[108].mxu1 %v2992_v61  ;;  %3710 = vmatmul.mubr.bf16.gmra.mrb[148].mxu0 %v2992_v61  ;;  %v11556_v61 = vmax.f32 %v9351_v60, 0.0 }
 0xb1e   :  { %3526 = vmatprep.mubr.bf16.mxu1 %v11692_v31  ;;  %3719 = vmatprep.mubr.bf16.mxu0 %v11692_v31 }
 0xb1f   :  { %v2994_v28 = vpack.c.bf16 %v11556_v61, %v11557_v5  ;;  %v11563_v61 = vmax.f32 %v9383_v14, 0.0 }
 0xb25   :  { %3527 = vmatmul.mubr.bf16.gmra.mrb[112].mxu1 %v2993_v38  ;;  %3720 = vmatmul.mubr.bf16.gmra.mrb[152].mxu0 %v2993_v38  ;;  %v11558_v38 = vmax.f32 %v9371_v3, 0.0 }
 0xb26   :  { %3536 = vmatprep.mubr.bf16.mxu1 %v11692_v31  ;;  %3729 = vmatprep.mubr.bf16.mxu0 %v11692_v31 }
 0xb27   :  { %v2995_v17 = vpack.c.bf16 %v11558_v38, %v11559_v58  ;;  %v11569_v38 = vmax.f32 %v9403_v1, 0.0 }
 0xb2d   :  { %3537 = vmatmul.mubr.bf16.gmra.mrb[116].mxu1 %v2994_v28  ;;  %3730 = vmatmul.mubr.bf16.gmra.mrb[156].mxu0 %v2994_v28  ;;  %v11562_v28 = vmax.f32 %v9391_v48, 0.0 }
 0xb2e   :  { %3546 = vmatprep.mubr.bf16.mxu1 %v11692_v31  ;;  %3739 = vmatprep.mubr.bf16.mxu0 %v11692_v31 }
 0xb2f   :  { %v2996_v5 = vpack.c.bf16 %v11562_v28, %v11563_v61 }
 0xb35   :  { %3547 = vmatmul.mubr.bf16.gmra.mrb[120].mxu1 %v2995_v17  ;;  %3740 = vmatmul.mubr.bf16.gmra.mrb[160].mxu0 %v2995_v17  ;;  %v11568_v17 = vmax.f32 %v9411_v10, 0.0 }
 0xb36   :  { %3556 = vmatprep.mubr.bf16.mxu1 %v11692_v31  ;;  %3749 = vmatprep.mubr.bf16.mxu0 %v11692_v31 }
 0xb37   :  { %v2997_v58 = vpack.c.bf16 %v11568_v17, %v11569_v38 }
 0xb3d   :  { %3557 = vmatmul.mubr.bf16.gmra.mrb[124].mxu1 %v2996_v5  ;;  %3750 = vmatmul.mubr.bf16.gmra.mrb[164].mxu0 %v2996_v5 }
 0xb3e   :  { %3566 = vmatprep.mubr.bf16.mxu1 %v11692_v31  ;;  %3759 = vmatprep.mubr.bf16.mxu0 %v11692_v31  ;;  %v9486_v31 = vld [vmem:[%s11477_s8 + $0x4] ss:$0 sm:$0xff] }
 0xb45   :  { %3567 = vmatmul.mubr.bf16.gmra.mrb[128].mxu1 %v2997_v58  ;;  %3760 = vmatmul.mubr.bf16.gmra.mrb[168].mxu0 %v2997_v58 }
 0xba0   :  { %v3418_v47 = vpop.f32.mrb[68].mxu1  ;;  %v3611_v0 = vpop.f32.mrb[108].mxu0 }
 0xba1   :  { %v3420_v28 = vpop.f32.mrb[69].mxu1  ;;  %v3613_v61 = vpop.f32.mrb[109].mxu0  ;;  %v3770_v57 = vadd.f32 %v9486_v31, %v3418_v47  ;;  %v3866_v20 = vadd.f32 %v3611_v0, %v8685_v22 }
 0xba2   :  { %v3422_v5 = vpop.f32.mrb[70].mxu1  ;;  %v3615_v41 = vpop.f32.mrb[110].mxu0  ;;  %v9498_v55 = vadd.f32 %v9495_v45, %v3420_v28  ;;  %v3867_v59 = vadd.f32 %v3613_v61, %v8687_v32 }
 0xba3   :  { %v3771_v23 = vadd.f32 %v9486_v31, %v3422_v5  ;;  %v3868_v17 = vadd.f32 %v3615_v41, %v8685_v22  ;;  %v3424_v58 = vpop.f32.mrb[71].mxu1  ;;  %v3617_v38 = vpop.f32.mrb[111].mxu0 }
 0xba4   :  { %v9502_v47 = vadd.f32 %v9495_v45, %v3424_v58  ;;  %v3869_v0 = vadd.f32 %v3617_v38, %v8687_v32 }
 0xba5   :  { %v9505_v5 = vpack.c.bf16 %v3771_v23, %v3770_v57  ;;  %v4805_v41 = vpack.c.bf16 %v3868_v17, %v3866_v20 }
 0xba6   :  { %v4806_v13 = vpack.c.bf16 %v3869_v0, %v3867_v59 }
 0xba7   :  { %6943 = vmatprep.mubr.bf16.mxu1 %v9505_v5 }
 0xba8   :  { %v3428_v40 = vpop.f32.mrb[72].mxu1  ;;  %v3621_v50 = vpop.f32.mrb[112].mxu0  ;;  %4837 = vmatprep.subr.bf16.mxu0 %v4806_v13 }
 0xba9   :  { %v3430_v28 = vpop.f32.mrb[73].mxu1  ;;  %v3623_v4 = vpop.f32.mrb[113].mxu0  ;;  %4838 = vmatpush1.bf16.msra.mxu0 %v4805_v41  ;;  %v3772_v7 = vadd.f32 %v9486_v31, %v3428_v40  ;;  %v3870_v23 = vadd.f32 %v3621_v50, %v8685_v22 }
 0xbaa   :  { %v3432_v61 = vpop.f32.mrb[74].mxu1  ;;  %v3625_v58 = vpop.f32.mrb[114].mxu0  ;;  %v9515_v17 = vadd.f32 %v9495_v45, %v3430_v28  ;;  %v3871_v13 = vadd.f32 %v3623_v4, %v8687_v32 }
 0xbab   :  { %v3773_v20 = vadd.f32 %v9486_v31, %v3432_v61  ;;  %v3872_v57 = vadd.f32 %v3625_v58, %v8685_v22  ;;  %v3434_v38 = vpop.f32.mrb[75].mxu1  ;;  %v3627_v59 = vpop.f32.mrb[115].mxu0 }
 0xbac   :  { %v9519_v0 = vadd.f32 %v9495_v45, %v3434_v38  ;;  %v3873_v41 = vadd.f32 %v3627_v59, %v8687_v32 }
 0xbad   :  { %v9522_v18 = vpack.c.bf16 %v3773_v20, %v3772_v7  ;;  %v4807_v40 = vpack.c.bf16 %v3872_v57, %v3870_v23 }
 0xbae   :  { %v4808_v61 = vpack.c.bf16 %v3873_v41, %v3871_v13 }
 0xbb0   :  { %v3438_v58 = vpop.f32.mrb[76].mxu1  ;;  %v3631_v43 = vpop.f32.mrb[116].mxu0  ;;  %4839 = vmatprep.subr.bf16.mxu0 %v4808_v61 }
 0xbb1   :  { %v3440_v12 = vpop.f32.mrb[77].mxu1  ;;  %v3633_v28 = vpop.f32.mrb[117].mxu0  ;;  %4840 = vmatpush1.bf16.msra.mxu0 %v4807_v40  ;;  %v3774_v38 = vadd.f32 %v9486_v31, %v3438_v58  ;;  %v3874_v10 = vadd.f32 %v3631_v43, %v8685_v22 }
 0xbb2   :  { %v3442_v62 = vpop.f32.mrb[78].mxu1  ;;  %v3635_v4 = vpop.f32.mrb[118].mxu0  ;;  %v9531_v59 = vadd.f32 %v9495_v45, %v3440_v12  ;;  %v3875_v13 = vadd.f32 %v3633_v28, %v8687_v32 }
 0xbb3   :  { %v3775_v7 = vadd.f32 %v9486_v31, %v3442_v62  ;;  %v3876_v23 = vadd.f32 %v3635_v4, %v8685_v22  ;;  %v3444_v20 = vpop.f32.mrb[79].mxu1  ;;  %v3637_v57 = vpop.f32.mrb[119].mxu0 }
 0xbb4   :  { %v9535_v41 = vadd.f32 %v9495_v45, %v3444_v20  ;;  %v3877_v40 = vadd.f32 %v3637_v57, %v8687_v32 }
 0xbb5   :  { %v9538_v61 = vpack.c.bf16 %v3775_v7, %v3774_v38  ;;  %v4809_v58 = vpack.c.bf16 %v3876_v23, %v3874_v10 }
 0xbb6   :  { %v4810_v62 = vpack.c.bf16 %v3877_v40, %v3875_v13 }
 0xbb8   :  { %v3448_v4 = vpop.f32.mrb[80].mxu1  ;;  %v3641_v50 = vpop.f32.mrb[120].mxu0  ;;  %4841 = vmatprep.subr.bf16.mxu0 %v4810_v62 }
 0xbb9   :  { %v3450_v1 = vpop.f32.mrb[81].mxu1  ;;  %v3643_v12 = vpop.f32.mrb[121].mxu0  ;;  %4842 = vmatpush1.bf16.msra.mxu0 %v4809_v58  ;;  %v3776_v20 = vadd.f32 %v9486_v31, %v3448_v4  ;;  %v3878_v14 = vadd.f32 %v3641_v50, %v8685_v22 }
 0xbba   :  { %v3452_v48 = vpop.f32.mrb[82].mxu1  ;;  %v3645_v28 = vpop.f32.mrb[122].mxu0  ;;  %v9547_v57 = vadd.f32 %v9495_v45, %v3450_v1  ;;  %v3879_v13 = vadd.f32 %v3643_v12, %v8687_v32 }
 0xbbb   :  { %v3777_v38 = vadd.f32 %v9486_v31, %v3452_v48  ;;  %v3880_v10 = vadd.f32 %v3645_v28, %v8685_v22  ;;  %v3454_v7 = vpop.f32.mrb[83].mxu1  ;;  %v3647_v23 = vpop.f32.mrb[123].mxu0 }
 0xbbc   :  { %v9551_v40 = vadd.f32 %v9495_v45, %v3454_v7  ;;  %v3881_v58 = vadd.f32 %v3647_v23, %v8687_v32 }
 0xbbd   :  { %v9554_v62 = vpack.c.bf16 %v3777_v38, %v3776_v20  ;;  %v4811_v4 = vpack.c.bf16 %v3880_v10, %v3878_v14 }
 0xbbe   :  { %v4812_v50 = vpack.c.bf16 %v3881_v58, %v3879_v13 }
 0xbc0   :  { %v3458_v28 = vpop.f32.mrb[84].mxu1  ;;  %v3651_v43 = vpop.f32.mrb[124].mxu0  ;;  %4843 = vmatprep.subr.bf16.mxu0 %v4812_v50 }
 0xbc1   :  { %v3460_v3 = vpop.f32.mrb[85].mxu1  ;;  %v3653_v1 = vpop.f32.mrb[125].mxu0  ;;  %4844 = vmatpush1.bf16.msra.mxu0 %v4811_v4  ;;  %v3778_v7 = vadd.f32 %v9486_v31, %v3458_v28  ;;  %v3882_v60 = vadd.f32 %v3651_v43, %v8685_v22 }
 0xbc2   :  { %v3462_v33 = vpop.f32.mrb[86].mxu1  ;;  %v3655_v12 = vpop.f32.mrb[126].mxu0  ;;  %v9563_v23 = vadd.f32 %v9495_v45, %v3460_v3  ;;  %v3883_v13 = vadd.f32 %v3653_v1, %v8687_v32 }
 0xbc3   :  { %v3779_v20 = vadd.f32 %v9486_v31, %v3462_v33  ;;  %v3884_v14 = vadd.f32 %v3655_v12, %v8685_v22  ;;  %v3464_v38 = vpop.f32.mrb[87].mxu1  ;;  %v3657_v10 = vpop.f32.mrb[127].mxu0 }
 0xbc4   :  { %v9567_v58 = vadd.f32 %v9495_v45, %v3464_v38  ;;  %v3885_v4 = vadd.f32 %v3657_v10, %v8687_v32 }
 0xbc5   :  { %v9570_v50 = vpack.c.bf16 %v3779_v20, %v3778_v7  ;;  %v4813_v28 = vpack.c.bf16 %v3884_v14, %v3882_v60 }
 0xbc6   :  { %v4814_v43 = vpack.c.bf16 %v3885_v4, %v3883_v13 }
 0xbc8   :  { %v3468_v12 = vpop.f32.mrb[88].mxu1  ;;  %v3661_v48 = vpop.f32.mrb[128].mxu0  ;;  %4845 = vmatprep.subr.bf16.mxu0 %v4814_v43 }
 0xbc9   :  { %v3470_v29 = vpop.f32.mrb[89].mxu1  ;;  %v3663_v3 = vpop.f32.mrb[129].mxu0  ;;  %4846 = vmatpush1.bf16.msra.mxu0 %v4813_v28  ;;  %v3780_v38 = vadd.f32 %v9486_v31, %v3468_v12  ;;  %v3886_v8 = vadd.f32 %v3661_v48, %v8685_v22 }
 0xbca   :  { %v3472_v52 = vpop.f32.mrb[90].mxu1  ;;  %v3665_v1 = vpop.f32.mrb[130].mxu0  ;;  %v9579_v10 = vadd.f32 %v9495_v45, %v3470_v29  ;;  %v3887_v13 = vadd.f32 %v3663_v3, %v8687_v32 }
 0xbcb   :  { %v3781_v7 = vadd.f32 %v9486_v31, %v3472_v52  ;;  %v3888_v60 = vadd.f32 %v3665_v1, %v8685_v22  ;;  %v3474_v20 = vpop.f32.mrb[91].mxu1  ;;  %v3667_v14 = vpop.f32.mrb[131].mxu0 }
 0xbcc   :  { %v9583_v4 = vadd.f32 %v9495_v45, %v3474_v20  ;;  %v3889_v28 = vadd.f32 %v3667_v14, %v8687_v32 }
 0xbcd   :  { %v9586_v43 = vpack.c.bf16 %v3781_v7, %v3780_v38  ;;  %v4815_v12 = vpack.c.bf16 %v3888_v60, %v3886_v8 }
 0xbce   :  { %v4816_v48 = vpack.c.bf16 %v3889_v28, %v3887_v13 }
 0xbd0   :  { %v3478_v1 = vpop.f32.mrb[92].mxu1  ;;  %v3671_v33 = vpop.f32.mrb[132].mxu0  ;;  %4847 = vmatprep.subr.bf16.mxu0 %v4816_v48 }
 0xbd1   :  { %v3480_v63 = vpop.f32.mrb[93].mxu1  ;;  %v3673_v29 = vpop.f32.mrb[133].mxu0  ;;  %4848 = vmatpush1.bf16.msra.mxu0 %v4815_v12  ;;  %v3782_v20 = vadd.f32 %v9486_v31, %v3478_v1  ;;  %v3890_v2 = vadd.f32 %v3671_v33, %v8685_v22 }
 0xbd2   :  { %v3482_v37 = vpop.f32.mrb[94].mxu1  ;;  %v3675_v3 = vpop.f32.mrb[134].mxu0  ;;  %v9595_v14 = vadd.f32 %v9495_v45, %v3480_v63  ;;  %v3891_v13 = vadd.f32 %v3673_v29, %v8687_v32 }
 0xbd3   :  { %v3783_v38 = vadd.f32 %v9486_v31, %v3482_v37  ;;  %v3892_v8 = vadd.f32 %v3675_v3, %v8685_v22  ;;  %v3484_v7 = vpop.f32.mrb[95].mxu1  ;;  %v3677_v60 = vpop.f32.mrb[135].mxu0 }
 0xbd4   :  { %v9599_v28 = vadd.f32 %v9495_v45, %v3484_v7  ;;  %v3893_v12 = vadd.f32 %v3677_v60, %v8687_v32 }
 0xbd5   :  { %v9602_v48 = vpack.c.bf16 %v3783_v38, %v3782_v20  ;;  %v4817_v1 = vpack.c.bf16 %v3892_v8, %v3890_v2 }
 0xbd6   :  { %v4818_v33 = vpack.c.bf16 %v3893_v12, %v3891_v13 }
 0xbd8   :  { %v3488_v3 = vpop.f32.mrb[96].mxu1  ;;  %v3681_v52 = vpop.f32.mrb[136].mxu0  ;;  %4849 = vmatprep.subr.bf16.mxu0 %v4818_v33 }
 0xbd9   :  { %v3490_v26 = vpop.f32.mrb[97].mxu1  ;;  %v3683_v63 = vpop.f32.mrb[137].mxu0  ;;  %4850 = vmatpush1.bf16.msra.mxu0 %v4817_v1  ;;  %v3784_v7 = vadd.f32 %v9486_v31, %v3488_v3  ;;  %v3894_v53 = vadd.f32 %v3681_v52, %v8685_v22 }
 0xbda   :  { %v3492_v6 = vpop.f32.mrb[98].mxu1  ;;  %v3685_v29 = vpop.f32.mrb[138].mxu0  ;;  %v9611_v60 = vadd.f32 %v9495_v45, %v3490_v26  ;;  %v3895_v13 = vadd.f32 %v3683_v63, %v8687_v32 }
 0xbdb   :  { %v3785_v20 = vadd.f32 %v9486_v31, %v3492_v6  ;;  %v3896_v2 = vadd.f32 %v3685_v29, %v8685_v22  ;;  %v3494_v38 = vpop.f32.mrb[99].mxu1  ;;  %v3687_v8 = vpop.f32.mrb[139].mxu0 }
 0xbdc   :  { %v9615_v12 = vadd.f32 %v9495_v45, %v3494_v38  ;;  %v3897_v1 = vadd.f32 %v3687_v8, %v8687_v32 }
 0xbdd   :  { %v9618_v33 = vpack.c.bf16 %v3785_v20, %v3784_v7  ;;  %v4819_v3 = vpack.c.bf16 %v3896_v2, %v3894_v53 }
 0xbde   :  { %v4820_v52 = vpack.c.bf16 %v3897_v1, %v3895_v13 }
 0xbe0   :  { %v3498_v29 = vpop.f32.mrb[100].mxu1  ;;  %v3691_v37 = vpop.f32.mrb[140].mxu0  ;;  %4851 = vmatprep.subr.bf16.mxu0 %v4820_v52 }
 0xbe1   :  { %v3500_v51 = vpop.f32.mrb[101].mxu1  ;;  %v3693_v26 = vpop.f32.mrb[141].mxu0  ;;  %4852 = vmatpush1.bf16.msra.mxu0 %v4819_v3  ;;  %v3786_v38 = vadd.f32 %v9486_v31, %v3498_v29  ;;  %v3898_v46 = vadd.f32 %v3691_v37, %v8685_v22 }
 0xbe2   :  { %v3502_v39 = vpop.f32.mrb[102].mxu1  ;;  %v3695_v63 = vpop.f32.mrb[142].mxu0  ;;  %v3834_v8 = vadd.f32 %v9495_v45, %v3500_v51  ;;  %v3899_v13 = vadd.f32 %v3693_v26, %v8687_v32  ;;  %v11765_v51 = vpack.c.bf16 %v9502_v47, %v9498_v55 }
 0xbe3   :  { %v3787_v7 = vadd.f32 %v9486_v31, %v3502_v39  ;;  %v3900_v53 = vadd.f32 %v3695_v63, %v8685_v22  ;;  %v3504_v20 = vpop.f32.mrb[103].mxu1  ;;  %v3697_v2 = vpop.f32.mrb[143].mxu0 }
 0xbe4   :  { %v3835_v1 = vadd.f32 %v9495_v45, %v3504_v20  ;;  %v3901_v3 = vadd.f32 %v3697_v2, %v8687_v32 }
 0xbe5   :  { %v9630_v52 = vpack.c.bf16 %v3787_v7, %v3786_v38  ;;  %v4821_v6 = vpack.c.bf16 %v3900_v53, %v3898_v46 }
 0xbe6   :  { %v3858_v29 = vpack.c.bf16 %v3835_v1, %v3834_v8  ;;  %v4822_v15 = vpack.c.bf16 %v3901_v3, %v3899_v13 }
 0xbe8   :  { %v3508_v37 = vpop.f32.mrb[104].mxu1  ;;  %v3701_v42 = vpop.f32.mrb[144].mxu0  ;;  %6927 = vmatprep.subr.bf16.mxu1 %v3858_v29  ;;  %4853 = vmatprep.subr.bf16.mxu0 %v4822_v15 }
 0xbe9   :  { %v3510_v39 = vpop.f32.mrb[105].mxu1  ;;  %v3703_v63 = vpop.f32.mrb[145].mxu0  ;;  %6928 = vmatpush3.bf16.xpose.msra.mxu1 %v11765_v51  ;;  %4854 = vmatpush1.bf16.msra.mxu0 %v4821_v6  ;;  %v3788_v2 = vadd.f32 %v9486_v31, %v3508_v37  ;;  %v3902_v38 = vadd.f32 %v3701_v42, %v8685_v22 }
 0xbea   :  { %v3512_v26 = vpop.f32.mrb[106].mxu1  ;;  %v3705_v20 = vpop.f32.mrb[146].mxu0  ;;  %v3836_v15 = vadd.f32 %v9495_v45, %v3510_v39  ;;  %v3903_v13 = vadd.f32 %v3703_v63, %v8687_v32  ;;  %v11766_v39 = vpack.c.bf16 %v9519_v0, %v9515_v17 }
 0xbeb   :  { %v3789_v46 = vadd.f32 %v9486_v31, %v3512_v26  ;;  %v3904_v7 = vadd.f32 %v3705_v20, %v8685_v22  ;;  %v3514_v53 = vpop.f32.mrb[107].mxu1  ;;  %v3707_v8 = vpop.f32.mrb[147].mxu0 }
 0xbec   :  { %v3837_v55 = vadd.f32 %v9495_v45, %v3514_v53  ;;  %v3905_v47 = vadd.f32 %v3707_v8, %v8687_v32 }
 0xbed   :  { %v9643_v6 = vpack.c.bf16 %v3789_v46, %v3788_v2  ;;  %v4823_v1 = vpack.c.bf16 %v3904_v7, %v3902_v38 }
 0xbee   :  { %v3859_v3 = vpack.c.bf16 %v3837_v55, %v3836_v15  ;;  %v4824_v29 = vpack.c.bf16 %v3905_v47, %v3903_v13 }
 0xbf0   :  { %v3518_v42 = vpop.f32.mrb[108].mxu1  ;;  %v3711_v37 = vpop.f32.mrb[148].mxu0  ;;  %6929 = vmatprep.subr.bf16.mxu1 %v3859_v3  ;;  %4855 = vmatprep.subr.bf16.mxu0 %v4824_v29 }
 0xbf1   :  { %v3520_v51 = vpop.f32.mrb[109].mxu1  ;;  %v3713_v26 = vpop.f32.mrb[149].mxu0  ;;  %6930 = vmatpush3.bf16.xpose.msra.mxu1 %v11766_v39  ;;  %4856 = vmatpush1.bf16.msra.mxu0 %v4823_v1  ;;  %v3790_v53 = vadd.f32 %v9486_v31, %v3518_v42  ;;  %v3906_v2 = vadd.f32 %v3711_v37, %v8685_v22 }
 0xbf2   :  { %v3522_v63 = vpop.f32.mrb[110].mxu1  ;;  %v3715_v20 = vpop.f32.mrb[150].mxu0  ;;  %v3838_v15 = vadd.f32 %v9495_v45, %v3520_v51  ;;  %v3907_v13 = vadd.f32 %v3713_v26, %v8687_v32  ;;  %v11767_v51 = vpack.c.bf16 %v9535_v41, %v9531_v59 }
 0xbf3   :  { %v3791_v38 = vadd.f32 %v9486_v31, %v3522_v63  ;;  %v3908_v46 = vadd.f32 %v3715_v20, %v8685_v22  ;;  %v3524_v7 = vpop.f32.mrb[111].mxu1  ;;  %v3717_v8 = vpop.f32.mrb[151].mxu0 }
 0xbf4   :  { %v3839_v17 = vadd.f32 %v9495_v45, %v3524_v7  ;;  %v3909_v0 = vadd.f32 %v3717_v8, %v8687_v32 }
 0xbf5   :  { %v9656_v55 = vpack.c.bf16 %v3791_v38, %v3790_v53  ;;  %v4825_v47 = vpack.c.bf16 %v3908_v46, %v3906_v2 }
 0xbf6   :  { %v3860_v1 = vpack.c.bf16 %v3839_v17, %v3838_v15  ;;  %v4826_v3 = vpack.c.bf16 %v3909_v0, %v3907_v13 }
 0xbf8   :  { %v3528_v29 = vpop.f32.mrb[112].mxu1  ;;  %v3721_v42 = vpop.f32.mrb[152].mxu0  ;;  %6931 = vmatprep.subr.bf16.mxu1 %v3860_v1  ;;  %4857 = vmatprep.subr.bf16.mxu0 %v4826_v3 }
 0xbf9   :  { %v3530_v37 = vpop.f32.mrb[113].mxu1  ;;  %v3723_v39 = vpop.f32.mrb[153].mxu0  ;;  %6932 = vmatpush3.bf16.xpose.msra.mxu1 %v11767_v51  ;;  %4858 = vmatpush1.bf16.msra.mxu0 %v4825_v47  ;;  %v3792_v20 = vadd.f32 %v9486_v31, %v3528_v29  ;;  %v3910_v53 = vadd.f32 %v3721_v42, %v8685_v22 }
 0xbfa   :  { %v3532_v26 = vpop.f32.mrb[114].mxu1  ;;  %v3725_v63 = vpop.f32.mrb[154].mxu0  ;;  %v3840_v8 = vadd.f32 %v9495_v45, %v3530_v37  ;;  %v3911_v15 = vadd.f32 %v3723_v39, %v8687_v32  ;;  %v11768_v37 = vpack.c.bf16 %v9551_v40, %v9547_v57 }
 0xbfb   :  { %v3793_v2 = vadd.f32 %v9486_v31, %v3532_v26  ;;  %v3912_v38 = vadd.f32 %v3725_v63, %v8685_v22  ;;  %v3534_v46 = vpop.f32.mrb[115].mxu1  ;;  %v3727_v7 = vpop.f32.mrb[155].mxu0 }
 0xbfc   :  { %v3841_v59 = vadd.f32 %v9495_v45, %v3534_v46  ;;  %v3913_v41 = vadd.f32 %v3727_v7, %v8687_v32 }
 0xbfd   :  { %v9669_v13 = vpack.c.bf16 %v3793_v2, %v3792_v20  ;;  %v4827_v17 = vpack.c.bf16 %v3912_v38, %v3910_v53 }
 0xbfe   :  { %v3861_v0 = vpack.c.bf16 %v3841_v59, %v3840_v8  ;;  %v4828_v47 = vpack.c.bf16 %v3913_v41, %v3911_v15 }
 0xc00   :  { %v3538_v1 = vpop.f32.mrb[116].mxu1  ;;  %v3731_v3 = vpop.f32.mrb[156].mxu0  ;;  %6933 = vmatprep.subr.bf16.mxu1 %v3861_v0  ;;  %4859 = vmatprep.subr.bf16.mxu0 %v4828_v47 }
 0xc01   :  { %v3540_v29 = vpop.f32.mrb[117].mxu1  ;;  %v3733_v42 = vpop.f32.mrb[157].mxu0  ;;  %6934 = vmatpush3.bf16.xpose.msra.mxu1 %v11768_v37  ;;  %4860 = vmatpush1.bf16.msra.mxu0 %v4827_v17  ;;  %v3794_v26 = vadd.f32 %v9486_v31, %v3538_v1  ;;  %v3914_v63 = vadd.f32 %v3731_v3, %v8685_v22  ;;  %v11769_v3 = vpack.c.bf16 %v9567_v58, %v9563_v23 }
 0xc02   :  { %v3542_v39 = vpop.f32.mrb[118].mxu1  ;;  %v3735_v51 = vpop.f32.mrb[158].mxu0  ;;  %v3842_v46 = vadd.f32 %v9495_v45, %v3540_v29  ;;  %v3915_v7 = vadd.f32 %v3733_v42, %v8687_v32 }
 0xc03   :  { %v3795_v20 = vadd.f32 %v9486_v31, %v3542_v39  ;;  %v3916_v53 = vadd.f32 %v3735_v51, %v8685_v22  ;;  %v3544_v2 = vpop.f32.mrb[119].mxu1  ;;  %v3737_v38 = vpop.f32.mrb[159].mxu0 }
 0xc04   :  { %v3843_v57 = vadd.f32 %v9495_v45, %v3544_v2  ;;  %v3917_v40 = vadd.f32 %v3737_v38, %v8687_v32 }
 0xc05   :  { %v9682_v8 = vpack.c.bf16 %v3795_v20, %v3794_v26  ;;  %v4829_v15 = vpack.c.bf16 %v3916_v53, %v3914_v63 }
 0xc06   :  { %v3862_v59 = vpack.c.bf16 %v3843_v57, %v3842_v46  ;;  %v4830_v41 = vpack.c.bf16 %v3917_v40, %v3915_v7 }
 0xc08   :  { %v3548_v17 = vpop.f32.mrb[120].mxu1  ;;  %v3741_v0 = vpop.f32.mrb[160].mxu0  ;;  %6935 = vmatprep.subr.bf16.mxu1 %v3862_v59  ;;  %4861 = vmatprep.subr.bf16.mxu0 %v4830_v41 }
 0xc09   :  { %v3550_v47 = vpop.f32.mrb[121].mxu1  ;;  %v3743_v1 = vpop.f32.mrb[161].mxu0  ;;  %6936 = vmatpush3.bf16.xpose.msra.mxu1 %v11769_v3  ;;  %4862 = vmatpush1.bf16.msra.mxu0 %v4829_v15  ;;  %v3796_v37 = vadd.f32 %v9486_v31, %v3548_v17  ;;  %v3918_v39 = vadd.f32 %v3741_v0, %v8685_v22  ;;  %v11770_v17 = vpack.c.bf16 %v9583_v4, %v9579_v10 }
 0xc0a   :  { %v3552_v29 = vpop.f32.mrb[122].mxu1  ;;  %v3745_v42 = vpop.f32.mrb[162].mxu0  ;;  %v3844_v53 = vadd.f32 %v9495_v45, %v3550_v47  ;;  %v3919_v2 = vadd.f32 %v3743_v1, %v8687_v32 }
 0xc0b   :  { %v3797_v51 = vadd.f32 %v9486_v31, %v3552_v29  ;;  %v3920_v26 = vadd.f32 %v3745_v42, %v8685_v22  ;;  %v3554_v63 = vpop.f32.mrb[123].mxu1  ;;  %v3747_v20 = vpop.f32.mrb[163].mxu0 }
 0xc0c   :  { %v3845_v23 = vadd.f32 %v9495_v45, %v3554_v63  ;;  %v3921_v58 = vadd.f32 %v3747_v20, %v8687_v32 }
 0xc0d   :  { %v9695_v38 = vpack.c.bf16 %v3797_v51, %v3796_v37  ;;  %v4831_v46 = vpack.c.bf16 %v3920_v26, %v3918_v39 }
 0xc0e   :  { %v3863_v7 = vpack.c.bf16 %v3845_v23, %v3844_v53  ;;  %v4832_v57 = vpack.c.bf16 %v3921_v58, %v3919_v2 }
 0xc10   :  { %v3558_v40 = vpop.f32.mrb[124].mxu1  ;;  %v3751_v15 = vpop.f32.mrb[164].mxu0  ;;  %6937 = vmatprep.subr.bf16.mxu1 %v3863_v7  ;;  %4863 = vmatprep.subr.bf16.mxu0 %v4832_v57  ;;  %v11771_v57 = vpack.c.bf16 %v9599_v28, %v9595_v14 }
 0xc11   :  { %v3560_v59 = vpop.f32.mrb[125].mxu1  ;;  %v3753_v41 = vpop.f32.mrb[165].mxu0  ;;  %6938 = vmatpush3.bf16.xpose.msra.mxu1 %v11770_v17  ;;  %4864 = vmatpush1.bf16.msra.mxu0 %v4831_v46  ;;  %v3798_v1 = vadd.f32 %v9486_v31, %v3558_v40  ;;  %v3922_v3 = vadd.f32 %v3751_v15, %v8685_v22 }
 0xc12   :  { %v3562_v0 = vpop.f32.mrb[126].mxu1  ;;  %v3755_v47 = vpop.f32.mrb[166].mxu0  ;;  %v3846_v51 = vadd.f32 %v9495_v45, %v3560_v59  ;;  %v3923_v26 = vadd.f32 %v3753_v41, %v8687_v32 }
 0xc13   :  { %v3799_v29 = vadd.f32 %v9486_v31, %v3562_v0  ;;  %v3924_v42 = vadd.f32 %v3755_v47, %v8685_v22  ;;  %v3564_v37 = vpop.f32.mrb[127].mxu1  ;;  %v3757_v39 = vpop.f32.mrb[167].mxu0 }
 0xc14   :  { %v3847_v10 = vadd.f32 %v9495_v45, %v3564_v37  ;;  %v3925_v4 = vadd.f32 %v3757_v39, %v8687_v32 }
 0xc15   :  { %v3816_v63 = vpack.c.bf16 %v3799_v29, %v3798_v1  ;;  %v4833_v20 = vpack.c.bf16 %v3924_v42, %v3922_v3 }
 0xc16   :  { %v3864_v53 = vpack.c.bf16 %v3847_v10, %v3846_v51  ;;  %v4834_v2 = vpack.c.bf16 %v3925_v4, %v3923_v26  ;;  %v11779_v26 = vld [vmem:[#allocation36_spill] sm:$0xff] }
 0xc17   :  { %v11780_v10 = vand.u32 15, %v11779_v26 }
 0xc18   :  { %v3568_v23 = vpop.f32.mrb[128].mxu1  ;;  %v3761_v58 = vpop.f32.mrb[168].mxu0  ;;  %6939 = vmatprep.subr.bf16.mxu1 %v3864_v53  ;;  %4865 = vmatprep.subr.bf16.mxu0 %v4834_v2  ;;  %v4126_v2 = vadd.s32 88, %v8675_v11 }
 0xc19   :  { %v3570_v46 = vpop.f32.mrb[129].mxu1  ;;  %v3763_v7 = vpop.f32.mrb[169].mxu0  ;;  %6940 = vmatpush3.bf16.xpose.msra.mxu1 %v11771_v57  ;;  %4866 = vmatpush1.bf16.msra.mxu0 %v4833_v20  ;;  %v3800_v59 = vadd.f32 %v9486_v31, %v3568_v23  ;;  %v3926_v41 = vadd.f32 %v3761_v58, %v8685_v22 }
 0xc1a   :  { %v3572_v40 = vpop.f32.mrb[130].mxu1  ;;  %v3765_v15 = vpop.f32.mrb[170].mxu0  ;;  %v3848_v3 = vadd.f32 %v9495_v45, %v3570_v46  ;;  %v3927_v29 = vadd.f32 %v3763_v7, %v8687_v32  ;;  %v11782_v7 = vld [vmem:[#allocation39_spill] sm:$0xff] }
 0xc1b   :  { %v3801_v17 = vadd.f32 %v9486_v31, %v3572_v40  ;;  %v3928_v0 = vadd.f32 %v3765_v15, %v8685_v22  ;;  %v3574_v47 = vpop.f32.mrb[131].mxu1  ;;  %v3767_v1 = vpop.f32.mrb[171].mxu0  ;;  %v11772_v31 = vpack.c.bf16 %v9615_v12, %v9611_v60  ;;  %v4147_v22 = vadd.s32 128, %v8734_v44 }
 0xc1c   :  { %v3849_v14 = vadd.f32 %v9495_v45, %v3574_v47  ;;  %v3929_v28 = vadd.f32 %v3767_v1, %v8687_v32  ;;  %v11783_v57 = vand.u32 15, %v11782_v7 }
 0xc1d   :  { %v3817_v42 = vpack.c.bf16 %v3801_v17, %v3800_v59  ;;  %v4835_v37 = vpack.c.bf16 %v3928_v0, %v3926_v41  ;;  %v9750_v32 = vand.u32 15, %v4147_v22  ;;  %v11785_v17 = vld [vmem:[#allocation43_spill] sm:$0xff] }
 0xc1e   :  { %v3865_v39 = vpack.c.bf16 %v3849_v14, %v3848_v3  ;;  %v4836_v51 = vpack.c.bf16 %v3929_v28, %v3927_v29  ;;  %v11786_v0 = vand.u32 15, %v11785_v17 }
 0xc1f   :  { %vm4176_vm13 = vcmp.eq.s32.totalorder %v11780_v10, %v9750_v32  ;;  %vm4177_vm14 = vcmp.eq.s32.totalorder %v11783_v57, %v9750_v32  ;;  %v11794_v10 = vld [vmem:[#allocation37_spill] sm:$0xff] }
 0xc20   :  { %6941 = vmatprep.subr.bf16.mxu1 %v3865_v39  ;;  %4867 = vmatprep.subr.bf16.mxu0 %v4836_v51  ;;  %vm4178_vm15 = vcmp.eq.s32.totalorder %v11786_v0, %v9750_v32  ;;  %v11788_v51 = vld [vmem:[#allocation42_spill] sm:$0xff] }
 0xc21   :  { %6942 = vmatpush3.bf16.xpose.msra.mxu1 %v11772_v31  ;;  %4868 = vmatpush1.bf16.msra.mxu0 %v4835_v37  ;;  %v4123_v37 = vadd.s32 64, %v8675_v11  ;;  %v11789_v31 = vand.u32 15, %v11788_v51 }
 0xc28   :  { %6944 = vmatmul.mubr.bf16.vlgmr.msra.gmra.mrb[132].mxu1 %v9505_v5 }
 0xc29   :  { %6945 = vmatprep.mubr.bf16.mxu1 %v9522_v18 }
 0xc30   :  { %6946 = vmatmul.mubr.bf16.gmra.mrb[136].mxu1 %v9522_v18  ;;  %v11773_v18 = vand.u32 15, %v8675_v11 }
 0xc31   :  { %6947 = vmatprep.mubr.bf16.mxu1 %v9538_v61 }
 0xc32   :  { %vm4173_vm10 = vcmp.eq.s32.totalorder %v11773_v18, %v9750_v32 }
 0xc38   :  { %6948 = vmatmul.mubr.bf16.gmra.mrb[140].mxu1 %v9538_v61 }
 0xc39   :  { %6949 = vmatprep.mubr.bf16.mxu1 %v9554_v62 }
 0xc40   :  { %6950 = vmatmul.mubr.bf16.gmra.mrb[144].mxu1 %v9554_v62  ;;  %v11774_v62 = vand.u32 15, %v8743_v54  ;;  %v11776_v54 = vld [vmem:[#allocation35_spill] sm:$0xff] }
 0xc41   :  { %6951 = vmatprep.mubr.bf16.mxu1 %v9570_v50 }
 0xc42   :  { %vm4174_vm11 = vcmp.eq.s32.totalorder %v11774_v62, %v9750_v32  ;;  %v11791_v62 = vld [vmem:[#allocation44_spill] sm:$0xff] }
 0xc48   :  { %6952 = vmatmul.mubr.bf16.gmra.mrb[148].mxu1 %v9570_v50 }
 0xc49   :  { %6953 = vmatprep.mubr.bf16.mxu1 %v9586_v43 }
 0xc50   :  { %6954 = vmatmul.mubr.bf16.gmra.mrb[152].mxu1 %v9586_v43 }
 0xc51   :  { %6955 = vmatprep.mubr.bf16.mxu1 %v9602_v48 }
 0xc58   :  { %6956 = vmatmul.mubr.bf16.gmra.mrb[156].mxu1 %v9602_v48 }
 0xc59   :  { %6957 = vmatprep.mubr.bf16.mxu1 %v9618_v33 }
 0xc60   :  { %6958 = vmatmul.mubr.bf16.gmra.mrb[160].mxu1 %v9618_v33 }
 0xc61   :  { %6959 = vmatprep.mubr.bf16.mxu1 %v9630_v52 }
 0xc68   :  { %6960 = vmatmul.mubr.bf16.gmra.mrb[164].mxu1 %v9630_v52 }
 0xc69   :  { %6961 = vmatprep.mubr.bf16.mxu1 %v9643_v6 }
 0xc70   :  { %6962 = vmatmul.mubr.bf16.gmra.mrb[168].mxu1 %v9643_v6  ;;  %v11777_v6 = vand.u32 15, %v11776_v54 }
 0xc71   :  { %6963 = vmatprep.mubr.bf16.mxu1 %v9656_v55 }
 0xc72   :  { %vm4175_vm12 = vcmp.eq.s32.totalorder %v11777_v6, %v9750_v32 }
 0xc78   :  { %6964 = vmatmul.mubr.bf16.gmra.mrb[172].mxu1 %v9656_v55 }
 0xc79   :  { %6965 = vmatprep.mubr.bf16.mxu1 %v9669_v13 }
 0xc80   :  { %6966 = vmatmul.mubr.bf16.gmra.mrb[176].mxu1 %v9669_v13 }
 0xc81   :  { %6967 = vmatprep.mubr.bf16.mxu1 %v9682_v8 }
 0xc88   :  { %6968 = vmatmul.mubr.bf16.gmra.mrb[180].mxu1 %v9682_v8 }
 0xc89   :  { %6969 = vmatprep.mubr.bf16.mxu1 %v9695_v38 }
 0xc90   :  { %6970 = vmatmul.mubr.bf16.gmra.mrb[184].mxu1 %v9695_v38 }
 0xc91   :  { %6971 = vmatprep.mubr.bf16.mxu1 %v3816_v63 }
 0xc98   :  { %6972 = vmatmul.mubr.bf16.gmra.mrb[188].mxu1 %v3816_v63 }
 0xc99   :  { %6973 = vmatprep.mubr.bf16.mxu1 %v3817_v42 }
 0xca0   :  { %6974 = vmatmul.mubr.bf16.gmra.mrb[192].mxu1 %v3817_v42 }
 0xcfb   :  { %v3964_v45 = vpop.f32.mrb[132].mxu1 }
 0xcfc   :  { %v9757_v5 = vsel %vm8762_vm2, %v3964_v45, -1e+30  ;;  %v3966_v61 = vpop.f32.mrb[133].mxu1 }
 0xcfd   :  { %v9762_v50 = vsel %vm4173_vm10, %v3966_v61, -1e+30  ;;  %v3968_v43 = vpop.f32.mrb[134].mxu1 }
 0xcfe   :  { %v3970_v48 = vpop.f32.mrb[135].mxu1  ;;  %v4293_v60 = vmax.f32 %v9757_v5, %v9762_v50  ;;  %v9768_v33 = vsel %vm8781_vm5, %v3968_v43, -1e+30  ;;  %v11792_v43 = vand.u32 15, %v11791_v62 }
 0xcff   :  { %v9770_v52 = vsel %vm4174_vm11, %v3970_v48, -1e+30  ;;  %v4124_v48 = vadd.s32 72, %v8675_v11 }
 0xd00   :  { %4294 = vmax.xlane.f32.xlu1 %v4293_v60  ;;  %v4296_v27 = vmax.f32 %v9768_v33, %v9770_v52  ;;  %vm4180_vm2 = vcmp.eq.s32.totalorder %v11792_v43, %v9750_v32 }
 0xd01   :  { %v4149_v26 = vand.u32 15, %v4124_v48 }
 0xd03   :  { %v3974_v55 = vpop.f32.mrb[136].mxu1  ;;  %vm4183_vm5 = vcmp.eq.s32.totalorder %v4149_v26, %v11794_v10 }
 0xd04   :  { %v9779_v8 = vsel %vm8755_vm1, %v3974_v55, -1e+30  ;;  %4297 = vmax.xlane.f32.xlu1 %v4296_v27  ;;  %v3976_v38 = vpop.f32.mrb[137].mxu1  ;;  %vm4179_vm1 = vcmp.eq.s32.totalorder %v11789_v31, %v9750_v32  ;;  %v4148_v27 = vand.u32 15, %v4123_v37  ;;  %v4128_v31 = vadd.s32 104, %v8675_v11 }
 0xd05   :  { %v9784_v4 = vsel %vm4175_vm12, %v3976_v38, -1e+30  ;;  %v3978_v63 = vpop.f32.mrb[138].mxu1 }
 0xd06   :  { %v3980_v20 = vpop.f32.mrb[139].mxu1  ;;  %v4299_v53 = vmax.f32 %v9779_v8, %v9784_v4  ;;  %v9790_v23 = vsel %vm8772_vm4, %v3978_v63, -1e+30  ;;  %vm4181_vm3 = vcmp.eq.s32.totalorder %v4148_v27, %v11794_v10  ;;  %v4125_v63 = vadd.s32 80, %v8675_v11 }
 0xd07   :  { %v9792_v58 = vsel %vm4176_vm13, %v3980_v20, -1e+30  ;;  %vm4182_vm4 = vcmp.eq.s32.totalorder %v4148_v27, %v9750_v32 }
 0xd08   :  { %4300 = vmax.xlane.f32.xlu1 %v4299_v53  ;;  %v4302_v46 = vmax.f32 %v9790_v23, %v9792_v58  ;;  %v4150_v15 = vand.u32 15, %v4125_v63 }
 0xd0b   :  { %v3984_v40 = vpop.f32.mrb[140].mxu1 }
 0xd0c   :  { %v9801_v59 = vsel %vm8810_vm6, %v3984_v40, -1e+30  ;;  %4303 = vmax.xlane.f32.xlu1 %v4302_v46  ;;  %v3986_v41 = vpop.f32.mrb[141].mxu1  ;;  %vm4184_vm6 = vcmp.eq.s32.totalorder %v4149_v26, %v9750_v32 }
 0xd0d   :  { %v9806_v47 = vsel %vm4177_vm14, %v3986_v41, -1e+30  ;;  %v3988_v1 = vpop.f32.mrb[142].mxu1 }
 0xd0e   :  { %v3990_v3 = vpop.f32.mrb[143].mxu1  ;;  %v4305_v29 = vmax.f32 %v9801_v59, %v9806_v47  ;;  %v9812_v28 = vsel %vm8825_vm8, %v3988_v1, -1e+30  ;;  %vm4186_vm8 = vcmp.eq.s32.totalorder %v4150_v15, %v9750_v32 }
 0xd0f   :  { %v9814_v42 = vsel %vm4178_vm15, %v3990_v3, -1e+30  ;;  %v4151_v3 = vand.u32 15, %v4126_v2 }
 0xd10   :  { %4306 = vmax.xlane.f32.xlu1 %v4305_v29  ;;  %v4308_v39 = vmax.f32 %v9812_v28, %v9814_v42  ;;  %v4127_v29 = vadd.s32 96, %v8675_v11 }
 0xd11   :  { %vm4188_vm10 = vcmp.eq.s32.totalorder %v4151_v3, %v9750_v32 }
 0xd13   :  { %v3994_v22 = vpop.f32.mrb[144].mxu1 }
 0xd14   :  { %v9824_v45 = vsel %vm8818_vm7, %v3994_v22, -1e+30  ;;  %4309 = vmax.xlane.f32.xlu1 %v4308_v39  ;;  %v3996_v61 = vpop.f32.mrb[145].mxu1  ;;  %vm4185_vm7 = vcmp.eq.s32.totalorder %v4150_v15, %v11794_v10 }
 0xd15   :  { %v9830_v60 = vsel %vm4179_vm1, %v3996_v61, -1e+30  ;;  %v3998_v12 = vpop.f32.mrb[146].mxu1  ;;  %v4152_v61 = vand.u32 15, %v4127_v29  ;;  %v4131_v29 = vadd.s32 128, %v8675_v11 }
 0xd16   :  { %v4000_v54 = vpop.f32.mrb[147].mxu1  ;;  %v4311_v6 = vmax.f32 %v9824_v45, %v9830_v60  ;;  %v9836_v13 = vsel %vm8834_vm9, %v3998_v12, -1e+30  ;;  %vm4187_vm9 = vcmp.eq.s32.totalorder %v4151_v3, %v11794_v10 }
 0xd17   :  { %v9838_v38 = vsel %vm4180_vm2, %v4000_v54, -1e+30  ;;  %v4153_v54 = vand.u32 15, %v4128_v31  ;;  %vm4189_vm11 = vcmp.eq.s32.totalorder %v4152_v61, %v11794_v10  ;;  %vm4190_vm12 = vcmp.eq.s32.totalorder %v4152_v61, %v9750_v32 }
 0xd18   :  { %4312 = vmax.xlane.f32.xlu1 %v4311_v6  ;;  %v4314_v20 = vmax.f32 %v9836_v13, %v9838_v38  ;;  %v4129_v6 = vadd.s32 112, %v8675_v11 }
 0xd19   :  { %vm4191_vm13 = vcmp.eq.s32.totalorder %v4153_v54, %v11794_v10  ;;  %vm4192_vm14 = vcmp.eq.s32.totalorder %v4153_v54, %v9750_v32 }
 0xd1b   :  { %v4004_v53 = vpop.f32.mrb[148].mxu1 }
 0xd1c   :  { %v9846_v46 = vsel %vm4181_vm3, %v4004_v53, -1e+30  ;;  %4315 = vmax.xlane.f32.xlu1 %v4314_v20  ;;  %v4006_v7 = vpop.f32.mrb[149].mxu1  ;;  %v4130_v20 = vadd.s32 120, %v8675_v11 }
 0xd1d   :  { %v9850_v57 = vsel %vm4182_vm4, %v4006_v7, -1e+30  ;;  %v4008_v40 = vpop.f32.mrb[150].mxu1  ;;  %v4154_v7 = vand.u32 15, %v4129_v6 }
 0xd1e   :  { %v4010_v41 = vpop.f32.mrb[151].mxu1  ;;  %v4317_v17 = vmax.f32 %v9846_v46, %v9850_v57  ;;  %v9854_v0 = vsel %vm4183_vm5, %v4008_v40, -1e+30  ;;  %v4155_v3 = vand.u32 15, %v4130_v20  ;;  %v4133_v20 = vadd.s32 144, %v8675_v11 }
 0xd1f   :  { %v9856_v1 = vsel %vm4184_vm6, %v4010_v41, -1e+30  ;;  %vm4193_vm15 = vcmp.eq.s32.totalorder %v4154_v7, %v11794_v10  ;;  %vm4194_vm1 = vcmp.eq.s32.totalorder %v4154_v7, %v9750_v32 }
 0xd20   :  { %4318 = vmax.xlane.f32.xlu1 %v4317_v17  ;;  %v4320_v14 = vmax.f32 %v9854_v0, %v9856_v1  ;;  %vm4195_vm2 = vcmp.eq.s32.totalorder %v4155_v3, %v11794_v10  ;;  %vm4196_vm3 = vcmp.eq.s32.totalorder %v4155_v3, %v9750_v32  ;;  %v4134_v3 = vadd.s32 152, %v8675_v11 }
 0xd23   :  { %v4014_v37 = vpop.f32.mrb[152].mxu1 }
 0xd24   :  { %v9864_v39 = vsel %vm4185_vm7, %v4014_v37, -1e+30  ;;  %4321 = vmax.xlane.f32.xlu1 %v4320_v14  ;;  %v4016_v51 = vpop.f32.mrb[153].mxu1 }
 0xd25   :  { %v9868_v22 = vsel %vm4186_vm8, %v4016_v51, -1e+30  ;;  %v4018_v18 = vpop.f32.mrb[154].mxu1 }
 0xd26   :  { %v9870_v62 = vsel %vm4187_vm9, %v4018_v18, -1e+30  ;;  %v4020_v43 = vpop.f32.mrb[155].mxu1  ;;  %v4323_v48 = vmax.f32 %v9864_v39, %v9868_v22  ;;  %v4132_v18 = vadd.s32 136, %v8675_v11 }
 0xd27   :  { %v9874_v12 = vsel %vm4188_vm10, %v4020_v43, -1e+30 }
 0xd28   :  { %4324 = vmax.xlane.f32.xlu1 %v4323_v48  ;;  %v4326_v27 = vmax.f32 %v9870_v62, %v9874_v12  ;;  %v4156_v48 = vand.u32 15, %v4131_v29 }
 0xd2a   :  { %4327 = vmax.xlane.f32.xlu0 %v4326_v27  ;;  %vm4197_vm4 = vcmp.eq.s32.totalorder %v4156_v48, %v11794_v10  ;;  %vm4198_vm5 = vcmp.eq.s32.totalorder %v4156_v48, %v9750_v32 }
 0xd2b   :  { %v4024_v55 = vpop.f32.mrb[156].mxu1 }
 0xd2c   :  { %v9881_v26 = vsel %vm4189_vm11, %v4024_v55, -1e+30  ;;  %v4026_v63 = vpop.f32.mrb[157].mxu1 }
 0xd2d   :  { %v9886_v53 = vsel %vm4190_vm12, %v4026_v63, -1e+30  ;;  %v4028_v2 = vpop.f32.mrb[158].mxu1  ;;  %v4157_v63 = vand.u32 15, %v4132_v18 }
 0xd2e   :  { %v4030_v40 = vpop.f32.mrb[159].mxu1  ;;  %v4329_v15 = vmax.f32 %v9881_v26, %v9886_v53  ;;  %v9890_v41 = vsel %vm4191_vm13, %v4028_v2, -1e+30 }
 0xd2f   :  { %v9892_v17 = vsel %vm4192_vm14, %v4030_v40, -1e+30  ;;  %vm4199_vm6 = vcmp.eq.s32.totalorder %v4157_v63, %v11794_v10  ;;  %vm4200_vm7 = vcmp.eq.s32.totalorder %v4157_v63, %v9750_v32 }
 0xd30   :  { %4330 = vmax.xlane.f32.xlu1 %v4329_v15  ;;  %v4332_v14 = vmax.f32 %v9890_v41, %v9892_v17 }
 0xd33   :  { %v4034_v37 = vpop.f32.mrb[160].mxu1 }
 0xd34   :  { %v9899_v51 = vsel %vm4193_vm15, %v4034_v37, -1e+30  ;;  %4333 = vmax.xlane.f32.xlu1 %v4332_v14  ;;  %v4036_v31 = vpop.f32.mrb[161].mxu1  ;;  %v4158_v37 = vand.u32 15, %v4133_v20 }
 0xd35   :  { %v9904_v61 = vsel %vm4194_vm1, %v4036_v31, -1e+30  ;;  %v4038_v43 = vpop.f32.mrb[162].mxu1 }
 0xd36   :  { %v4040_v27 = vpop.f32.mrb[163].mxu1  ;;  %v4335_v54 = vmax.f32 %v9899_v51, %v9904_v61  ;;  %v9908_v6 = vsel %vm4195_vm2, %v4038_v43, -1e+30  ;;  %vm4201_vm8 = vcmp.eq.s32.totalorder %v4158_v37, %v11794_v10  ;;  %vm4202_vm9 = vcmp.eq.s32.totalorder %v4158_v37, %v9750_v32 }
 0xd37   :  { %v9910_v55 = vsel %vm4196_vm3, %v4040_v27, -1e+30  ;;  %v4159_v27 = vand.u32 15, %v4134_v3 }
 0xd38   :  { %11795 = vst [vmem:[#allocation41_spill] sm:$0xff] %v9910_v55  ;;  %4336 = vmax.xlane.f32.xlu1 %v4335_v54  ;;  %v4338_v2 = vmax.f32 %v9908_v6, %v9910_v55  ;;  %v4135_v54 = vadd.s32 160, %v8675_v11 }
 0xd39   :  { %vm4203_vm10 = vcmp.eq.s32.totalorder %v4159_v27, %v11794_v10  ;;  %vm4204_vm11 = vcmp.eq.s32.totalorder %v4159_v27, %v9750_v32 }
 0xd3b   :  { %v4044_v7 = vpop.f32.mrb[164].mxu1 }
 0xd3c   :  { %v9917_v40 = vsel %vm4197_vm4, %v4044_v7, -1e+30  ;;  %4339 = vmax.xlane.f32.xlu1 %v4338_v2  ;;  %v4046_v15 = vpop.f32.mrb[165].mxu1  ;;  %v4136_v2 = vadd.s32 168, %v8675_v11 }
 0xd3d   :  { %11796 = vst [vmem:[#allocation35_spill] sm:$0xff] %v9917_v40  ;;  %v9922_v29 = vsel %vm4198_vm5, %v4046_v15, -1e+30  ;;  %v4048_v14 = vpop.f32.mrb[166].mxu1 }
 0xd3e   :  { %11797 = vst [vmem:[#allocation38_spill] sm:$0xff] %v9922_v29  ;;  %v4050_v31 = vpop.f32.mrb[167].mxu1  ;;  %v4341_v18 = vmax.f32 %v9917_v40, %v9922_v29  ;;  %v9926_v43 = vsel %vm4199_vm6, %v4048_v14, -1e+30  ;;  %v4140_v40 = vadd.s32 200, %v8675_v11 }
 0xd3f   :  { %11798 = vst [vmem:[#allocation36_spill] sm:$0xff] %v9926_v43  ;;  %v9928_v48 = vsel %vm4200_vm7, %v4050_v31, -1e+30  ;;  %v4160_v31 = vand.u32 15, %v4135_v54 }
 0xd40   :  { %11799 = vst [vmem:[#allocation40_spill] sm:$0xff] %v9928_v48  ;;  %4342 = vmax.xlane.f32.xlu1 %v4341_v18  ;;  %v4344_v63 = vmax.f32 %v9926_v43, %v9928_v48 }
 0xd41   :  { %vm4205_vm12 = vcmp.eq.s32.totalorder %v4160_v31, %v11794_v10  ;;  %vm4206_vm13 = vcmp.eq.s32.totalorder %v4160_v31, %v9750_v32 }
 0xd43   :  { %v4054_v20 = vpop.f32.mrb[168].mxu1 }
 0xd44   :  { %v9936_v7 = vsel %vm4201_vm8, %v4054_v20, -1e+30  ;;  %4345 = vmax.xlane.f32.xlu1 %v4344_v63  ;;  %v4056_v15 = vpop.f32.mrb[169].mxu1  ;;  %v4161_v20 = vand.u32 15, %v4136_v2  ;;  %v4137_v63 = vadd.s32 176, %v8675_v11 }
 0xd45   :  { %11800 = vst [vmem:[#allocation39_spill] sm:$0xff] %v9936_v7  ;;  %v9940_v3 = vsel %vm4202_vm9, %v4056_v15, -1e+30  ;;  %v4058_v14 = vpop.f32.mrb[170].mxu1  ;;  %v4138_v15 = vadd.s32 184, %v8675_v11 }
 0xd46   :  { %11801 = vst [vmem:[#allocation45_spill] sm:$0xff] %v9940_v3  ;;  %v4060_v18 = vpop.f32.mrb[171].mxu1  ;;  %v4347_v44 = vmax.f32 %v9936_v7, %v9940_v3  ;;  %v9944_v37 = vsel %vm4203_vm10, %v4058_v14, -1e+30  ;;  %vm4207_vm14 = vcmp.eq.s32.totalorder %v4161_v20, %v11794_v10  ;;  %vm4208_vm15 = vcmp.eq.s32.totalorder %v4161_v20, %v9750_v32 }
 0xd47   :  { %11802 = vst [vmem:[#allocation43_spill] sm:$0xff] %v9944_v37  ;;  %v9946_v19 = vsel %vm4204_vm11, %v4060_v18, -1e+30  ;;  %v4162_v25 = vand.u32 15, %v4137_v63  ;;  %v4163_v35 = vand.u32 15, %v4138_v15 }
 0xd48   :  { %11803 = vst [vmem:[#allocation47_spill] sm:$0xff] %v9946_v19  ;;  %4348 = vmax.xlane.f32.xlu1 %v4347_v44  ;;  %v4350_v27 = vmax.f32 %v9944_v37, %v9946_v19  ;;  %v4139_v19 = vadd.s32 192, %v8675_v11 }
 0xd49   :  { %vm4209_vm1 = vcmp.eq.s32.totalorder %v4162_v25, %v11794_v10  ;;  %vm4210_vm2 = vcmp.eq.s32.totalorder %v4162_v25, %v9750_v32  ;;  %vm4211_vm3 = vcmp.eq.s32.totalorder %v4163_v35, %v11794_v10  ;;  %vm4212_vm4 = vcmp.eq.s32.totalorder %v4163_v35, %v9750_v32 }
 0xd4a   :  { %v4164_v29 = vand.u32 15, %v4139_v19 }
 0xd4b   :  { %v4064_v54 = vpop.f32.mrb[172].mxu1 }
 0xd4c   :  { %v9955_v14 = vsel %vm4205_vm12, %v4064_v54, -1e+30  ;;  %4351 = vmax.xlane.f32.xlu1 %v4350_v27  ;;  %v4066_v18 = vpop.f32.mrb[173].mxu1  ;;  %vm4213_vm5 = vcmp.eq.s32.totalorder %v4164_v29, %v11794_v10  ;;  %vm4214_vm6 = vcmp.eq.s32.totalorder %v4164_v29, %v9750_v32  ;;  %v4144_v29 = vadd.s32 232, %v8675_v11 }
 0xd4d   :  { %11804 = vst [vmem:[#allocation42_spill] sm:$0xff] %v9955_v14  ;;  %v9958_v44 = vsel %vm4206_vm13, %v4066_v18, -1e+30  ;;  %v4068_v2 = vpop.f32.mrb[174].mxu1 }
 0xd4e   :  { %11805 = vst [vmem:[#allocation46_spill] sm:$0xff] %v9958_v44  ;;  %v9960_v56 = vsel %vm4207_vm14, %v4068_v2, -1e+30  ;;  %v4070_v49 = vpop.f32.mrb[175].mxu1  ;;  %v4353_v31 = vmax.f32 %v9955_v14, %v9958_v44 }
 0xd4f   :  { %11806 = vst [vmem:[#allocation44_spill] sm:$0xff] %v9960_v56  ;;  %v9964_v36 = vsel %vm4208_vm15, %v4070_v49, -1e+30 }
 0xd50   :  { %11807 = vst [vmem:[#allocation48_spill] sm:$0xff] %v9964_v36  ;;  %4354 = vmax.xlane.f32.xlu0 %v4353_v31  ;;  %v4356_v27 = vmax.f32 %v9960_v56, %v9964_v36 }
 0xd52   :  { %4357 = vmax.xlane.f32.xlu1 %v4356_v27 }
 0xd53   :  { %v4074_v20 = vpop.f32.mrb[176].mxu1 }
 0xd54   :  { %v9971_v63 = vsel %vm4209_vm1, %v4074_v20, -1e+30  ;;  %v4076_v54 = vpop.f32.mrb[177].mxu1 }
 0xd55   :  { %11808 = vst [vmem:[#allocation37_spill] sm:$0xff] %v9971_v63  ;;  %v9974_v49 = vsel %vm4210_vm2, %v4076_v54, -1e+30  ;;  %v4078_v15 = vpop.f32.mrb[178].mxu1 }
 0xd56   :  { %11809 = vst [vmem:[#allocation82_spill] sm:$0xff] %v9974_v49  ;;  %v9976_v18 = vsel %vm4211_vm3, %v4078_v15, -1e+30  ;;  %v4080_v2 = vpop.f32.mrb[179].mxu1  ;;  %v4359_v31 = vmax.f32 %v9971_v63, %v9974_v49 }
 0xd57   :  { %11810 = vst [vmem:[#allocation83_spill] sm:$0xff] %v9976_v18  ;;  %v9980_v27 = vsel %vm4212_vm4, %v4080_v2, -1e+30 }
 0xd58   :  { %11811 = vst [vmem:[#allocation84_spill] sm:$0xff] %v9980_v27  ;;  %4360 = vmax.xlane.f32.xlu0 %v4359_v31  ;;  %v4362_v25 = vmax.f32 %v9976_v18, %v9980_v27 }
 0xd5a   :  { %4363 = vmax.xlane.f32.xlu1 %v4362_v25 }
 0xd5b   :  { %v4084_v20 = vpop.f32.mrb[180].mxu1 }
 0xd5c   :  { %v4086_v9 = vpop.f32.mrb[181].mxu1 }
 0xd5d   :  { %v9984_v24 = vpop.f32.mrb[182].mxu1 }
 0xd5e   :  { %v9986_v35 = vpop.f32.mrb[183].mxu1 }
 0xd63   :  { %v9988_v54 = vpop.f32.mrb[184].mxu1 }
 0xd64   :  { %v9990_v15 = vpop.f32.mrb[185].mxu1 }
 0xd65   :  { %v9992_v30 = vpop.f32.mrb[186].mxu1 }
 0xd66   :  { %v9994_v21 = vpop.f32.mrb[187].mxu1 }
 0xd6b   :  { %v9996_v2 = vpop.f32.mrb[188].mxu1 }
 0xd6c   :  { %v9998_v31 = vpop.f32.mrb[189].mxu1 }
 0xd6d   :  { %v10000_v16 = vpop.f32.mrb[190].mxu1 }
 0xd6e   :  { %v10002_v25 = vpop.f32.mrb[191].mxu1 }
 0xd73   :  { %v10004_v34 = vpop.f32.mrb[192].mxu1 }
 0xd74   :  { %v10006_v27 = vpop.f32.mrb[193].mxu1 }
 0xd75   :  { %v10008_v18 = vpop.f32.mrb[194].mxu1 }
 0xd76   :  { %v10010_v49 = vpop.f32.mrb[195].mxu1 }
 0xd8d   :  { %v4295_v63 = vpop.xlane.xlu1 %4294 }
 0xd8e   :  { %v4389_v36 = vsub.f32 %v9757_v5, %v4295_v63  ;;  %v4390_v56 = vsub.f32 %v9762_v50, %v4295_v63 }
 0xd90   :  { %v4453_v44 = vmul.f32 1.442695, %v4389_v36  ;;  %v4455_v14 = vmul.f32 1.442695, %v4390_v56  ;;  %v4141_v56 = vadd.s32 208, %v8675_v11 }
 0xd91   :  { %v4298_v37 = vpop.xlane.xlu1 %4297 }
 0xd92   :  { %7717 = vpow2.f32 %v4453_v44  ;;  %v4391_v3 = vsub.f32 %v9768_v33, %v4298_v37  ;;  %v4392_v7 = vsub.f32 %v9770_v52, %v4298_v37  ;;  %v4165_v33 = vand.u32 15, %v4140_v40 }
 0xd93   :  { %7719 = vpow2.f32 %v4455_v14  ;;  %v10030_v37 = vsel %vm4213_vm5, %v4084_v20, -1e+30  ;;  %v10032_v40 = vsel %vm4214_vm6, %v4086_v9, -1e+30  ;;  %v4143_v20 = vadd.s32 224, %v8675_v11 }
 0xd94   :  { %v4457_v48 = vmul.f32 1.442695, %v4391_v3  ;;  %v4459_v43 = vmul.f32 1.442695, %v4392_v7  ;;  %vm10035_vm7 = vcmp.eq.s32.totalorder %v4165_v33, %v11794_v10  ;;  %vm10040_vm8 = vcmp.eq.s32.totalorder %v4165_v33, %v9750_v32 }
 0xd95   :  { %v4301_v55 = vpop.xlane.xlu1 %4300  ;;  %v10066_v33 = vsel %vm10040_vm8, %v9986_v35, -1e+30 }
 0xd96   :  { %7721 = vpow2.f32 %v4457_v48  ;;  %v4393_v5 = vsub.f32 %v9779_v8, %v4301_v55  ;;  %v4394_v36 = vsub.f32 %v9784_v4, %v4301_v55  ;;  %v4166_v4 = vand.u32 15, %v4141_v56 }
 0xd97   :  { %7723 = vpow2.f32 %v4459_v43  ;;  %v4142_v55 = vadd.s32 216, %v8675_v11 }
 0xd98   :  { %v4461_v50 = vmul.f32 1.442695, %v4393_v5  ;;  %v4463_v44 = vmul.f32 1.442695, %v4394_v36  ;;  %vm10052_vm9 = vcmp.eq.s32.totalorder %v4166_v4, %v11794_v10  ;;  %vm10069_vm10 = vcmp.eq.s32.totalorder %v4166_v4, %v9750_v32 }
 0xd99   :  { %v4304_v52 = vpop.xlane.xlu1 %4303  ;;  %v4167_v56 = vand.u32 15, %v4142_v55 }
 0xd9a   :  { %7725 = vpow2.f32 %v4461_v50  ;;  %v4395_v19 = vsub.f32 %v9790_v23, %v4304_v52  ;;  %v4396_v48 = vsub.f32 %v9792_v58, %v4304_v52  ;;  %v4145_v52 = vadd.s32 240, %v8675_v11 }
 0xd9b   :  { %7727 = vpow2.f32 %v4463_v44  ;;  %vm10082_vm11 = vcmp.eq.s32.totalorder %v4167_v56, %v11794_v10  ;;  %vm10100_vm12 = vcmp.eq.s32.totalorder %v4167_v56, %v9750_v32 }
 0xd9c   :  { %v10025_v8 = vpop.eup %7717  ;;  %v4465_v43 = vmul.f32 1.442695, %v4395_v19  ;;  %v4467_v7 = vmul.f32 1.442695, %v4396_v48  ;;  %v4365_v48 = vmax.f32 %v10030_v37, %v10032_v40 }
 0xd9d   :  { %v10028_v3 = vpop.eup %7719  ;;  %v4307_v58 = vpop.xlane.xlu1 %4306 }
 0xd9e   :  { %7729 = vpow2.f32 %v4465_v43  ;;  %v4397_v14 = vsub.f32 %v9801_v59, %v4307_v58  ;;  %v4398_v63 = vsub.f32 %v9806_v47, %v4307_v58  ;;  %v4581_v9 = vadd.f32 %v10028_v3, %v10025_v8 }
 0xd9f   :  { %7731 = vpow2.f32 %v4467_v7  ;;  %v10061_v47 = vsel %vm10035_vm7, %v9984_v24, -1e+30  ;;  %v4168_v7 = vand.u32 15, %v4143_v20 }
 0xda0   :  { %v10049_v5 = vpop.eup %7721  ;;  %v4469_v50 = vmul.f32 1.442695, %v4397_v14  ;;  %v4471_v44 = vmul.f32 1.442695, %v4398_v63  ;;  %4582 = vadd.xlane.f32.xlu0 %v4581_v9  ;;  %v10097_v14 = vsel %vm10069_vm10, %v9990_v15, -1e+30  ;;  %v4368_v20 = vmax.f32 %v10061_v47, %v10066_v33 }
 0xda1   :  { %v10056_v59 = vpop.eup %7723  ;;  %v4310_v19 = vpop.xlane.xlu1 %4309  ;;  %vm10111_vm13 = vcmp.eq.s32.totalorder %v4168_v7, %v11794_v10  ;;  %vm10131_vm14 = vcmp.eq.s32.totalorder %v4168_v7, %v9750_v32 }
 0xda2   :  { %7733 = vpow2.f32 %v4469_v50  ;;  %v4399_v55 = vsub.f32 %v9812_v28, %v4310_v19  ;;  %v4400_v24 = vsub.f32 %v9814_v42, %v4310_v19  ;;  %v4584_v43 = vadd.f32 %v10056_v59, %v10049_v5 }
 0xda3   :  { %7735 = vpow2.f32 %v4471_v44  ;;  %v10092_v42 = vsel %vm10052_vm9, %v9988_v54, -1e+30  ;;  %v4169_v44 = vand.u32 15, %v4144_v29 }
 0xda4   :  { %v10079_v35 = vpop.eup %7725  ;;  %v4473_v23 = vmul.f32 1.442695, %v4399_v55  ;;  %v4475_v58 = vmul.f32 1.442695, %v4400_v24  ;;  %4585 = vadd.xlane.f32.xlu1 %v4584_v43  ;;  %4366 = vmax.xlane.f32.xlu0 %v4365_v48  ;;  %v10128_v55 = vsel %vm10100_vm12, %v9994_v21, -1e+30  ;;  %v4371_v29 = vmax.f32 %v10092_v42, %v10097_v14 }
 0xda5   :  { %v10087_v28 = vpop.eup %7727  ;;  %v4313_v9 = vpop.xlane.xlu1 %4312  ;;  %vm10144_vm15 = vcmp.eq.s32.totalorder %v4169_v44, %v11794_v10  ;;  %vm10161_vm1 = vcmp.eq.s32.totalorder %v4169_v44, %v9750_v32 }
 0xda6   :  { %7737 = vpow2.f32 %v4473_v23  ;;  %v4401_v50 = vsub.f32 %v9824_v45, %v4313_v9  ;;  %v4402_v54 = vsub.f32 %v9830_v60, %v4313_v9  ;;  %v4587_v36 = vadd.f32 %v10087_v28, %v10079_v35 }
 0xda7   :  { %7739 = vpow2.f32 %v4475_v58  ;;  %v10123_v60 = vsel %vm10082_vm11, %v9992_v30, -1e+30  ;;  %v4170_v58 = vand.u32 15, %v4145_v52 }
 0xda8   :  { %v10115_v56 = vpop.eup %7729  ;;  %v4477_v19 = vmul.f32 1.442695, %v4401_v50  ;;  %v4479_v48 = vmul.f32 1.442695, %v4402_v54  ;;  %4588 = vadd.xlane.f32.xlu0 %v4587_v36  ;;  %4369 = vmax.xlane.f32.xlu1 %v4368_v20  ;;  %v4374_v36 = vmax.f32 %v10123_v60, %v10128_v55 }
 0xda9   :  { %v10118_v45 = vpop.eup %7731  ;;  %v4316_v43 = vpop.xlane.xlu1 %4315  ;;  %vm10175_vm2 = vcmp.eq.s32.totalorder %v4170_v58, %v11794_v10  ;;  %vm10192_vm3 = vcmp.eq.s32.totalorder %v4170_v58, %v9750_v32 }
 0xdaa   :  { %7741 = vpow2.f32 %v4477_v19  ;;  %v4403_v23 = vsub.f32 %v9836_v13, %v4316_v43  ;;  %v4404_v30 = vsub.f32 %v9838_v38, %v4316_v43  ;;  %v4590_v4 = vadd.f32 %v10118_v45, %v10115_v56 }
 0xdab   :  { %7743 = vpow2.f32 %v4479_v48  ;;  %v10153_v13 = vsel %vm10111_vm13, %v9996_v2, -1e+30  ;;  %v10158_v38 = vsel %vm10131_vm14, %v9998_v31, -1e+30  ;;  %v4146_v31 = vadd.s32 248, %v8675_v11 }
 0xdac   :  { %v10141_v21 = vpop.eup %7733  ;;  %v4481_v63 = vmul.f32 1.442695, %v4403_v23  ;;  %v4483_v9 = vmul.f32 1.442695, %v4404_v30  ;;  %4591 = vadd.xlane.f32.xlu1 %v4590_v4  ;;  %4372 = vmax.xlane.f32.xlu0 %v4371_v29  ;;  %v10189_v11 = vsel %vm10161_vm1, %v10002_v25, -1e+30  ;;  %v4377_v23 = vmax.f32 %v10153_v13, %v10158_v38 }
 0xdad   :  { %v10148_v20 = vpop.eup %7735  ;;  %v4319_v54 = vpop.xlane.xlu1 %4318  ;;  %v4171_v7 = vand.u32 15, %v4146_v31  ;;  %v10209_v50 = vsel %vm10175_vm2, %v10004_v34, -1e+30 }
 0xdae   :  { %7745 = vpow2.f32 %v4481_v63  ;;  %v4405_v52 = vsub.f32 %v9846_v46, %v4319_v54  ;;  %v4406_v2 = vsub.f32 %v9850_v57, %v4319_v54  ;;  %v4593_v15 = vadd.f32 %v10148_v20, %v10141_v21 }
 0xdaf   :  { %7747 = vpow2.f32 %v4483_v9  ;;  %v10184_v57 = vsel %vm10144_vm15, %v10000_v16, -1e+30  ;;  %vm10223_vm4 = vcmp.eq.s32.totalorder %v4171_v7, %v11794_v10  ;;  %vm10228_vm5 = vcmp.eq.s32.totalorder %v4171_v7, %v9750_v32 }
 0xdb0   :  { %v10172_v19 = vpop.eup %7737  ;;  %v4485_v48 = vmul.f32 1.442695, %v4405_v52  ;;  %v4487_v24 = vmul.f32 1.442695, %v4406_v2  ;;  %4594 = vadd.xlane.f32.xlu0 %v4593_v15  ;;  %4375 = vmax.xlane.f32.xlu1 %v4374_v36  ;;  %v4380_v54 = vmax.f32 %v10184_v57, %v10189_v11 }
 0xdb1   :  { %v10179_v46 = vpop.eup %7739  ;;  %v4322_v29 = vpop.xlane.xlu1 %4321 }
 0xdb2   :  { %7749 = vpow2.f32 %v4485_v48  ;;  %v4407_v30 = vsub.f32 %v9854_v0, %v4322_v29  ;;  %v4408_v16 = vsub.f32 %v9856_v1, %v4322_v29  ;;  %v4596_v4 = vadd.f32 %v10179_v46, %v10172_v19 }
 0xdb3   :  { %7751 = vpow2.f32 %v4487_v24  ;;  %v10214_v0 = vsel %vm10192_vm3, %v10006_v27, -1e+30 }
 0xdb4   :  { %v10202_v25 = vpop.eup %7741  ;;  %v4489_v58 = vmul.f32 1.442695, %v4407_v30  ;;  %v4491_v63 = vmul.f32 1.442695, %v4408_v16  ;;  %4597 = vadd.xlane.f32.xlu1 %v4596_v4  ;;  %4378 = vmax.xlane.f32.xlu0 %v4377_v23  ;;  %v4383_v32 = vmax.f32 %v10209_v50, %v10214_v0  ;;  %v10245_v23 = vsel %vm10223_vm4, %v10008_v18, -1e+30 }
 0xdb5   :  { %v10204_v9 = vpop.eup %7743  ;;  %v4325_v1 = vpop.xlane.xlu1 %4324 }
 0xdb6   :  { %7753 = vpow2.f32 %v4489_v58  ;;  %v4409_v36 = vsub.f32 %v9864_v39, %v4325_v1  ;;  %v4410_v52 = vsub.f32 %v9868_v22, %v4325_v1  ;;  %v4599_v2 = vadd.f32 %v10204_v9, %v10202_v25 }
 0xdb7   :  { %7755 = vpow2.f32 %v4491_v63  ;;  %v4328_v15 = vpop.xlane.xlu0 %4327 }
 0xdb8   :  { %v10232_v31 = vpop.eup %7745  ;;  %v4493_v39 = vmul.f32 1.442695, %v4409_v36  ;;  %v4495_v44 = vmul.f32 1.442695, %v4410_v52  ;;  %v4411_v22 = vsub.f32 %v9870_v62, %v4328_v15  ;;  %v4412_v48 = vsub.f32 %v9874_v12, %v4328_v15  ;;  %4600 = vadd.xlane.f32.xlu0 %v4599_v2  ;;  %4381 = vmax.xlane.f32.xlu1 %v4380_v54 }
 0xdb9   :  { %v10236_v10 = vpop.eup %7747  ;;  %v10250_v62 = vsel %vm10228_vm5, %v10010_v49, -1e+30 }
 0xdba   :  { %7757 = vpow2.f32 %v4493_v39  ;;  %v4497_v24 = vmul.f32 1.442695, %v4411_v22  ;;  %v4499_v43 = vmul.f32 1.442695, %v4412_v48  ;;  %v4602_v29 = vadd.f32 %v10236_v10, %v10232_v31 }
 0xdbb   :  { %7759 = vpow2.f32 %v4495_v44  ;;  %v4386_v49 = vmax.f32 %v10245_v23, %v10250_v62 }
 0xdbc   :  { %v10252_v12 = vpop.eup %7749  ;;  %7761 = vpow2.f32 %v4497_v24  ;;  %4603 = vadd.xlane.f32.xlu1 %v4602_v29  ;;  %4384 = vmax.xlane.f32.xlu0 %v4383_v32 }
 0xdbd   :  { %v10254_v30 = vpop.eup %7751  ;;  %7763 = vpow2.f32 %v4499_v43  ;;  %v4331_v16 = vpop.xlane.xlu1 %4330 }
 0xdbe   :  { %v4413_v4 = vsub.f32 %v9881_v26, %v4331_v16  ;;  %v4414_v18 = vsub.f32 %v9886_v53, %v4331_v16  ;;  %v4605_v7 = vadd.f32 %v10254_v30, %v10252_v12 }
 0xdc0   :  { %v10262_v58 = vpop.eup %7753  ;;  %v4501_v63 = vmul.f32 1.442695, %v4413_v4  ;;  %v4503_v1 = vmul.f32 1.442695, %v4414_v18  ;;  %4606 = vadd.xlane.f32.xlu0 %v4605_v7  ;;  %4387 = vmax.xlane.f32.xlu1 %v4386_v49  ;;  %v11840_v4 = vld [vmem:[#allocation41_spill] sm:$0xff] }
 0xdc1   :  { %v10264_v54 = vpop.eup %7755  ;;  %v4334_v36 = vpop.xlane.xlu1 %4333 }
 0xdc2   :  { %7765 = vpow2.f32 %v4501_v63  ;;  %v4415_v26 = vsub.f32 %v9890_v41, %v4334_v36  ;;  %v4416_v53 = vsub.f32 %v9892_v17, %v4334_v36  ;;  %v4608_v52 = vadd.f32 %v10264_v54, %v10262_v58 }
 0xdc3   :  { %7767 = vpow2.f32 %v4503_v1  ;;  %v11841_v1 = vld [vmem:[#allocation35_spill] sm:$0xff] }
 0xdc4   :  { %v10270_v2 = vpop.eup %7757  ;;  %v4505_v34 = vmul.f32 1.442695, %v4415_v26  ;;  %v4507_v27 = vmul.f32 1.442695, %v4416_v53  ;;  %4609 = vadd.xlane.f32.xlu1 %v4608_v52  ;;  %v11842_v26 = vld [vmem:[#allocation38_spill] sm:$0xff] }
 0xdc5   :  { %v10272_v15 = vpop.eup %7759  ;;  %v4337_v39 = vpop.xlane.xlu1 %4336 }
 0xdc6   :  { %v10274_v44 = vpop.eup %7761  ;;  %7769 = vpow2.f32 %v4505_v34  ;;  %v4417_v22 = vsub.f32 %v9899_v51, %v4337_v39  ;;  %v4418_v41 = vsub.f32 %v9904_v61, %v4337_v39  ;;  %v4611_v17 = vadd.f32 %v10272_v15, %v10270_v2 }
 0xdc7   :  { %v10280_v48 = vpop.eup %7763  ;;  %7771 = vpow2.f32 %v4507_v27 }
 0xdc8   :  { %v4509_v32 = vmul.f32 1.442695, %v4417_v22  ;;  %v4511_v24 = vmul.f32 1.442695, %v4418_v41  ;;  %4612 = vadd.xlane.f32.xlu0 %v4611_v17  ;;  %v4614_v43 = vadd.f32 %v10280_v48, %v10274_v44  ;;  %v11843_v41 = vld [vmem:[#allocation36_spill] sm:$0xff] }
 0xdc9   :  { %v4340_v29 = vpop.xlane.xlu1 %4339 }
 0xdca   :  { %7773 = vpow2.f32 %v4509_v32  ;;  %v4419_v16 = vsub.f32 %v9908_v6, %v4340_v29  ;;  %v4420_v51 = vsub.f32 %v11840_v4, %v4340_v29  ;;  %4615 = vadd.xlane.f32.xlu1 %v4614_v43  ;;  %v11844_v32 = vld [vmem:[#allocation40_spill] sm:$0xff] }
 0xdcb   :  { %7775 = vpow2.f32 %v4511_v24 }
 0xdcc   :  { %v10286_v61 = vpop.eup %7765  ;;  %v4513_v18 = vmul.f32 1.442695, %v4419_v16  ;;  %v4515_v7 = vmul.f32 1.442695, %v4420_v51 }
 0xdcd   :  { %v10288_v49 = vpop.eup %7767  ;;  %v4343_v63 = vpop.xlane.xlu1 %4342 }
 0xdce   :  { %7777 = vpow2.f32 %v4513_v18  ;;  %v4421_v36 = vsub.f32 %v11841_v1, %v4343_v63  ;;  %v4422_v53 = vsub.f32 %v11842_v26, %v4343_v63  ;;  %v4617_v52 = vadd.f32 %v10288_v49, %v10286_v61  ;;  %v11847_v1 = vld [vmem:[#allocation45_spill] sm:$0xff] }
 0xdcf   :  { %7779 = vpow2.f32 %v4515_v7  ;;  %v11846_v7 = vld [vmem:[#allocation39_spill] sm:$0xff] }
 0xdd0   :  { %v10294_v6 = vpop.eup %7769  ;;  %v4517_v34 = vmul.f32 1.442695, %v4421_v36  ;;  %v4519_v27 = vmul.f32 1.442695, %v4422_v53  ;;  %4618 = vadd.xlane.f32.xlu0 %v4617_v52 }
 0xdd1   :  { %v10296_v39 = vpop.eup %7771  ;;  %v4346_v22 = vpop.xlane.xlu1 %4345 }
 0xdd2   :  { %7781 = vpow2.f32 %v4517_v34  ;;  %v4423_v17 = vsub.f32 %v11843_v41, %v4346_v22  ;;  %v4424_v24 = vsub.f32 %v11844_v32, %v4346_v22  ;;  %v4620_v43 = vadd.f32 %v10296_v39, %v10294_v6  ;;  %v11850_v41 = vld [vmem:[#allocation43_spill] sm:$0xff] }
 0xdd3   :  { %7783 = vpow2.f32 %v4519_v27  ;;  %v11851_v32 = vld [vmem:[#allocation47_spill] sm:$0xff] }
 0xdd4   :  { %v10302_v29 = vpop.eup %7773  ;;  %v4521_v16 = vmul.f32 1.442695, %v4423_v17  ;;  %v4523_v4 = vmul.f32 1.442695, %v4424_v24  ;;  %4621 = vadd.xlane.f32.xlu1 %v4620_v43 }
 0xdd5   :  { %11845 = vst [vmem:[#allocation41_spill] sm:$0xff] %v10302_v29  ;;  %v10304_v51 = vpop.eup %7775  ;;  %v4349_v18 = vpop.xlane.xlu1 %4348 }
 0xdd6   :  { %7785 = vpow2.f32 %v4521_v16  ;;  %v4425_v63 = vsub.f32 %v11846_v7, %v4349_v18  ;;  %v4426_v36 = vsub.f32 %v11847_v1, %v4349_v18  ;;  %v4623_v26 = vadd.f32 %v10304_v51, %v10302_v29  ;;  %v11853_v1 = vld [vmem:[#allocation42_spill] sm:$0xff] }
 0xdd7   :  { %7787 = vpow2.f32 %v4523_v4 }
 0xdd8   :  { %v10310_v53 = vpop.eup %7777  ;;  %v4525_v52 = vmul.f32 1.442695, %v4425_v63  ;;  %v4527_v34 = vmul.f32 1.442695, %v4426_v36  ;;  %4624 = vadd.xlane.f32.xlu0 %v4623_v26  ;;  %v11854_v26 = vld [vmem:[#allocation46_spill] sm:$0xff] }
 0xdd9   :  { %11848 = vst [vmem:[#allocation35_spill] sm:$0xff] %v10310_v53  ;;  %v10312_v27 = vpop.eup %7779  ;;  %v4352_v22 = vpop.xlane.xlu1 %4351 }
 0xdda   :  { %11849 = vst [vmem:[#allocation38_spill] sm:$0xff] %v10312_v27  ;;  %7789 = vpow2.f32 %v4525_v52  ;;  %v4427_v17 = vsub.f32 %v11850_v41, %v4352_v22  ;;  %v4428_v24 = vsub.f32 %v11851_v32, %v4352_v22  ;;  %v4626_v43 = vadd.f32 %v10312_v27, %v10310_v53 }
 0xddb   :  { %7791 = vpow2.f32 %v4527_v34 }
 0xddc   :  { %v10318_v16 = vpop.eup %7781  ;;  %v4529_v4 = vmul.f32 1.442695, %v4427_v17  ;;  %v4531_v18 = vmul.f32 1.442695, %v4428_v24  ;;  %4627 = vadd.xlane.f32.xlu1 %v4626_v43  ;;  %v11856_v17 = vld [vmem:[#allocation44_spill] sm:$0xff] }
 0xddd   :  { %11852 = vst [vmem:[#allocation36_spill] sm:$0xff] %v10318_v16  ;;  %v10320_v7 = vpop.eup %7783  ;;  %v4355_v63 = vpop.xlane.xlu0 %4354  ;;  %v11857_v43 = vld [vmem:[#allocation48_spill] sm:$0xff] }
 0xdde   :  { %7793 = vpow2.f32 %v4529_v4  ;;  %v4429_v36 = vsub.f32 %v11853_v1, %v4355_v63  ;;  %v4430_v52 = vsub.f32 %v11854_v26, %v4355_v63  ;;  %v4629_v22 = vadd.f32 %v10320_v7, %v10318_v16  ;;  %v11861_v16 = vld [vmem:[#allocation83_spill] sm:$0xff] }
 0xddf   :  { %7795 = vpow2.f32 %v4531_v18  ;;  %v4358_v41 = vpop.xlane.xlu1 %4357 }
 0xde0   :  { %v10326_v32 = vpop.eup %7785  ;;  %v4533_v34 = vmul.f32 1.442695, %v4429_v36  ;;  %v4535_v29 = vmul.f32 1.442695, %v4430_v52  ;;  %v4431_v24 = vsub.f32 %v11856_v17, %v4358_v41  ;;  %v4432_v53 = vsub.f32 %v11857_v43, %v4358_v41  ;;  %4630 = vadd.xlane.f32.xlu0 %v4629_v22  ;;  %v11859_v52 = vld [vmem:[#allocation37_spill] sm:$0xff]  ;;  %v11860_v22 = vld [vmem:[#allocation82_spill] sm:$0xff] }
 0xde1   :  { %11855 = vst [vmem:[#allocation40_spill] sm:$0xff] %v10326_v32  ;;  %v10330_v27 = vpop.eup %7787 }
 0xde2   :  { %11858 = vst [vmem:[#allocation39_spill] sm:$0xff] %v10330_v27  ;;  %7797 = vpow2.f32 %v4533_v34  ;;  %v4537_v4 = vmul.f32 1.442695, %v4431_v24  ;;  %v4539_v1 = vmul.f32 1.442695, %v4432_v53  ;;  %v4632_v63 = vadd.f32 %v10330_v27, %v10326_v32 }
 0xde3   :  { %7799 = vpow2.f32 %v4535_v29 }
 0xde4   :  { %v10334_v18 = vpop.eup %7789  ;;  %7801 = vpow2.f32 %v4537_v4  ;;  %4633 = vadd.xlane.f32.xlu1 %v4632_v63  ;;  %v11862_v4 = vld [vmem:[#allocation84_spill] sm:$0xff] }
 0xde5   :  { %v10336_v36 = vpop.eup %7791  ;;  %7803 = vpow2.f32 %v4539_v1  ;;  %v4361_v26 = vpop.xlane.xlu0 %4360 }
 0xde6   :  { %v4433_v41 = vsub.f32 %v11859_v52, %v4361_v26  ;;  %v4434_v17 = vsub.f32 %v11860_v22, %v4361_v26  ;;  %v4635_v34 = vadd.f32 %v10336_v36, %v10334_v18 }
 0xde7   :  { %v4364_v53 = vpop.xlane.xlu1 %4363 }
 0xde8   :  { %v10342_v24 = vpop.eup %7793  ;;  %v4541_v43 = vmul.f32 1.442695, %v4433_v41  ;;  %v4543_v29 = vmul.f32 1.442695, %v4434_v17  ;;  %v4435_v32 = vsub.f32 %v11861_v16, %v4364_v53  ;;  %v4436_v63 = vsub.f32 %v11862_v4, %v4364_v53  ;;  %4636 = vadd.xlane.f32.xlu0 %v4635_v34 }
 0xde9   :  { %v10346_v27 = vpop.eup %7795 }
 0xdea   :  { %7805 = vpow2.f32 %v4541_v43  ;;  %v4545_v1 = vmul.f32 1.442695, %v4435_v32  ;;  %v4547_v52 = vmul.f32 1.442695, %v4436_v63  ;;  %v4638_v26 = vadd.f32 %v10346_v27, %v10342_v24 }
 0xdeb   :  { %7807 = vpow2.f32 %v4543_v29 }
 0xdec   :  { %v10350_v22 = vpop.eup %7797  ;;  %7809 = vpow2.f32 %v4545_v1  ;;  %4639 = vadd.xlane.f32.xlu1 %v4638_v26 }
 0xded   :  { %11863 = vst [vmem:[#allocation45_spill] sm:$0xff] %v10350_v22  ;;  %v10352_v41 = vpop.eup %7799  ;;  %7811 = vpow2.f32 %v4547_v52 }
 0xdee   :  { %11864 = vst [vmem:[#allocation43_spill] sm:$0xff] %v10352_v41  ;;  %v10354_v16 = vpop.eup %7801  ;;  %v4641_v17 = vadd.f32 %v10352_v41, %v10350_v22 }
 0xdef   :  { %11865 = vst [vmem:[#allocation47_spill] sm:$0xff] %v10354_v16  ;;  %v10358_v34 = vpop.eup %7803 }
 0xdf0   :  { %11866 = vst [vmem:[#allocation42_spill] sm:$0xff] %v10358_v34  ;;  %4642 = vadd.xlane.f32.xlu0 %v4641_v17  ;;  %v4644_v32 = vadd.f32 %v10358_v34, %v10354_v16 }
 0xdf2   :  { %4645 = vadd.xlane.f32.xlu1 %v4644_v32 }
 0xdf4   :  { %v10362_v53 = vpop.eup %7805 }
 0xdf5   :  { %11867 = vst [vmem:[#allocation46_spill] sm:$0xff] %v10362_v53  ;;  %v10364_v43 = vpop.eup %7807 }
 0xdf6   :  { %11868 = vst [vmem:[#allocation44_spill] sm:$0xff] %v10364_v43  ;;  %v10366_v29 = vpop.eup %7809  ;;  %v4647_v4 = vadd.f32 %v10364_v43, %v10362_v53 }
 0xdf7   :  { %11869 = vst [vmem:[#allocation48_spill] sm:$0xff] %v10366_v29  ;;  %v10370_v63 = vpop.eup %7811 }
 0xdf8   :  { %11870 = vst [vmem:[#allocation37_spill] sm:$0xff] %v10370_v63  ;;  %4648 = vadd.xlane.f32.xlu0 %v4647_v4  ;;  %v4650_v1 = vadd.f32 %v10370_v63, %v10366_v29 }
 0xdfa   :  { %4651 = vadd.xlane.f32.xlu1 %v4650_v1 }
 0xe2d   :  { %v4583_v52 = vpop.xlane.xlu0 %4582 }
 0xe2e   :  { %7813 = vrcp.f32 %v4583_v52 }
 0xe31   :  { %v4586_v26 = vpop.xlane.xlu1 %4585  ;;  %v4367_v17 = vpop.xlane.xlu0 %4366 }
 0xe32   :  { %7815 = vrcp.f32 %v4586_v26  ;;  %v4437_v32 = vsub.f32 %v10030_v37, %v4367_v17  ;;  %v4438_v22 = vsub.f32 %v10032_v40, %v4367_v17 }
 0xe34   :  { %v4549_v16 = vmul.f32 1.442695, %v4437_v32  ;;  %v4551_v34 = vmul.f32 1.442695, %v4438_v22 }
 0xe35   :  { %v4589_v41 = vpop.xlane.xlu0 %4588  ;;  %v4370_v53 = vpop.xlane.xlu1 %4369 }
 0xe36   :  { %7817 = vpow2.f32 %v4549_v16  ;;  %v4439_v4 = vsub.f32 %v10061_v47, %v4370_v53  ;;  %v4440_v43 = vsub.f32 %v10066_v33, %v4370_v53 }
 0xe37   :  { %7819 = vpow2.f32 %v4551_v34 }
 0xe38   :  { %7821 = vrcp.f32 %v4589_v41  ;;  %v4553_v1 = vmul.f32 1.442695, %v4439_v4  ;;  %v4555_v52 = vmul.f32 1.442695, %v4440_v43  ;;  %v7814_v26 = vpop.eup %7813 }
 0xe39   :  { %v4592_v29 = vpop.xlane.xlu1 %4591  ;;  %v4373_v63 = vpop.xlane.xlu0 %4372  ;;  %v4709_v47 = vmul.f32 %v7814_v26, %v10025_v8  ;;  %v4710_v53 = vmul.f32 %v7814_v26, %v10028_v3 }
 0xe3a   :  { %7823 = vpow2.f32 %v4553_v1  ;;  %v4441_v37 = vsub.f32 %v10092_v42, %v4373_v63  ;;  %v4442_v40 = vsub.f32 %v10097_v14, %v4373_v63 }
 0xe3b   :  { %7825 = vpow2.f32 %v4555_v52 }
 0xe3c   :  { %v7816_v22 = vpop.eup %7815  ;;  %7827 = vrcp.f32 %v4592_v29  ;;  %v4557_v16 = vmul.f32 1.442695, %v4441_v37  ;;  %v4559_v17 = vmul.f32 1.442695, %v4442_v40 }
 0xe3d   :  { %v4711_v33 = vmul.f32 %v7816_v22, %v10049_v5  ;;  %v4595_v41 = vpop.xlane.xlu0 %4594  ;;  %v4376_v34 = vpop.xlane.xlu1 %4375  ;;  %v4712_v43 = vmul.f32 %v7816_v22, %v10056_v59 }
 0xe3e   :  { %7829 = vpow2.f32 %v4557_v16  ;;  %v4443_v42 = vsub.f32 %v10123_v60, %v4376_v34  ;;  %v4444_v14 = vsub.f32 %v10128_v55, %v4376_v34 }
 0xe3f   :  { %7831 = vpow2.f32 %v4559_v17  ;;  %v4774_v63 = vpack.c.bf16 %v4712_v43, %v4710_v53  ;;  %v4773_v29 = vpack.c.bf16 %v4711_v33, %v4709_v47 }
 0xe40   :  { %v10386_v32 = vpop.eup %7817  ;;  %7833 = vrcp.f32 %v4595_v41  ;;  %v4561_v8 = vmul.f32 1.442695, %v4443_v42  ;;  %v4563_v4 = vmul.f32 1.442695, %v4444_v14 }
 0xe41   :  { %v10388_v5 = vpop.eup %7819  ;;  %4869 = vmatprep.mubr.bf16.mxu0 %v4774_v63  ;;  %v4598_v1 = vpop.xlane.xlu1 %4597 }
 0xe42   :  { %v4379_v3 = vpop.xlane.xlu0 %4378  ;;  %v7822_v52 = vpop.eup %7821  ;;  %7835 = vpow2.f32 %v4561_v8  ;;  %4870 = vmatmul.mubr.bf16.vlgmr.msra.gmra.mrb[172].mxu0 %v4773_v29  ;;  %v4653_v55 = vadd.f32 %v10388_v5, %v10386_v32 }
 0xe43   :  { %v4445_v59 = vsub.f32 %v10153_v13, %v4379_v3  ;;  %v4446_v60 = vsub.f32 %v10158_v38, %v4379_v3  ;;  %7837 = vpow2.f32 %v4563_v4  ;;  %v4714_v47 = vmul.f32 %v7822_v52, %v10087_v28 }
 0xe44   :  { %v10394_v26 = vpop.eup %7823  ;;  %7839 = vrcp.f32 %v4598_v1  ;;  %4654 = vadd.xlane.f32.xlu0 %v4653_v55  ;;  %v4713_v53 = vmul.f32 %v7822_v52, %v10079_v35 }
 0xe45   :  { %v4565_v37 = vmul.f32 1.442695, %v4445_v59  ;;  %v4567_v40 = vmul.f32 1.442695, %v4446_v60  ;;  %v10396_v22 = vpop.eup %7825  ;;  %v4382_v17 = vpop.xlane.xlu1 %4381 }
 0xe46   :  { %v4601_v16 = vpop.xlane.xlu0 %4600  ;;  %v7828_v13 = vpop.eup %7827  ;;  %v4447_v38 = vsub.f32 %v10184_v57, %v4382_v17  ;;  %v4448_v33 = vsub.f32 %v10189_v11, %v4382_v17  ;;  %v4656_v41 = vadd.f32 %v10396_v22, %v10394_v26 }
 0xe47   :  { %7841 = vpow2.f32 %v4565_v37  ;;  %v4716_v34 = vmul.f32 %v7828_v13, %v10118_v45  ;;  %v4715_v43 = vmul.f32 %v7828_v13, %v10115_v56 }
 0xe48   :  { %7843 = vpow2.f32 %v4567_v40  ;;  %v10406_v42 = vpop.eup %7829  ;;  %v4569_v14 = vmul.f32 1.442695, %v4447_v38  ;;  %v4571_v28 = vmul.f32 1.442695, %v4448_v33  ;;  %4657 = vadd.xlane.f32.xlu1 %v4656_v41 }
 0xe49   :  { %v10408_v63 = vpop.eup %7831  ;;  %7845 = vrcp.f32 %v4601_v16  ;;  %v4776_v57 = vpack.c.bf16 %v4716_v34, %v4714_v47  ;;  %v4604_v11 = vpop.xlane.xlu1 %4603  ;;  %v4775_v8 = vpack.c.bf16 %v4715_v43, %v4713_v53 }
 0xe4a   :  { %v4385_v29 = vpop.xlane.xlu0 %4384  ;;  %v7834_v4 = vpop.eup %7833  ;;  %7847 = vpow2.f32 %v4569_v14  ;;  %v4659_v56 = vadd.f32 %v10408_v63, %v10406_v42 }
 0xe4b   :  { %v4449_v45 = vsub.f32 %v10209_v50, %v4385_v29  ;;  %v4450_v35 = vsub.f32 %v10214_v0, %v4385_v29  ;;  %7849 = vpow2.f32 %v4571_v28  ;;  %4879 = vmatprep.mubr.bf16.mxu0 %v4776_v57  ;;  %v4718_v55 = vmul.f32 %v7834_v4, %v10148_v20 }
 0xe4c   :  { %v10414_v1 = vpop.eup %7835  ;;  %7851 = vrcp.f32 %v4604_v11  ;;  %4880 = vmatmul.mubr.bf16.gmra.mrb[176].mxu0 %v4775_v8  ;;  %4660 = vadd.xlane.f32.xlu0 %v4659_v56  ;;  %v4717_v47 = vmul.f32 %v7834_v4, %v10141_v21 }
 0xe4d   :  { %v4573_v3 = vmul.f32 1.442695, %v4449_v45  ;;  %v4575_v52 = vmul.f32 1.442695, %v4450_v35  ;;  %v10416_v59 = vpop.eup %7837  ;;  %v4388_v60 = vpop.xlane.xlu1 %4387 }
 0xe4e   :  { %v7840_v50 = vpop.eup %7839  ;;  %v4607_v0 = vpop.xlane.xlu0 %4606  ;;  %v4451_v37 = vsub.f32 %v10245_v23, %v4388_v60  ;;  %v4452_v40 = vsub.f32 %v10250_v62, %v4388_v60  ;;  %v4662_v16 = vadd.f32 %v10416_v59, %v10414_v1 }
 0xe4f   :  { %7853 = vpow2.f32 %v4573_v3  ;;  %v4720_v17 = vmul.f32 %v7840_v50, %v10179_v46  ;;  %v4719_v13 = vmul.f32 %v7840_v50, %v10172_v19 }
 0xe50   :  { %7855 = vpow2.f32 %v4575_v52  ;;  %v4577_v20 = vmul.f32 1.442695, %v4451_v37  ;;  %v4579_v33 = vmul.f32 1.442695, %v4452_v40  ;;  %4663 = vadd.xlane.f32.xlu1 %v4662_v16 }
 0xe51   :  { %v10426_v38 = vpop.eup %7841  ;;  %7857 = vrcp.f32 %v4607_v0  ;;  %v4778_v23 = vpack.c.bf16 %v4720_v17, %v4718_v55  ;;  %v4610_v62 = vpop.xlane.xlu1 %4609  ;;  %v4777_v34 = vpack.c.bf16 %v4719_v13, %v4717_v47 }
 0xe52   :  { %v10428_v41 = vpop.eup %7843  ;;  %7859 = vpow2.f32 %v4577_v20 }
 0xe53   :  { %v4665_v53 = vadd.f32 %v10428_v41, %v10426_v38  ;;  %v7846_v46 = vpop.eup %7845  ;;  %7861 = vpow2.f32 %v4579_v33  ;;  %4889 = vmatprep.mubr.bf16.mxu0 %v4778_v23 }
 0xe54   :  { %v10432_v21 = vpop.eup %7847  ;;  %7863 = vrcp.f32 %v4610_v62  ;;  %4890 = vmatmul.mubr.bf16.gmra.mrb[180].mxu0 %v4777_v34  ;;  %v4722_v11 = vmul.f32 %v7846_v46, %v10204_v9  ;;  %v4721_v8 = vmul.f32 %v7846_v46, %v10202_v25 }
 0xe55   :  { %4666 = vadd.xlane.f32.xlu0 %v4665_v53  ;;  %v10434_v19 = vpop.eup %7849  ;;  %v4613_v43 = vpop.xlane.xlu0 %4612 }
 0xe56   :  { %v7852_v14 = vpop.eup %7851  ;;  %7865 = vrcp.f32 %v4613_v43  ;;  %v4668_v28 = vadd.f32 %v10434_v19, %v10432_v21 }
 0xe57   :  { %v4616_v57 = vpop.xlane.xlu1 %4615  ;;  %v4724_v29 = vmul.f32 %v7852_v14, %v10236_v10  ;;  %v4723_v4 = vmul.f32 %v7852_v14, %v10232_v31 }
 0xe58   :  { %4669 = vadd.xlane.f32.xlu1 %v4668_v28  ;;  %7867 = vrcp.f32 %v4616_v57 }
 0xe59   :  { %v10442_v45 = vpop.eup %7853  ;;  %v4780_v56 = vpack.c.bf16 %v4724_v29, %v4722_v11  ;;  %v4779_v3 = vpack.c.bf16 %v4723_v4, %v4721_v8 }
 0xe5a   :  { %v10444_v35 = vpop.eup %7855 }
 0xe5b   :  { %v4671_v52 = vadd.f32 %v10444_v35, %v10442_v45  ;;  %v7858_v60 = vpop.eup %7857  ;;  %4899 = vmatprep.mubr.bf16.mxu0 %v4780_v56  ;;  %v11871_v56 = vld [vmem:[#allocation38_spill] sm:$0xff] }
 0xe5c   :  { %v10448_v9 = vpop.eup %7859  ;;  %4900 = vmatmul.mubr.bf16.gmra.mrb[184].mxu0 %v4779_v3  ;;  %v4726_v50 = vmul.f32 %v7858_v60, %v10254_v30  ;;  %v4725_v37 = vmul.f32 %v7858_v60, %v10252_v12  ;;  %v11872_v3 = vld [vmem:[#allocation35_spill] sm:$0xff] }
 0xe5d   :  { %4672 = vadd.xlane.f32.xlu0 %v4671_v52  ;;  %v10450_v25 = vpop.eup %7861  ;;  %v4619_v31 = vpop.xlane.xlu0 %4618  ;;  %v11873_v52 = vld [vmem:[#allocation41_spill] sm:$0xff] }
 0xe5e   :  { %v7864_v10 = vpop.eup %7863  ;;  %v4674_v55 = vadd.f32 %v10450_v25, %v10448_v9  ;;  %7869 = vrcp.f32 %v4619_v31 }
 0xe5f   :  { %v4728_v0 = vmul.f32 %v7864_v10, %v10264_v54  ;;  %v4727_v40 = vmul.f32 %v7864_v10, %v10262_v58 }
 0xe60   :  { %v7866_v16 = vpop.eup %7865  ;;  %4675 = vadd.xlane.f32.xlu1 %v4674_v55 }
 0xe61   :  { %v4782_v17 = vpack.c.bf16 %v4728_v0, %v4726_v50  ;;  %v4622_v47 = vpop.xlane.xlu1 %4621  ;;  %v4781_v13 = vpack.c.bf16 %v4727_v40, %v4725_v37  ;;  %v4730_v33 = vmul.f32 %v7866_v16, %v10272_v15  ;;  %v4729_v58 = vmul.f32 %v7866_v16, %v10270_v2  ;;  %v11874_v37 = vld [vmem:[#allocation39_spill] sm:$0xff]  ;;  %v11875_v40 = vld [vmem:[#allocation40_spill] sm:$0xff] }
 0xe62   :  { %v7868_v20 = vpop.eup %7867  ;;  %7871 = vrcp.f32 %v4622_v47 }
 0xe63   :  { %4909 = vmatprep.mubr.bf16.mxu0 %v4782_v17  ;;  %v4732_v23 = vmul.f32 %v7868_v20, %v10280_v48  ;;  %v4731_v12 = vmul.f32 %v7868_v20, %v10274_v44  ;;  %v11876_v17 = vld [vmem:[#allocation36_spill] sm:$0xff] }
 0xe64   :  { %4910 = vmatmul.mubr.bf16.gmra.mrb[188].mxu0 %v4781_v13 }
 0xe65   :  { %v4625_v30 = vpop.xlane.xlu0 %4624  ;;  %v4784_v54 = vpack.c.bf16 %v4732_v23, %v4730_v33  ;;  %v4783_v53 = vpack.c.bf16 %v4731_v12, %v4729_v58 }
 0xe66   :  { %7873 = vrcp.f32 %v4625_v30 }
 0xe67   :  { %4919 = vmatprep.mubr.bf16.mxu0 %v4784_v54 }
 0xe68   :  { %v7870_v34 = vpop.eup %7869 }
 0xe69   :  { %v4628_v62 = vpop.xlane.xlu1 %4627  ;;  %v4734_v15 = vmul.f32 %v7870_v34, %v10288_v49  ;;  %v4733_v28 = vmul.f32 %v7870_v34, %v10286_v61 }
 0xe6a   :  { %7875 = vrcp.f32 %v4628_v62 }
 0xe6c   :  { %v7872_v46 = vpop.eup %7871  ;;  %4920 = vmatmul.mubr.bf16.gmra.mrb[192].mxu0 %v4783_v53 }
 0xe6d   :  { %v4631_v43 = vpop.xlane.xlu0 %4630  ;;  %v4736_v48 = vmul.f32 %v7872_v46, %v10296_v39  ;;  %v4735_v14 = vmul.f32 %v7872_v46, %v10294_v6 }
 0xe6e   :  { %7877 = vrcp.f32 %v4631_v43 }
 0xe6f   :  { %v4786_v44 = vpack.c.bf16 %v4736_v48, %v4734_v15  ;;  %v4785_v57 = vpack.c.bf16 %v4735_v14, %v4733_v28  ;;  %v11877_v48 = vld [vmem:[#allocation43_spill] sm:$0xff]  ;;  %v11878_v28 = vld [vmem:[#allocation42_spill] sm:$0xff] }
 0xe70   :  { %v7874_v11 = vpop.eup %7873 }
 0xe71   :  { %4929 = vmatprep.mubr.bf16.mxu0 %v4786_v44  ;;  %v4634_v2 = vpop.xlane.xlu1 %4633  ;;  %v4738_v4 = vmul.f32 %v7874_v11, %v10304_v51  ;;  %v4737_v6 = vmul.f32 %v7874_v11, %v11873_v52 }
 0xe72   :  { %7879 = vrcp.f32 %v4634_v2  ;;  %v11880_v2 = vld [vmem:[#allocation45_spill] sm:$0xff] }
 0xe74   :  { %v7876_v29 = vpop.eup %7875  ;;  %4930 = vmatmul.mubr.bf16.gmra.mrb[196].mxu0 %v4785_v57  ;;  %v11879_v57 = vld [vmem:[#allocation47_spill] sm:$0xff] }
 0xe75   :  { %v4637_v8 = vpop.xlane.xlu0 %4636  ;;  %v4740_v49 = vmul.f32 %v7876_v29, %v11871_v56  ;;  %v4739_v39 = vmul.f32 %v7876_v29, %v11872_v3  ;;  %v11882_v56 = vld [vmem:[#allocation37_spill] sm:$0xff] }
 0xe76   :  { %7881 = vrcp.f32 %v4637_v8  ;;  %v11881_v8 = vld [vmem:[#allocation44_spill] sm:$0xff] }
 0xe77   :  { %v4788_v60 = vpack.c.bf16 %v4740_v49, %v4738_v4  ;;  %v4787_v61 = vpack.c.bf16 %v4739_v39, %v4737_v6  ;;  %v11883_v39 = vld [vmem:[#allocation48_spill] sm:$0xff]  ;;  %v11884_v6 = vld [vmem:[#allocation46_spill] sm:$0xff] }
 0xe78   :  { %v7878_v10 = vpop.eup %7877 }
 0xe79   :  { %4939 = vmatprep.mubr.bf16.mxu0 %v4788_v60  ;;  %v4640_v31 = vpop.xlane.xlu1 %4639  ;;  %v4742_v0 = vmul.f32 %v7878_v10, %v10320_v7  ;;  %v4741_v47 = vmul.f32 %v7878_v10, %v11876_v17 }
 0xe7a   :  { %7883 = vrcp.f32 %v4640_v31  ;;  %v7676_v31 = vld [vmem:[%s11482_s6] sm:$0xff]  }
 0xe7b   :  { %7148 = vmatprep.subr.bf16.mxu1 %v7676_v31 }
 0xe7c   :  { %v7880_v55 = vpop.eup %7879  ;;  %4940 = vmatmul.mubr.bf16.gmra.mrb[200].mxu0 %v4787_v61  ;;  %7149 = vmatpush3.bf16.msra.mxu1 %v7676_v31 }
 0xe7d   :  { %v4643_v50 = vpop.xlane.xlu0 %4642  ;;  %v4744_v51 = vmul.f32 %v7880_v55, %v11874_v37  ;;  %v4743_v16 = vmul.f32 %v7880_v55, %v11875_v40 }
 0xe7e   :  { %7885 = vrcp.f32 %v4643_v50 }
 0xe7f   :  { %v4646_v13 = vpop.xlane.xlu1 %4645  ;;  %v4790_v20 = vpack.c.bf16 %v4744_v51, %v4742_v0  ;;  %v4789_v33 = vpack.c.bf16 %v4743_v16, %v4741_v47 }
 0xe80   :  { %7887 = vrcp.f32 %v4646_v13  ;;  %v7882_v23 = vpop.eup %7881 }
 0xe81   :  { %4949 = vmatprep.mubr.bf16.mxu0 %v4790_v20  ;;  %v4746_v12 = vmul.f32 %v7882_v23, %v10336_v36  ;;  %v4745_v62 = vmul.f32 %v7882_v23, %v10334_v18 }
 0xe84   :  { %v7884_v30 = vpop.eup %7883  ;;  %4950 = vmatmul.mubr.bf16.gmra.mrb[204].mxu0 %v4789_v33 }
 0xe85   :  { %v4649_v54 = vpop.xlane.xlu0 %4648  ;;  %v4748_v7 = vmul.f32 %v7884_v30, %v10346_v27  ;;  %v4747_v58 = vmul.f32 %v7884_v30, %v10342_v24 }
 0xe86   :  { %7889 = vrcp.f32 %v4649_v54 }
 0xe87   :  { %v4652_v34 = vpop.xlane.xlu1 %4651  ;;  %v4792_v53 = vpack.c.bf16 %v4748_v7, %v4746_v12  ;;  %v4791_v43 = vpack.c.bf16 %v4747_v58, %v4745_v62 }
 0xe88   :  { %v7886_v46 = vpop.eup %7885  ;;  %7891 = vrcp.f32 %v4652_v34 }
 0xe89   :  { %4959 = vmatprep.mubr.bf16.mxu0 %v4792_v53  ;;  %v4750_v14 = vmul.f32 %v7886_v46, %v11877_v48  ;;  %v4749_v11 = vmul.f32 %v7886_v46, %v11880_v2 }
 0xe8a   :  { %v7888_v15 = vpop.eup %7887 }
 0xe8b   :  { %v4752_v44 = vmul.f32 %v7888_v15, %v11878_v28  ;;  %v4751_v27 = vmul.f32 %v7888_v15, %v11879_v57 }
 0xe8c   :  { %4960 = vmatmul.mubr.bf16.gmra.mrb[208].mxu0 %v4791_v43 }
 0xe8d   :  { %v4794_v36 = vpack.c.bf16 %v4752_v44, %v4750_v14  ;;  %v4793_v29 = vpack.c.bf16 %v4751_v27, %v4749_v11 }
 0xe8f   :  { %4969 = vmatprep.mubr.bf16.mxu0 %v4794_v36 }
 0xe90   :  { %v7890_v24 = vpop.eup %7889 }
 0xe91   :  { %v4754_v4 = vmul.f32 %v7890_v24, %v11881_v8  ;;  %v4753_v60 = vmul.f32 %v7890_v24, %v11884_v6 }
 0xe92   :  { %v7892_v18 = vpop.eup %7891 }
 0xe93   :  { %v4756_v49 = vmul.f32 %v7892_v18, %v11882_v56  ;;  %v4755_v52 = vmul.f32 %v7892_v18, %v11883_v39  ;;  %v11886_v18 = vld [vmem:[#allocation50_spill] sm:$0xff]  ;;  %v11890_v56 = vld [vmem:[#allocation19_spill] sm:$0xff] }
 0xe94   :  { %4970 = vmatmul.mubr.bf16.gmra.mrb[212].mxu0 %v4793_v29 }
 0xe95   :  { %v4796_v3 = vpack.c.bf16 %v4756_v49, %v4754_v4  ;;  %v4795_v61 = vpack.c.bf16 %v4755_v52, %v4753_v60 }
 0xe97   :  { %4979 = vmatprep.mubr.bf16.mxu0 %v4796_v3  ;;  %v11891_v3 = vld [vmem:[#allocation15_spill] sm:$0xff] }
 0xe9c   :  { %4980 = vmatmul.mubr.bf16.gmra.mrb[216].mxu0 %v4795_v61 }
 0xed1   :  { %v4655_v10 = vpop.xlane.xlu0 %4654 }
 0xed2   :  { %7893 = vrcp.f32 %v4655_v10 }
 0xed5   :  { %v4658_v55 = vpop.xlane.xlu1 %4657 }
 0xed6   :  { %7895 = vrcp.f32 %v4658_v55 }
 0xed9   :  { %v4661_v50 = vpop.xlane.xlu0 %4660 }
 0xeda   :  { %7897 = vrcp.f32 %v4661_v50 }
 0xedc   :  { %v7894_v37 = vpop.eup %7893 }
 0xedd   :  { %v4664_v0 = vpop.xlane.xlu1 %4663  ;;  %v4758_v16 = vmul.f32 %v7894_v37, %v10388_v5  ;;  %v4757_v47 = vmul.f32 %v7894_v37, %v10386_v32 }
 0xede   :  { %7899 = vrcp.f32 %v4664_v0 }
 0xee0   :  { %v7896_v51 = vpop.eup %7895 }
 0xee1   :  { %v4760_v17 = vmul.f32 %v7896_v51, %v10396_v22  ;;  %v4759_v13 = vmul.f32 %v7896_v51, %v10394_v26  ;;  %v11892_v51 = vld [vmem:[#allocation54_spill] sm:$0xff] }
 0xee2   :  { %v4667_v40 = vpop.xlane.xlu0 %4666 }
 0xee3   :  { %v4798_v20 = vpack.c.bf16 %v4760_v17, %v4758_v16  ;;  %v4797_v33 = vpack.c.bf16 %v4759_v13, %v4757_v47  ;;  %7901 = vrcp.f32 %v4667_v40  ;;  %v11893_v40 = vmax.f32 %v11892_v51, 0.0  ;;  %v11894_v17 = vld [vmem:[#allocation56_spill] sm:$0xff]  ;;  %v11910_v51 = vld [vmem:[#allocation66_spill] sm:$0xff] }
 0xee4   :  { %v7898_v30 = vpop.eup %7897  ;;  %v11895_v47 = vmax.f32 %v11894_v17, 0.0 }
 0xee5   :  { %4989 = vmatprep.mubr.bf16.mxu0 %v4798_v20  ;;  %v4670_v23 = vpop.xlane.xlu1 %4669  ;;  %v4762_v7 = vmul.f32 %v7898_v30, %v10408_v63  ;;  %v4761_v22 = vmul.f32 %v7898_v30, %v10406_v42  ;;  %v11896_v20 = vld [vmem:[#allocation22_spill] sm:$0xff] }
 0xee6   :  { %7903 = vrcp.f32 %v4670_v23  ;;  %4990 = vmatmul.mubr.bf16.gmra.mrb[220].mxu0 %v4797_v33  ;;  %v11897_v23 = vld [vmem:[#allocation20_spill] sm:$0xff] }
 0xee8   :  { %v7900_v54 = vpop.eup %7899 }
 0xee9   :  { %v4764_v5 = vmul.f32 %v7900_v54, %v10416_v59  ;;  %v4763_v32 = vmul.f32 %v7900_v54, %v10414_v1 }
 0xeea   :  { %v4673_v12 = vpop.xlane.xlu0 %4672 }
 0xeeb   :  { %v4800_v58 = vpack.c.bf16 %v4764_v5, %v4762_v7  ;;  %v4799_v26 = vpack.c.bf16 %v4763_v32, %v4761_v22  ;;  %7905 = vrcp.f32 %v4673_v12 }
 0xeed   :  { %4999 = vmatprep.mubr.bf16.mxu0 %v4800_v58  ;;  %v4676_v62 = vpop.xlane.xlu1 %4675  ;;  %v7902_v34 = vpop.eup %7901 }
 0xeee   :  { %7907 = vrcp.f32 %v4676_v62  ;;  %5000 = vmatmul.mubr.bf16.gmra.mrb[224].mxu0 %v4799_v26  ;;  %v4766_v46 = vmul.f32 %v7902_v34, %v10428_v41  ;;  %v4765_v63 = vmul.f32 %v7902_v34, %v10426_v38 }
 0xef0   :  { %v7904_v53 = vpop.eup %7903 }
 0xef1   :  { %v4768_v43 = vmul.f32 %v7904_v53, %v10434_v19  ;;  %v4767_v59 = vmul.f32 %v7904_v53, %v10432_v21  ;;  %v11885_v21 = vld [vmem:[#allocation49_spill] sm:$0xff]  ;;  %v11898_v53 = vld [vmem:[#allocation58_spill] sm:$0xff] }
 0xef3   :  { %v4802_v42 = vpack.c.bf16 %v4768_v43, %v4766_v46  ;;  %v4801_v15 = vpack.c.bf16 %v4767_v59, %v4765_v63  ;;  %v11899_v46 = vmax.f32 %v11898_v53, 0.0  ;;  %v11900_v63 = vld [vmem:[#allocation60_spill] sm:$0xff] }
 0xef4   :  { %v11901_v59 = vmax.f32 %v11900_v63, 0.0  ;;  %v7677_v63 = vld [vmem:[%s11483_s5] sm:$0xff]  }
 0xef5   :  { %5009 = vmatprep.mubr.bf16.mxu0 %v4802_v42  ;;  %v7906_v1 = vpop.eup %7905  ;;  %7182 = vmatprep.subr.bf16.mxu1 %v7677_v63 }
 0xef6   :  { %5010 = vmatmul.mubr.bf16.gmra.mrb[228].mxu0 %v4801_v15  ;;  %v4770_v14 = vmul.f32 %v7906_v1, %v10444_v35  ;;  %v4769_v44 = vmul.f32 %v7906_v1, %v10442_v45  ;;  %v11887_v45 = vmax.f32 %v11886_v18, 0.0  ;;  %v11902_v15 = vld [vmem:[#allocation23_spill] sm:$0xff]  ;;  %v11906_v18 = vld [vmem:[#allocation64_spill] sm:$0xff] }
 0xef8   :  { %v7908_v48 = vpop.eup %7907 }
 0xef9   :  { %v4772_v28 = vmul.f32 %v7908_v48, %v10450_v25  ;;  %v4771_v41 = vmul.f32 %v7908_v48, %v10448_v9  ;;  %v11888_v9 = vld [vmem:[#allocation52_spill] sm:$0xff]  ;;  %v11903_v48 = vld [vmem:[#allocation21_spill] sm:$0xff] }
 0xefa   :  { %v11889_v8 = vmax.f32 %v11888_v9, 0.0 }
 0xefb   :  { %v4804_v36 = vpack.c.bf16 %v4772_v28, %v4770_v14  ;;  %v4803_v19 = vpack.c.bf16 %v4771_v41, %v4769_v44 }
 0xefd   :  { %5019 = vmatprep.mubr.bf16.mxu0 %v4804_v36 }
 0xefe   :  { %5020 = vmatmul.mubr.bf16.gmra.mrb[232].mxu0 %v4803_v19 }
 0xf15   :  { %v4871_v38 = vpop.f32.mrb[172].mxu0 }
 0xf16   :  { %v5030_v57 = vmul.f32 %v4871_v38, %v11885_v21  ;;  %v4873_v27 = vpop.f32.mrb[173].mxu0 }
 0xf17   :  { %v5094_v24 = vmul.f32 %v4873_v27, %v11885_v21  ;;  %v4875_v2 = vpop.f32.mrb[174].mxu0 }
 0xf18   :  { %v5031_v11 = vmul.f32 %v4875_v2, %v11885_v21  ;;  %v4877_v35 = vpop.f32.mrb[175].mxu0  ;;  %v10511_v29 = vadd.f32 %v5030_v57, %v11887_v45  ;;  %v11907_v45 = vmax.f32 %v11906_v18, 0.0 }
 0xf19   :  { %v5095_v25 = vmul.f32 %v4877_v35, %v11885_v21  ;;  %v5126_v49 = vadd.f32 %v5094_v24, %v11890_v56 }
 0xf1a   :  { %v10515_v4 = vadd.f32 %v5031_v11, %v11889_v8  ;;  %v11904_v11 = vld [vmem:[#allocation62_spill] sm:$0xff] }
 0xf1b   :  { %v5127_v39 = vadd.f32 %v5095_v25, %v11891_v3  ;;  %v11905_v35 = vmax.f32 %v11904_v11, 0.0  ;;  %v11908_v8 = vld [vmem:[#allocation26_spill] sm:$0xff] }
 0xf1c   :  { %v5158_v52 = vpack.c.bf16 %v10515_v4, %v10511_v29 }
 0xf1d   :  { %v5190_v6 = vpack.c.bf16 %v5127_v39, %v5126_v49  ;;  %v11909_v49 = vld [vmem:[#allocation24_spill] sm:$0xff] }
 0xf1f   :  { %v4881_v60 = vpop.f32.mrb[176].mxu0  ;;  %7150 = vmatprep.mubr.msk.bf16.mxu1 %vm488_vm0, %v5190_v6 }
 0xf20   :  { %v5032_v61 = vmul.f32 %v4881_v60, %v11885_v21  ;;  %v4883_v31 = vpop.f32.mrb[177].mxu0 }
 0xf21   :  { %v5096_v10 = vmul.f32 %v4883_v31, %v11885_v21  ;;  %v4885_v55 = vpop.f32.mrb[178].mxu0 }
 0xf22   :  { %v5033_v50 = vmul.f32 %v4885_v55, %v11885_v21  ;;  %v4887_v0 = vpop.f32.mrb[179].mxu0  ;;  %v10528_v16 = vadd.f32 %v5032_v61, %v11893_v40  ;;  %v11911_v40 = vmax.f32 %v11910_v51, 0.0  ;;  %v11927_v51 = vld [vmem:[#allocation29_spill] sm:$0xff] }
 0xf23   :  { %v5097_v37 = vmul.f32 %v4887_v0, %v11885_v21  ;;  %v5128_v33 = vadd.f32 %v5096_v10, %v11896_v20 }
 0xf24   :  { %v10532_v13 = vadd.f32 %v5033_v50, %v11895_v47  ;;  %v11912_v47 = vld [vmem:[#allocation68_spill] sm:$0xff] }
 0xf25   :  { %v5129_v30 = vadd.f32 %v5097_v37, %v11897_v23  ;;  %v11913_v20 = vmax.f32 %v11912_v47, 0.0  ;;  %v11914_v23 = vld [vmem:[#allocation27_spill] sm:$0xff]  ;;  %v7680_v47 = vld [vmem:[%s11483_s5 + $0x18] sm:$0xff]  }
 0xf26   :  { %v5159_v54 = vpack.c.bf16 %v10532_v13, %v10528_v16 }
 0xf27   :  { %v5191_v12 = vpack.c.bf16 %v5129_v30, %v5128_v33  ;;  %v4891_v7 = vpop.f32.mrb[180].mxu0 }
 0xf28   :  { %v5034_v5 = vmul.f32 %v4891_v7, %v11885_v21  ;;  %v4893_v22 = vpop.f32.mrb[181].mxu0 }
 0xf29   :  { %v5098_v32 = vmul.f32 %v4893_v22, %v11885_v21  ;;  %v4895_v58 = vpop.f32.mrb[182].mxu0  ;;  %7151 = vmatmul.mubr.msk.bf16.vlgmr.msra.gmra.mrb[196].mxu1 %vm488_vm0, %v5191_v12  ;;  %v11915_v12 = vld [vmem:[#allocation25_spill] sm:$0xff] }
 0xf2a   :  { %v5035_v26 = vmul.f32 %v4895_v58, %v11885_v21  ;;  %v4897_v62 = vpop.f32.mrb[183].mxu0  ;;  %v10545_v43 = vadd.f32 %v5034_v5, %v11899_v46  ;;  %7183 = vmatpush3.bf16.msra.mxu1 %v7677_v63 }
 0xf2b   :  { %v5099_v34 = vmul.f32 %v4897_v62, %v11885_v21  ;;  %v5130_v1 = vadd.f32 %v5098_v32, %v11902_v15  ;;  %v11916_v15 = vld [vmem:[#allocation70_spill] sm:$0xff] }
 0xf2c   :  { %v10549_v42 = vadd.f32 %v5035_v26, %v11901_v59 }
 0xf2d   :  { %v5131_v14 = vadd.f32 %v5099_v34, %v11903_v48 }
 0xf2e   :  { %v5160_v28 = vpack.c.bf16 %v10549_v42, %v10545_v43 }
 0xf2f   :  { %v5192_v44 = vpack.c.bf16 %v5131_v14, %v5130_v1  ;;  %v4901_v41 = vpop.f32.mrb[184].mxu0  ;;  %v11917_v1 = vmax.f32 %v11916_v15, 0.0  ;;  %v11918_v14 = vld [vmem:[#allocation72_spill] sm:$0xff] }
 0xf30   :  { %v5036_v36 = vmul.f32 %v4901_v41, %v11885_v21  ;;  %v4903_v19 = vpop.f32.mrb[185].mxu0 }
 0xf31   :  { %v5100_v38 = vmul.f32 %v4903_v19, %v11885_v21  ;;  %v4905_v57 = vpop.f32.mrb[186].mxu0  ;;  %7154 = vmatprep.mubr.msk.bf16.mxu1 %vm488_vm0, %v5192_v44  ;;  %v11919_v44 = vmax.f32 %v11918_v14, 0.0  ;;  %v11932_v14 = vld [vmem:[#allocation33_spill] sm:$0xff] }
 0xf32   :  { %v5037_v27 = vmul.f32 %v4905_v57, %v11885_v21  ;;  %v4907_v24 = vpop.f32.mrb[187].mxu0  ;;  %v10562_v25 = vadd.f32 %v5036_v36, %v11905_v35  ;;  %v11920_v36 = vld [vmem:[#allocation30_spill] sm:$0xff] }
 0xf33   :  { %v5101_v2 = vmul.f32 %v4907_v24, %v11885_v21  ;;  %v5132_v56 = vadd.f32 %v5100_v38, %v11908_v8  ;;  %v11921_v38 = vld [vmem:[#allocation28_spill] sm:$0xff] }
 0xf34   :  { %v10566_v9 = vadd.f32 %v5037_v27, %v11907_v45  ;;  %v7678_v27 = vld [vmem:[%s11483_s5 + $0x8] sm:$0xff]  }
 0xf35   :  { %v5133_v3 = vadd.f32 %v5101_v2, %v11909_v49  ;;  %7184 = vmatprep.subr.bf16.mxu1 %v7678_v27 }
 0xf36   :  { %v5161_v39 = vpack.c.bf16 %v10566_v9, %v10562_v25  ;;  %7185 = vmatpush3.bf16.msra.mxu1 %v7678_v27 }
 0xf37   :  { %v5193_v6 = vpack.c.bf16 %v5133_v3, %v5132_v56  ;;  %v4911_v60 = vpop.f32.mrb[188].mxu0  ;;  %v7679_v3 = vld [vmem:[%s11483_s5 + $0x10] sm:$0xff]  }
 0xf38   :  { %v5038_v61 = vmul.f32 %v4911_v60, %v11885_v21  ;;  %v4913_v31 = vpop.f32.mrb[189].mxu0  ;;  %v11922_v60 = vld [vmem:[#allocation74_spill] sm:$0xff]  ;;  %7186 = vmatprep.subr.bf16.mxu1 %v7679_v3 }
 0xf39   :  { %v5102_v10 = vmul.f32 %v4913_v31, %v11885_v21  ;;  %v4915_v55 = vpop.f32.mrb[190].mxu0  ;;  %7155 = vmatmul.mubr.msk.bf16.gmra.mrb[200].mxu1 %vm488_vm0, %v5193_v6 }
 0xf3a   :  { %v5039_v50 = vmul.f32 %v4915_v55, %v11885_v21  ;;  %v4917_v0 = vpop.f32.mrb[191].mxu0  ;;  %v10579_v17 = vadd.f32 %v5038_v61, %v11911_v40  ;;  %v11923_v61 = vmax.f32 %v11922_v60, 0.0  ;;  %7187 = vmatpush3.bf16.msra.mxu1 %v7679_v3 }
 0xf3b   :  { %v5103_v37 = vmul.f32 %v4917_v0, %v11885_v21  ;;  %v5134_v30 = vadd.f32 %v5102_v10, %v11914_v23  ;;  %v11924_v10 = vld [vmem:[#allocation76_spill] sm:$0xff]  ;;  %v11926_v0 = vld [vmem:[#allocation31_spill] sm:$0xff]  ;;  %7188 = vmatprep.subr.bf16.mxu1 %v7680_v47 }
 0xf3c   :  { %v10583_v33 = vadd.f32 %v5039_v50, %v11913_v20  ;;  %v11925_v55 = vmax.f32 %v11924_v10, 0.0  ;;  %v11936_v10 = vld [vmem:[#allocation53_spill] sm:$0xff] }
 0xf3d   :  { %v5135_v7 = vadd.f32 %v5103_v37, %v11915_v12 }
 0xf3e   :  { %v5162_v5 = vpack.c.bf16 %v10583_v33, %v10579_v17  ;;  %7189 = vmatpush3.bf16.msra.mxu1 %v7680_v47  ;;  %v11939_v47 = vld [vmem:[#allocation4_spill] sm:$0xff] }
 0xf3f   :  { %v5194_v22 = vpack.c.bf16 %v5135_v7, %v5134_v30  ;;  %v4921_v32 = vpop.f32.mrb[192].mxu0 }
 0xf40   :  { %v5040_v58 = vmul.f32 %v4921_v32, %v11885_v21  ;;  %v4923_v26 = vpop.f32.mrb[193].mxu0 }
 0xf41   :  { %v5104_v62 = vmul.f32 %v4923_v26, %v11885_v21  ;;  %v4925_v34 = vpop.f32.mrb[194].mxu0  ;;  %7158 = vmatprep.mubr.msk.bf16.mxu1 %vm488_vm0, %v5194_v22 }
 0xf42   :  { %v5041_v53 = vmul.f32 %v4925_v34, %v11885_v21  ;;  %v4927_v46 = vpop.f32.mrb[195].mxu0  ;;  %v10599_v48 = vadd.f32 %v5040_v58, %v11917_v1 }
 0xf43   :  { %v5105_v59 = vmul.f32 %v4927_v46, %v11885_v21  ;;  %v5136_v19 = vadd.f32 %v5104_v62, %v11920_v36  ;;  %v7681_v62 = vld [vmem:[%s11483_s5 + $0x20] sm:$0xff]   ;;  %v11933_v36 = vld [vmem:[#allocation32_spill] sm:$0xff] }
 0xf44   :  { %v10603_v41 = vadd.f32 %v5041_v53, %v11919_v44  ;;  %v11928_v53 = vld [vmem:[#allocation78_spill] sm:$0xff]  ;;  %7190 = vmatprep.subr.bf16.mxu1 %v7681_v62 }
 0xf45   :  { %v5137_v57 = vadd.f32 %v5105_v59, %v11921_v38  ;;  %v11929_v46 = vmax.f32 %v11928_v53, 0.0  ;;  %v11930_v59 = vld [vmem:[#allocation80_spill] sm:$0xff]  ;;  %7191 = vmatpush3.bf16.msra.mxu1 %v7681_v62  ;;  %v7682_v38 = vld [vmem:[%s11483_s5 + $0x28] sm:$0xff]  }
 0xf46   :  { %v5163_v24 = vpack.c.bf16 %v10603_v41, %v10599_v48  ;;  %v11931_v15 = vmax.f32 %v11930_v59, 0.0  ;;  %7192 = vmatprep.subr.bf16.mxu1 %v7682_v38 }
 0xf47   :  { %v5195_v2 = vpack.c.bf16 %v5137_v57, %v5136_v19  ;;  %v4931_v11 = vpop.f32.mrb[196].mxu0 }
 0xf48   :  { %v5042_v35 = vmul.f32 %v4931_v11, %v11885_v21  ;;  %v4933_v18 = vpop.f32.mrb[197].mxu0 }
 0xf49   :  { %v5106_v45 = vmul.f32 %v4933_v18, %v11885_v21  ;;  %v4935_v8 = vpop.f32.mrb[198].mxu0  ;;  %7159 = vmatmul.mubr.msk.bf16.gmra.mrb[204].mxu1 %vm488_vm0, %v5195_v2 }
 0xf4a   :  { %v5043_v56 = vmul.f32 %v4935_v8, %v11885_v21  ;;  %v4937_v49 = vpop.f32.mrb[199].mxu0  ;;  %v10622_v31 = vadd.f32 %v5042_v35, %v11923_v61  ;;  %7193 = vmatpush3.bf16.msra.mxu1 %v7682_v38 }
 0xf4b   :  { %v5107_v6 = vmul.f32 %v4937_v49, %v11885_v21  ;;  %v5138_v37 = vadd.f32 %v5106_v45, %v11926_v0  ;;  %v7683_v49 = vld [vmem:[%s11483_s5 + $0x30] sm:$0xff]  }
 0xf4c   :  { %v10626_v50 = vadd.f32 %v5043_v56, %v11925_v55  ;;  %v11937_v55 = vmax.f32 %v11936_v10, 0.0  ;;  %7194 = vmatprep.subr.bf16.mxu1 %v7683_v49  ;;  %v11946_v10 = vld [vmem:[#allocation59_spill] sm:$0xff] }
 0xf4d   :  { %v5139_v40 = vadd.f32 %v5107_v6, %v11927_v51  ;;  %v11934_v6 = vld [vmem:[#allocation51_spill] sm:$0xff] }
 0xf4e   :  { %v5164_v20 = vpack.c.bf16 %v10626_v50, %v10622_v31  ;;  %v11935_v60 = vmax.f32 %v11934_v6, 0.0  ;;  %v11938_v51 = vld [vmem:[#allocation3_spill] sm:$0xff]  ;;  %7195 = vmatpush3.bf16.msra.mxu1 %v7683_v49 }
 0xf4f   :  { %v5196_v23 = vpack.c.bf16 %v5139_v40, %v5138_v37  ;;  %v4941_v30 = vpop.f32.mrb[200].mxu0  ;;  %v7684_v37 = vld [vmem:[%s11483_s5 + $0x38] sm:$0xff]  }
 0xf50   :  { %v5044_v12 = vmul.f32 %v4941_v30, %v11885_v21  ;;  %v4943_v7 = vpop.f32.mrb[201].mxu0  ;;  %7196 = vmatprep.subr.bf16.mxu1 %v7684_v37 }
 0xf51   :  { %v5108_v22 = vmul.f32 %v4943_v7, %v11885_v21  ;;  %v4945_v32 = vpop.f32.mrb[202].mxu0  ;;  %7162 = vmatprep.mubr.msk.bf16.mxu1 %vm488_vm0, %v5196_v23 }
 0xf52   :  { %v5045_v58 = vmul.f32 %v4945_v32, %v11885_v21  ;;  %v4947_v26 = vpop.f32.mrb[203].mxu0  ;;  %v10645_v63 = vadd.f32 %v5044_v12, %v11929_v46  ;;  %7197 = vmatpush3.bf16.msra.mxu1 %v7684_v37  ;;  %v11940_v46 = vld [vmem:[#allocation55_spill] sm:$0xff] }
 0xf53   :  { %v5109_v34 = vmul.f32 %v4947_v26, %v11885_v21  ;;  %v5140_v44 = vadd.f32 %v5108_v22, %v11932_v14  ;;  %v11941_v59 = vmax.f32 %v11940_v46, 0.0  ;;  %v11942_v14 = vld [vmem:[#allocation57_spill] sm:$0xff] }
 0xf54   :  { %v10649_v1 = vadd.f32 %v5045_v58, %v11931_v15 }
 0xf55   :  { %v5141_v19 = vadd.f32 %v5109_v34, %v11933_v36 }
 0xf56   :  { %v5165_v57 = vpack.c.bf16 %v10649_v1, %v10645_v63 }
 0xf57   :  { %v5197_v27 = vpack.c.bf16 %v5141_v19, %v5140_v44  ;;  %v4951_v2 = vpop.f32.mrb[204].mxu0  ;;  %v11943_v44 = vmax.f32 %v11942_v14, 0.0  ;;  %v11944_v19 = vld [vmem:[#allocation5_spill] sm:$0xff] }
 0xf58   :  { %v5046_v11 = vmul.f32 %v4951_v2, %v11885_v21  ;;  %v4953_v35 = vpop.f32.mrb[205].mxu0 }
 0xf59   :  { %v5110_v18 = vmul.f32 %v4953_v35, %v11885_v21  ;;  %v4955_v45 = vpop.f32.mrb[206].mxu0  ;;  %7163 = vmatmul.mubr.msk.bf16.gmra.mrb[208].mxu1 %vm488_vm0, %v5197_v27  ;;  %v11945_v27 = vld [vmem:[#allocation2_spill] sm:$0xff] }
 0xf5a   :  { %v5047_v8 = vmul.f32 %v4955_v45, %v11885_v21  ;;  %v4957_v56 = vpop.f32.mrb[207].mxu0  ;;  %v10668_v61 = vadd.f32 %v5046_v11, %v11935_v60 }
 0xf5b   :  { %v5111_v3 = vmul.f32 %v4957_v56, %v11885_v21  ;;  %v5142_v40 = vadd.f32 %v5110_v18, %v11938_v51  ;;  %v11948_v51 = vld [vmem:[#allocation61_spill] sm:$0xff] }
 0xf5c   :  { %v10672_v0 = vadd.f32 %v5047_v8, %v11937_v55  ;;  %v11947_v55 = vmax.f32 %v11946_v10, 0.0 }
 0xf5d   :  { %v5143_v23 = vadd.f32 %v5111_v3, %v11939_v47 }
 0xf5e   :  { %v5166_v30 = vpack.c.bf16 %v10672_v0, %v10668_v61 }
 0xf5f   :  { %v5198_v12 = vpack.c.bf16 %v5143_v23, %v5142_v40  ;;  %v4961_v7 = vpop.f32.mrb[208].mxu0  ;;  %v11949_v40 = vmax.f32 %v11948_v51, 0.0  ;;  %v11950_v23 = vld [vmem:[#allocation7_spill] sm:$0xff] }
 0xf60   :  { %v5048_v22 = vmul.f32 %v4961_v7, %v11885_v21  ;;  %v4963_v32 = vpop.f32.mrb[209].mxu0  ;;  %v11951_v7 = vld [vmem:[#allocation8_spill] sm:$0xff] }
 0xf61   :  { %v5112_v58 = vmul.f32 %v4963_v32, %v11885_v21  ;;  %v4965_v26 = vpop.f32.mrb[210].mxu0  ;;  %7166 = vmatprep.mubr.msk.bf16.mxu1 %vm488_vm0, %v5198_v12 }
 0xf62   :  { %v5049_v62 = vmul.f32 %v4965_v26, %v11885_v21  ;;  %v4967_v34 = vpop.f32.mrb[211].mxu0  ;;  %v10688_v15 = vadd.f32 %v5048_v22, %v11941_v59 }
 0xf63   :  { %v5113_v53 = vmul.f32 %v4967_v34, %v11885_v21  ;;  %v5144_v38 = vadd.f32 %v5112_v58, %v11944_v19  ;;  %v11952_v19 = vld [vmem:[#allocation63_spill] sm:$0xff] }
 0xf64   :  { %v10692_v36 = vadd.f32 %v5049_v62, %v11943_v44 }
 0xf65   :  { %v5145_v2 = vadd.f32 %v5113_v53, %v11945_v27 }
 0xf66   :  { %v5167_v11 = vpack.c.bf16 %v10692_v36, %v10688_v15 }
 0xf67   :  { %v5199_v35 = vpack.c.bf16 %v5145_v2, %v5144_v38  ;;  %v4971_v18 = vpop.f32.mrb[212].mxu0  ;;  %v11953_v38 = vmax.f32 %v11952_v19, 0.0  ;;  %v11954_v2 = vld [vmem:[#allocation65_spill] sm:$0xff] }
 0xf68   :  { %v5050_v45 = vmul.f32 %v4971_v18, %v11885_v21  ;;  %v4973_v8 = vpop.f32.mrb[213].mxu0 }
 0xf69   :  { %v5114_v56 = vmul.f32 %v4973_v8, %v11885_v21  ;;  %v4975_v49 = vpop.f32.mrb[214].mxu0  ;;  %7167 = vmatmul.mubr.msk.bf16.gmra.mrb[212].mxu1 %vm488_vm0, %v5199_v35  ;;  %v11955_v35 = vmax.f32 %v11954_v2, 0.0 }
 0xf6a   :  { %v5051_v3 = vmul.f32 %v4975_v49, %v11885_v21  ;;  %v4977_v6 = vpop.f32.mrb[215].mxu0  ;;  %v10705_v37 = vadd.f32 %v5050_v45, %v11947_v55  ;;  %v11956_v45 = vld [vmem:[#allocation9_spill] sm:$0xff] }
 0xf6b   :  { %v5115_v60 = vmul.f32 %v4977_v6, %v11885_v21  ;;  %v5146_v12 = vadd.f32 %v5114_v56, %v11950_v23  ;;  %v11957_v56 = vld [vmem:[#allocation6_spill] sm:$0xff] }
 0xf6c   :  { %v10709_v47 = vadd.f32 %v5051_v3, %v11949_v40 }
 0xf6d   :  { %v5147_v22 = vadd.f32 %v5115_v60, %v11951_v7 }
 0xf6e   :  { %v5168_v32 = vpack.c.bf16 %v10709_v47, %v10705_v37 }
 0xf6f   :  { %v5200_v58 = vpack.c.bf16 %v5147_v22, %v5146_v12  ;;  %v4981_v26 = vpop.f32.mrb[216].mxu0  ;;  %v11958_v22 = vld [vmem:[#allocation67_spill] sm:$0xff] }
 0xf70   :  { %v5052_v62 = vmul.f32 %v4981_v26, %v11885_v21  ;;  %v4983_v34 = vpop.f32.mrb[217].mxu0 }
 0xf71   :  { %v5116_v53 = vmul.f32 %v4983_v34, %v11885_v21  ;;  %v4985_v46 = vpop.f32.mrb[218].mxu0  ;;  %7170 = vmatprep.mubr.msk.bf16.mxu1 %vm488_vm0, %v5200_v58  ;;  %v11959_v58 = vmax.f32 %v11958_v22, 0.0 }
 0xf72   :  { %v5053_v59 = vmul.f32 %v4985_v46, %v11885_v21  ;;  %v4987_v14 = vpop.f32.mrb[219].mxu0  ;;  %v10722_v27 = vadd.f32 %v5052_v62, %v11953_v38  ;;  %v11960_v62 = vld [vmem:[#allocation69_spill] sm:$0xff]  ;;  %v11962_v46 = vld [vmem:[#allocation11_spill] sm:$0xff] }
 0xf73   :  { %v5117_v44 = vmul.f32 %v4987_v14, %v11885_v21  ;;  %v5148_v8 = vadd.f32 %v5116_v53, %v11956_v45  ;;  %v11961_v34 = vmax.f32 %v11960_v62, 0.0  ;;  %v11963_v14 = vld [vmem:[#allocation12_spill] sm:$0xff] }
 0xf74   :  { %v10726_v18 = vadd.f32 %v5053_v59, %v11955_v35 }
 0xf75   :  { %v5149_v49 = vadd.f32 %v5117_v44, %v11957_v56 }
 0xf76   :  { %v5169_v3 = vpack.c.bf16 %v10726_v18, %v10722_v27 }
 0xf77   :  { %v5201_v6 = vpack.c.bf16 %v5149_v49, %v5148_v8 }
 0xf79   :  { %7171 = vmatmul.mubr.msk.bf16.gmra.mrb[216].mxu1 %vm488_vm0, %v5201_v6 }
 0xfb9   :  { %v4991_v60 = vpop.f32.mrb[220].mxu0 }
 0xfba   :  { %v5054_v10 = vmul.f32 %v4991_v60, %v11885_v21  ;;  %v4993_v55 = vpop.f32.mrb[221].mxu0 }
 0xfbb   :  { %v5118_v51 = vmul.f32 %v4993_v55, %v11885_v21  ;;  %v4995_v40 = vpop.f32.mrb[222].mxu0 }
 0xfbc   :  { %v5055_v23 = vmul.f32 %v4995_v40, %v11885_v21  ;;  %v4997_v12 = vpop.f32.mrb[223].mxu0  ;;  %v10739_v26 = vadd.f32 %v5054_v10, %v11959_v58  ;;  %v11964_v10 = vld [vmem:[#allocation71_spill] sm:$0xff]  ;;  %v11966_v40 = vld [vmem:[#allocation73_spill] sm:$0xff]  ;;  %v11969_v58 = vld [vmem:[#allocation10_spill] sm:$0xff] }
 0xfbd   :  { %v5119_v7 = vmul.f32 %v4997_v12, %v11885_v21  ;;  %v5150_v59 = vadd.f32 %v5118_v51, %v11962_v46  ;;  %v11965_v55 = vmax.f32 %v11964_v10, 0.0  ;;  %v11974_v10 = vld [vmem:[#allocation16_spill] sm:$0xff] }
 0xfbe   :  { %v10743_v53 = vadd.f32 %v5055_v23, %v11961_v34  ;;  %v11967_v23 = vmax.f32 %v11966_v40, 0.0 }
 0xfbf   :  { %v5151_v44 = vadd.f32 %v5119_v7, %v11963_v14  ;;  %v11968_v7 = vld [vmem:[#allocation13_spill] sm:$0xff] }
 0xfc0   :  { %v5170_v19 = vpack.c.bf16 %v10743_v53, %v10739_v26 }
 0xfc1   :  { %v5202_v38 = vpack.c.bf16 %v5151_v44, %v5150_v59  ;;  %v5001_v2 = vpop.f32.mrb[224].mxu0 }
 0xfc2   :  { %v5056_v35 = vmul.f32 %v5001_v2, %v11885_v21  ;;  %v5003_v45 = vpop.f32.mrb[225].mxu0 }
 0xfc3   :  { %v5120_v8 = vmul.f32 %v5003_v45, %v11885_v21  ;;  %v5005_v56 = vpop.f32.mrb[226].mxu0  ;;  %7174 = vmatprep.mubr.msk.bf16.mxu1 %vm488_vm0, %v5202_v38  ;;  %v11970_v45 = vld [vmem:[#allocation75_spill] sm:$0xff] }
 0xfc4   :  { %v5057_v49 = vmul.f32 %v5005_v56, %v11885_v21  ;;  %v5007_v6 = vpop.f32.mrb[227].mxu0  ;;  %v5088_v51 = vadd.f32 %v5056_v35, %v11965_v55 }
 0xfc5   :  { %v5121_v60 = vmul.f32 %v5007_v6, %v11885_v21  ;;  %v5152_v22 = vadd.f32 %v5120_v8, %v11968_v7  ;;  %v11971_v8 = vmax.f32 %v11970_v45, 0.0 }
 0xfc6   :  { %v5089_v12 = vadd.f32 %v5057_v49, %v11967_v23  ;;  %v11972_v49 = vld [vmem:[#allocation77_spill] sm:$0xff] }
 0xfc7   :  { %v5153_v26 = vadd.f32 %v5121_v60, %v11969_v58  ;;  %v11973_v6 = vmax.f32 %v11972_v49, 0.0  ;;  %v11981_v49 = vld [vmem:[#allocation14_spill] sm:$0xff] }
 0xfc8   :  { %v5171_v62 = vpack.c.bf16 %v5089_v12, %v5088_v51  ;;  %v11975_v51 = vld [vmem:[#allocation17_spill] sm:$0xff] }
 0xfc9   :  { %v5203_v34 = vpack.c.bf16 %v5153_v26, %v5152_v22  ;;  %v5011_v53 = vpop.f32.mrb[228].mxu0 }
 0xfca   :  { %v5058_v46 = vmul.f32 %v5011_v53, %v11885_v21  ;;  %v5013_v59 = vpop.f32.mrb[229].mxu0 }
 0xfcb   :  { %v5122_v14 = vmul.f32 %v5013_v59, %v11885_v21  ;;  %v5015_v44 = vpop.f32.mrb[230].mxu0  ;;  %7175 = vmatmul.mubr.msk.bf16.gmra.mrb[220].mxu1 %vm488_vm0, %v5203_v34 }
 0xfcc   :  { %v5059_v38 = vmul.f32 %v5015_v44, %v11885_v21  ;;  %v5017_v2 = vpop.f32.mrb[231].mxu0  ;;  %v5090_v56 = vadd.f32 %v5058_v46, %v11971_v8  ;;  %v11976_v44 = vld [vmem:[#allocation79_spill] sm:$0xff]  ;;  %v11980_v8 = vld [vmem:[#allocation18_spill] sm:$0xff] }
 0xfcd   :  { %v5123_v35 = vmul.f32 %v5017_v2, %v11885_v21  ;;  %v5154_v55 = vadd.f32 %v5122_v14, %v11974_v10  ;;  %v11977_v14 = vmax.f32 %v11976_v44, 0.0  ;;  %v11978_v2 = vld [vmem:[#allocation81_spill] sm:$0xff] }
 0xfce   :  { %v5091_v60 = vadd.f32 %v5059_v38, %v11973_v6 }
 0xfcf   :  { %v5155_v40 = vadd.f32 %v5123_v35, %v11975_v51  ;;  %v11979_v35 = vmax.f32 %v11978_v2, 0.0 }
 0xfd0   :  { %v5172_v23 = vpack.c.bf16 %v5091_v60, %v5090_v56 }
 0xfd1   :  { %v5204_v12 = vpack.c.bf16 %v5155_v40, %v5154_v55  ;;  %v5021_v7 = vpop.f32.mrb[232].mxu0 }
 0xfd2   :  { %v5060_v22 = vmul.f32 %v5021_v7, %v11885_v21  ;;  %v5023_v58 = vpop.f32.mrb[233].mxu0 }
 0xfd3   :  { %v5124_v26 = vmul.f32 %v5023_v58, %v11885_v21  ;;  %v5025_v34 = vpop.f32.mrb[234].mxu0  ;;  %7178 = vmatprep.mubr.msk.bf16.mxu1 %vm488_vm0, %v5204_v12 }
 0xfd4   :  { %v5061_v53 = vmul.f32 %v5025_v34, %v11885_v21  ;;  %v5027_v46 = vpop.f32.mrb[235].mxu0  ;;  %v5092_v38 = vadd.f32 %v5060_v22, %v11977_v14 }
 0xfd5   :  { %v5125_v59 = vmul.f32 %v5027_v46, %v11885_v21  ;;  %v5156_v56 = vadd.f32 %v5124_v26, %v11980_v8 }
 0xfd6   :  { %v5093_v45 = vadd.f32 %v5061_v53, %v11979_v35 }
 0xfd7   :  { %v5157_v6 = vadd.f32 %v5125_v59, %v11981_v49 }
 0xfd8   :  { %v5173_v60 = vpack.c.bf16 %v5093_v45, %v5092_v38 }
 0xfd9   :  { %v5205_v10 = vpack.c.bf16 %v5157_v6, %v5156_v56 }
 0xfdb   :  { %7179 = vmatmul.mubr.msk.bf16.gmra.mrb[224].mxu1 %vm488_vm0, %v5205_v10 }
 0xfdc   :  { %7198 = vmatprep.mubr.bf16.mxu1 %v5158_v52 }
 0xfe3   :  { %7199 = vmatmul.mubr.bf16.vlgmr.msra.gmra.mrb[196].mxu1 %v5159_v54 }
 0xfe4   :  { %7202 = vmatprep.mubr.bf16.mxu1 %v5160_v28 }
 0xfeb   :  { %7203 = vmatmul.mubr.bf16.gmra.mrb[200].mxu1 %v5161_v39 }
 0xfec   :  { %7206 = vmatprep.mubr.bf16.mxu1 %v5162_v5 }
 0xff3   :  { %7207 = vmatmul.mubr.bf16.gmra.mrb[204].mxu1 %v5163_v24 }
 0xff4   :  { %7210 = vmatprep.mubr.bf16.mxu1 %v5164_v20 }
 0xffb   :  { %7211 = vmatmul.mubr.bf16.gmra.mrb[208].mxu1 %v5165_v57 }
 0xffc   :  { %7214 = vmatprep.mubr.bf16.mxu1 %v5166_v30 }
0x1003   :  { %7215 = vmatmul.mubr.bf16.gmra.mrb[212].mxu1 %v5167_v11 }
0x1004   :  { %7218 = vmatprep.mubr.bf16.mxu1 %v5168_v32  ;;  %v11982_v32 = vld [vmem:[#allocation34_spill] sm:$0xff] }
0x100b   :  { %7219 = vmatmul.mubr.bf16.gmra.mrb[216].mxu1 %v5169_v3 }
0x100c   :  { %7222 = vmatprep.mubr.bf16.mxu1 %v5170_v19 }
0x1013   :  { %7223 = vmatmul.mubr.bf16.gmra.mrb[220].mxu1 %v5171_v62 }
0x1014   :  { %7226 = vmatprep.mubr.bf16.mxu1 %v5172_v23 }
0x101b   :  { %7227 = vmatmul.mubr.bf16.gmra.mrb[224].mxu1 %v5173_v60 }
0x10b6   :  { %v10819_v21 = vpop.f32.mrb[196].mxu1 }
0x10b7   :  { %5636 = vmax.xlane.f32.xlu0 %v10819_v21  ;;  %v10822_v29 = vpop.f32.mrb[197].mxu1 }
0x10b8   :  { %v10824_v4 = vpop.f32.mrb[198].mxu1 }
0x10b9   :  { %5638 = vmax.xlane.f32.xlu1 %v10824_v4  ;;  %v10827_v52 = vpop.f32.mrb[199].mxu1 }
0x10bb   :  { %5632 = vmax.xlane.f32.xlu0 %v10822_v29 }
0x10bd   :  { %5634 = vmax.xlane.f32.xlu1 %v10827_v52 }
0x10be   :  { %v10831_v16 = vpop.f32.mrb[200].mxu1 }
0x10bf   :  { %5644 = vmax.xlane.f32.xlu0 %v10831_v16  ;;  %v10834_v13 = vpop.f32.mrb[201].mxu1 }
0x10c0   :  { %v10836_v54 = vpop.f32.mrb[202].mxu1 }
0x10c1   :  { %5646 = vmax.xlane.f32.xlu1 %v10836_v54  ;;  %v10839_v43 = vpop.f32.mrb[203].mxu1 }
0x10c3   :  { %5640 = vmax.xlane.f32.xlu0 %v10834_v13 }
0x10c5   :  { %5642 = vmax.xlane.f32.xlu1 %v10839_v43 }
0x10c6   :  { %v10843_v42 = vpop.f32.mrb[204].mxu1 }
0x10c7   :  { %5652 = vmax.xlane.f32.xlu0 %v10843_v42  ;;  %v10846_v28 = vpop.f32.mrb[205].mxu1 }
0x10c8   :  { %v10848_v25 = vpop.f32.mrb[206].mxu1 }
0x10c9   :  { %5654 = vmax.xlane.f32.xlu1 %v10848_v25  ;;  %v10851_v9 = vpop.f32.mrb[207].mxu1 }
0x10cb   :  { %5648 = vmax.xlane.f32.xlu0 %v10846_v28 }
0x10cd   :  { %5650 = vmax.xlane.f32.xlu1 %v10851_v9 }
0x10ce   :  { %v10855_v39 = vpop.f32.mrb[208].mxu1 }
0x10cf   :  { %5660 = vmax.xlane.f32.xlu0 %v10855_v39  ;;  %v10858_v17 = vpop.f32.mrb[209].mxu1 }
0x10d0   :  { %v10860_v33 = vpop.f32.mrb[210].mxu1 }
0x10d1   :  { %5662 = vmax.xlane.f32.xlu1 %v10860_v33  ;;  %v10863_v5 = vpop.f32.mrb[211].mxu1 }
0x10d3   :  { %5656 = vmax.xlane.f32.xlu0 %v10858_v17 }
0x10d5   :  { %5658 = vmax.xlane.f32.xlu1 %v10863_v5 }
0x10d6   :  { %v10867_v48 = vpop.f32.mrb[212].mxu1 }
0x10d7   :  { %5668 = vmax.xlane.f32.xlu0 %v10867_v48  ;;  %v10870_v41 = vpop.f32.mrb[213].mxu1 }
0x10d8   :  { %v10872_v24 = vpop.f32.mrb[214].mxu1 }
0x10d9   :  { %5670 = vmax.xlane.f32.xlu1 %v10872_v24  ;;  %v10875_v31 = vpop.f32.mrb[215].mxu1 }
0x10db   :  { %5664 = vmax.xlane.f32.xlu0 %v10870_v41 }
0x10dd   :  { %5666 = vmax.xlane.f32.xlu1 %v10875_v31 }
0x10de   :  { %v10879_v50 = vpop.f32.mrb[216].mxu1 }
0x10df   :  { %5676 = vmax.xlane.f32.xlu0 %v10879_v50  ;;  %v10882_v20 = vpop.f32.mrb[217].mxu1 }
0x10e0   :  { %v10884_v63 = vpop.f32.mrb[218].mxu1 }
0x10e1   :  { %5678 = vmax.xlane.f32.xlu1 %v10884_v63  ;;  %v10887_v1 = vpop.f32.mrb[219].mxu1 }
0x10e3   :  { %5672 = vmax.xlane.f32.xlu0 %v10882_v20 }
0x10e5   :  { %5674 = vmax.xlane.f32.xlu1 %v10887_v1 }
0x10e6   :  { %v10891_v57 = vpop.f32.mrb[220].mxu1 }
0x10e7   :  { %5684 = vmax.xlane.f32.xlu0 %v10891_v57  ;;  %v10894_v61 = vpop.f32.mrb[221].mxu1 }
0x10e8   :  { %v10896_v0 = vpop.f32.mrb[222].mxu1 }
0x10e9   :  { %5686 = vmax.xlane.f32.xlu1 %v10896_v0  ;;  %v10899_v30 = vpop.f32.mrb[223].mxu1 }
0x10eb   :  { %5680 = vmax.xlane.f32.xlu0 %v10894_v61 }
0x10ed   :  { %5682 = vmax.xlane.f32.xlu1 %v10899_v30 }
0x10ee   :  { %v10903_v15 = vpop.f32.mrb[224].mxu1 }
0x10ef   :  { %v10905_v36 = vpop.f32.mrb[225].mxu1 }
0x10f0   :  { %5688 = vmax.xlane.f32.xlu0 %v10905_v36  ;;  %v10908_v11 = vpop.f32.mrb[226].mxu1 }
0x10f1   :  { %v10910_v37 = vpop.f32.mrb[227].mxu1 }
0x10f2   :  { %5690 = vmax.xlane.f32.xlu1 %v10910_v37 }
0x10f4   :  { %5692 = vmax.xlane.f32.xlu0 %v10903_v15 }
0x10f6   :  { %5694 = vmax.xlane.f32.xlu1 %v10908_v11 }
0x1144   :  { %v5637_v47 = vpop.xlane.xlu0 %5636 }
0x1145   :  { %vm5698_vm0 = vcmp.eq.f32.partialorder %v10819_v21, %v5637_v47 }
0x1146   :  { %v10917_v27 = vsel %vm5698_vm0, %v11982_v32, 128  ;;  %v5639_v18 = vpop.xlane.xlu1 %5638 }
0x1147   :  { %vm5699_vm6 = vcmp.eq.f32.partialorder %v10824_v4, %v5639_v18  ;;  %v5789_v3 = vshra.s32 %v10917_v27, 16 }
0x1148   :  { %v10922_v19 = vsel %vm5699_vm6, %v11982_v32, 128  ;;  %v5633_v62 = vpop.xlane.xlu0 %5632 }
0x1149   :  { %v5803_v55 = vshra.s32 %v10922_v19, 16  ;;  %vm5696_vm7 = vcmp.eq.f32.partialorder %v10822_v29, %v5633_v62  ;;  %v10929_v23 = vcvt.s32.f32 %v5789_v3 }
0x114a   :  { %v10927_v51 = vsel %vm5696_vm7, %v11982_v32, 128  ;;  %v5635_v40 = vpop.xlane.xlu1 %5634 }
0x114b   :  { %v10931_v12 = vcvt.s32.f32 %v5803_v55  ;;  %v5761_v7 = vshra.s32 %v10927_v51, 16  ;;  %vm5697_vm8 = vcmp.eq.f32.partialorder %v10827_v52, %v5635_v40  ;;  %5792 = vmin.xlane.f32.xlu0 %v10929_v23 }
0x114c   :  { %v5645_v22 = vpop.xlane.xlu0 %5644  ;;  %v10939_v26 = vsel %vm5697_vm8, %v11982_v32, 128 }
0x114d   :  { %v10936_v58 = vcvt.s32.f32 %v5761_v7  ;;  %vm5702_vm9 = vcmp.eq.f32.partialorder %v10831_v16, %v5645_v22  ;;  %5806 = vmin.xlane.f32.xlu1 %v10931_v12  ;;  %v5775_v34 = vshra.s32 %v10939_v26, 16 }
0x114e   :  { %v10945_v53 = vsel %vm5702_vm9, %v11982_v32, 128  ;;  %v5647_v46 = vpop.xlane.xlu1 %5646 }
0x114f   :  { %v5845_v59 = vshra.s32 %v10945_v53, 16  ;;  %vm5703_vm10 = vcmp.eq.f32.partialorder %v10836_v54, %v5647_v46  ;;  %v10949_v44 = vcvt.s32.f32 %v5775_v34  ;;  %5764 = vmin.xlane.f32.xlu0 %v10936_v58 }
0x1150   :  { %v10952_v14 = vsel %vm5703_vm10, %v11982_v32, 128  ;;  %v5641_v38 = vpop.xlane.xlu0 %5640 }
0x1151   :  { %v10955_v2 = vcvt.s32.f32 %v5845_v59  ;;  %v5859_v35 = vshra.s32 %v10952_v14, 16  ;;  %vm5700_vm11 = vcmp.eq.f32.partialorder %v10834_v13, %v5641_v38  ;;  %5778 = vmin.xlane.f32.xlu1 %v10949_v44 }
0x1152   :  { %v5643_v45 = vpop.xlane.xlu1 %5642  ;;  %v10963_v56 = vsel %vm5700_vm11, %v11982_v32, 128 }
0x1153   :  { %v10960_v8 = vcvt.s32.f32 %v5859_v35  ;;  %vm5701_vm12 = vcmp.eq.f32.partialorder %v10839_v43, %v5643_v45  ;;  %v5817_v49 = vshra.s32 %v10963_v56, 16  ;;  %5848 = vmin.xlane.f32.xlu0 %v10955_v2 }
0x1154   :  { %v10968_v6 = vsel %vm5701_vm12, %v11982_v32, 128  ;;  %v5653_v60 = vpop.xlane.xlu0 %5652 }
0x1155   :  { %v5831_v10 = vshra.s32 %v10968_v6, 16  ;;  %vm5706_vm13 = vcmp.eq.f32.partialorder %v10843_v42, %v5653_v60  ;;  %v10973_v21 = vcvt.s32.f32 %v5817_v49  ;;  %5862 = vmin.xlane.f32.xlu1 %v10960_v8 }
0x1156   :  { %v10976_v29 = vsel %vm5706_vm13, %v11982_v32, 128  ;;  %v5655_v4 = vpop.xlane.xlu1 %5654 }
0x1157   :  { %v10979_v52 = vcvt.s32.f32 %v5831_v10  ;;  %v5901_v16 = vshra.s32 %v10976_v29, 16  ;;  %vm5707_vm14 = vcmp.eq.f32.partialorder %v10848_v25, %v5655_v4  ;;  %5820 = vmin.xlane.f32.xlu0 %v10973_v21 }
0x1158   :  { %v5649_v13 = vpop.xlane.xlu0 %5648  ;;  %v10987_v43 = vsel %vm5707_vm14, %v11982_v32, 128 }
0x1159   :  { %v10984_v54 = vcvt.s32.f32 %v5901_v16  ;;  %vm5704_vm15 = vcmp.eq.f32.partialorder %v10846_v28, %v5649_v13  ;;  %v5915_v42 = vshra.s32 %v10987_v43, 16  ;;  %5834 = vmin.xlane.f32.xlu1 %v10979_v52 }
0x115a   :  { %v10992_v47 = vsel %vm5704_vm15, %v11982_v32, 128  ;;  %v5651_v18 = vpop.xlane.xlu1 %5650 }
0x115b   :  { %v5873_v25 = vshra.s32 %v10992_v47, 16  ;;  %vm5705_vm1 = vcmp.eq.f32.partialorder %v10851_v9, %v5651_v18  ;;  %v10997_v3 = vcvt.s32.f32 %v5915_v42  ;;  %5904 = vmin.xlane.f32.xlu0 %v10984_v54 }
0x115c   :  { %v11000_v62 = vsel %vm5705_vm1, %v11982_v32, 128  ;;  %v5661_v28 = vpop.xlane.xlu0 %5660 }
0x115d   :  { %v11003_v55 = vcvt.s32.f32 %v5873_v25  ;;  %v5887_v40 = vshra.s32 %v11000_v62, 16  ;;  %vm5710_vm2 = vcmp.eq.f32.partialorder %v10855_v39, %v5661_v28  ;;  %5918 = vmin.xlane.f32.xlu1 %v10997_v3 }
0x115e   :  { %v5663_v7 = vpop.xlane.xlu1 %5662  ;;  %v11011_v9 = vsel %vm5710_vm2, %v11982_v32, 128 }
0x115f   :  { %v11008_v22 = vcvt.s32.f32 %v5887_v40  ;;  %vm5711_vm3 = vcmp.eq.f32.partialorder %v10860_v33, %v5663_v7  ;;  %v5957_v34 = vshra.s32 %v11011_v9, 16  ;;  %5876 = vmin.xlane.f32.xlu0 %v11003_v55 }
0x1160   :  { %v11016_v46 = vsel %vm5711_vm3, %v11982_v32, 128  ;;  %v5657_v59 = vpop.xlane.xlu0 %5656 }
0x1161   :  { %v5971_v39 = vshra.s32 %v11016_v46, 16  ;;  %vm5708_vm4 = vcmp.eq.f32.partialorder %v10858_v17, %v5657_v59  ;;  %v11021_v38 = vcvt.s32.f32 %v5957_v34  ;;  %5890 = vmin.xlane.f32.xlu1 %v11008_v22 }
0x1162   :  { %v11024_v35 = vsel %vm5708_vm4, %v11982_v32, 128  ;;  %v5659_v33 = vpop.xlane.xlu1 %5658 }
0x1163   :  { %v11027_v45 = vcvt.s32.f32 %v5971_v39  ;;  %v5929_v49 = vshra.s32 %v11024_v35, 16  ;;  %vm5709_vm5 = vcmp.eq.f32.partialorder %v10863_v5, %v5659_v33  ;;  %5960 = vmin.xlane.f32.xlu0 %v11021_v38 }
0x1164   :  { %v5669_v60 = vpop.xlane.xlu0 %5668  ;;  %v11035_v17 = vsel %vm5709_vm5, %v11982_v32, 128 }
0x1165   :  { %v11032_v10 = vcvt.s32.f32 %v5929_v49  ;;  %vm5714_vm0 = vcmp.eq.f32.partialorder %v10867_v48, %v5669_v60  ;;  %v5943_v4 = vshra.s32 %v11035_v17, 16  ;;  %5974 = vmin.xlane.f32.xlu1 %v11027_v45 }
0x1166   :  { %v11040_v16 = vsel %vm5714_vm0, %v11982_v32, 128  ;;  %v5671_v13 = vpop.xlane.xlu1 %5670 }
0x1167   :  { %v6013_v5 = vshra.s32 %v11040_v16, 16  ;;  %vm5715_vm6 = vcmp.eq.f32.partialorder %v10872_v24, %v5671_v13  ;;  %v11045_v42 = vcvt.s32.f32 %v5943_v4  ;;  %5932 = vmin.xlane.f32.xlu0 %v11032_v10 }
0x1168   :  { %v11048_v18 = vsel %vm5715_vm6, %v11982_v32, 128  ;;  %v5665_v48 = vpop.xlane.xlu0 %5664 }
0x1169   :  { %v11051_v25 = vcvt.s32.f32 %v6013_v5  ;;  %v6027_v28 = vshra.s32 %v11048_v18, 16  ;;  %vm5712_vm7 = vcmp.eq.f32.partialorder %v10870_v41, %v5665_v48  ;;  %5946 = vmin.xlane.f32.xlu1 %v11045_v42 }
0x116a   :  { %v5667_v40 = vpop.xlane.xlu1 %5666  ;;  %v11059_v24 = vsel %vm5712_vm7, %v11982_v32, 128 }
0x116b   :  { %v11056_v7 = vcvt.s32.f32 %v6027_v28  ;;  %vm5713_vm8 = vcmp.eq.f32.partialorder %v10875_v31, %v5667_v40  ;;  %v5985_v34 = vshra.s32 %v11059_v24, 16  ;;  %6016 = vmin.xlane.f32.xlu0 %v11051_v25 }
0x116c   :  { %v11064_v59 = vsel %vm5713_vm8, %v11982_v32, 128  ;;  %v5677_v39 = vpop.xlane.xlu0 %5676 }
0x116d   :  { %v5999_v41 = vshra.s32 %v11064_v59, 16  ;;  %vm5718_vm9 = vcmp.eq.f32.partialorder %v10879_v50, %v5677_v39  ;;  %v11069_v33 = vcvt.s32.f32 %v5985_v34  ;;  %6030 = vmin.xlane.f32.xlu1 %v11056_v7 }
0x116e   :  { %v11072_v49 = vsel %vm5718_vm9, %v11982_v32, 128  ;;  %v5679_v31 = vpop.xlane.xlu1 %5678 }
0x116f   :  { %v11075_v60 = vcvt.s32.f32 %v5999_v41  ;;  %v6069_v4 = vshra.s32 %v11072_v49, 16  ;;  %vm5719_vm10 = vcmp.eq.f32.partialorder %v10884_v63, %v5679_v31  ;;  %5988 = vmin.xlane.f32.xlu0 %v11069_v33 }
0x1170   :  { %v5673_v13 = vpop.xlane.xlu0 %5672  ;;  %v11083_v50 = vsel %vm5719_vm10, %v11982_v32, 128 }
0x1171   :  { %v11080_v5 = vcvt.s32.f32 %v6069_v4  ;;  %vm5716_vm11 = vcmp.eq.f32.partialorder %v10882_v20, %v5673_v13  ;;  %v6083_v48 = vshra.s32 %v11083_v50, 16  ;;  %6002 = vmin.xlane.f32.xlu1 %v11075_v60 }
0x1172   :  { %v11088_v28 = vsel %vm5716_vm11, %v11982_v32, 128  ;;  %v5675_v40 = vpop.xlane.xlu1 %5674 }
0x1173   :  { %v6041_v63 = vshra.s32 %v11088_v28, 16  ;;  %vm5717_vm12 = vcmp.eq.f32.partialorder %v10887_v1, %v5675_v40  ;;  %v11093_v34 = vcvt.s32.f32 %v6083_v48  ;;  %6072 = vmin.xlane.f32.xlu0 %v11080_v5 }
0x1174   :  { %v11096_v39 = vsel %vm5717_vm12, %v11982_v32, 128  ;;  %v5685_v20 = vpop.xlane.xlu0 %5684 }
0x1175   :  { %v11099_v41 = vcvt.s32.f32 %v6041_v63  ;;  %v6055_v31 = vshra.s32 %v11096_v39, 16  ;;  %vm5722_vm13 = vcmp.eq.f32.partialorder %v10891_v57, %v5685_v20  ;;  %6086 = vmin.xlane.f32.xlu1 %v11093_v34 }
0x1176   :  { %v5687_v4 = vpop.xlane.xlu1 %5686  ;;  %v11107_v1 = vsel %vm5722_vm13, %v11982_v32, 128 }
0x1177   :  { %11983 = vst [vmem:[#allocation82_spill] sm:$0xff] %v11099_v41  ;;  %v11104_v13 = vcvt.s32.f32 %v6055_v31  ;;  %11985 = vst [vmem:[#allocation84_spill] sm:$0xff] %v11107_v1  ;;  %vm5723_vm14 = vcmp.eq.f32.partialorder %v10896_v0, %v5687_v4  ;;  %v6125_v48 = vshra.s32 %v11107_v1, 16  ;;  %6044 = vmin.xlane.f32.xlu0 %v11099_v41 }
0x1178   :  { %v11112_v40 = vsel %vm5723_vm14, %v11982_v32, 128  ;;  %v5681_v63 = vpop.xlane.xlu0 %5680 }
0x1179   :  { %11984 = vst [vmem:[#allocation83_spill] sm:$0xff] %v11104_v13  ;;  %v6139_v57 = vshra.s32 %v11112_v40, 16  ;;  %vm5720_vm15 = vcmp.eq.f32.partialorder %v10894_v61, %v5681_v63  ;;  %v11117_v20 = vcvt.s32.f32 %v6125_v48  ;;  %6058 = vmin.xlane.f32.xlu1 %v11104_v13 }
0x117a   :  { %v11120_v31 = vsel %vm5720_vm15, %v11982_v32, 128  ;;  %v5683_v0 = vpop.xlane.xlu1 %5682 }
0x117b   :  { %11986 = vst [vmem:[#allocation38_spill] sm:$0xff] %v11120_v31  ;;  %v11123_v4 = vcvt.s32.f32 %v6139_v57  ;;  %v6097_v1 = vshra.s32 %v11120_v31, 16  ;;  %vm5721_vm1 = vcmp.eq.f32.partialorder %v10899_v30, %v5683_v0  ;;  %6128 = vmin.xlane.f32.xlu0 %v11117_v20 }
0x117c   :  { %v11131_v61 = vsel %vm5721_vm1, %v11982_v32, 128 }
0x117d   :  { %v11128_v41 = vcvt.s32.f32 %v6097_v1  ;;  %11988 = vst [vmem:[#allocation41_spill] sm:$0xff] %v11131_v61  ;;  %v5689_v48 = vpop.xlane.xlu0 %5688  ;;  %v6111_v63 = vshra.s32 %v11131_v61, 16  ;;  %6142 = vmin.xlane.f32.xlu1 %v11123_v4 }
0x117e   :  { %vm5724_vm2 = vcmp.eq.f32.partialorder %v10905_v36, %v5689_v48 }
0x117f   :  { %11987 = vst [vmem:[#allocation35_spill] sm:$0xff] %v11128_v41  ;;  %v11137_v57 = vsel %vm5724_vm2, %v11982_v32, 128  ;;  %v5691_v31 = vpop.xlane.xlu1 %5690  ;;  %v11139_v13 = vcvt.s32.f32 %v6111_v63  ;;  %6100 = vmin.xlane.f32.xlu0 %v11128_v41 }
0x1180   :  { %v6153_v30 = vshra.s32 %v11137_v57, 16  ;;  %vm5725_vm3 = vcmp.eq.f32.partialorder %v10910_v37, %v5691_v31 }
0x1181   :  { %v5693_v1 = vpop.xlane.xlu0 %5692  ;;  %v11147_v61 = vsel %vm5725_vm3, %v11982_v32, 128  ;;  %6114 = vmin.xlane.f32.xlu1 %v11139_v13 }
0x1182   :  { %v11144_v0 = vcvt.s32.f32 %v6153_v30  ;;  %vm5726_vm4 = vcmp.eq.f32.partialorder %v10903_v15, %v5693_v1  ;;  %v6167_v36 = vshra.s32 %v11147_v61, 16 }
0x1183   :  { %v11153_v48 = vsel %vm5726_vm4, %v11982_v32, 128  ;;  %v5695_v63 = vpop.xlane.xlu1 %5694 }
0x1184   :  { %11989 = vst [vmem:[#allocation39_spill] sm:$0xff] %v11144_v0  ;;  %v6181_v41 = vshra.s32 %v11153_v48, 16  ;;  %vm5727_vm5 = vcmp.eq.f32.partialorder %v10908_v11, %v5695_v63  ;;  %6156 = vmin.xlane.f32.xlu0 %v11144_v0  ;;  %v11158_v37 = vcvt.s32.f32 %v6167_v36  ;;  %v5788_v11 = vand.u32 65535, %v10917_v27 }
0x1185   :  { %v11161_v31 = vsel %vm5727_vm5, %v11982_v32, 128  ;;  %v5802_v36 = vand.u32 65535, %v10922_v19  ;;  %v5760_v32 = vand.u32 65535, %v10927_v51 }
0x1186   :  { %11990 = vst [vmem:[#allocation40_spill] sm:$0xff] %v11158_v37  ;;  %v11163_v15 = vcvt.s32.f32 %v6181_v41  ;;  %v6195_v30 = vshra.s32 %v11161_v31, 16  ;;  %6170 = vmin.xlane.f32.xlu1 %v11158_v37  ;;  %v5790_v63 = vcvt.s32.f32 %v5788_v11  ;;  %v5844_v11 = vand.u32 65535, %v10945_v53 }
0x1187   :  { %v5804_v41 = vcvt.s32.f32 %v5802_v36  ;;  %v5762_v19 = vcvt.s32.f32 %v5760_v32  ;;  %v5858_v36 = vand.u32 65535, %v10952_v14  ;;  %v5816_v32 = vand.u32 65535, %v10963_v56 }
0x1188   :  { %v11167_v1 = vcvt.s32.f32 %v6195_v30  ;;  %6184 = vmin.xlane.f32.xlu0 %v11163_v15  ;;  %v5774_v30 = vand.u32 65535, %v10939_v26  ;;  %v5830_v14 = vand.u32 65535, %v10968_v6  ;;  %v5900_v56 = vand.u32 65535, %v10976_v29 }
0x1189   :  { %v5914_v6 = vand.u32 65535, %v10987_v43  ;;  %v5872_v29 = vand.u32 65535, %v10992_v47  ;;  %v5886_v43 = vand.u32 65535, %v11000_v62  ;;  %v5956_v47 = vand.u32 65535, %v11011_v9 }
0x118a   :  { %11991 = vst [vmem:[#allocation36_spill] sm:$0xff] %v11167_v1  ;;  %6198 = vmin.xlane.f32.xlu1 %v11167_v1  ;;  %v5970_v62 = vand.u32 65535, %v11016_v46  ;;  %v5928_v9 = vand.u32 65535, %v11024_v35  ;;  %v5942_v46 = vand.u32 65535, %v11035_v17  ;;  %v6012_v35 = vand.u32 65535, %v11040_v16 }
0x118b   :  { %v6026_v17 = vand.u32 65535, %v11048_v18  ;;  %v5984_v16 = vand.u32 65535, %v11059_v24  ;;  %v5998_v18 = vand.u32 65535, %v11064_v59  ;;  %v6068_v24 = vand.u32 65535, %v11072_v49 }
0x118c   :  { %v6082_v59 = vand.u32 65535, %v11083_v50  ;;  %v6040_v49 = vand.u32 65535, %v11088_v28  ;;  %v6054_v50 = vand.u32 65535, %v11096_v39  ;;  %v6138_v39 = vand.u32 65535, %v11112_v40 }
0x11d8   :  { %v11174_v0 = vpop.xlane.xlu0 %5792 }
0x11d9   :  { %11992 = vst [vmem:[#allocation43_spill] sm:$0xff] %v11174_v0  ;;  %vm5794_vm0 = vcmp.eq.f32.partialorder %v10929_v23, %v11174_v0  ;;  %v5776_v23 = vcvt.s32.f32 %v5774_v30 }
0x11da   :  { %v11178_v37 = vpop.xlane.xlu1 %5806  ;;  %v5795_v1 = vsel %vm5794_vm0, %v5790_v63, inf }
0x11db   :  { %vm5808_vm6 = vcmp.eq.f32.partialorder %v10931_v12, %v11178_v37  ;;  %5796 = vmin.xlane.f32.xlu0 %v5795_v1  ;;  %v5846_v12 = vcvt.s32.f32 %v5844_v11 }
0x11dc   :  { %v5809_v27 = vsel %vm5808_vm6, %v5804_v41, inf  ;;  %v11184_v51 = vpop.xlane.xlu0 %5764 }
0x11dd   :  { %5810 = vmin.xlane.f32.xlu1 %v5809_v27  ;;  %vm5766_vm7 = vcmp.eq.f32.partialorder %v10936_v58, %v11184_v51  ;;  %v5860_v58 = vcvt.s32.f32 %v5858_v36 }
0x11de   :  { %v11189_v0 = vpop.xlane.xlu1 %5778  ;;  %v5767_v26 = vsel %vm5766_vm7, %v5762_v19, inf }
0x11df   :  { %vm5780_vm8 = vcmp.eq.f32.partialorder %v10949_v44, %v11189_v0  ;;  %5768 = vmin.xlane.f32.xlu0 %v5767_v26  ;;  %v5818_v44 = vcvt.s32.f32 %v5816_v32 }
0x11e0   :  { %v11194_v53 = vpop.xlane.xlu0 %5848  ;;  %v5781_v1 = vsel %vm5780_vm8, %v5776_v23, inf }
0x11e1   :  { %vm5850_vm9 = vcmp.eq.f32.partialorder %v10955_v2, %v11194_v53  ;;  %5782 = vmin.xlane.f32.xlu1 %v5781_v1  ;;  %v5832_v2 = vcvt.s32.f32 %v5830_v14 }
0x11e2   :  { %v11199_v63 = vpop.xlane.xlu1 %5862  ;;  %v5851_v41 = vsel %vm5850_vm9, %v5846_v12, inf }
0x11e3   :  { %vm5864_vm10 = vcmp.eq.f32.partialorder %v10960_v8, %v11199_v63  ;;  %5852 = vmin.xlane.f32.xlu0 %v5851_v41  ;;  %v5902_v8 = vcvt.s32.f32 %v5900_v56 }
0x11e4   :  { %v11204_v30 = vpop.xlane.xlu0 %5820  ;;  %v5865_v27 = vsel %vm5864_vm10, %v5860_v58, inf }
0x11e5   :  { %vm5822_vm11 = vcmp.eq.f32.partialorder %v10973_v21, %v11204_v30  ;;  %5866 = vmin.xlane.f32.xlu1 %v5865_v27  ;;  %v5916_v21 = vcvt.s32.f32 %v5914_v6 }
0x11e6   :  { %v11209_v19 = vpop.xlane.xlu1 %5834  ;;  %v5823_v11 = vsel %vm5822_vm11, %v5818_v44, inf }
0x11e7   :  { %vm5836_vm12 = vcmp.eq.f32.partialorder %v10979_v52, %v11209_v19  ;;  %5824 = vmin.xlane.f32.xlu0 %v5823_v11  ;;  %v5874_v52 = vcvt.s32.f32 %v5872_v29 }
0x11e8   :  { %v11214_v23 = vpop.xlane.xlu0 %5904  ;;  %v5837_v36 = vsel %vm5836_vm12, %v5832_v2, inf }
0x11e9   :  { %vm5906_vm13 = vcmp.eq.f32.partialorder %v10984_v54, %v11214_v23  ;;  %5838 = vmin.xlane.f32.xlu1 %v5837_v36  ;;  %v5888_v54 = vcvt.s32.f32 %v5886_v43 }
0x11ea   :  { %v11219_v26 = vpop.xlane.xlu1 %5918  ;;  %v5907_v12 = vsel %vm5906_vm13, %v5902_v8, inf }
0x11eb   :  { %vm5920_vm14 = vcmp.eq.f32.partialorder %v10997_v3, %v11219_v26  ;;  %5908 = vmin.xlane.f32.xlu0 %v5907_v12  ;;  %v5958_v3 = vcvt.s32.f32 %v5956_v47 }
0x11ec   :  { %v11224_v32 = vpop.xlane.xlu0 %5876  ;;  %v5921_v1 = vsel %vm5920_vm14, %v5916_v21, inf }
0x11ed   :  { %vm5878_vm15 = vcmp.eq.f32.partialorder %v11003_v55, %v11224_v32  ;;  %5922 = vmin.xlane.f32.xlu1 %v5921_v1  ;;  %v5972_v55 = vcvt.s32.f32 %v5970_v62 }
0x11ee   :  { %v11229_v58 = vpop.xlane.xlu1 %5890  ;;  %v5879_v14 = vsel %vm5878_vm15, %v5874_v52, inf }
0x11ef   :  { %vm5892_vm1 = vcmp.eq.f32.partialorder %v11008_v22, %v11229_v58  ;;  %5880 = vmin.xlane.f32.xlu0 %v5879_v14  ;;  %v5930_v22 = vcvt.s32.f32 %v5928_v9  ;;  %v11993_v9 = vld [vmem:[#allocation84_spill] sm:$0xff] }
0x11f0   :  { %v11234_v41 = vpop.xlane.xlu0 %5960  ;;  %v5893_v44 = vsel %vm5892_vm1, %v5888_v54, inf  ;;  %v6124_v28 = vand.u32 65535, %v11993_v9 }
0x11f1   :  { %vm5962_vm2 = vcmp.eq.f32.partialorder %v11021_v38, %v11234_v41  ;;  %5894 = vmin.xlane.f32.xlu1 %v5893_v44  ;;  %v5944_v38 = vcvt.s32.f32 %v5942_v46  ;;  %v11994_v46 = vld [vmem:[#allocation82_spill] sm:$0xff] }
0x11f2   :  { %v11239_v56 = vpop.xlane.xlu1 %5974  ;;  %v5963_v27 = vsel %vm5962_vm2, %v5958_v3, inf }
0x11f3   :  { %vm5976_vm3 = vcmp.eq.f32.partialorder %v11027_v45, %v11239_v56  ;;  %5964 = vmin.xlane.f32.xlu0 %v5963_v27  ;;  %v6014_v45 = vcvt.s32.f32 %v6012_v35  ;;  %v11995_v35 = vld [vmem:[#allocation83_spill] sm:$0xff] }
0x11f4   :  { %v11244_v2 = vpop.xlane.xlu0 %5932  ;;  %v5977_v6 = vsel %vm5976_vm3, %v5972_v55, inf }
0x11f5   :  { %vm5934_vm4 = vcmp.eq.f32.partialorder %v11032_v10, %v11244_v2  ;;  %5978 = vmin.xlane.f32.xlu1 %v5977_v6  ;;  %v6028_v10 = vcvt.s32.f32 %v6026_v17  ;;  %v11996_v6 = vld [vmem:[#allocation38_spill] sm:$0xff] }
0x11f6   :  { %v11249_v11 = vpop.xlane.xlu1 %5946  ;;  %v5935_v8 = vsel %vm5934_vm4, %v5930_v22, inf }
0x11f7   :  { %vm5948_vm5 = vcmp.eq.f32.partialorder %v11045_v42, %v11249_v11  ;;  %5936 = vmin.xlane.f32.xlu0 %v5935_v8  ;;  %v5986_v42 = vcvt.s32.f32 %v5984_v16  ;;  %v11997_v16 = vld [vmem:[#allocation41_spill] sm:$0xff] }
0x11f8   :  { %v11254_v29 = vpop.xlane.xlu0 %6016  ;;  %v5949_v36 = vsel %vm5948_vm5, %v5944_v38, inf  ;;  %v6096_v38 = vand.u32 65535, %v11996_v6  ;;  %v6110_v40 = vand.u32 65535, %v11997_v16  ;;  %v5785_v16 = vcvt.f32.s32 %v11189_v0 }
0x11f9   :  { %vm6018_vm0 = vcmp.eq.f32.partialorder %v11051_v25, %v11254_v29  ;;  %5950 = vmin.xlane.f32.xlu1 %v5949_v36  ;;  %v6000_v25 = vcvt.s32.f32 %v5998_v18 }
0x11fa   :  { %v11259_v21 = vpop.xlane.xlu1 %6030  ;;  %v6019_v43 = vsel %vm6018_vm0, %v6014_v45, inf  ;;  %v6140_v45 = vcvt.s32.f32 %v6138_v39  ;;  %v6098_v18 = vcvt.s32.f32 %v6096_v38  ;;  %v12002_v39 = vld [vmem:[#allocation43_spill] sm:$0xff] }
0x11fb   :  { %vm6032_vm6 = vcmp.eq.f32.partialorder %v11056_v7, %v11259_v21  ;;  %6020 = vmin.xlane.f32.xlu0 %v6019_v43  ;;  %v6070_v7 = vcvt.s32.f32 %v6068_v24  ;;  %v6152_v43 = vand.u32 65535, %v11137_v57  ;;  %v6180_v57 = vand.u32 65535, %v11153_v48 }
0x11fc   :  { %v11264_v12 = vpop.xlane.xlu0 %5988  ;;  %v6033_v52 = vsel %vm6032_vm6, %v6028_v10, inf }
0x11fd   :  { %vm5990_vm7 = vcmp.eq.f32.partialorder %v11069_v33, %v11264_v12  ;;  %6034 = vmin.xlane.f32.xlu1 %v6033_v52  ;;  %v6084_v33 = vcvt.s32.f32 %v6082_v59  ;;  %v11998_v52 = vld [vmem:[#allocation35_spill] sm:$0xff] }
0x11fe   :  { %v11269_v47 = vpop.xlane.xlu1 %6002  ;;  %v5991_v1 = vsel %vm5990_vm7, %v5986_v42, inf }
0x11ff   :  { %vm6004_vm8 = vcmp.eq.f32.partialorder %v11075_v60, %v11269_v47  ;;  %5992 = vmin.xlane.f32.xlu0 %v5991_v1  ;;  %v6042_v60 = vcvt.s32.f32 %v6040_v49  ;;  %v6166_v1 = vand.u32 65535, %v11147_v61  ;;  %v6182_v61 = vcvt.s32.f32 %v6180_v57 }
0x1200   :  { %v11274_v54 = vpop.xlane.xlu0 %6072  ;;  %v6005_v62 = vsel %vm6004_vm8, %v6000_v25, inf }
0x1201   :  { %vm6074_vm9 = vcmp.eq.f32.partialorder %v11080_v5, %v11274_v54  ;;  %6006 = vmin.xlane.f32.xlu1 %v6005_v62  ;;  %v6056_v5 = vcvt.s32.f32 %v6054_v50  ;;  %v11999_v62 = vld [vmem:[#allocation39_spill] sm:$0xff]  ;;  %v6168_v50 = vcvt.s32.f32 %v6166_v1  ;;  %v5869_v1 = vcvt.f32.s32 %v11199_v63 }
0x1202   :  { %v11279_v14 = vpop.xlane.xlu1 %6086  ;;  %v6075_v3 = vsel %vm6074_vm9, %v6070_v7, inf  ;;  %v5841_v63 = vcvt.f32.s32 %v11209_v19 }
0x1203   :  { %vm6088_vm10 = vcmp.eq.f32.partialorder %v11093_v34, %v11279_v14  ;;  %6076 = vmin.xlane.f32.xlu0 %v6075_v3  ;;  %v6126_v34 = vcvt.s32.f32 %v6124_v28  ;;  %v6194_v3 = vand.u32 65535, %v11161_v31  ;;  %v12001_v31 = vld [vmem:[#allocation36_spill] sm:$0xff] }
0x1204   :  { %v11284_v44 = vpop.xlane.xlu0 %6044  ;;  %v6089_v55 = vsel %vm6088_vm10, %v6084_v33, inf }
0x1205   :  { %vm6046_vm11 = vcmp.eq.f32.partialorder %v11994_v46, %v11284_v44  ;;  %6090 = vmin.xlane.f32.xlu1 %v6089_v55  ;;  %v6196_v55 = vcvt.s32.f32 %v6194_v3 }
0x1206   :  { %v11289_v27 = vpop.xlane.xlu1 %6058  ;;  %v6047_v22 = vsel %vm6046_vm11, %v6042_v60, inf }
0x1207   :  { %vm6060_vm12 = vcmp.eq.f32.partialorder %v11995_v35, %v11289_v27  ;;  %6048 = vmin.xlane.f32.xlu0 %v6047_v22  ;;  %v5799_v22 = vcvt.f32.s32 %v12002_v39  ;;  %v5813_v35 = vcvt.f32.s32 %v11178_v37  ;;  %v5786_v37 = vshll.u32 %v5785_v16, 16 }
0x1208   :  { %v11294_v17 = vpop.xlane.xlu0 %6128  ;;  %v6061_v8 = vsel %vm6060_vm12, %v6056_v5, inf }
0x1209   :  { %vm6130_vm13 = vcmp.eq.f32.partialorder %v11117_v20, %v11294_v17  ;;  %6062 = vmin.xlane.f32.xlu1 %v6061_v8  ;;  %v6112_v20 = vcvt.s32.f32 %v6110_v40  ;;  %v5800_v6 = vshll.u32 %v5799_v22, 16 }
0x120a   :  { %v11299_v36 = vpop.xlane.xlu1 %6142  ;;  %v6131_v10 = vsel %vm6130_vm13, %v6126_v34, inf }
0x120b   :  { %vm6144_vm14 = vcmp.eq.f32.partialorder %v11123_v4, %v11299_v36  ;;  %6132 = vmin.xlane.f32.xlu0 %v6131_v10  ;;  %v6154_v4 = vcvt.s32.f32 %v6152_v43 }
0x120c   :  { %v11304_v42 = vpop.xlane.xlu0 %6100  ;;  %v6145_v24 = vsel %vm6144_vm14, %v6140_v45, inf  ;;  %v5814_v45 = vshll.u32 %v5813_v35, 16 }
0x120d   :  { %vm6102_vm15 = vcmp.eq.f32.partialorder %v11998_v52, %v11304_v42  ;;  %6146 = vmin.xlane.f32.xlu1 %v6145_v24  ;;  %v5855_v52 = vcvt.f32.s32 %v11194_v53 }
0x120e   :  { %v11308_v25 = vpop.xlane.xlu1 %6114  ;;  %v6103_v59 = vsel %vm6102_vm15, %v6098_v18, inf }
0x120f   :  { %vm6116_vm1 = vcmp.eq.f32.partialorder %v11139_v13, %v11308_v25  ;;  %6104 = vmin.xlane.f32.xlu0 %v6103_v59  ;;  %v12000_v13 = vld [vmem:[#allocation40_spill] sm:$0xff]  ;;  %v5856_v3 = vshll.u32 %v5855_v52, 16 }
0x1210   :  { %v6117_v49 = vsel %vm6116_vm1, %v6112_v20, inf  ;;  %v12003_v20 = vld [vmem:[#allocation34_spill] sm:$0xff] }
0x1211   :  { %v11314_v7 = vpop.xlane.xlu0 %6156  ;;  %6118 = vmin.xlane.f32.xlu1 %v6117_v49 }
0x1212   :  { %vm6158_vm2 = vcmp.eq.f32.partialorder %v11999_v62, %v11314_v7 }
0x1213   :  { %v6159_v33 = vsel %vm6158_vm2, %v6154_v4, inf  ;;  %v11319_v60 = vpop.xlane.xlu1 %6170  ;;  %v7948_v4 = vmov 0.0  }
0x1214   :  { %6160 = vmin.xlane.f32.xlu0 %v6159_v33  ;;  %vm6172_vm3 = vcmp.eq.f32.partialorder %v12000_v13, %v11319_v60  ;;  %v5827_v33 = vcvt.f32.s32 %v11204_v30 }
0x1215   :  { %v11323_v9 = vpop.xlane.xlu0 %6184  ;;  %v6173_v48 = vsel %vm6172_vm3, %v6168_v50, inf }
0x1216   :  { %vm6186_vm4 = vcmp.eq.f32.partialorder %v11163_v15, %v11323_v9  ;;  %6174 = vmin.xlane.f32.xlu1 %v6173_v48  ;;  %v5771_v15 = vcvt.f32.s32 %v11184_v51  ;;  %v5828_v30 = vshll.u32 %v5827_v33, 16 }
0x1217   :  { %v6187_v28 = vsel %vm6186_vm4, %v6182_v61, inf  ;;  %v11327_v46 = vpop.xlane.xlu1 %6198 }
0x1218   :  { %6188 = vmin.xlane.f32.xlu0 %v6187_v28  ;;  %vm6200_vm5 = vcmp.eq.f32.partialorder %v12001_v31, %v11327_v46  ;;  %v5772_v24 = vshll.u32 %v5771_v15, 16  ;;  %v5870_v28 = vshll.u32 %v5869_v1, 16  ;;  %v5842_v15 = vshll.u32 %v5841_v63, 16 }
0x1219   :  { %v6201_v5 = vsel %vm6200_vm5, %v6196_v55, inf }
0x121a   :  { %6202 = vmin.xlane.f32.xlu1 %v6201_v5  ;;  %v5911_v5 = vcvt.f32.s32 %v11214_v23 }
0x121c   :  { %v5912_v16 = vshll.u32 %v5911_v5, 16 }
0x1268   :  { %v5797_v34 = vpop.xlane.xlu0 %5796 }
0x1269   :  { %v5798_v38 = vcvt.f32.s32 %v5797_v34 }
0x126a   :  { %v5811_v8 = vpop.xlane.xlu1 %5810 }
0x126b   :  { %v5812_v40 = vcvt.f32.s32 %v5811_v8  ;;  %v5801_v10 = vadd.s32 %v5800_v6, %v5798_v38  ;;  %v5925_v8 = vcvt.f32.s32 %v11219_v26 }
0x126c   :  { %v5769_v43 = vpop.xlane.xlu0 %5768 }
0x126d   :  { %v5815_v18 = vadd.s32 %v5814_v45, %v5812_v40  ;;  %vm6210_vm0 = vcmp.eq.s32.totalorder %v12003_v20, %v5801_v10  ;;  %v5770_v59 = vcvt.f32.s32 %v5769_v43  ;;  %v5883_v40 = vcvt.f32.s32 %v11224_v32 }
0x126e   :  { %v5783_v51 = vpop.xlane.xlu1 %5782  ;;  %v6704_v57 = vsel %vm6210_vm0, 1.0, %v7948_v4  ;;  %v5926_v1 = vshll.u32 %v5925_v8, 16 }
0x126f   :  { %vm6211_vm6 = vcmp.eq.s32.totalorder %v12003_v20, %v5815_v18  ;;  %v5773_v49 = vadd.s32 %v5772_v24, %v5770_v59  ;;  %v5784_v62 = vcvt.f32.s32 %v5783_v51  ;;  %v5897_v59 = vcvt.f32.s32 %v11229_v58 }
0x1270   :  { %v6705_v0 = vsel %vm6211_vm6, 1.0, %v7948_v4  ;;  %v5853_v53 = vpop.xlane.xlu0 %5852 }
0x1271   :  { %v6802_v50 = vpack.c.bf16 %v6705_v0, %v6704_v57  ;;  %vm6208_vm7 = vcmp.eq.s32.totalorder %v12003_v20, %v5773_v49  ;;  %v5787_v61 = vadd.s32 %v5786_v37, %v5784_v62  ;;  %v5854_v13 = vcvt.f32.s32 %v5853_v53 }
0x1272   :  { %v5867_v48 = vpop.xlane.xlu1 %5866  ;;  %v6702_v39 = vsel %vm6208_vm7, 1.0, %v7948_v4  ;;  %v5884_v57 = vshll.u32 %v5883_v40, 16  ;;  %v5967_v0 = vcvt.f32.s32 %v11234_v41 }
0x1273   :  { %6846 = vst [vmem:[%s11484_s9 + $0x8] sm:$0xff] %v6802_v50   ;;  %vm6209_vm8 = vcmp.eq.s32.totalorder %v12003_v20, %v5787_v61  ;;  %v5857_v55 = vadd.s32 %v5856_v3, %v5854_v13  ;;  %v5868_v31 = vcvt.f32.s32 %v5867_v48  ;;  %v5898_v3 = vshll.u32 %v5897_v59, 16 }
0x1274   :  { %v6703_v22 = vsel %vm6209_vm8, 1.0, %v7948_v4  ;;  %v5825_v35 = vpop.xlane.xlu0 %5824  ;;  %v5981_v13 = vcvt.f32.s32 %v11239_v56  ;;  %v5968_v48 = vshll.u32 %v5967_v0, 16 }
0x1275   :  { %v6799_v34 = vpack.c.bf16 %v6703_v22, %v6702_v39  ;;  %vm6214_vm9 = vcmp.eq.s32.totalorder %v12003_v20, %v5857_v55  ;;  %v5871_v19 = vadd.s32 %v5870_v28, %v5868_v31  ;;  %v5826_v6 = vcvt.f32.s32 %v5825_v35 }
0x1276   :  { %v5839_v38 = vpop.xlane.xlu1 %5838  ;;  %v6708_v10 = vsel %vm6214_vm9, 1.0, %v7948_v4  ;;  %v5939_v28 = vcvt.f32.s32 %v11244_v2  ;;  %v5953_v22 = vcvt.f32.s32 %v11249_v11 }
0x1277   :  { %6800 = vst [vmem:[%s11484_s9] sm:$0xff] %v6799_v34   ;;  %vm6215_vm10 = vcmp.eq.s32.totalorder %v12003_v20, %v5871_v19  ;;  %v5829_v23 = vadd.s32 %v5828_v30, %v5826_v6  ;;  %v5840_v45 = vcvt.f32.s32 %v5839_v38  ;;  %v5982_v34 = vshll.u32 %v5981_v13, 16 }
0x1278   :  { %v6709_v18 = vsel %vm6215_vm10, 1.0, %v7948_v4  ;;  %v5909_v43 = vpop.xlane.xlu0 %5908  ;;  %v5940_v6 = vshll.u32 %v5939_v28, 16  ;;  %v5954_v40 = vshll.u32 %v5953_v22, 16  ;;  %v6065_v22 = vcvt.f32.s32 %v11289_v27 }
0x1279   :  { %v6808_v24 = vpack.c.bf16 %v6709_v18, %v6708_v10  ;;  %vm6212_vm11 = vcmp.eq.s32.totalorder %v12003_v20, %v5829_v23  ;;  %v5843_v26 = vadd.s32 %v5842_v15, %v5840_v45  ;;  %v5910_v52 = vcvt.f32.s32 %v5909_v43 }
0x127a   :  { %v5923_v37 = vpop.xlane.xlu1 %5922  ;;  %v6706_v49 = vsel %vm6212_vm11, 1.0, %v7948_v4  ;;  %v6023_v15 = vcvt.f32.s32 %v11254_v29  ;;  %v6037_v18 = vcvt.f32.s32 %v11259_v21 }
0x127b   :  { %6848 = vst [vmem:[%s11484_s9 + $0x18] sm:$0xff] %v6808_v24   ;;  %vm6213_vm12 = vcmp.eq.s32.totalorder %v12003_v20, %v5843_v26  ;;  %v5913_v32 = vadd.s32 %v5912_v16, %v5910_v52  ;;  %v5924_v51 = vcvt.f32.s32 %v5923_v37  ;;  %v5995_v26 = vcvt.f32.s32 %v11264_v12 }
0x127c   :  { %v6707_v62 = vsel %vm6213_vm12, 1.0, %v7948_v4  ;;  %v5881_v33 = vpop.xlane.xlu0 %5880  ;;  %v6024_v24 = vshll.u32 %v6023_v15, 16  ;;  %v6038_v0 = vshll.u32 %v6037_v18, 16 }
0x127d   :  { %v6805_v50 = vpack.c.bf16 %v6707_v62, %v6706_v49  ;;  %vm6218_vm13 = vcmp.eq.s32.totalorder %v12003_v20, %v5913_v32  ;;  %v5927_v58 = vadd.s32 %v5926_v1, %v5924_v51  ;;  %v5882_v53 = vcvt.f32.s32 %v5881_v33 }
0x127e   :  { %v5895_v61 = vpop.xlane.xlu1 %5894  ;;  %v6712_v55 = vsel %vm6218_vm13, 1.0, %v7948_v4  ;;  %v6009_v51 = vcvt.f32.s32 %v11269_v47  ;;  %v5996_v62 = vshll.u32 %v5995_v26, 16  ;;  %v6079_v33 = vcvt.f32.s32 %v11274_v54 }
0x127f   :  { %6847 = vst [vmem:[%s11484_s9 + $0x10] sm:$0xff] %v6805_v50   ;;  %vm6219_vm14 = vcmp.eq.s32.totalorder %v12003_v20, %v5927_v58  ;;  %v5885_v41 = vadd.s32 %v5884_v57, %v5882_v53  ;;  %v5896_v63 = vcvt.f32.s32 %v5895_v61 }
0x1280   :  { %v6713_v31 = vsel %vm6219_vm14, 1.0, %v7948_v4  ;;  %v5965_v30 = vpop.xlane.xlu0 %5964  ;;  %v6010_v13 = vshll.u32 %v6009_v51, 16  ;;  %v6080_v28 = vshll.u32 %v6079_v33, 16 }
0x1281   :  { %v6814_v5 = vpack.c.bf16 %v6713_v31, %v6712_v55  ;;  %vm6216_vm15 = vcmp.eq.s32.totalorder %v12003_v20, %v5885_v41  ;;  %v5899_v56 = vadd.s32 %v5898_v3, %v5896_v63  ;;  %v5966_v39 = vcvt.f32.s32 %v5965_v30 }
0x1282   :  { %v5979_v35 = vpop.xlane.xlu1 %5978  ;;  %v6710_v38 = vsel %vm6216_vm15, 1.0, %v7948_v4  ;;  %v6093_v63 = vcvt.f32.s32 %v11279_v14  ;;  %v6051_v55 = vcvt.f32.s32 %v11284_v44 }
0x1283   :  { %6850 = vst [vmem:[%s11484_s9 + $0x28] sm:$0xff] %v6814_v5   ;;  %vm6217_vm1 = vcmp.eq.s32.totalorder %v12003_v20, %v5899_v56  ;;  %v5969_v2 = vadd.s32 %v5968_v48, %v5966_v39  ;;  %v5980_v19 = vcvt.f32.s32 %v5979_v35 }
0x1284   :  { %v6711_v8 = vsel %vm6217_vm1, 1.0, %v7948_v4  ;;  %v5937_v23 = vpop.xlane.xlu0 %5936 }
0x1285   :  { %v6811_v45 = vpack.c.bf16 %v6711_v8, %v6710_v38  ;;  %vm6222_vm2 = vcmp.eq.s32.totalorder %v12003_v20, %v5969_v2  ;;  %v5983_v11 = vadd.s32 %v5982_v34, %v5980_v19  ;;  %v5938_v16 = vcvt.f32.s32 %v5937_v23 }
0x1286   :  { %v5951_v10 = vpop.xlane.xlu1 %5950  ;;  %v6716_v52 = vsel %vm6222_vm2, 1.0, %v7948_v4  ;;  %v6094_v34 = vshll.u32 %v6093_v63, 16  ;;  %v6052_v19 = vshll.u32 %v6051_v55, 16 }
0x1287   :  { %6849 = vst [vmem:[%s11484_s9 + $0x20] sm:$0xff] %v6811_v45   ;;  %vm6223_vm3 = vcmp.eq.s32.totalorder %v12003_v20, %v5983_v11  ;;  %v5941_v29 = vadd.s32 %v5940_v6, %v5938_v16  ;;  %v5952_v43 = vcvt.f32.s32 %v5951_v10  ;;  %v6135_v6 = vcvt.f32.s32 %v11294_v17 }
0x1288   :  { %v6717_v59 = vsel %vm6223_vm3, 1.0, %v7948_v4  ;;  %v6021_v37 = vpop.xlane.xlu0 %6020  ;;  %v6066_v11 = vshll.u32 %v6065_v22, 16 }
0x1289   :  { %v6820_v1 = vpack.c.bf16 %v6717_v59, %v6716_v52  ;;  %vm6220_vm4 = vcmp.eq.s32.totalorder %v12003_v20, %v5941_v29  ;;  %v5955_v21 = vadd.s32 %v5954_v40, %v5952_v43  ;;  %v6022_v32 = vcvt.f32.s32 %v6021_v37 }
0x128a   :  { %v6035_v57 = vpop.xlane.xlu1 %6034  ;;  %v6714_v50 = vsel %vm6220_vm4, 1.0, %v7948_v4  ;;  %v6149_v40 = vcvt.f32.s32 %v11299_v36  ;;  %v6136_v18 = vshll.u32 %v6135_v6, 16  ;;  %v6107_v29 = vcvt.f32.s32 %v11304_v42 }
0x128b   :  { %6852 = vst [vmem:[%s11484_s9 + $0x38] sm:$0xff] %v6820_v1   ;;  %vm6221_vm5 = vcmp.eq.s32.totalorder %v12003_v20, %v5955_v21  ;;  %v6025_v12 = vadd.s32 %v6024_v24, %v6022_v32  ;;  %v6036_v49 = vcvt.f32.s32 %v6035_v57  ;;  %v6121_v37 = vcvt.f32.s32 %v11308_v25 }
0x128c   :  { %v6715_v58 = vsel %vm6221_vm5, 1.0, %v7948_v4  ;;  %v5993_v53 = vpop.xlane.xlu0 %5992  ;;  %v6150_v21 = vshll.u32 %v6149_v40, 16  ;;  %v6108_v51 = vshll.u32 %v6107_v29, 16  ;;  %v6163_v57 = vcvt.f32.s32 %v11314_v7 }
0x128d   :  { %v6817_v3 = vpack.c.bf16 %v6715_v58, %v6714_v50  ;;  %vm6226_vm0 = vcmp.eq.s32.totalorder %v12003_v20, %v6025_v12  ;;  %v6039_v47 = vadd.s32 %v6038_v0, %v6036_v49  ;;  %v5994_v61 = vcvt.f32.s32 %v5993_v53 }
0x128e   :  { %v6007_v41 = vpop.xlane.xlu1 %6006  ;;  %v6720_v31 = vsel %vm6226_vm0, 1.0, %v7948_v4  ;;  %v6122_v50 = vshll.u32 %v6121_v37, 16  ;;  %v6177_v53 = vcvt.f32.s32 %v11319_v60 }
0x128f   :  { %6851 = vst [vmem:[%s11484_s9 + $0x30] sm:$0xff] %v6817_v3   ;;  %vm6227_vm6 = vcmp.eq.s32.totalorder %v12003_v20, %v6039_v47  ;;  %v5997_v54 = vadd.s32 %v5996_v62, %v5994_v61  ;;  %v6008_v48 = vcvt.f32.s32 %v6007_v41  ;;  %v6164_v47 = vshll.u32 %v6163_v57, 16 }
0x1290   :  { %v6721_v30 = vsel %vm6227_vm6, 1.0, %v7948_v4  ;;  %v6077_v5 = vpop.xlane.xlu0 %6076  ;;  %v6191_v61 = vcvt.f32.s32 %v11323_v9  ;;  %v6205_v9 = vcvt.f32.s32 %v11327_v46 }
0x1291   :  { %v6826_v56 = vpack.c.bf16 %v6721_v30, %v6720_v31  ;;  %vm6224_vm7 = vcmp.eq.s32.totalorder %v12003_v20, %v5997_v54  ;;  %v6011_v14 = vadd.s32 %v6010_v13, %v6008_v48  ;;  %v6078_v39 = vcvt.f32.s32 %v6077_v5 }
0x1292   :  { %v6091_v35 = vpop.xlane.xlu1 %6090  ;;  %v6718_v15 = vsel %vm6224_vm7, 1.0, %v7948_v4 }
0x1293   :  { %6854 = vst [vmem:[%s11484_s9 + $0x48] sm:$0xff] %v6826_v56   ;;  %vm6225_vm8 = vcmp.eq.s32.totalorder %v12003_v20, %v6011_v14  ;;  %v6081_v44 = vadd.s32 %v6080_v28, %v6078_v39  ;;  %v6092_v2 = vcvt.f32.s32 %v6091_v35  ;;  %v6178_v28 = vshll.u32 %v6177_v53, 16 }
0x1294   :  { %v6719_v38 = vsel %vm6225_vm8, 1.0, %v7948_v4  ;;  %v6049_v8 = vpop.xlane.xlu0 %6048  ;;  %v6192_v39 = vshll.u32 %v6191_v61, 16 }
0x1295   :  { %v6823_v23 = vpack.c.bf16 %v6719_v38, %v6718_v15  ;;  %vm6230_vm9 = vcmp.eq.s32.totalorder %v12003_v20, %v6081_v44  ;;  %v6095_v27 = vadd.s32 %v6094_v34, %v6092_v2  ;;  %v6050_v45 = vcvt.f32.s32 %v6049_v8 }
0x1296   :  { %v6063_v16 = vpop.xlane.xlu1 %6062  ;;  %v6724_v43 = vsel %vm6230_vm9, 1.0, %v7948_v4 }
0x1297   :  { %6853 = vst [vmem:[%s11484_s9 + $0x40] sm:$0xff] %v6823_v23   ;;  %vm6231_vm10 = vcmp.eq.s32.totalorder %v12003_v20, %v6095_v27  ;;  %v6053_v17 = vadd.s32 %v6052_v19, %v6050_v45  ;;  %v6064_v10 = vcvt.f32.s32 %v6063_v16  ;;  %v6206_v19 = vshll.u32 %v6205_v9, 16 }
0x1298   :  { %v6725_v24 = vsel %vm6231_vm10, 1.0, %v7948_v4  ;;  %v6133_v26 = vpop.xlane.xlu0 %6132 }
0x1299   :  { %v6832_v52 = vpack.c.bf16 %v6725_v24, %v6724_v43  ;;  %vm6228_vm11 = vcmp.eq.s32.totalorder %v12003_v20, %v6053_v17  ;;  %v6067_v36 = vadd.s32 %v6066_v11, %v6064_v10  ;;  %v6134_v59 = vcvt.f32.s32 %v6133_v26 }
0x129a   :  { %v6147_v1 = vpop.xlane.xlu1 %6146  ;;  %v6722_v0 = vsel %vm6228_vm11, 1.0, %v7948_v4 }
0x129b   :  { %6856 = vst [vmem:[%s11484_s9 + $0x58] sm:$0xff] %v6832_v52   ;;  %vm6229_vm12 = vcmp.eq.s32.totalorder %v12003_v20, %v6067_v36  ;;  %v6137_v42 = vadd.s32 %v6136_v18, %v6134_v59  ;;  %v6148_v32 = vcvt.f32.s32 %v6147_v1 }
0x129c   :  { %v6723_v12 = vsel %vm6229_vm12, 1.0, %v7948_v4  ;;  %v6105_v49 = vpop.xlane.xlu0 %6104 }
0x129d   :  { %v6829_v62 = vpack.c.bf16 %v6723_v12, %v6722_v0  ;;  %vm6234_vm13 = vcmp.eq.s32.totalorder %v12003_v20, %v6137_v42  ;;  %v6151_v25 = vadd.s32 %v6150_v21, %v6148_v32  ;;  %v6106_v33 = vcvt.f32.s32 %v6105_v49 }
0x129e   :  { %v6119_v58 = vpop.xlane.xlu1 %6118  ;;  %v6728_v13 = vsel %vm6234_vm13, 1.0, %v7948_v4 }
0x129f   :  { %6855 = vst [vmem:[%s11484_s9 + $0x50] sm:$0xff] %v6829_v62   ;;  %vm6235_vm14 = vcmp.eq.s32.totalorder %v12003_v20, %v6151_v25  ;;  %v6109_v7 = vadd.s32 %v6108_v51, %v6106_v33  ;;  %v6120_v3 = vcvt.f32.s32 %v6119_v58 }
0x12a0   :  { %v6729_v41 = vsel %vm6235_vm14, 1.0, %v7948_v4 }
0x12a1   :  { %v6161_v63 = vpop.xlane.xlu0 %6160  ;;  %v6838_v54 = vpack.c.bf16 %v6729_v41, %v6728_v13  ;;  %vm6232_vm15 = vcmp.eq.s32.totalorder %v12003_v20, %v6109_v7  ;;  %v6123_v60 = vadd.s32 %v6122_v50, %v6120_v3 }
0x12a2   :  { %v6162_v48 = vcvt.f32.s32 %v6161_v63  ;;  %v6726_v30 = vsel %vm6232_vm15, 1.0, %v7948_v4 }
0x12a3   :  { %6858 = vst [vmem:[%s11484_s9 + $0x68] sm:$0xff] %v6838_v54   ;;  %vm6233_vm1 = vcmp.eq.s32.totalorder %v12003_v20, %v6123_v60  ;;  %v6175_v31 = vpop.xlane.xlu1 %6174 }
0x12a4   :  { %v6165_v55 = vadd.s32 %v6164_v47, %v6162_v48  ;;  %v6727_v5 = vsel %vm6233_vm1, 1.0, %v7948_v4  ;;  %v6176_v56 = vcvt.f32.s32 %v6175_v31 }
0x12a5   :  { %v6189_v14 = vpop.xlane.xlu0 %6188  ;;  %v6835_v22 = vpack.c.bf16 %v6727_v5, %v6726_v30 }
0x12a6   :  { %v6190_v35 = vcvt.f32.s32 %v6189_v14  ;;  %vm6236_vm2 = vcmp.eq.s32.totalorder %v12003_v20, %v6165_v55  ;;  %v6179_v34 = vadd.s32 %v6178_v28, %v6176_v56 }
0x12a7   :  { %6857 = vst [vmem:[%s11484_s9 + $0x60] sm:$0xff] %v6835_v22   ;;  %v6203_v2 = vpop.xlane.xlu1 %6202  ;;  %v6730_v6 = vsel %vm6236_vm2, 1.0, %v7948_v4 }
0x12a8   :  { %v6193_v44 = vadd.s32 %v6192_v39, %v6190_v35  ;;  %vm6237_vm3 = vcmp.eq.s32.totalorder %v12003_v20, %v6179_v34  ;;  %v6204_v46 = vcvt.f32.s32 %v6203_v2 }
0x12a9   :  { %v6731_v15 = vsel %vm6237_vm3, 1.0, %v7948_v4 }
0x12aa   :  { %v6841_v38 = vpack.c.bf16 %v6731_v15, %v6730_v6  ;;  %vm6238_vm4 = vcmp.eq.s32.totalorder %v12003_v20, %v6193_v44  ;;  %v6207_v8 = vadd.s32 %v6206_v19, %v6204_v46 }
0x12ab   :  { %v6732_v23 = vsel %vm6238_vm4, 1.0, %v7948_v4 }
0x12ac   :  { %6859 = vst [vmem:[%s11484_s9 + $0x70] sm:$0xff] %v6841_v38   ;;  %vm6239_vm5 = vcmp.eq.s32.totalorder %v12003_v20, %v6207_v8 }
0x12ad   :  { %v6733_v27 = vsel %vm6239_vm5, 1.0, %v7948_v4 }
0x12ae   :  { %v6844_v45 = vpack.c.bf16 %v6733_v27, %v6732_v23 }
0x12b0   :  { %6860 = vst [vmem:[%s11484_s9 + $0x78] sm:$0xff] %v6844_v45  }

</bundles_post_ra>
